<compile_context>
chip_gen: v7x
topology: tpu7x:2x2x1
jax: 0.10.0
libtpu: 0.0.40
codegen_flags: <defaults>
</compile_context>

<pallas_src>
import jax
import jax.numpy as jnp
from jax.experimental import pallas as pl
from jax.experimental.pallas import tpu as pltpu


_LN_EPS = 1e-5


def _round_up(x, m):
    return (x + m - 1) // m * m


# ---------------------------------------------------------------------------
# Fused postprocess shared by both kernels.
# ---------------------------------------------------------------------------

def _erf(x):
    # Abramowitz & Stegun 7.1.26 polynomial, |err| <= 1.5e-7 in f32.  Used so
    # the exact-GELU path only needs exp / mul / add / select (all guaranteed
    # Mosaic primitives).
    p = jnp.float32(0.3275911)
    a1 = jnp.float32(0.254829592)
    a2 = jnp.float32(-0.284496736)
    a3 = jnp.float32(1.421413741)
    a4 = jnp.float32(-1.453152027)
    a5 = jnp.float32(1.061405429)
    ax = jnp.abs(x)
    t = 1.0 / (1.0 + p * ax)
    poly = ((((a5 * t + a4) * t + a3) * t + a2) * t + a1) * t
    e = 1.0 - poly * jnp.exp(-ax * ax)
    return jnp.where(x >= 0, e, -e)


def _gelu_exact(x):
    # torch.nn.GELU() default = exact erf formulation.
    return x * jnp.float32(0.5) * (1.0 + _erf(x * jnp.float32(0.7071067811865476)))


def _wgt_gelu_layernorm(x, wgt, gamma, beta):
    x = x * wgt                                   # use_wgt = True
    # stack([embed], -2).mean(-2) over a single idx group == identity.
    # Dropout is identity in eval mode.
    x = _gelu_exact(x)
    e = x.shape[-1]
    inv_e = jnp.float32(1.0 / e)
    mean = jnp.sum(x, axis=-1, keepdims=True) * inv_e
    xc = x - mean
    var = jnp.sum(xc * xc, axis=-1, keepdims=True) * inv_e
    y = xc * jax.lax.rsqrt(var + jnp.float32(_LN_EPS))
    return y * gamma + beta


# ---------------------------------------------------------------------------
# FAST PATH: VMEM-resident (hi, lo) table, one-hot MXU gather.
# ---------------------------------------------------------------------------

def _expander_vmem_kernel(idx_ref,      # (tile_n, 1) int32  VMEM block
                          wgt_ref,      # (tile_n, 1) f32    VMEM block
                          gamma_ref,    # (1, E) f32
                          beta_ref,     # (1, E) f32
                          thi_ref,      # (Vp, E) bf16, resident across grid
                          tlo_ref,      # (Vp, E) bf16, resident across grid
                          out_ref):     # (tile_n, E) f32
    tile_n = idx_ref.shape[0]
    vp = thi_ref.shape[0]
    # One-hot gather on the MXU: exactly one 1.0 per row, hi/lo bf16 split
    # keeps the gathered row exact to ~4e-6 relative.
    lane = jax.lax.broadcasted_iota(jnp.int32, (tile_n, vp), 1)
    onehot = (idx_ref[...] == lane).astype(jnp.bfloat16)
    gathered = (jnp.dot(onehot, thi_ref[...], preferred_element_type=jnp.float32)
                + jnp.dot(onehot, tlo_ref[...], preferred_element_type=jnp.float32))
    out_ref[...] = _wgt_gelu_layernorm(
        gathered, wgt_ref[...], gamma_ref[...], beta_ref[...])


# ---------------------------------------------------------------------------
# FALLBACK: HBM table, per-row DMA gather double-buffered across grid steps.
# ---------------------------------------------------------------------------

def _expander_hbm_kernel(idx_ref,       # (Np,) int32 in SMEM (scalar prefetch)
                         wgt_ref,       # (tile_n, 1) f32
                         gamma_ref,     # (1, E) f32
                         beta_ref,      # (1, E) f32
                         table_hbm,     # (V, E) f32, raw HBM ref (pl.ANY)
                         out_ref,       # (tile_n, E) f32
                         gather_buf,    # (2, tile_n, E) f32 VMEM scratch
                         dma_sem):      # DMA semaphores, shape (2,)
    n_rows = gather_buf.shape[1]
    step = pl.program_id(0)
    n_steps = pl.num_programs(0)
    slot = jax.lax.rem(step, 2)

    def issue_gather(s, slot_):
        base = s * n_rows

        def body(r, carry):
            row = idx_ref[base + r]
            pltpu.make_async_copy(
                table_hbm.at[pl.ds(row, 1)],
                gather_buf.at[slot_, pl.ds(r, 1)],
                dma_sem.at[slot_],
            ).start()
            return carry

        # Unrolled so descriptor pushes pack into the vector-misc slot.
        jax.lax.fori_loop(0, n_rows, body, 0, unroll=8)

    @pl.when(step == 0)
    def _():
        issue_gather(0, 0)            # prime slot 0

    # ONE aggregate wait: the DMA semaphore counts bytes; the n_rows per-row
    # copies into this slot sum to exactly one slot's worth.
    pltpu.make_async_copy(
        gather_buf.at[slot], gather_buf.at[slot], dma_sem.at[slot]
    ).wait()

    # Prefetch the next step's rows into the other slot; overlaps the compute
    # below (grid axis is 'arbitrary' -> steps run sequentially).
    @pl.when(step + 1 < n_steps)
    def _():
        issue_gather(step + 1, 1 - slot)

    out_ref[...] = _wgt_gelu_layernorm(
        gather_buf[slot], wgt_ref[...], gamma_ref[...], beta_ref[...])


# ---------------------------------------------------------------------------
# Wrapper (Expander_Layer.forward, eval mode).
# ---------------------------------------------------------------------------

def expander_forward(holder, wgt, table, gamma, beta, *, tile_n=512,
                     onehot_max_vocab=4096,
                     table_vmem_max_bytes=32 * 1024 * 1024):
    """holder: (B, L) int, wgt: (B, L) float, table: (V, E), gamma/beta: (E,).

    Returns ('output_name_nnlvl', {'holder': holder, 'info': (B, L, E) f32}).
    """
    B, L = holder.shape
    V, E = table.shape
    N = B * L

    # TODO(synk): torch.nn.Embedding raises on out-of-range indices; here we
    # clamp (silently) so the gather stays in bounds.
    idx = jnp.clip(holder.reshape(N).astype(jnp.int32), 0, V - 1)
    w = wgt.reshape(N, 1).astype(jnp.float32)

    tile_n = max(8, min(tile_n, _round_up(N, 8)))
    n_pad = (-N) % tile_n
    if n_pad:
        idx = jnp.concatenate([idx, jnp.zeros((n_pad,), jnp.int32)])
        w = jnp.concatenate([w, jnp.zeros((n_pad, 1), jnp.float32)])
    Np = N + n_pad
    grid = (Np // tile_n,)

    gamma2d = gamma.reshape(1, E).astype(jnp.float32)
    beta2d = beta.reshape(1, E).astype(jnp.float32)
    table_f32 = table.astype(jnp.float32)

    resident_table_bytes = 2 * _round_up(V, 128) * E * 2   # hi + lo in bf16
    use_fast = (V <= onehot_max_vocab and
                resident_table_bytes <= table_vmem_max_bytes)

    if use_fast:
        # --- FAST PATH: VMEM-resident table, MXU one-hot gather -------------
        Vp = _round_up(V, 128)
        t_pad = jnp.zeros((Vp, E), jnp.float32).at[:V].set(table_f32)
        t_hi = t_pad.astype(jnp.bfloat16)
        t_lo = (t_pad - t_hi.astype(jnp.float32)).astype(jnp.bfloat16)

        vmem_budget = (2 * resident_table_bytes          # hi/lo (double-buffered)
                       + 2 * tile_n * E * 4              # out blocks
                       + 4 * tile_n * 128 * 4            # idx + wgt blocks (lane pad)
                       + 2 * tile_n * Vp * 2             # one-hot temporaries
                       + (8 << 20))                      # headroom
        vmem_limit = int(min(vmem_budget, 48 << 20))     # v7x-safe cap
        # TODO(synk): on v7x, pltpu.VMEM_SHARED could hold one table copy for
        # both TensorCores instead of one per core.

        out = pl.pallas_call(
            _expander_vmem_kernel,
            out_shape=jax.ShapeDtypeStruct((Np, E), jnp.float32),
            grid=grid,
            in_specs=[
                pl.BlockSpec((tile_n, 1), lambda i: (i, 0)),   # idx
                pl.BlockSpec((tile_n, 1), lambda i: (i, 0)),   # wgt
                pl.BlockSpec((1, E), lambda i: (0, 0)),        # gamma
                pl.BlockSpec((1, E), lambda i: (0, 0)),        # beta
                pl.BlockSpec((Vp, E), lambda i: (0, 0)),       # table hi (resident)
                pl.BlockSpec((Vp, E), lambda i: (0, 0)),       # table lo (resident)
            ],
            out_specs=pl.BlockSpec((tile_n, E), lambda i: (i, 0)),
            compiler_params=pltpu.CompilerParams(
                dimension_semantics=("parallel",),   # v7x: shard tiles over 2 TCs
                vmem_limit_bytes=vmem_limit,
            ),
        )(idx.reshape(Np, 1), w, gamma2d, beta2d, t_hi, t_lo)
    else:
        # --- FALLBACK: HBM table, double-buffered per-row DMA gather --------
        # TODO(synk): scalar-prefetched idx pads SMEM to next_pow2(4*Np) bytes;
        # for very large B*L switch idx to a per-step SMEM BlockSpec tile.
        # TODO(synk): for v7x, add an explicit leading 'parallel' core axis of
        # size 2 so both TensorCores issue gather DMAs.
        vmem_limit = int(min(2 * 2 * tile_n * E * 4       # gather_buf slots (x2 safety)
                             + 2 * tile_n * E * 4         # out blocks
                             + 4 * tile_n * 128 * 4       # wgt blocks
                             + (8 << 20), 48 << 20))
        out = pl.pallas_call(
            _expander_hbm_kernel,
            out_shape=jax.ShapeDtypeStruct((Np, E), jnp.float32),
            grid_spec=pltpu.PrefetchScalarGridSpec(
                num_scalar_prefetch=1,                     # idx -> SMEM
                grid=grid,
                in_specs=[
                    pl.BlockSpec((tile_n, 1), lambda i, idx_ref: (i, 0)),  # wgt
                    pl.BlockSpec((1, E), lambda i, idx_ref: (0, 0)),       # gamma
                    pl.BlockSpec((1, E), lambda i, idx_ref: (0, 0)),       # beta
                    pl.BlockSpec(memory_space=pl.ANY),                     # table (HBM)
                ],
                out_specs=pl.BlockSpec((tile_n, E), lambda i, idx_ref: (i, 0)),
                scratch_shapes=[
                    pltpu.VMEM((2, tile_n, E), jnp.float32),   # double-buffered gather
                    pltpu.SemaphoreType.DMA((2,)),             # one sem per slot
                ],
            ),
            compiler_params=pltpu.CompilerParams(
                # 'arbitrary': the manual cross-step double-buffer needs
                # sequential grid steps.
                dimension_semantics=("arbitrary",),
                vmem_limit_bytes=vmem_limit,
            ),
        )(idx, w, gamma2d, beta2d, table_f32)

    info = out[:N].reshape(B, L, E)
    return "output_name_nnlvl", {"holder": holder, "info": info}


# ---------------------------------------------------------------------------
# Pure-JAX reference (same eval-mode semantics as the torch module).
# ---------------------------------------------------------------------------

def _reference(holder, wgt, table, gamma, beta):
    emb = table[holder]                               # embedding gather
    emb = emb * wgt[..., None]                        # use_wgt
    emb = jax.nn.gelu(emb, approximate=False)         # dropout(eval)=id, GELU
    mean = emb.mean(-1, keepdims=True)
    var = ((emb - mean) ** 2).mean(-1, keepdims=True)
    return (emb - mean) * jax.lax.rsqrt(var + _LN_EPS) * gamma + beta


if __name__ == "__main__":
    # Small deterministic example consistent with the module.
    B, L = 8, 128        # holder shape -> N = 1024 tokens (2 grid steps)
    V, E = 1000, 128     # vocab size, embed/output size (lane-dense E)

    key = jax.random.PRNGKey(0)
    k_idx, k_wgt, k_tab = jax.random.split(key, 3)

    holder = jax.random.randint(k_idx, (B, L), 0, V, dtype=jnp.int32)
    wgt = jax.random.uniform(k_wgt, (B, L), dtype=jnp.float32)
    table = jax.random.normal(k_tab, (V, E), dtype=jnp.float32)
    gamma = jnp.ones((E,), jnp.float32)      # LayerNorm weight init
    beta = jnp.zeros((E,), jnp.float32)      # LayerNorm bias init

    # TODO(synk): torch.nn.Dropout is identity in eval mode; training-mode
    # dropout (stateful PRNG masking) is not reproduced here.

    name, out_dict = expander_forward(holder, wgt, table, gamma, beta)
    info = jax.block_until_ready(out_dict["info"])
    assert name == "output_name_nnlvl"
    assert info.shape == (B, L, E)

    ref = _reference(holder, wgt, table, gamma, beta)
    max_err = float(jnp.max(jnp.abs(info - ref)))
    assert max_err < 1e-3, f"mismatch vs reference: {max_err}"

    print("KERNEL_OK")
</pallas_src>

<mosaic_0001>
module attributes {stable_mosaic.version = 11 : i64} {
  func.func @_expander_vmem_kernel(%arg0: i32, %arg1: memref<512x1xi32, #tpu.memory_space<vmem>>, %arg2: memref<512x1xf32, #tpu.memory_space<vmem>>, %arg3: memref<1x128xf32, #tpu.memory_space<vmem>>, %arg4: memref<1x128xf32, #tpu.memory_space<vmem>>, %arg5: memref<1024x128xbf16, #tpu.memory_space<vmem>>, %arg6: memref<1024x128xbf16, #tpu.memory_space<vmem>>, %arg7: memref<512x128xf32, #tpu.memory_space<vmem>>) attributes {dimension_semantics = [#tpu.dimension_semantics<parallel>], iteration_bounds = array<i64: 2>, scalar_prefetch = 0 : i64, scratch_operands = 0 : i64, tpu.core_type = #tpu.core_type<tc>, window_params = [{transform_indices = @transform_0, window_bounds = array<i64: 512, 1>}, {transform_indices = @transform_1, window_bounds = array<i64: 512, 1>}, {pipeline_mode = #tpu.pipeline_mode<synchronous>, transform_indices = @transform_2, window_bounds = array<i64: 1, 128>}, {pipeline_mode = #tpu.pipeline_mode<synchronous>, transform_indices = @transform_3, window_bounds = array<i64: 1, 128>}, {pipeline_mode = #tpu.pipeline_mode<synchronous>, transform_indices = @transform_4, window_bounds = array<i64: 1024, 128>}, {pipeline_mode = #tpu.pipeline_mode<synchronous>, transform_indices = @transform_5, window_bounds = array<i64: 1024, 128>}, {transform_indices = @transform_6, window_bounds = array<i64: 512, 128>}]} {
    %0 = tpu.iota {dimensions = array<i32: 1>} : vector<512x1024xi32>
    %c0 = arith.constant 0 : index
    %c0_0 = arith.constant 0 : index
    %1 = vector.load %arg1[%c0, %c0_0] : memref<512x1xi32, #tpu.memory_space<vmem>>, vector<512x1xi32>
    %2 = vector.broadcast %1 : vector<512x1xi32> to vector<512x1024xi32>
    %3 = arith.cmpi eq, %2, %0 : vector<512x1024xi32>
    %4 = arith.extui %3 : vector<512x1024xi1> to vector<512x1024xi32>
    %5 = arith.sitofp %4 : vector<512x1024xi32> to vector<512x1024xf32>
    %6 = arith.truncf %5 : vector<512x1024xf32> to vector<512x1024xbf16>
    %c0_1 = arith.constant 0 : index
    %c0_2 = arith.constant 0 : index
    %7 = vector.load %arg5[%c0_1, %c0_2] : memref<1024x128xbf16, #tpu.memory_space<vmem>>, vector<1024x128xbf16>
    %cst = arith.constant dense<0.000000e+00> : vector<512x128xf32>
    %8 = tpu.matmul %6, %7, %cst {dimension_numbers = #tpu.dot_dimension_numbers<[1], [0], [0], [1], [0, 0, 1, 1], [], []>} : vector<512x1024xbf16>, vector<1024x128xbf16>, vector<512x128xf32> -> vector<512x128xf32>
    %c0_3 = arith.constant 0 : index
    %c0_4 = arith.constant 0 : index
    %9 = vector.load %arg6[%c0_3, %c0_4] : memref<1024x128xbf16, #tpu.memory_space<vmem>>, vector<1024x128xbf16>
    %cst_5 = arith.constant dense<0.000000e+00> : vector<512x128xf32>
    %10 = tpu.matmul %6, %9, %cst_5 {dimension_numbers = #tpu.dot_dimension_numbers<[1], [0], [0], [1], [0, 0, 1, 1], [], []>} : vector<512x1024xbf16>, vector<1024x128xbf16>, vector<512x128xf32> -> vector<512x128xf32>
    %11 = arith.addf %8, %10 : vector<512x128xf32>
    %c0_6 = arith.constant 0 : index
    %c0_7 = arith.constant 0 : index
    %12 = vector.load %arg2[%c0_6, %c0_7] : memref<512x1xf32, #tpu.memory_space<vmem>>, vector<512x1xf32>
    %c0_8 = arith.constant 0 : index
    %c0_9 = arith.constant 0 : index
    %13 = vector.load %arg3[%c0_8, %c0_9] : memref<1x128xf32, #tpu.memory_space<vmem>>, vector<1x128xf32>
    %c0_10 = arith.constant 0 : index
    %c0_11 = arith.constant 0 : index
    %14 = vector.load %arg4[%c0_10, %c0_11] : memref<1x128xf32, #tpu.memory_space<vmem>>, vector<1x128xf32>
    %15 = vector.broadcast %12 : vector<512x1xf32> to vector<512x128xf32>
    %16 = arith.mulf %11, %15 : vector<512x128xf32>
    %cst_12 = arith.constant 5.000000e-01 : f32
    %17 = vector.broadcast %cst_12 : f32 to vector<512x128xf32>
    %18 = arith.mulf %16, %17 : vector<512x128xf32>
    %cst_13 = arith.constant 0.707106769 : f32
    %19 = vector.broadcast %cst_13 : f32 to vector<512x128xf32>
    %20 = arith.mulf %16, %19 : vector<512x128xf32>
    %21 = math.absf %20 : vector<512x128xf32>
    %cst_14 = arith.constant 0.327591091 : f32
    %22 = vector.broadcast %cst_14 : f32 to vector<512x128xf32>
    %23 = arith.mulf %22, %21 : vector<512x128xf32>
    %cst_15 = arith.constant 1.000000e+00 : f32
    %24 = vector.broadcast %cst_15 : f32 to vector<512x128xf32>
    %25 = arith.addf %24, %23 : vector<512x128xf32>
    %cst_16 = arith.constant 1.000000e+00 : f32
    %26 = vector.broadcast %cst_16 : f32 to vector<512x128xf32>
    %27 = arith.divf %26, %25 : vector<512x128xf32>
    %cst_17 = arith.constant 1.06140542 : f32
    %28 = vector.broadcast %cst_17 : f32 to vector<512x128xf32>
    %29 = arith.mulf %28, %27 : vector<512x128xf32>
    %cst_18 = arith.constant -1.45315206 : f32
    %30 = vector.broadcast %cst_18 : f32 to vector<512x128xf32>
    %31 = arith.addf %29, %30 : vector<512x128xf32>
    %32 = arith.mulf %31, %27 : vector<512x128xf32>
    %cst_19 = arith.constant 1.42141378 : f32
    %33 = vector.broadcast %cst_19 : f32 to vector<512x128xf32>
    %34 = arith.addf %32, %33 : vector<512x128xf32>
    %35 = arith.mulf %34, %27 : vector<512x128xf32>
    %cst_20 = arith.constant -0.284496725 : f32
    %36 = vector.broadcast %cst_20 : f32 to vector<512x128xf32>
    %37 = arith.addf %35, %36 : vector<512x128xf32>
    %38 = arith.mulf %37, %27 : vector<512x128xf32>
    %cst_21 = arith.constant 0.254829586 : f32
    %39 = vector.broadcast %cst_21 : f32 to vector<512x128xf32>
    %40 = arith.addf %38, %39 : vector<512x128xf32>
    %41 = arith.mulf %40, %27 : vector<512x128xf32>
    %cst_22 = arith.constant 0.000000e+00 : f32
    %42 = vector.broadcast %cst_22 : f32 to vector<512x128xf32>
    %43 = arith.subf %42, %21 : vector<512x128xf32>
    %44 = arith.mulf %43, %21 : vector<512x128xf32>
    %45 = math.exp %44 : vector<512x128xf32>
    %46 = arith.mulf %41, %45 : vector<512x128xf32>
    %cst_23 = arith.constant 1.000000e+00 : f32
    %47 = vector.broadcast %cst_23 : f32 to vector<512x128xf32>
    %48 = arith.subf %47, %46 : vector<512x128xf32>
    %cst_24 = arith.constant 0.000000e+00 : f32
    %49 = vector.broadcast %cst_24 : f32 to vector<512x128xf32>
    %50 = arith.cmpf oge, %20, %49 : vector<512x128xf32>
    %cst_25 = arith.constant 0.000000e+00 : f32
    %51 = vector.broadcast %cst_25 : f32 to vector<512x128xf32>
    %52 = arith.subf %51, %48 : vector<512x128xf32>
    %53 = arith.select %50, %48, %52 : vector<512x128xi1>, vector<512x128xf32>
    %cst_26 = arith.constant 1.000000e+00 : f32
    %54 = vector.broadcast %cst_26 : f32 to vector<512x128xf32>
    %55 = arith.addf %54, %53 : vector<512x128xf32>
    %56 = arith.mulf %18, %55 : vector<512x128xf32>
    %cst_27 = arith.constant dense<0.000000e+00> : vector<512xf32>
    %57 = vector.multi_reduction <add>, %56, %cst_27 [1] : vector<512x128xf32> to vector<512xf32>
    %58 = vector.shape_cast %57 : vector<512xf32> to vector<512x1xf32>
    %cst_28 = arith.constant 7.812500e-03 : f32
    %59 = vector.broadcast %cst_28 : f32 to vector<512x1xf32>
    %60 = arith.mulf %58, %59 : vector<512x1xf32>
    %61 = vector.broadcast %60 : vector<512x1xf32> to vector<512x128xf32>
    %62 = arith.subf %56, %61 : vector<512x128xf32>
    %63 = arith.mulf %62, %62 : vector<512x128xf32>
    %cst_29 = arith.constant dense<0.000000e+00> : vector<512xf32>
    %64 = vector.multi_reduction <add>, %63, %cst_29 [1] : vector<512x128xf32> to vector<512xf32>
    %65 = vector.shape_cast %64 : vector<512xf32> to vector<512x1xf32>
    %cst_30 = arith.constant 7.812500e-03 : f32
    %66 = vector.broadcast %cst_30 : f32 to vector<512x1xf32>
    %67 = arith.mulf %65, %66 : vector<512x1xf32>
    %cst_31 = arith.constant 9.99999974E-6 : f32
    %68 = vector.broadcast %cst_31 : f32 to vector<512x1xf32>
    %69 = arith.addf %67, %68 : vector<512x1xf32>
    %70 = math.rsqrt %69 : vector<512x1xf32>
    %71 = vector.broadcast %70 : vector<512x1xf32> to vector<512x128xf32>
    %72 = arith.mulf %62, %71 : vector<512x128xf32>
    %73 = vector.broadcast %13 : vector<1x128xf32> to vector<512x128xf32>
    %74 = arith.mulf %72, %73 : vector<512x128xf32>
    %75 = vector.broadcast %14 : vector<1x128xf32> to vector<512x128xf32>
    %76 = arith.addf %74, %75 : vector<512x128xf32>
    %c0_32 = arith.constant 0 : index
    %c0_33 = arith.constant 0 : index
    %77 = vector.load %arg7[%c0_32, %c0_33] : memref<512x128xf32, #tpu.memory_space<vmem>>, vector<512x128xf32>
    tpu.vector_store %arg7[%c0_32, %c0_33], %76 {strides = array<i32>} : memref<512x128xf32, #tpu.memory_space<vmem>>, vector<512x128xf32>,
    return
  }
  func.func @transform_0(%arg0: i32) -> (i32, i32) {
    %c0_i32 = arith.constant 0 : i32
    %c0_i32_0 = arith.constant 0 : i32
    return %arg0, %c0_i32 : i32, i32
  }
  func.func @transform_1(%arg0: i32) -> (i32, i32) {
    %c0_i32 = arith.constant 0 : i32
    %c0_i32_0 = arith.constant 0 : i32
    return %arg0, %c0_i32 : i32, i32
  }
  func.func @transform_2(%arg0: i32) -> (i32, i32) {
    %c0_i32 = arith.constant 0 : i32
    %c0_i32_0 = arith.constant 0 : i32
    %c0_i32_1 = arith.constant 0 : i32
    return %c0_i32, %c0_i32_0 : i32, i32
  }
  func.func @transform_3(%arg0: i32) -> (i32, i32) {
    %c0_i32 = arith.constant 0 : i32
    %c0_i32_0 = arith.constant 0 : i32
    %c0_i32_1 = arith.constant 0 : i32
    return %c0_i32, %c0_i32_0 : i32, i32
  }
  func.func @transform_4(%arg0: i32) -> (i32, i32) {
    %c0_i32 = arith.constant 0 : i32
    %c0_i32_0 = arith.constant 0 : i32
    %c0_i32_1 = arith.constant 0 : i32
    return %c0_i32, %c0_i32_0 : i32, i32
  }
  func.func @transform_5(%arg0: i32) -> (i32, i32) {
    %c0_i32 = arith.constant 0 : i32
    %c0_i32_0 = arith.constant 0 : i32
    %c0_i32_1 = arith.constant 0 : i32
    return %c0_i32, %c0_i32_0 : i32, i32
  }
  func.func @transform_6(%arg0: i32) -> (i32, i32) {
    %c0_i32 = arith.constant 0 : i32
    %c0_i32_0 = arith.constant 0 : i32
    return %arg0, %c0_i32 : i32, i32
  }
}

</mosaic_0001>

<bundles_post_ra>
// kernel: tpu_custom_call.1
= control target key start
LH: loop header
LB: loop body
LE: loop exit
PB: predicated region body
PF: predicated region fallthrough
CT: control target
= control target key end

     0   :  { %11 = vsyncpa [#allocation3], 0  ;;  %s17241_s0 = inlined_call_operand.vmem [shape: s32[1024,1], index: 0, kind: input, shape index: {}]   ;;  %s17242_s1 = inlined_call_operand.vmem [shape: f32[1024,1], index: 1, kind: input, shape index: {}]   ;;  %s17243_s2 = inlined_call_operand.vmem [shape: f32[1,128], index: 2, kind: input, shape index: {}]   ;;  %s17244_s3 = inlined_call_operand.vmem [shape: f32[1,128], index: 3, kind: input, shape index: {}]   ;;  %s17245_s4 = inlined_call_operand.vmem [shape: bf16[1024,128], index: 4, kind: input, shape index: {}]   ;;  %s17246_s5 = inlined_call_operand.vmem [shape: bf16[1024,128], index: 5, kind: input, shape index: {}]   ;;  %s17247_s6 = inlined_call_operand.hbm [shape: f32[1024,128], index: 6, kind: output, shape index: {}]  }
   0x1   :  { %13 = vsyncpa [#allocation3 + $0x1], 0  ;;  %s12019_s21 = smov 0   ;;  %s12021_s22 = smov 0  }
   0x2   :  { %s12023_s23 = smov 0   ;;  %s12025_s24 = smov 0  }
   0x3 LB: > { %s12040_s25 = sadd.s32 4294967295, %s11977_s24   ;;  %s8843_s26 = sadd.s32 4294967294, %s11977_s24   ;;  %s11977_s24 = sphi %s12025_s24, %s17852_s24   ;;  %s11973_s23 = sphi %s12023_s23, %s17851_s23   ;;  %s11969_s22 = sphi %s12021_s22, %s17850_s22   ;;  %s11965_s21 = sphi %s12019_s21, %s17849_s21  }
   0x4   : > { %s12044_s27 = sadd.s32 1, %s11977_s24   ;;  %s162_s28 = sadd.s32 1, %s11973_s23 }
   0x5   : > { %s159_s29 = ssub.s32 %s11977_s24, %s12044_s27  ;;  %p172_p0 = scmp.ne.s32.totalorder %s11973_s23, %s11969_s22 }
   0x6   : > { %p160_p1 = scmp.eq.s32.totalorder %s159_s29, 0  ;;  %p173_p2 = scmp.eq.s32.totalorder %s12040_s25, 1 }
   0x7   : > { %p178_p3 = scmp.ne.s32.totalorder %s11969_s22, %s11965_s21  ;;  %p179_p4 = scmp.eq.s32.totalorder %s8843_s26, 1 }
   0x8   : > { %s12055_s30 = scalar_select %p160_p1, %s11973_s23, %s162_s28  }
   0x9   : > { %p12057_p5 = por %p173_p2, %p172_p0  ;;  %p12061_p6 = por %p179_p4, %p178_p3 }
   0xa   : > { %p8846_p7 = scmp.ge.s32.totalorder %s11977_s24, 1  ;;  %p227_p8 = scmp.lt.s32.totalorder %s11977_s24, 3 }
   0xc   : > { %p228_p9 = pnand %p8846_p7, %p227_p8 }
   0xe   : > { %231 = sbr.rel (%p228_p9) target bundleno = 1973 (0x7b5), region = 44 }
  0x15   : > { %s8848_s9 = sshll.u32 %s12040_s25, 6  ;;  %v17248_v0 = vmov 0   ;;  %v11401_v1 = vld [vmem:[%s17246_s5] sm:$0xff]   ;;  %v11403_v3 = vld [vmem:[%s17246_s5 + $0x8] sm:$0xff]   ;;  %v11405_v7 = vld [vmem:[%s17246_s5 + $0x10] sm:$0xff]   ;;  %s10523_s15 = sshll.u32 %s12040_s25, 13 }
  0x16   : > { %11400 = vset.pattern.permute.xlu1 %v17248_v0  ;;  %11399 = vset.pattern.permute.xlu0 %v17248_v0  ;;  %p263_p10 = scmp.lt.s32.totalorder %s8848_s9, 127  ;;  %v11402_v2 = vld [vmem:[%s17245_s4] sm:$0xff]   ;;  %v11404_v4 = vld [vmem:[%s17245_s4 + $0x8] sm:$0xff]   ;;  %v11406_v10 = vld [vmem:[%s17245_s4 + $0x10] sm:$0xff]  }
  0x17   : > { %2973 = vmatprep.subr.bf16.mxu1 %v17248_v0  ;;  %4513 = vmatprep.subr.bf16.mxu0 %v17248_v0  ;;  %v11407_v17 = vld [vmem:[%s17246_s5 + $0x18] sm:$0xff]   ;;  %v11409_v19 = vld [vmem:[%s17246_s5 + $0x20] sm:$0xff]   ;;  %v11411_v24 = vld [vmem:[%s17246_s5 + $0x28] sm:$0xff]  }
  0x18   : > { %s17854_s9 = smov (!%p263_p10, %s8848_s9), 127  ;;  %2974 = vmatpush1.bf16.msra.mxu1 %v11401_v1  ;;  %4514 = vmatpush1.bf16.msra.mxu0 %v11402_v2  ;;  %v11408_v18 = vld [vmem:[%s17245_s4 + $0x18] sm:$0xff]   ;;  %v11410_v22 = vld [vmem:[%s17245_s4 + $0x20] sm:$0xff]   ;;  %v11412_v26 = vld [vmem:[%s17245_s4 + $0x28] sm:$0xff]  }
  0x19   : > { %2975 = vmatprep.subr.bf16.mxu1 %v17248_v0  ;;  %s8849_s16 = sshll.u32 %s17854_s9, 3  ;;  %4515 = vmatprep.subr.bf16.mxu0 %v17248_v0  ;;  %v11413_v27 = vld [vmem:[%s17246_s5 + $0x30] sm:$0xff]   ;;  %v11415_v32 = vld [vmem:[%s17246_s5 + $0x38] sm:$0xff]   ;;  %v11417_v35 = vld [vmem:[%s17246_s5 + $0x40] sm:$0xff]  }
  0x1a   : > { %s12094_s26 = scalar_lea.vmem %s17241_s0, %s8849_s16  ;;  %v11414_v30 = vld [vmem:[%s17245_s4 + $0x30] sm:$0xff]   ;;  %v11416_v34 = vld [vmem:[%s17245_s4 + $0x38] sm:$0xff]   ;;  %v11418_v38 = vld [vmem:[%s17245_s4 + $0x40] sm:$0xff]   ;;  %s12279_s19 = scalar_lea.vmem %s17242_s1, %s8849_s16 }
  0x1b   : > { %v287_v5 = vld [vmem:[%s12094_s26 + $0x10] sm:$0xff]  ;;  %v285_v6 = vld [vmem:[%s12094_s26] sm:$0xff]  ;;  %v288_v8 = vld [vmem:[%s12094_s26 + $0x18] sm:$0xff]  ;;  %s259_s16 = sand.u32 1, %s11969_s22  }
  0x1c   : > { %2976 = vmatpush1.bf16.msra.mxu1 %v11403_v3  ;;  %356 = vperm.xlu1 %11400, %v287_v5   ;;  %v286_v9 = vld [vmem:[%s12094_s26 + $0x8] sm:$0xff]  ;;  %v289_v12 = vld [vmem:[%s12094_s26 + $0x20] sm:$0xff]  ;;  %v292_v13 = vld [vmem:[%s12094_s26 + $0x38] sm:$0xff]  ;;  %s8847_s28 = sshll.u32 %s259_s16, 9  ;;  %s17200_s25 = scalar_lea.sflag [#allocation3], %s259_s16 }
  0x1d   : > { %350 = vperm.xlu0 %11399, %v285_v6   ;;  %4516 = vmatpush1.bf16.msra.mxu0 %v11404_v4  ;;  %v290_v11 = vld [vmem:[%s12094_s26 + $0x28] sm:$0xff]  ;;  %v291_v14 = vld [vmem:[%s12094_s26 + $0x30] sm:$0xff]  ;;  %v293_v16 = vld [vmem:[%s12094_s26 + $0x40] sm:$0xff]  ;;  %s16778_s11 = scalar_lea.vmem [#allocation2], %s8847_s28  ;;  %s11981_s28 = smov [#allocation2]  }
  0x1e   : > { %2977 = vmatprep.subr.bf16.mxu1 %v17248_v0  ;;  %4517 = vmatprep.subr.bf16.mxu0 %v17248_v0  ;;  %v294_v15 = vld [vmem:[%s12094_s26 + $0x48] sm:$0xff]  ;;  %v296_v20 = vld [vmem:[%s12094_s26 + $0x58] sm:$0xff]  ;;  %v295_v21 = vld [vmem:[%s12094_s26 + $0x50] sm:$0xff]  ;;  %s8769_s17 = sshll.u32 %s16778_s11, 4  ;;  %s11919_s29 = sshll.u32 %s11981_s28, 4  ;;  %s17193_s17 = int_to_ptr.vmem [resolvable:$true] %s8769_s17  ;;  %s11920_s29 = int_to_ptr.vmem [resolvable:$false] %s11919_s29 }
  0x1f   : > { %v298_v23 = vld [vmem:[%s12094_s26 + $0x68] sm:$0xff]  ;;  %v297_v25 = vld [vmem:[%s12094_s26 + $0x60] sm:$0xff]  ;;  %v300_v28 = vld [vmem:[%s12094_s26 + $0x78] sm:$0xff]  ;;  %s11915_s20 = scalar_lea.vmem %s17193_s17, 8192  ;;  %s11921_s10 = scalar_lea.vmem %s11920_s29, 16384 }
  0x20   : > { %2978 = vmatpush1.bf16.msra.mxu1 %v11405_v7  ;;  %359 = vperm.xlu1 %11400, %v288_v8   ;;  %v299_v29 = vld [vmem:[%s12094_s26 + $0x70] sm:$0xff]  ;;  %v302_v31 = vld [vmem:[%s12094_s26 + $0x88] sm:$0xff]  ;;  %v301_v33 = vld [vmem:[%s12094_s26 + $0x80] sm:$0xff]  ;;  %p11916_p11 = scmp.ne.s32.totalorder %s17193_s17, %s11915_s20  ;;  %p11922_p0 = scmp.lt.s32.totalorder %s17193_s17, %s11920_s29 }
  0x21   : > { %353 = vperm.xlu0 %11399, %v286_v9   ;;  %4518 = vmatpush1.bf16.msra.mxu0 %v11406_v10  ;;  %v304_v36 = vld [vmem:[%s12094_s26 + $0x98] sm:$0xff]  ;;  %v303_v37 = vld [vmem:[%s12094_s26 + $0x90] sm:$0xff]  ;;  %v306_v39 = vld [vmem:[%s12094_s26 + $0xa8] sm:$0xff]  ;;  %p11923_p1 = scmp.lt.s32.totalorder %s11921_s10, %s11915_s20 }
  0x22   : > { %2979 = vmatprep.subr.bf16.mxu1 %v17248_v0  ;;  %4519 = vmatprep.subr.bf16.mxu0 %v17248_v0  ;;  %v11419_v40 = vld [vmem:[%s17246_s5 + $0x48] sm:$0xff]   ;;  %v305_v41 = vld [vmem:[%s12094_s26 + $0xa0] sm:$0xff]  ;;  %v11421_v43 = vld [vmem:[%s17246_s5 + $0x50] sm:$0xff]   ;;  %p11917_p12 = pnand %p11916_p11, %p12057_p5 }
  0x23   : > { %v11420_v42 = vld [vmem:[%s17245_s4 + $0x48] sm:$0xff]   ;;  %v308_v44 = vld [vmem:[%s12094_s26 + $0xb8] sm:$0xff]  ;;  %v307_v45 = vld [vmem:[%s12094_s26 + $0xb0] sm:$0xff]  ;;  %p11924_p2 = por %p11923_p1, %p11922_p0 }
  0x24   : > { %365 = vperm.xlu1 %11400, %v290_v11   ;;  %2980 = vmatpush1.bf16.msra.mxu1 %v11407_v17  ;;  %v11422_v46 = vld [vmem:[%s17245_s4 + $0x50] sm:$0xff]   ;;  %v310_v47 = vld [vmem:[%s12094_s26 + $0xc8] sm:$0xff]  ;;  %v11423_v48 = vld [vmem:[%s17246_s5 + $0x58] sm:$0xff]   ;;  %p11918_p13 = pneg %p11917_p12 }
  0x25   : > { %362 = vperm.xlu0 %11399, %v289_v12   ;;  %4520 = vmatpush1.bf16.msra.mxu0 %v11408_v18  ;;  %v309_v49 = vld [vmem:[%s12094_s26 + $0xc0] sm:$0xff]  ;;  %v11424_v50 = vld [vmem:[%s17245_s4 + $0x58] sm:$0xff]   ;;  %v311_v53 = vld [vmem:[%s12094_s26 + $0xd0] sm:$0xff] }
  0x26   : > { %2981 = vmatprep.subr.bf16.mxu1 %v17248_v0  ;;  %4521 = vmatprep.subr.bf16.mxu0 %v17248_v0  ;;  %v11425_v51 = vld [vmem:[%s17246_s5 + $0x60] sm:$0xff]   ;;  %v312_v52 = vld [vmem:[%s12094_s26 + $0xd8] sm:$0xff]  ;;  %v11427_v55 = vld [vmem:[%s17246_s5 + $0x68] sm:$0xff]   ;;  %p11925_p3 = pnand %p11924_p2, %p11918_p13 }
  0x27   : > { %v11426_v54 = vld [vmem:[%s17245_s4 + $0x60] sm:$0xff]   ;;  %v314_v56 = vld [vmem:[%s12094_s26 + $0xe8] sm:$0xff]  ;;  %v316_v59 = vld [vmem:[%s12094_s26 + $0xf8] sm:$0xff] }
  0x28   : > { %371 = vperm.xlu1 %11400, %v292_v13   ;;  %2982 = vmatpush1.bf16.msra.mxu1 %v11409_v19  ;;  %v313_v57 = vld [vmem:[%s12094_s26 + $0xe0] sm:$0xff]  ;;  %v11428_v58 = vld [vmem:[%s17245_s4 + $0x68] sm:$0xff]   ;;  %v11429_v60 = vld [vmem:[%s17246_s5 + $0x70] sm:$0xff]  }
  0x29   : > { %368 = vperm.xlu0 %11399, %v291_v14   ;;  %4522 = vmatpush1.bf16.msra.mxu0 %v11410_v22  ;;  %v315_v61 = vld [vmem:[%s12094_s26 + $0xf0] sm:$0xff]  ;;  %v11431_v63 = vld [vmem:[%s17246_s5 + $0x78] sm:$0xff]   ;;  %v318_v1 = vld [vmem:[%s12094_s26 + $0x108] sm:$0xff] }
  0x2a   : > { %2983 = vmatprep.subr.bf16.mxu1 %v17248_v0  ;;  %4523 = vmatprep.subr.bf16.mxu0 %v17248_v0  ;;  %v11430_v62 = vld [vmem:[%s17245_s4 + $0x70] sm:$0xff]   ;;  %v317_v2 = vld [vmem:[%s12094_s26 + $0x100] sm:$0xff]  ;;  %v11432_v3 = vld [vmem:[%s17245_s4 + $0x78] sm:$0xff]  }
  0x2b   : > { %v320_v4 = vld [vmem:[%s12094_s26 + $0x118] sm:$0xff]  ;;  %v319_v5 = vld [vmem:[%s12094_s26 + $0x110] sm:$0xff]  ;;  %v322_v6 = vld [vmem:[%s12094_s26 + $0x128] sm:$0xff] }
  0x2c   : > { %377 = vperm.xlu1 %11400, %v294_v15   ;;  %2984 = vmatpush1.bf16.msra.mxu1 %v11411_v24  ;;  %v321_v7 = vld [vmem:[%s12094_s26 + $0x120] sm:$0xff]  ;;  %v324_v8 = vld [vmem:[%s12094_s26 + $0x138] sm:$0xff]  ;;  %v323_v9 = vld [vmem:[%s12094_s26 + $0x130] sm:$0xff] }
  0x2d   : > { %374 = vperm.xlu0 %11399, %v293_v16   ;;  %4524 = vmatpush1.bf16.msra.mxu0 %v11412_v26  ;;  %v326_v10 = vld [vmem:[%s12094_s26 + $0x148] sm:$0xff]  ;;  %v325_v11 = vld [vmem:[%s12094_s26 + $0x140] sm:$0xff]  ;;  %v328_v12 = vld [vmem:[%s12094_s26 + $0x158] sm:$0xff] }
  0x2e   : > { %2985 = vmatprep.subr.bf16.mxu1 %v17248_v0  ;;  %4525 = vmatprep.subr.bf16.mxu0 %v17248_v0  ;;  %v327_v13 = vld [vmem:[%s12094_s26 + $0x150] sm:$0xff]  ;;  %v330_v14 = vld [vmem:[%s12094_s26 + $0x168] sm:$0xff]  ;;  %v329_v15 = vld [vmem:[%s12094_s26 + $0x160] sm:$0xff] }
  0x2f   : > { %v332_v16 = vld [vmem:[%s12094_s26 + $0x178] sm:$0xff]  ;;  %v331_v17 = vld [vmem:[%s12094_s26 + $0x170] sm:$0xff]  ;;  %v334_v18 = vld [vmem:[%s12094_s26 + $0x188] sm:$0xff] }
  0x30   : > { %383 = vperm.xlu1 %11400, %v296_v20   ;;  %2986 = vmatpush1.bf16.msra.mxu1 %v11413_v27  ;;  %v333_v19 = vld [vmem:[%s12094_s26 + $0x180] sm:$0xff]  ;;  %v336_v20 = vld [vmem:[%s12094_s26 + $0x198] sm:$0xff]  ;;  %v338_v22 = vld [vmem:[%s12094_s26 + $0x1a8] sm:$0xff] }
  0x31   : > { %380 = vperm.xlu0 %11399, %v295_v21   ;;  %4526 = vmatpush1.bf16.msra.mxu0 %v11414_v30  ;;  %v335_v21 = vld [vmem:[%s12094_s26 + $0x190] sm:$0xff]  ;;  %v340_v24 = vld [vmem:[%s12094_s26 + $0x1b8] sm:$0xff]  ;;  %v342_v26 = vld [vmem:[%s12094_s26 + $0x1c8] sm:$0xff] }
  0x32   : > { %2987 = vmatprep.subr.bf16.mxu1 %v17248_v0  ;;  %4527 = vmatprep.subr.bf16.mxu0 %v17248_v0  ;;  %v341_v27 = vld [vmem:[%s12094_s26 + $0x1c0] sm:$0xff]  ;;  %v346_v30 = vld [vmem:[%s12094_s26 + $0x1e8] sm:$0xff] }
  0x34   : > { %389 = vperm.xlu1 %11400, %v298_v23   ;;  %2988 = vmatpush1.bf16.msra.mxu1 %v11415_v32  ;;  %v337_v23 = vld [vmem:[%s12094_s26 + $0x1a0] sm:$0xff]  ;;  %v276_v32 = vlaneseq }
  0x35   : > { %386 = vperm.xlu0 %11399, %v297_v25   ;;  %4528 = vmatpush1.bf16.msra.mxu0 %v11416_v34  ;;  %v339_v25 = vld [vmem:[%s12094_s26 + $0x1b0] sm:$0xff] }
  0x36   : > { %2989 = vmatprep.subr.bf16.mxu1 %v17248_v0  ;;  %4529 = vmatprep.subr.bf16.mxu0 %v17248_v0  ;;  %v347_v34 = vld [vmem:[%s12094_s26 + $0x1f0] sm:$0xff] }
  0x38   : > { %395 = vperm.xlu1 %11400, %v300_v28   ;;  %2990 = vmatpush1.bf16.msra.mxu1 %v11417_v35  ;;  %v344_v28 = vld [vmem:[%s12094_s26 + $0x1d8] sm:$0xff]  ;;  %v12281_v35 = vand.u32 127, %v276_v32  ;;  %v11450_v32 = vld [vmem:[%s17245_s4 + $0xc0] sm:$0xff]  }
  0x39   : > { %392 = vperm.xlu0 %11399, %v299_v29   ;;  %4530 = vmatpush1.bf16.msra.mxu0 %v11418_v38  ;;  %v343_v29 = vld [vmem:[%s12094_s26 + $0x1d0] sm:$0xff] }
  0x3a   : > { %2991 = vmatprep.subr.bf16.mxu1 %v17248_v0  ;;  %4531 = vmatprep.subr.bf16.mxu0 %v17248_v0  ;;  %17422 = vst [vmem:[#allocation5_spill] sm:$0xff] %v12281_v35  ;;  %v12286_v38 = vadd.s32 128, %v12281_v35 }
  0x3c   : > { %401 = vperm.xlu1 %11400, %v302_v31   ;;  %2992 = vmatpush1.bf16.msra.mxu1 %v11419_v40  ;;  %v345_v31 = vld [vmem:[%s12094_s26 + $0x1e0] sm:$0xff] }
  0x3d   : > { %398 = vperm.xlu0 %11399, %v301_v33   ;;  %4532 = vmatpush1.bf16.msra.mxu0 %v11420_v42  ;;  %v348_v33 = vld [vmem:[%s12094_s26 + $0x1f8] sm:$0xff]  ;;  %v5671_v42 = vld [vmem:[%s12279_s19 + $0x10] sm:$0xff]  ;;  %s17191_s26 = scalar_lea.hbm %s17247_s6, %s10523_s15 }
  0x3e   : > { %2993 = vmatprep.subr.bf16.mxu1 %v17248_v0  ;;  %4533 = vmatprep.subr.bf16.mxu0 %v17248_v0 }
  0x40   : > { %407 = vperm.xlu1 %11400, %v304_v36   ;;  %2994 = vmatpush1.bf16.msra.mxu1 %v11421_v43  ;;  %v5670_v36 = vld [vmem:[%s12279_s19 + $0x8] sm:$0xff]  ;;  %v11433_v43 = vld [vmem:[%s17246_s5 + $0x80] sm:$0xff]  }
  0x41   : > { %404 = vperm.xlu0 %11399, %v303_v37   ;;  %4534 = vmatpush1.bf16.msra.mxu0 %v11422_v46  ;;  %v5669_v37 = vld [vmem:[%s12279_s19] sm:$0xff] }
  0x42   : > { %2995 = vmatprep.subr.bf16.mxu1 %v17248_v0  ;;  %4535 = vmatprep.subr.bf16.mxu0 %v17248_v0 }
  0x44   : > { %413 = vperm.xlu1 %11400, %v306_v39   ;;  %2996 = vmatpush1.bf16.msra.mxu1 %v11423_v48  ;;  %v5673_v48 = vld [vmem:[%s12279_s19 + $0x20] sm:$0xff] }
  0x45   : > { %410 = vperm.xlu0 %11399, %v305_v41   ;;  %4536 = vmatpush1.bf16.msra.mxu0 %v11424_v50  ;;  %v5672_v41 = vld [vmem:[%s12279_s19 + $0x18] sm:$0xff]  ;;  %v11435_v50 = vld [vmem:[%s17246_s5 + $0x88] sm:$0xff]  }
  0x46   : > { %2997 = vmatprep.subr.bf16.mxu1 %v17248_v0  ;;  %4537 = vmatprep.subr.bf16.mxu0 %v17248_v0 }
  0x48   : > { %419 = vperm.xlu1 %11400, %v308_v44   ;;  %2998 = vmatpush1.bf16.msra.mxu1 %v11425_v51  ;;  %v11434_v44 = vld [vmem:[%s17245_s4 + $0x80] sm:$0xff]   ;;  %v11436_v51 = vld [vmem:[%s17245_s4 + $0x88] sm:$0xff]  }
  0x49   : > { %416 = vperm.xlu0 %11399, %v307_v45   ;;  %4538 = vmatpush1.bf16.msra.mxu0 %v11426_v54  ;;  %v5676_v54 = vld [vmem:[%s12279_s19 + $0x38] sm:$0xff] }
  0x4a   : > { %2999 = vmatprep.subr.bf16.mxu1 %v17248_v0  ;;  %4539 = vmatprep.subr.bf16.mxu0 %v17248_v0 }
  0x4c   : > { %425 = vperm.xlu1 %11400, %v310_v47   ;;  %3000 = vmatpush1.bf16.msra.mxu1 %v11427_v55  ;;  %v5674_v47 = vld [vmem:[%s12279_s19 + $0x28] sm:$0xff]  ;;  %v5675_v55 = vld [vmem:[%s12279_s19 + $0x30] sm:$0xff] }
  0x4d   : > { %422 = vperm.xlu0 %11399, %v309_v49   ;;  %4540 = vmatpush1.bf16.msra.mxu0 %v11428_v58  ;;  %v11980_v49 = vmov 1.0|1.0   ;;  %v11437_v58 = vld [vmem:[%s17246_s5 + $0x90] sm:$0xff]  }
  0x4e   : > { %3001 = vmatprep.subr.bf16.mxu1 %v17248_v0  ;;  %4541 = vmatprep.subr.bf16.mxu0 %v17248_v0 }
  0x50   : > { %431 = vperm.xlu1 %11400, %v312_v52   ;;  %3002 = vmatpush1.bf16.msra.mxu1 %v11429_v60 }
  0x51   : > { %428 = vperm.xlu0 %11399, %v311_v53   ;;  %4542 = vmatpush1.bf16.msra.mxu0 %v11430_v62  ;;  %v5680_v62 = vld [vmem:[%s12279_s19 + $0x58] sm:$0xff] }
  0x52   : > { %3003 = vmatprep.subr.bf16.mxu1 %v17248_v0  ;;  %4543 = vmatprep.subr.bf16.mxu0 %v17248_v0 }
  0x54   : > { %437 = vperm.xlu1 %11400, %v314_v56   ;;  %3004 = vmatpush1.bf16.msra.mxu1 %v11431_v63  ;;  %v5678_v56 = vld [vmem:[%s12279_s19 + $0x48] sm:$0xff]  ;;  %v5679_v63 = vld [vmem:[%s12279_s19 + $0x50] sm:$0xff] }
  0x55   : > { %434 = vperm.xlu0 %11399, %v313_v57   ;;  %4544 = vmatpush1.bf16.msra.mxu0 %v11432_v3  ;;  %v5677_v57 = vld [vmem:[%s12279_s19 + $0x40] sm:$0xff]  ;;  %v5682_v3 = vld [vmem:[%s12279_s19 + $0x68] sm:$0xff] }
  0x56   : > { %3262 = vmatprep.subr.bf16.mxu1 %v17248_v0  ;;  %4802 = vmatprep.subr.bf16.mxu0 %v17248_v0 }
  0x58   : > { %443 = vperm.xlu1 %11400, %v316_v59   ;;  %v11438_v59 = vld [vmem:[%s17245_s4 + $0x90] sm:$0xff]  }
  0x59   : > { %440 = vperm.xlu0 %11399, %v315_v61  }
  0x5c   : > { %449 = vperm.xlu1 %11400, %v318_v1   ;;  %v11439_v1 = vld [vmem:[%s17246_s5 + $0x98] sm:$0xff]  }
  0x5d   : > { %446 = vperm.xlu0 %11399, %v317_v2   ;;  %v11440_v2 = vld [vmem:[%s17245_s4 + $0x98] sm:$0xff]  }
  0x60   : > { %455 = vperm.xlu1 %11400, %v320_v4   ;;  %v5681_v4 = vld [vmem:[%s12279_s19 + $0x60] sm:$0xff] }
  0x61   : > { %452 = vperm.xlu0 %11399, %v319_v5   ;;  %v11441_v5 = vld [vmem:[%s17246_s5 + $0xa0] sm:$0xff]  }
  0x64   : > { %461 = vperm.xlu1 %11400, %v322_v6   ;;  %v11442_v6 = vld [vmem:[%s17245_s4 + $0xa0] sm:$0xff]  }
  0x65   : > { %458 = vperm.xlu0 %11399, %v321_v7  }
  0x68   : > { %467 = vperm.xlu1 %11400, %v324_v8  }
  0x69   : > { %464 = vperm.xlu0 %11399, %v323_v9   ;;  %v5684_v9 = vld [vmem:[%s12279_s19 + $0x78] sm:$0xff] }
  0x6c   : > { %473 = vperm.xlu1 %11400, %v326_v10   ;;  %v5683_v10 = vld [vmem:[%s12279_s19 + $0x70] sm:$0xff] }
  0x6d   : > { %470 = vperm.xlu0 %11399, %v325_v11   ;;  %v5686_v11 = vld [vmem:[%s12279_s19 + $0x88] sm:$0xff] }
  0x70   : > { %479 = vperm.xlu1 %11400, %v328_v12   ;;  %v5685_v12 = vld [vmem:[%s12279_s19 + $0x80] sm:$0xff] }
  0x71   : > { %476 = vperm.xlu0 %11399, %v327_v13   ;;  %v11443_v13 = vld [vmem:[%s17246_s5 + $0xa8] sm:$0xff]  }
  0x74   : > { %485 = vperm.xlu1 %11400, %v330_v14   ;;  %v11444_v14 = vld [vmem:[%s17245_s4 + $0xa8] sm:$0xff]  }
  0x75   : > { %482 = vperm.xlu0 %11399, %v329_v15  }
  0x78   : > { %491 = vperm.xlu1 %11400, %v332_v16  }
  0x79   : > { %488 = vperm.xlu0 %11399, %v331_v17   ;;  %v5688_v17 = vld [vmem:[%s12279_s19 + $0x98] sm:$0xff] }
  0x7c   : > { %497 = vperm.xlu1 %11400, %v334_v18   ;;  %v5687_v18 = vld [vmem:[%s12279_s19 + $0x90] sm:$0xff] }
  0x7d   : > { %494 = vperm.xlu0 %11399, %v333_v19   ;;  %v11445_v19 = vld [vmem:[%s17246_s5 + $0xb0] sm:$0xff]  }
  0x80   : > { %503 = vperm.xlu1 %11400, %v336_v20   ;;  %v11446_v20 = vld [vmem:[%s17245_s4 + $0xb0] sm:$0xff]  }
  0x81   : > { %500 = vperm.xlu0 %11399, %v335_v21   ;;  %v5690_v21 = vld [vmem:[%s12279_s19 + $0xa8] sm:$0xff] }
  0x84   : > { %509 = vperm.xlu1 %11400, %v338_v22   ;;  %v5689_v22 = vld [vmem:[%s12279_s19 + $0xa0] sm:$0xff] }
  0x85   : > { %506 = vperm.xlu0 %11399, %v337_v23   ;;  %v11447_v23 = vld [vmem:[%s17246_s5 + $0xb8] sm:$0xff]  }
  0x88   : > { %515 = vperm.xlu1 %11400, %v340_v24   ;;  %v11448_v24 = vld [vmem:[%s17245_s4 + $0xb8] sm:$0xff]  }
  0x89   : > { %512 = vperm.xlu0 %11399, %v339_v25  }
  0x8c   : > { %521 = vperm.xlu1 %11400, %v342_v26  }
  0x8d   : > { %518 = vperm.xlu0 %11399, %v341_v27   ;;  %v5692_v27 = vld [vmem:[%s12279_s19 + $0xb8] sm:$0xff] }
  0x90   : > { %527 = vperm.xlu1 %11400, %v344_v28   ;;  %v5691_v28 = vld [vmem:[%s12279_s19 + $0xb0] sm:$0xff] }
  0x91   : > { %524 = vperm.xlu0 %11399, %v343_v29   ;;  %v5694_v29 = vld [vmem:[%s12279_s19 + $0xc8] sm:$0xff] }
  0x94   : > { %533 = vperm.xlu1 %11400, %v346_v30   ;;  %v5693_v30 = vld [vmem:[%s12279_s19 + $0xc0] sm:$0xff] }
  0x95   : > { %530 = vperm.xlu0 %11399, %v345_v31   ;;  %v11449_v31 = vld [vmem:[%s17246_s5 + $0xc0] sm:$0xff]  }
  0x98   : > { %539 = vperm.xlu1 %11400, %v348_v33  }
  0x99   : > { %536 = vperm.xlu0 %11399, %v347_v34  }
  0x9b   : > { %v12288_v39 = vpop.permute.xlu1 %356 }
  0x9c   : > { %v12290_v40 = vpop.permute.xlu0 %350  ;;  %5742 = vperm.xlu1 %11400, %v5670_v36   ;;  %vm558_vm1 = vcmp.eq.s32.totalorder %v12288_v39, %v12286_v38  ;;  %vm557_vm9 = vcmp.eq.s32.totalorder %v12288_v39, %v12281_v35  ;;  %v5696_v36 = vld [vmem:[%s12279_s19 + $0xd8] sm:$0xff] }
  0x9d   : > { %17423 = vst [vmem:[#allocation6_spill] sm:$0xff] %v12290_v40  ;;  %5737 = vperm.xlu0 %11399, %v5669_v37   ;;  %vm542_vm0 = vcmp.eq.s32.totalorder %v12290_v40, %v12286_v38  ;;  %vm541_vm6 = vcmp.eq.s32.totalorder %v12290_v40, %v12281_v35  ;;  %v5695_v37 = vld [vmem:[%s12279_s19 + $0xd0] sm:$0xff] }
  0x9f   : > { %v12300_v45 = vpop.permute.xlu1 %359 }
  0xa0   : > { %v12302_v46 = vpop.permute.xlu0 %353  ;;  %5752 = vperm.xlu1 %11400, %v5672_v41   ;;  %vm566_vm4 = vcmp.eq.s32.totalorder %v12300_v45, %v12286_v38  ;;  %vm565_vm10 = vcmp.eq.s32.totalorder %v12300_v45, %v12281_v35  ;;  %v11451_v41 = vld [vmem:[%s17246_s5 + $0xc8] sm:$0xff]  }
  0xa1   : > { %17424 = vst [vmem:[#allocation7_spill] sm:$0xff] %v12302_v46  ;;  %5747 = vperm.xlu0 %11399, %v5671_v42   ;;  %vm550_vm2 = vcmp.eq.s32.totalorder %v12302_v46, %v12286_v38  ;;  %vm549_vm3 = vcmp.eq.s32.totalorder %v12302_v46, %v12281_v35  ;;  %vm9432_vm8 = vmpackc.low %vm566_vm4, %vm558_vm1  ;;  %v11452_v42 = vld [vmem:[%s17245_s4 + $0xc8] sm:$0xff]  }
  0xa2   : > { %vm9428_vm5 = vmpackc.low %vm550_vm2, %vm542_vm0 }
  0xa3   : > { %9429 = vmatprep.mubr.msk.bf16.mxu1 %vm9428_vm5, %v11980_v49  ;;  %10005 = vmatprep.mubr.msk.bf16.mxu0 %vm9428_vm5, %v11980_v49  ;;  %vm9430_vm7 = vmpackc.low %vm549_vm3, %vm541_vm6  ;;  %v12331_v52 = vpop.permute.xlu1 %365 }
  0xa4   : > { %9431 = vmatmul.mubr.msk.bf16.vlgmr.msra.gmra.mrb[0].mxu1 %vm9430_vm7, %v11980_v49  ;;  %10007 = vmatmul.mubr.msk.bf16.vlgmr.msra.gmra.mrb[0].mxu0 %vm9430_vm7, %v11980_v49  ;;  %v12333_v53 = vpop.permute.xlu0 %362  ;;  %vm582_vm12 = vcmp.eq.s32.totalorder %v12331_v52, %v12286_v38  ;;  %vm9434_vm13 = vmpackc.low %vm565_vm10, %vm557_vm9  ;;  %vm581_vm0 = vcmp.eq.s32.totalorder %v12331_v52, %v12281_v35 }
  0xa5   : > { %3263 = vmatpush1.bf16.msra.mxu1 %v11433_v43  ;;  %4803 = vmatpush1.bf16.msra.mxu0 %v11434_v44  ;;  %vm574_vm11 = vcmp.eq.s32.totalorder %v12333_v53, %v12286_v38  ;;  %vm573_vm15 = vcmp.eq.s32.totalorder %v12333_v53, %v12281_v35  ;;  %v5698_v43 = vld [vmem:[%s12279_s19 + $0xe8] sm:$0xff]  ;;  %v5697_v44 = vld [vmem:[%s12279_s19 + $0xe0] sm:$0xff] }
  0xa6   : > { %5762 = vperm.xlu1 %11400, %v5674_v47   ;;  %5757 = vperm.xlu0 %11399, %v5673_v48   ;;  %vm9436_vm14 = vmpackc.low %vm582_vm12, %vm574_vm11  ;;  %v11453_v47 = vld [vmem:[%s17246_s5 + $0xd0] sm:$0xff]  }
  0xa7   : > { %9433 = vmatprep.mubr.msk.bf16.mxu1 %vm9432_vm8, %v11980_v49  ;;  %10009 = vmatprep.mubr.msk.bf16.mxu0 %vm9432_vm8, %v11980_v49  ;;  %v12366_v60 = vpop.permute.xlu1 %371  ;;  %vm9438_vm3 = vmpackc.low %vm581_vm0, %vm573_vm15  ;;  %v11454_v48 = vld [vmem:[%s17245_s4 + $0xd0] sm:$0xff]  }
  0xa8   : > { %3264 = vmatprep.subr.bf16.mxu1 %v17248_v0  ;;  %4804 = vmatprep.subr.bf16.mxu0 %v17248_v0  ;;  %v12368_v61 = vpop.permute.xlu0 %368  ;;  %vm598_vm2 = vcmp.eq.s32.totalorder %v12366_v60, %v12286_v38  ;;  %vm597_vm6 = vcmp.eq.s32.totalorder %v12366_v60, %v12281_v35 }
  0xa9   : > { %3265 = vmatpush1.bf16.msra.mxu1 %v11435_v50  ;;  %4805 = vmatpush1.bf16.msra.mxu0 %v11436_v51  ;;  %vm590_vm1 = vcmp.eq.s32.totalorder %v12368_v61, %v12286_v38  ;;  %vm589_vm5 = vcmp.eq.s32.totalorder %v12368_v61, %v12281_v35 }
  0xaa   : > { %5772 = vperm.xlu1 %11400, %v5676_v54   ;;  %5767 = vperm.xlu0 %11399, %v5675_v55   ;;  %vm9440_vm4 = vmpackc.low %vm598_vm2, %vm590_vm1  ;;  %v5700_v54 = vld [vmem:[%s12279_s19 + $0xf8] sm:$0xff]  ;;  %v5699_v55 = vld [vmem:[%s12279_s19 + $0xf0] sm:$0xff] }
  0xab   : > { %3266 = vmatprep.subr.bf16.mxu1 %v17248_v0  ;;  %4806 = vmatprep.subr.bf16.mxu0 %v17248_v0  ;;  %v12400_v7 = vpop.permute.xlu1 %377  ;;  %vm9442_vm9 = vmpackc.low %vm597_vm6, %vm589_vm5 }
  0xac   : > { %9435 = vmatmul.mubr.msk.bf16.gmra.mrb[4].mxu1 %vm9434_vm13, %v11980_v49  ;;  %10011 = vmatmul.mubr.msk.bf16.gmra.mrb[4].mxu0 %vm9434_vm13, %v11980_v49  ;;  %v12402_v8 = vpop.permute.xlu0 %374  ;;  %vm614_vm8 = vcmp.eq.s32.totalorder %v12400_v7, %v12286_v38  ;;  %vm613_vm12 = vcmp.eq.s32.totalorder %v12400_v7, %v12281_v35 }
  0xad   : > { %9437 = vmatprep.mubr.msk.bf16.mxu1 %vm9436_vm14, %v11980_v49  ;;  %10013 = vmatprep.mubr.msk.bf16.mxu0 %vm9436_vm14, %v11980_v49  ;;  %vm606_vm7 = vcmp.eq.s32.totalorder %v12402_v8, %v12286_v38  ;;  %vm605_vm11 = vcmp.eq.s32.totalorder %v12402_v8, %v12281_v35 }
  0xae   : > { %5782 = vperm.xlu1 %11400, %v5678_v56   ;;  %5777 = vperm.xlu0 %11399, %v5677_v57   ;;  %vm9444_vm10 = vmpackc.low %vm614_vm8, %vm606_vm7  ;;  %v5702_v56 = vld [vmem:[%s12279_s19 + $0x108] sm:$0xff]  ;;  %v5701_v57 = vld [vmem:[%s12279_s19 + $0x100] sm:$0xff] }
  0xaf   : > { %3267 = vmatpush1.bf16.msra.mxu1 %v11437_v58  ;;  %4807 = vmatpush1.bf16.msra.mxu0 %v11438_v59  ;;  %v12430_v15 = vpop.permute.xlu1 %383  ;;  %vm9446_vm15 = vmpackc.low %vm613_vm12, %vm605_vm11  ;;  %v11455_v58 = vld [vmem:[%s17246_s5 + $0xd8] sm:$0xff]  }
  0xb0   : > { %3268 = vmatprep.subr.bf16.mxu1 %v17248_v0  ;;  %4808 = vmatprep.subr.bf16.mxu0 %v17248_v0  ;;  %v12432_v16 = vpop.permute.xlu0 %380  ;;  %vm630_vm14 = vcmp.eq.s32.totalorder %v12430_v15, %v12286_v38  ;;  %vm629_vm2 = vcmp.eq.s32.totalorder %v12430_v15, %v12281_v35  ;;  %v11456_v59 = vld [vmem:[%s17245_s4 + $0xd8] sm:$0xff]  }
  0xb1   : > { %vm622_vm13 = vcmp.eq.s32.totalorder %v12432_v16, %v12286_v38  ;;  %vm621_vm1 = vcmp.eq.s32.totalorder %v12432_v16, %v12281_v35 }
  0xb2   : > { %5792 = vperm.xlu1 %11400, %v5680_v62   ;;  %5787 = vperm.xlu0 %11399, %v5679_v63   ;;  %vm9448_vm0 = vmpackc.low %vm630_vm14, %vm622_vm13 }
  0xb3   : > { %3269 = vmatpush1.bf16.msra.mxu1 %v11439_v1  ;;  %4809 = vmatpush1.bf16.msra.mxu0 %v11440_v2  ;;  %v12464_v25 = vpop.permute.xlu1 %389  ;;  %vm9450_vm5 = vmpackc.low %vm629_vm2, %vm621_vm1  ;;  %v5704_v1 = vld [vmem:[%s12279_s19 + $0x118] sm:$0xff]  ;;  %v5703_v2 = vld [vmem:[%s12279_s19 + $0x110] sm:$0xff] }
  0xb4   : > { %9439 = vmatmul.mubr.msk.bf16.gmra.mrb[8].mxu1 %vm9438_vm3, %v11980_v49  ;;  %10015 = vmatmul.mubr.msk.bf16.gmra.mrb[8].mxu0 %vm9438_vm3, %v11980_v49  ;;  %v12466_v26 = vpop.permute.xlu0 %386  ;;  %vm645_vm8 = vcmp.eq.s32.totalorder %v12464_v25, %v12281_v35 }
  0xb5   : > { %9441 = vmatprep.mubr.msk.bf16.mxu1 %vm9440_vm4, %v11980_v49  ;;  %10017 = vmatprep.mubr.msk.bf16.mxu0 %vm9440_vm4, %v11980_v49  ;;  %vm638_vm3 = vcmp.eq.s32.totalorder %v12466_v26, %v12286_v38  ;;  %vm646_vm4 = vcmp.eq.s32.totalorder %v12464_v25, %v12286_v38  ;;  %vm637_vm7 = vcmp.eq.s32.totalorder %v12466_v26, %v12281_v35 }
  0xb6   : > { %5802 = vperm.xlu1 %11400, %v5682_v3   ;;  %5797 = vperm.xlu0 %11399, %v5681_v4   ;;  %vm9452_vm6 = vmpackc.low %vm646_vm4, %vm638_vm3  ;;  %v5706_v3 = vld [vmem:[%s12279_s19 + $0x128] sm:$0xff]  ;;  %v5705_v4 = vld [vmem:[%s12279_s19 + $0x120] sm:$0xff] }
  0xb7   : > { %3270 = vmatprep.subr.bf16.mxu1 %v17248_v0  ;;  %4810 = vmatprep.subr.bf16.mxu0 %v17248_v0  ;;  %v12494_v33 = vpop.permute.xlu1 %395  ;;  %vm9454_vm11 = vmpackc.low %vm645_vm8, %vm637_vm7 }
  0xb8   : > { %3271 = vmatpush1.bf16.msra.mxu1 %v11441_v5  ;;  %4811 = vmatpush1.bf16.msra.mxu0 %v11442_v6  ;;  %v12496_v34 = vpop.permute.xlu0 %392  ;;  %vm661_vm14 = vcmp.eq.s32.totalorder %v12494_v33, %v12281_v35  ;;  %v11457_v5 = vld [vmem:[%s17246_s5 + $0xe0] sm:$0xff]  }
  0xb9   : > { %3272 = vmatprep.subr.bf16.mxu1 %v17248_v0  ;;  %4812 = vmatprep.subr.bf16.mxu0 %v17248_v0  ;;  %vm653_vm13 = vcmp.eq.s32.totalorder %v12496_v34, %v12281_v35  ;;  %v11458_v6 = vld [vmem:[%s17245_s4 + $0xe0] sm:$0xff]  }
  0xba   : > { %5812 = vperm.xlu1 %11400, %v5684_v9   ;;  %5807 = vperm.xlu0 %11399, %v5683_v10   ;;  %vm9458_vm1 = vmpackc.low %vm661_vm14, %vm653_vm13 }
  0xbb   : > { %v12528_v50 = vpop.permute.xlu1 %401 }
  0xbc   : > { %9443 = vmatmul.mubr.msk.bf16.gmra.mrb[12].mxu1 %vm9442_vm9, %v11980_v49  ;;  %10019 = vmatmul.mubr.msk.bf16.gmra.mrb[12].mxu0 %vm9442_vm9, %v11980_v49  ;;  %vm654_vm9 = vcmp.eq.s32.totalorder %v12496_v34, %v12286_v38  ;;  %v12530_v51 = vpop.permute.xlu0 %398  ;;  %vm677_vm4 = vcmp.eq.s32.totalorder %v12528_v50, %v12281_v35 }
  0xbd   : > { %9445 = vmatprep.mubr.msk.bf16.mxu1 %vm9444_vm10, %v11980_v49  ;;  %10021 = vmatprep.mubr.msk.bf16.mxu0 %vm9444_vm10, %v11980_v49  ;;  %vm662_vm10 = vcmp.eq.s32.totalorder %v12494_v33, %v12286_v38  ;;  %vm669_vm3 = vcmp.eq.s32.totalorder %v12530_v51, %v12281_v35 }
  0xbe   : > { %5822 = vperm.xlu1 %11400, %v5686_v11   ;;  %5817 = vperm.xlu0 %11399, %v5685_v12   ;;  %vm9456_vm12 = vmpackc.low %vm662_vm10, %vm654_vm9  ;;  %v5708_v11 = vld [vmem:[%s12279_s19 + $0x138] sm:$0xff]  ;;  %v5707_v12 = vld [vmem:[%s12279_s19 + $0x130] sm:$0xff] }
  0xbf   : > { %3273 = vmatpush1.bf16.msra.mxu1 %v11443_v13  ;;  %4813 = vmatpush1.bf16.msra.mxu0 %v11444_v14  ;;  %v12558_v62 = vpop.permute.xlu1 %407  ;;  %vm9462_vm7 = vmpackc.low %vm677_vm4, %vm669_vm3  ;;  %v5710_v13 = vld [vmem:[%s12279_s19 + $0x148] sm:$0xff]  ;;  %v5709_v14 = vld [vmem:[%s12279_s19 + $0x140] sm:$0xff] }
  0xc0   : > { %3274 = vmatprep.subr.bf16.mxu1 %v17248_v0  ;;  %4814 = vmatprep.subr.bf16.mxu0 %v17248_v0  ;;  %v12560_v63 = vpop.permute.xlu0 %404  ;;  %vm693_vm10 = vcmp.eq.s32.totalorder %v12558_v62, %v12281_v35 }
  0xc1   : > { %vm685_vm9 = vcmp.eq.s32.totalorder %v12560_v63, %v12281_v35 }
  0xc2   : > { %5832 = vperm.xlu1 %11400, %v5688_v17   ;;  %5827 = vperm.xlu0 %11399, %v5687_v18   ;;  %vm9466_vm13 = vmpackc.low %vm693_vm10, %vm685_vm9 }
  0xc3   : > { %3275 = vmatpush1.bf16.msra.mxu1 %v11445_v19  ;;  %4815 = vmatpush1.bf16.msra.mxu0 %v11446_v20  ;;  %v12586_v9 = vpop.permute.xlu1 %413  ;;  %v5712_v19 = vld [vmem:[%s12279_s19 + $0x158] sm:$0xff]  ;;  %v5711_v20 = vld [vmem:[%s12279_s19 + $0x150] sm:$0xff] }
  0xc4   : > { %9447 = vmatmul.mubr.msk.bf16.gmra.mrb[16].mxu1 %vm9446_vm15, %v11980_v49  ;;  %10023 = vmatmul.mubr.msk.bf16.gmra.mrb[16].mxu0 %vm9446_vm15, %v11980_v49  ;;  %vm670_vm15 = vcmp.eq.s32.totalorder %v12530_v51, %v12286_v38  ;;  %v12588_v10 = vpop.permute.xlu0 %410 }
  0xc5   : > { %9449 = vmatprep.mubr.msk.bf16.mxu1 %vm9448_vm0, %v11980_v49  ;;  %10025 = vmatprep.mubr.msk.bf16.mxu0 %vm9448_vm0, %v11980_v49  ;;  %vm678_vm0 = vcmp.eq.s32.totalorder %v12528_v50, %v12286_v38 }
  0xc6   : > { %5842 = vperm.xlu1 %11400, %v5690_v21   ;;  %5837 = vperm.xlu0 %11399, %v5689_v22   ;;  %vm9460_vm2 = vmpackc.low %vm678_vm0, %vm670_vm15  ;;  %vm701_vm15 = vcmp.eq.s32.totalorder %v12588_v10, %v12281_v35  ;;  %vm709_vm0 = vcmp.eq.s32.totalorder %v12586_v9, %v12281_v35  ;;  %v5714_v21 = vld [vmem:[%s12279_s19 + $0x168] sm:$0xff]  ;;  %v5713_v22 = vld [vmem:[%s12279_s19 + $0x160] sm:$0xff] }
  0xc7   : > { %3276 = vmatprep.subr.bf16.mxu1 %v17248_v0  ;;  %4816 = vmatprep.subr.bf16.mxu0 %v17248_v0  ;;  %v12608_v17 = vpop.permute.xlu1 %419  ;;  %vm9470_vm3 = vmpackc.low %vm709_vm0, %vm701_vm15 }
  0xc8   : > { %3277 = vmatpush1.bf16.msra.mxu1 %v11447_v23  ;;  %4817 = vmatpush1.bf16.msra.mxu0 %v11448_v24  ;;  %v12610_v18 = vpop.permute.xlu0 %416  ;;  %v11459_v23 = vld [vmem:[%s17246_s5 + $0xe8] sm:$0xff]  }
  0xc9   : > { %3278 = vmatprep.subr.bf16.mxu1 %v17248_v0  ;;  %4818 = vmatprep.subr.bf16.mxu0 %v17248_v0  ;;  %v11460_v24 = vld [vmem:[%s17245_s4 + $0xe8] sm:$0xff]  }
  0xca   : > { %5852 = vperm.xlu1 %11400, %v5692_v27   ;;  %5847 = vperm.xlu0 %11399, %v5691_v28  }
  0xcb   : > { %v12634_v27 = vpop.permute.xlu1 %425 }
  0xcc   : > { %9451 = vmatmul.mubr.msk.bf16.gmra.mrb[20].mxu1 %vm9450_vm5, %v11980_v49  ;;  %10027 = vmatmul.mubr.msk.bf16.gmra.mrb[20].mxu0 %vm9450_vm5, %v11980_v49  ;;  %vm686_vm5 = vcmp.eq.s32.totalorder %v12560_v63, %v12286_v38  ;;  %v12636_v28 = vpop.permute.xlu0 %422 }
  0xcd   : > { %9453 = vmatprep.mubr.msk.bf16.mxu1 %vm9452_vm6, %v11980_v49  ;;  %10029 = vmatprep.mubr.msk.bf16.mxu0 %vm9452_vm6, %v11980_v49  ;;  %vm694_vm6 = vcmp.eq.s32.totalorder %v12558_v62, %v12286_v38 }
  0xce   : > { %5862 = vperm.xlu1 %11400, %v5694_v29   ;;  %5857 = vperm.xlu0 %11399, %v5693_v30   ;;  %vm9464_vm8 = vmpackc.low %vm694_vm6, %vm686_vm5  ;;  %v5716_v29 = vld [vmem:[%s12279_s19 + $0x178] sm:$0xff]  ;;  %v5715_v30 = vld [vmem:[%s12279_s19 + $0x170] sm:$0xff]  ;;  %vm717_vm5 = vcmp.eq.s32.totalorder %v12610_v18, %v12281_v35  ;;  %vm725_vm6 = vcmp.eq.s32.totalorder %v12608_v17, %v12281_v35 }
  0xcf   : > { %3279 = vmatpush1.bf16.msra.mxu1 %v11449_v31  ;;  %4819 = vmatpush1.bf16.msra.mxu0 %v11450_v32  ;;  %vm9474_vm9 = vmpackc.low %vm725_vm6, %vm717_vm5  ;;  %v5718_v31 = vld [vmem:[%s12279_s19 + $0x188] sm:$0xff]  ;;  %v5717_v32 = vld [vmem:[%s12279_s19 + $0x180] sm:$0xff] }
  0xd0   : > { %3280 = vmatprep.subr.bf16.mxu1 %v17248_v0  ;;  %4820 = vmatprep.subr.bf16.mxu0 %v17248_v0 }
  0xd2   : > { %5872 = vperm.xlu1 %11400, %v5696_v36   ;;  %5867 = vperm.xlu0 %11399, %v5695_v37   ;;  %v12656_v36 = vpop.permute.xlu1 %431  ;;  %v12658_v37 = vpop.permute.xlu0 %428 }
  0xd3   : > { %3281 = vmatpush1.bf16.msra.mxu1 %v11451_v41  ;;  %4821 = vmatpush1.bf16.msra.mxu0 %v11452_v42  ;;  %v5720_v41 = vld [vmem:[%s12279_s19 + $0x198] sm:$0xff]  ;;  %v5719_v42 = vld [vmem:[%s12279_s19 + $0x190] sm:$0xff] }
  0xd4   : > { %9455 = vmatmul.mubr.msk.bf16.gmra.mrb[24].mxu1 %vm9454_vm11, %v11980_v49  ;;  %10031 = vmatmul.mubr.msk.bf16.gmra.mrb[24].mxu0 %vm9454_vm11, %v11980_v49  ;;  %vm702_vm11 = vcmp.eq.s32.totalorder %v12588_v10, %v12286_v38 }
  0xd5   : > { %9457 = vmatprep.mubr.msk.bf16.mxu1 %vm9456_vm12, %v11980_v49  ;;  %10033 = vmatprep.mubr.msk.bf16.mxu0 %vm9456_vm12, %v11980_v49  ;;  %vm710_vm12 = vcmp.eq.s32.totalorder %v12586_v9, %v12286_v38 }
  0xd6   : > { %5882 = vperm.xlu1 %11400, %v5698_v43   ;;  %5877 = vperm.xlu0 %11399, %v5697_v44   ;;  %vm9468_vm14 = vmpackc.low %vm710_vm12, %vm702_vm11  ;;  %vm733_vm11 = vcmp.eq.s32.totalorder %v12636_v28, %v12281_v35  ;;  %vm741_vm12 = vcmp.eq.s32.totalorder %v12634_v27, %v12281_v35  ;;  %v5722_v43 = vld [vmem:[%s12279_s19 + $0x1a8] sm:$0xff]  ;;  %v5721_v44 = vld [vmem:[%s12279_s19 + $0x1a0] sm:$0xff] }
  0xd7   : > { %3282 = vmatprep.subr.bf16.mxu1 %v17248_v0  ;;  %4822 = vmatprep.subr.bf16.mxu0 %v17248_v0  ;;  %vm9478_vm15 = vmpackc.low %vm741_vm12, %vm733_vm11 }
  0xd8   : > { %3283 = vmatpush1.bf16.msra.mxu1 %v11453_v47  ;;  %4823 = vmatpush1.bf16.msra.mxu0 %v11454_v48  ;;  %v11461_v47 = vld [vmem:[%s17246_s5 + $0xf0] sm:$0xff]  }
  0xd9   : > { %3284 = vmatprep.subr.bf16.mxu1 %v17248_v0  ;;  %4824 = vmatprep.subr.bf16.mxu0 %v17248_v0  ;;  %v11462_v48 = vld [vmem:[%s17245_s4 + $0xf0] sm:$0xff]  }
  0xda   : > { %5892 = vperm.xlu1 %11400, %v5700_v54   ;;  %5887 = vperm.xlu0 %11399, %v5699_v55   ;;  %v12682_v54 = vpop.permute.xlu1 %437  ;;  %v12684_v55 = vpop.permute.xlu0 %434 }
  0xdc   : > { %9459 = vmatmul.mubr.msk.bf16.gmra.mrb[28].mxu1 %vm9458_vm1, %v11980_v49  ;;  %10035 = vmatmul.mubr.msk.bf16.gmra.mrb[28].mxu0 %vm9458_vm1, %v11980_v49  ;;  %vm718_vm1 = vcmp.eq.s32.totalorder %v12610_v18, %v12286_v38 }
  0xdd   : > { %9461 = vmatprep.mubr.msk.bf16.mxu1 %vm9460_vm2, %v11980_v49  ;;  %10037 = vmatprep.mubr.msk.bf16.mxu0 %vm9460_vm2, %v11980_v49  ;;  %vm726_vm2 = vcmp.eq.s32.totalorder %v12608_v17, %v12286_v38 }
  0xde   : > { %5902 = vperm.xlu1 %11400, %v5702_v56   ;;  %5897 = vperm.xlu0 %11399, %v5701_v57   ;;  %vm9472_vm4 = vmpackc.low %vm726_vm2, %vm718_vm1  ;;  %v5724_v56 = vld [vmem:[%s12279_s19 + $0x1b8] sm:$0xff]  ;;  %v5723_v57 = vld [vmem:[%s12279_s19 + $0x1b0] sm:$0xff]  ;;  %vm749_vm1 = vcmp.eq.s32.totalorder %v12658_v37, %v12281_v35  ;;  %vm757_vm2 = vcmp.eq.s32.totalorder %v12656_v36, %v12281_v35 }
  0xdf   : > { %3285 = vmatpush1.bf16.msra.mxu1 %v11455_v58  ;;  %4825 = vmatpush1.bf16.msra.mxu0 %v11456_v59  ;;  %vm9482_vm5 = vmpackc.low %vm757_vm2, %vm749_vm1  ;;  %v5726_v58 = vld [vmem:[%s12279_s19 + $0x1c8] sm:$0xff]  ;;  %v5725_v59 = vld [vmem:[%s12279_s19 + $0x1c0] sm:$0xff] }
  0xe0   : > { %3286 = vmatprep.subr.bf16.mxu1 %v17248_v0  ;;  %4826 = vmatprep.subr.bf16.mxu0 %v17248_v0 }
  0xe2   : > { %5912 = vperm.xlu1 %11400, %v5704_v1   ;;  %5907 = vperm.xlu0 %11399, %v5703_v2   ;;  %v12704_v1 = vpop.permute.xlu1 %443  ;;  %v12706_v2 = vpop.permute.xlu0 %440 }
  0xe3   : > { %3287 = vmatpush1.bf16.msra.mxu1 %v11457_v5  ;;  %4827 = vmatpush1.bf16.msra.mxu0 %v11458_v6  ;;  %v5730_v5 = vld [vmem:[%s12279_s19 + $0x1e8] sm:$0xff]  ;;  %v5729_v6 = vld [vmem:[%s12279_s19 + $0x1e0] sm:$0xff] }
  0xe4   : > { %9463 = vmatmul.mubr.msk.bf16.gmra.mrb[32].mxu1 %vm9462_vm7, %v11980_v49  ;;  %10039 = vmatmul.mubr.msk.bf16.gmra.mrb[32].mxu0 %vm9462_vm7, %v11980_v49  ;;  %vm734_vm7 = vcmp.eq.s32.totalorder %v12636_v28, %v12286_v38 }
  0xe5   : > { %9465 = vmatprep.mubr.msk.bf16.mxu1 %vm9464_vm8, %v11980_v49  ;;  %10041 = vmatprep.mubr.msk.bf16.mxu0 %vm9464_vm8, %v11980_v49  ;;  %vm742_vm8 = vcmp.eq.s32.totalorder %v12634_v27, %v12286_v38 }
  0xe6   : > { %5922 = vperm.xlu1 %11400, %v5706_v3   ;;  %5917 = vperm.xlu0 %11399, %v5705_v4   ;;  %vm9476_vm10 = vmpackc.low %vm742_vm8, %vm734_vm7  ;;  %v5728_v3 = vld [vmem:[%s12279_s19 + $0x1d8] sm:$0xff]  ;;  %v5727_v4 = vld [vmem:[%s12279_s19 + $0x1d0] sm:$0xff]  ;;  %vm765_vm7 = vcmp.eq.s32.totalorder %v12684_v55, %v12281_v35  ;;  %vm773_vm8 = vcmp.eq.s32.totalorder %v12682_v54, %v12281_v35 }
  0xe7   : > { %3288 = vmatprep.subr.bf16.mxu1 %v17248_v0  ;;  %4828 = vmatprep.subr.bf16.mxu0 %v17248_v0  ;;  %vm9486_vm11 = vmpackc.low %vm773_vm8, %vm765_vm7 }
  0xe8   : > { %3289 = vmatpush1.bf16.msra.mxu1 %v11459_v23  ;;  %4829 = vmatpush1.bf16.msra.mxu0 %v11460_v24 }
  0xe9   : > { %3290 = vmatprep.subr.bf16.mxu1 %v17248_v0  ;;  %4830 = vmatprep.subr.bf16.mxu0 %v17248_v0 }
  0xea   : > { %5932 = vperm.xlu1 %11400, %v5708_v11   ;;  %5927 = vperm.xlu0 %11399, %v5707_v12   ;;  %v11463_v11 = vld [vmem:[%s17246_s5 + $0xf8] sm:$0xff]  }
  0xeb   : > { %v11464_v12 = vld [vmem:[%s17245_s4 + $0xf8] sm:$0xff]  }
  0xec   : > { %9467 = vmatmul.mubr.msk.bf16.gmra.mrb[36].mxu1 %vm9466_vm13, %v11980_v49  ;;  %10043 = vmatmul.mubr.msk.bf16.gmra.mrb[36].mxu0 %vm9466_vm13, %v11980_v49  ;;  %vm750_vm13 = vcmp.eq.s32.totalorder %v12658_v37, %v12286_v38 }
  0xed   : > { %9469 = vmatprep.mubr.msk.bf16.mxu1 %vm9468_vm14, %v11980_v49  ;;  %10045 = vmatprep.mubr.msk.bf16.mxu0 %vm9468_vm14, %v11980_v49  ;;  %vm758_vm14 = vcmp.eq.s32.totalorder %v12656_v36, %v12286_v38 }
  0xee   : > { %5942 = vperm.xlu1 %11400, %v5710_v13   ;;  %5937 = vperm.xlu0 %11399, %v5709_v14   ;;  %vm9480_vm0 = vmpackc.low %vm758_vm14, %vm750_vm13  ;;  %v12730_v13 = vpop.permute.xlu1 %449  ;;  %v12732_v14 = vpop.permute.xlu0 %446  ;;  %vm781_vm13 = vcmp.eq.s32.totalorder %v12706_v2, %v12281_v35  ;;  %vm789_vm14 = vcmp.eq.s32.totalorder %v12704_v1, %v12281_v35 }
  0xef   : > { %3291 = vmatpush1.bf16.msra.mxu1 %v11461_v47  ;;  %4831 = vmatpush1.bf16.msra.mxu0 %v11462_v48  ;;  %vm9490_vm1 = vmpackc.low %vm789_vm14, %vm781_vm13 }
  0xf0   : > { %3292 = vmatprep.subr.bf16.mxu1 %v17248_v0  ;;  %4832 = vmatprep.subr.bf16.mxu0 %v17248_v0 }
  0xf2   : > { %5952 = vperm.xlu1 %11400, %v5712_v19   ;;  %5947 = vperm.xlu0 %11399, %v5711_v20   ;;  %v5732_v19 = vld [vmem:[%s12279_s19 + $0x1f8] sm:$0xff]  ;;  %v5731_v20 = vld [vmem:[%s12279_s19 + $0x1f0] sm:$0xff] }
  0xf3   : > { %3293 = vmatpush1.bf16.msra.mxu1 %v11463_v11  ;;  %4833 = vmatpush1.bf16.msra.mxu0 %v11464_v12 }
  0xf4   : > { %9471 = vmatmul.mubr.msk.bf16.gmra.mrb[40].mxu1 %vm9470_vm3, %v11980_v49  ;;  %10047 = vmatmul.mubr.msk.bf16.gmra.mrb[40].mxu0 %vm9470_vm3, %v11980_v49  ;;  %vm766_vm3 = vcmp.eq.s32.totalorder %v12684_v55, %v12286_v38 }
  0xf5   : > { %9473 = vmatprep.mubr.msk.bf16.mxu1 %vm9472_vm4, %v11980_v49  ;;  %10049 = vmatprep.mubr.msk.bf16.mxu0 %vm9472_vm4, %v11980_v49  ;;  %vm774_vm4 = vcmp.eq.s32.totalorder %v12682_v54, %v12286_v38 }
  0xf6   : > { %5962 = vperm.xlu1 %11400, %v5714_v21   ;;  %5957 = vperm.xlu0 %11399, %v5713_v22   ;;  %vm9484_vm6 = vmpackc.low %vm774_vm4, %vm766_vm3  ;;  %v12750_v21 = vpop.permute.xlu1 %455  ;;  %v12752_v22 = vpop.permute.xlu0 %452  ;;  %vm797_vm3 = vcmp.eq.s32.totalorder %v12732_v14, %v12281_v35  ;;  %vm805_vm4 = vcmp.eq.s32.totalorder %v12730_v13, %v12281_v35 }
  0xf7   : > { %3551 = vmatprep.subr.bf16.mxu1 %v17248_v0  ;;  %5091 = vmatprep.subr.bf16.mxu0 %v17248_v0  ;;  %vm9494_vm7 = vmpackc.low %vm805_vm4, %vm797_vm3 }
  0xfa   : > { %5972 = vperm.xlu1 %11400, %v5716_v29   ;;  %5967 = vperm.xlu0 %11399, %v5715_v30   ;;  %v12766_v23 = vpop.permute.xlu1 %461  ;;  %v12768_v24 = vpop.permute.xlu0 %458 }
  0xfc   : > { %9475 = vmatmul.mubr.msk.bf16.gmra.mrb[44].mxu1 %vm9474_vm9, %v11980_v49  ;;  %10051 = vmatmul.mubr.msk.bf16.gmra.mrb[44].mxu0 %vm9474_vm9, %v11980_v49  ;;  %vm782_vm9 = vcmp.eq.s32.totalorder %v12706_v2, %v12286_v38 }
  0xfd   : > { %9477 = vmatprep.mubr.msk.bf16.mxu1 %vm9476_vm10, %v11980_v49  ;;  %10053 = vmatprep.mubr.msk.bf16.mxu0 %vm9476_vm10, %v11980_v49  ;;  %vm790_vm10 = vcmp.eq.s32.totalorder %v12704_v1, %v12286_v38 }
  0xfe   : > { %5982 = vperm.xlu1 %11400, %v5718_v31   ;;  %5977 = vperm.xlu0 %11399, %v5717_v32   ;;  %vm9488_vm12 = vmpackc.low %vm790_vm10, %vm782_vm9  ;;  %vm813_vm9 = vcmp.eq.s32.totalorder %v12752_v22, %v12281_v35  ;;  %vm821_vm10 = vcmp.eq.s32.totalorder %v12750_v21, %v12281_v35  ;;  %v12782_v29 = vpop.permute.xlu1 %467  ;;  %v12784_v30 = vpop.permute.xlu0 %464 }
  0xff   : > { %vm9498_vm13 = vmpackc.low %vm821_vm10, %vm813_vm9 }
 0x102   : > { %5992 = vperm.xlu1 %11400, %v5720_v41   ;;  %5987 = vperm.xlu0 %11399, %v5719_v42   ;;  %v12798_v31 = vpop.permute.xlu1 %473  ;;  %v12800_v32 = vpop.permute.xlu0 %470 }
 0x104   : > { %9479 = vmatmul.mubr.msk.bf16.gmra.mrb[48].mxu1 %vm9478_vm15, %v11980_v49  ;;  %10055 = vmatmul.mubr.msk.bf16.gmra.mrb[48].mxu0 %vm9478_vm15, %v11980_v49  ;;  %vm798_vm15 = vcmp.eq.s32.totalorder %v12732_v14, %v12286_v38 }
 0x105   : > { %9481 = vmatprep.mubr.msk.bf16.mxu1 %vm9480_vm0, %v11980_v49  ;;  %10057 = vmatprep.mubr.msk.bf16.mxu0 %vm9480_vm0, %v11980_v49  ;;  %vm806_vm0 = vcmp.eq.s32.totalorder %v12730_v13, %v12286_v38 }
 0x106   : > { %6002 = vperm.xlu1 %11400, %v5722_v43   ;;  %5997 = vperm.xlu0 %11399, %v5721_v44   ;;  %vm9492_vm2 = vmpackc.low %vm806_vm0, %vm798_vm15  ;;  %vm829_vm15 = vcmp.eq.s32.totalorder %v12768_v24, %v12281_v35  ;;  %vm837_vm0 = vcmp.eq.s32.totalorder %v12766_v23, %v12281_v35  ;;  %v12814_v41 = vpop.permute.xlu1 %479  ;;  %v12816_v42 = vpop.permute.xlu0 %476 }
 0x107   : > { %vm9502_vm3 = vmpackc.low %vm837_vm0, %vm829_vm15 }
 0x10a   : > { %6012 = vperm.xlu1 %11400, %v5724_v56   ;;  %6007 = vperm.xlu0 %11399, %v5723_v57   ;;  %v12830_v43 = vpop.permute.xlu1 %485  ;;  %v12832_v44 = vpop.permute.xlu0 %482 }
 0x10c   : > { %9483 = vmatmul.mubr.msk.bf16.gmra.mrb[52].mxu1 %vm9482_vm5, %v11980_v49  ;;  %10059 = vmatmul.mubr.msk.bf16.gmra.mrb[52].mxu0 %vm9482_vm5, %v11980_v49  ;;  %vm814_vm5 = vcmp.eq.s32.totalorder %v12752_v22, %v12286_v38 }
 0x10d   : > { %9485 = vmatprep.mubr.msk.bf16.mxu1 %vm9484_vm6, %v11980_v49  ;;  %10061 = vmatprep.mubr.msk.bf16.mxu0 %vm9484_vm6, %v11980_v49  ;;  %vm822_vm6 = vcmp.eq.s32.totalorder %v12750_v21, %v12286_v38 }
 0x10e   : > { %6022 = vperm.xlu1 %11400, %v5726_v58   ;;  %6017 = vperm.xlu0 %11399, %v5725_v59   ;;  %vm9496_vm8 = vmpackc.low %vm822_vm6, %vm814_vm5  ;;  %vm845_vm5 = vcmp.eq.s32.totalorder %v12784_v30, %v12281_v35  ;;  %vm853_vm6 = vcmp.eq.s32.totalorder %v12782_v29, %v12281_v35  ;;  %v12846_v47 = vpop.permute.xlu1 %491  ;;  %v12848_v48 = vpop.permute.xlu0 %488 }
 0x10f   : > { %vm9506_vm9 = vmpackc.low %vm853_vm6, %vm845_vm5 }
 0x112   : > { %6032 = vperm.xlu1 %11400, %v5728_v3   ;;  %6027 = vperm.xlu0 %11399, %v5727_v4   ;;  %v12862_v56 = vpop.permute.xlu1 %497  ;;  %v12864_v57 = vpop.permute.xlu0 %494 }
 0x114   : > { %9487 = vmatmul.mubr.msk.bf16.gmra.mrb[56].mxu1 %vm9486_vm11, %v11980_v49  ;;  %10063 = vmatmul.mubr.msk.bf16.gmra.mrb[56].mxu0 %vm9486_vm11, %v11980_v49  ;;  %vm830_vm11 = vcmp.eq.s32.totalorder %v12768_v24, %v12286_v38 }
 0x115   : > { %9489 = vmatprep.mubr.msk.bf16.mxu1 %vm9488_vm12, %v11980_v49  ;;  %10065 = vmatprep.mubr.msk.bf16.mxu0 %vm9488_vm12, %v11980_v49  ;;  %vm838_vm12 = vcmp.eq.s32.totalorder %v12766_v23, %v12286_v38 }
 0x116   : > { %6042 = vperm.xlu1 %11400, %v5730_v5   ;;  %6037 = vperm.xlu0 %11399, %v5729_v6   ;;  %vm9500_vm14 = vmpackc.low %vm838_vm12, %vm830_vm11  ;;  %vm861_vm11 = vcmp.eq.s32.totalorder %v12800_v32, %v12281_v35  ;;  %vm869_vm12 = vcmp.eq.s32.totalorder %v12798_v31, %v12281_v35  ;;  %v12878_v58 = vpop.permute.xlu1 %503  ;;  %v12880_v59 = vpop.permute.xlu0 %500 }
 0x117   : > { %vm9510_vm15 = vmpackc.low %vm869_vm12, %vm861_vm11 }
 0x11a   : > { %6052 = vperm.xlu1 %11400, %v5732_v19   ;;  %6047 = vperm.xlu0 %11399, %v5731_v20   ;;  %v12894_v3 = vpop.permute.xlu1 %509  ;;  %v12896_v4 = vpop.permute.xlu0 %506 }
 0x11c   : > { %9491 = vmatmul.mubr.msk.bf16.gmra.mrb[60].mxu1 %vm9490_vm1, %v11980_v49  ;;  %10067 = vmatmul.mubr.msk.bf16.gmra.mrb[60].mxu0 %vm9490_vm1, %v11980_v49  ;;  %vm846_vm1 = vcmp.eq.s32.totalorder %v12784_v30, %v12286_v38 }
 0x11d   : > { %9493 = vmatprep.mubr.msk.bf16.mxu1 %vm9492_vm2, %v11980_v49  ;;  %10069 = vmatprep.mubr.msk.bf16.mxu0 %vm9492_vm2, %v11980_v49  ;;  %vm854_vm2 = vcmp.eq.s32.totalorder %v12782_v29, %v12286_v38 }
 0x11e   : > { %vm9504_vm4 = vmpackc.low %vm854_vm2, %vm846_vm1  ;;  %vm877_vm1 = vcmp.eq.s32.totalorder %v12816_v42, %v12281_v35  ;;  %vm885_vm2 = vcmp.eq.s32.totalorder %v12814_v41, %v12281_v35  ;;  %v12910_v5 = vpop.permute.xlu1 %515  ;;  %v12912_v6 = vpop.permute.xlu0 %512 }
 0x11f   : > { %vm9514_vm5 = vmpackc.low %vm885_vm2, %vm877_vm1 }
 0x122   : > { %v12926_v11 = vpop.permute.xlu1 %521  ;;  %v12928_v12 = vpop.permute.xlu0 %518 }
 0x123   : > { %17425 = vst [vmem:[#allocation8_spill] sm:$0xff] %v12926_v11  ;;  %17426 = vst [vmem:[#allocation9_spill] sm:$0xff] %v12928_v12 }
 0x124   : > { %9495 = vmatmul.mubr.msk.bf16.gmra.mrb[64].mxu1 %vm9494_vm7, %v11980_v49  ;;  %10071 = vmatmul.mubr.msk.bf16.gmra.mrb[64].mxu0 %vm9494_vm7, %v11980_v49  ;;  %vm862_vm7 = vcmp.eq.s32.totalorder %v12800_v32, %v12286_v38 }
 0x125   : > { %9497 = vmatprep.mubr.msk.bf16.mxu1 %vm9496_vm8, %v11980_v49  ;;  %10073 = vmatprep.mubr.msk.bf16.mxu0 %vm9496_vm8, %v11980_v49  ;;  %vm870_vm8 = vcmp.eq.s32.totalorder %v12798_v31, %v12286_v38 }
 0x126   : > { %vm9508_vm10 = vmpackc.low %vm870_vm8, %vm862_vm7  ;;  %vm893_vm7 = vcmp.eq.s32.totalorder %v12832_v44, %v12281_v35  ;;  %vm901_vm8 = vcmp.eq.s32.totalorder %v12830_v43, %v12281_v35  ;;  %v12942_v19 = vpop.permute.xlu1 %527  ;;  %v12944_v20 = vpop.permute.xlu0 %524 }
 0x127   : > { %vm9518_vm11 = vmpackc.low %vm901_vm8, %vm893_vm7  ;;  %17427 = vst [vmem:[#allocation10_spill] sm:$0xff] %v12942_v19 }
 0x128   : > { %17428 = vst [vmem:[#allocation11_spill] sm:$0xff] %v12944_v20 }
 0x12a   : > { %v12958_v0 = vpop.permute.xlu1 %533 }
 0x12b   : > { %17429 = vst [vmem:[#allocation12_spill] sm:$0xff] %v12958_v0 }
 0x12c   : > { %9499 = vmatmul.mubr.msk.bf16.gmra.mrb[68].mxu1 %vm9498_vm13, %v11980_v49  ;;  %10075 = vmatmul.mubr.msk.bf16.gmra.mrb[68].mxu0 %vm9498_vm13, %v11980_v49  ;;  %vm878_vm13 = vcmp.eq.s32.totalorder %v12816_v42, %v12286_v38 }
 0x12d   : > { %9501 = vmatprep.mubr.msk.bf16.mxu1 %vm9500_vm14, %v11980_v49  ;;  %10077 = vmatprep.mubr.msk.bf16.mxu0 %vm9500_vm14, %v11980_v49  ;;  %vm886_vm14 = vcmp.eq.s32.totalorder %v12814_v41, %v12286_v38 }
 0x12e   : > { %vm9512_vm0 = vmpackc.low %vm886_vm14, %vm878_vm13  ;;  %vm909_vm13 = vcmp.eq.s32.totalorder %v12848_v48, %v12281_v35  ;;  %vm917_vm14 = vcmp.eq.s32.totalorder %v12846_v47, %v12281_v35 }
 0x12f   : > { %vm9522_vm1 = vmpackc.low %vm917_vm14, %vm909_vm13 }
 0x134   : > { %9503 = vmatmul.mubr.msk.bf16.gmra.mrb[72].mxu1 %vm9502_vm3, %v11980_v49  ;;  %10079 = vmatmul.mubr.msk.bf16.gmra.mrb[72].mxu0 %vm9502_vm3, %v11980_v49  ;;  %vm894_vm3 = vcmp.eq.s32.totalorder %v12832_v44, %v12286_v38 }
 0x135   : > { %9505 = vmatprep.mubr.msk.bf16.mxu1 %vm9504_vm4, %v11980_v49  ;;  %10081 = vmatprep.mubr.msk.bf16.mxu0 %vm9504_vm4, %v11980_v49  ;;  %vm902_vm4 = vcmp.eq.s32.totalorder %v12830_v43, %v12286_v38 }
 0x136   : > { %vm9516_vm6 = vmpackc.low %vm902_vm4, %vm894_vm3  ;;  %vm925_vm3 = vcmp.eq.s32.totalorder %v12864_v57, %v12281_v35  ;;  %vm933_vm4 = vcmp.eq.s32.totalorder %v12862_v56, %v12281_v35 }
 0x137   : > { %vm9526_vm7 = vmpackc.low %vm933_vm4, %vm925_vm3 }
 0x13c   : > { %9507 = vmatmul.mubr.msk.bf16.gmra.mrb[76].mxu1 %vm9506_vm9, %v11980_v49  ;;  %10083 = vmatmul.mubr.msk.bf16.gmra.mrb[76].mxu0 %vm9506_vm9, %v11980_v49  ;;  %vm910_vm9 = vcmp.eq.s32.totalorder %v12848_v48, %v12286_v38 }
 0x13d   : > { %9509 = vmatprep.mubr.msk.bf16.mxu1 %vm9508_vm10, %v11980_v49  ;;  %10085 = vmatprep.mubr.msk.bf16.mxu0 %vm9508_vm10, %v11980_v49  ;;  %vm918_vm10 = vcmp.eq.s32.totalorder %v12846_v47, %v12286_v38 }
 0x13e   : > { %vm9520_vm12 = vmpackc.low %vm918_vm10, %vm910_vm9  ;;  %vm941_vm9 = vcmp.eq.s32.totalorder %v12880_v59, %v12281_v35  ;;  %vm949_vm10 = vcmp.eq.s32.totalorder %v12878_v58, %v12281_v35 }
 0x13f   : > { %vm9530_vm13 = vmpackc.low %vm949_vm10, %vm941_vm9 }
 0x144   : > { %9511 = vmatmul.mubr.msk.bf16.gmra.mrb[80].mxu1 %vm9510_vm15, %v11980_v49  ;;  %10087 = vmatmul.mubr.msk.bf16.gmra.mrb[80].mxu0 %vm9510_vm15, %v11980_v49  ;;  %vm926_vm15 = vcmp.eq.s32.totalorder %v12864_v57, %v12286_v38 }
 0x145   : > { %9513 = vmatprep.mubr.msk.bf16.mxu1 %vm9512_vm0, %v11980_v49  ;;  %10089 = vmatprep.mubr.msk.bf16.mxu0 %vm9512_vm0, %v11980_v49  ;;  %vm934_vm0 = vcmp.eq.s32.totalorder %v12862_v56, %v12286_v38 }
 0x146   : > { %vm9524_vm2 = vmpackc.low %vm934_vm0, %vm926_vm15  ;;  %vm957_vm15 = vcmp.eq.s32.totalorder %v12896_v4, %v12281_v35  ;;  %vm965_vm0 = vcmp.eq.s32.totalorder %v12894_v3, %v12281_v35 }
 0x147   : > { %vm9534_vm3 = vmpackc.low %vm965_vm0, %vm957_vm15 }
 0x14c   : > { %9515 = vmatmul.mubr.msk.bf16.gmra.mrb[84].mxu1 %vm9514_vm5, %v11980_v49  ;;  %10091 = vmatmul.mubr.msk.bf16.gmra.mrb[84].mxu0 %vm9514_vm5, %v11980_v49  ;;  %vm942_vm5 = vcmp.eq.s32.totalorder %v12880_v59, %v12286_v38 }
 0x14d   : > { %9517 = vmatprep.mubr.msk.bf16.mxu1 %vm9516_vm6, %v11980_v49  ;;  %10093 = vmatprep.mubr.msk.bf16.mxu0 %vm9516_vm6, %v11980_v49  ;;  %vm950_vm6 = vcmp.eq.s32.totalorder %v12878_v58, %v12286_v38 }
 0x14e   : > { %vm9528_vm8 = vmpackc.low %vm950_vm6, %vm942_vm5  ;;  %vm973_vm5 = vcmp.eq.s32.totalorder %v12912_v6, %v12281_v35  ;;  %vm981_vm6 = vcmp.eq.s32.totalorder %v12910_v5, %v12281_v35 }
 0x14f   : > { %vm9538_vm9 = vmpackc.low %vm981_vm6, %vm973_vm5 }
 0x154   : > { %9519 = vmatmul.mubr.msk.bf16.gmra.mrb[88].mxu1 %vm9518_vm11, %v11980_v49  ;;  %10095 = vmatmul.mubr.msk.bf16.gmra.mrb[88].mxu0 %vm9518_vm11, %v11980_v49  ;;  %vm958_vm11 = vcmp.eq.s32.totalorder %v12896_v4, %v12286_v38 }
 0x155   : > { %9521 = vmatprep.mubr.msk.bf16.mxu1 %vm9520_vm12, %v11980_v49  ;;  %10097 = vmatprep.mubr.msk.bf16.mxu0 %vm9520_vm12, %v11980_v49  ;;  %vm966_vm12 = vcmp.eq.s32.totalorder %v12894_v3, %v12286_v38 }
 0x156   : > { %vm9532_vm14 = vmpackc.low %vm966_vm12, %vm958_vm11  ;;  %vm989_vm11 = vcmp.eq.s32.totalorder %v12928_v12, %v12281_v35  ;;  %vm997_vm12 = vcmp.eq.s32.totalorder %v12926_v11, %v12281_v35 }
 0x157   : > { %vm9542_vm15 = vmpackc.low %vm997_vm12, %vm989_vm11 }
 0x15c   : > { %9523 = vmatmul.mubr.msk.bf16.gmra.mrb[92].mxu1 %vm9522_vm1, %v11980_v49  ;;  %10099 = vmatmul.mubr.msk.bf16.gmra.mrb[92].mxu0 %vm9522_vm1, %v11980_v49  ;;  %vm974_vm1 = vcmp.eq.s32.totalorder %v12912_v6, %v12286_v38 }
 0x15d   : > { %9525 = vmatprep.mubr.msk.bf16.mxu1 %vm9524_vm2, %v11980_v49  ;;  %10101 = vmatprep.mubr.msk.bf16.mxu0 %vm9524_vm2, %v11980_v49  ;;  %vm982_vm2 = vcmp.eq.s32.totalorder %v12910_v5, %v12286_v38 }
 0x15e   : > { %vm9536_vm4 = vmpackc.low %vm982_vm2, %vm974_vm1  ;;  %vm1005_vm1 = vcmp.eq.s32.totalorder %v12944_v20, %v12281_v35  ;;  %vm1013_vm2 = vcmp.eq.s32.totalorder %v12942_v19, %v12281_v35 }
 0x15f   : > { %vm9546_vm5 = vmpackc.low %vm1013_vm2, %vm1005_vm1 }
 0x164   : > { %9527 = vmatmul.mubr.msk.bf16.gmra.mrb[96].mxu1 %vm9526_vm7, %v11980_v49  ;;  %10103 = vmatmul.mubr.msk.bf16.gmra.mrb[96].mxu0 %vm9526_vm7, %v11980_v49  ;;  %vm990_vm7 = vcmp.eq.s32.totalorder %v12928_v12, %v12286_v38  ;;  %v12960_v12 = vpop.permute.xlu0 %530 }
 0x165   : > { %9529 = vmatprep.mubr.msk.bf16.mxu1 %vm9528_vm8, %v11980_v49  ;;  %10105 = vmatprep.mubr.msk.bf16.mxu0 %vm9528_vm8, %v11980_v49  ;;  %vm998_vm8 = vcmp.eq.s32.totalorder %v12926_v11, %v12286_v38  ;;  %17430 = vst [vmem:[#allocation13_spill] sm:$0xff] %v12960_v12 }
 0x166   : > { %vm9540_vm10 = vmpackc.low %vm998_vm8, %vm990_vm7  ;;  %vm1021_vm7 = vcmp.eq.s32.totalorder %v12960_v12, %v12281_v35  ;;  %vm1029_vm8 = vcmp.eq.s32.totalorder %v12958_v0, %v12281_v35 }
 0x167   : > { %vm9550_vm11 = vmpackc.low %vm1029_vm8, %vm1021_vm7 }
 0x168   : > { %v12976_v11 = vpop.permute.xlu0 %536 }
 0x169   : > { %17432 = vst [vmem:[#allocation15_spill] sm:$0xff] %v12976_v11 }
 0x16c   : > { %9531 = vmatmul.mubr.msk.bf16.gmra.mrb[100].mxu1 %vm9530_vm13, %v11980_v49  ;;  %10107 = vmatmul.mubr.msk.bf16.gmra.mrb[100].mxu0 %vm9530_vm13, %v11980_v49  ;;  %vm1006_vm13 = vcmp.eq.s32.totalorder %v12944_v20, %v12286_v38  ;;  %v12974_v20 = vpop.permute.xlu1 %539 }
 0x16d   : > { %9533 = vmatprep.mubr.msk.bf16.mxu1 %vm9532_vm14, %v11980_v49  ;;  %10109 = vmatprep.mubr.msk.bf16.mxu0 %vm9532_vm14, %v11980_v49  ;;  %vm1014_vm14 = vcmp.eq.s32.totalorder %v12942_v19, %v12286_v38  ;;  %17431 = vst [vmem:[#allocation14_spill] sm:$0xff] %v12974_v20 }
 0x16e   : > { %vm9544_vm0 = vmpackc.low %vm1014_vm14, %vm1006_vm13  ;;  %vm1037_vm13 = vcmp.eq.s32.totalorder %v12976_v11, %v12281_v35  ;;  %vm1045_vm14 = vcmp.eq.s32.totalorder %v12974_v20, %v12281_v35 }
 0x174   : > { %9535 = vmatmul.mubr.msk.bf16.gmra.mrb[104].mxu1 %vm9534_vm3, %v11980_v49  ;;  %10111 = vmatmul.mubr.msk.bf16.gmra.mrb[104].mxu0 %vm9534_vm3, %v11980_v49  ;;  %vm1022_vm3 = vcmp.eq.s32.totalorder %v12960_v12, %v12286_v38  ;;  %v12991_v12 = vadd.s32 384, %v12281_v35 }
 0x175   : > { %9537 = vmatprep.mubr.msk.bf16.mxu1 %vm9536_vm4, %v11980_v49  ;;  %10113 = vmatprep.mubr.msk.bf16.mxu0 %vm9536_vm4, %v11980_v49  ;;  %vm1030_vm4 = vcmp.eq.s32.totalorder %v12958_v0, %v12286_v38 }
 0x176   : > { %vm9548_vm6 = vmpackc.low %vm1030_vm4, %vm1022_vm3  ;;  %vm544_vm1 = vcmp.eq.s32.totalorder %v12290_v40, %v12991_v12 }
 0x17c   : > { %9539 = vmatmul.mubr.msk.bf16.gmra.mrb[108].mxu1 %vm9538_vm9, %v11980_v49  ;;  %10115 = vmatmul.mubr.msk.bf16.gmra.mrb[108].mxu0 %vm9538_vm9, %v11980_v49  ;;  %vm1038_vm9 = vcmp.eq.s32.totalorder %v12976_v11, %v12286_v38  ;;  %v11466_v11 = vld [vmem:[%s17245_s4 + $0x100] sm:$0xff]  }
 0x17d   : > { %9541 = vmatprep.mubr.msk.bf16.mxu1 %vm9540_vm10, %v11980_v49  ;;  %10117 = vmatprep.mubr.msk.bf16.mxu0 %vm9540_vm10, %v11980_v49  ;;  %vm1046_vm10 = vcmp.eq.s32.totalorder %v12974_v20, %v12286_v38  ;;  %v13006_v38 = vadd.s32 256, %v12281_v35  ;;  %v11465_v20 = vld [vmem:[%s17246_s5 + $0x100] sm:$0xff]   ;;  %v17433_v35 = vmov 0  }
 0x17e   : > { %vm9552_vm12 = vmpackc.low %vm1046_vm10, %vm1038_vm9 }
 0x17f   : > { %vm551_vm3 = vcmp.eq.s32.totalorder %v12302_v46, %v13006_v38  ;;  %vm543_vm4 = vcmp.eq.s32.totalorder %v12290_v40, %v13006_v38  ;;  %v11468_v40 = vld [vmem:[%s17245_s4 + $0x108] sm:$0xff]   ;;  %vm559_vm9 = vcmp.eq.s32.totalorder %v12288_v39, %v13006_v38  ;;  %vm567_vm10 = vcmp.eq.s32.totalorder %v12300_v45, %v13006_v38 }
 0x180   : > { %vm9558_vm7 = vmpackc.low %vm551_vm3, %vm543_vm4 }
 0x184   : > { %9543 = vmatmul.mubr.msk.bf16.gmra.mrb[112].mxu1 %vm9542_vm15, %v11980_v49  ;;  %10119 = vmatmul.mubr.msk.bf16.gmra.mrb[112].mxu0 %vm9542_vm15, %v11980_v49  ;;  %vm552_vm15 = vcmp.eq.s32.totalorder %v12302_v46, %v12991_v12  ;;  %v11467_v46 = vld [vmem:[%s17246_s5 + $0x108] sm:$0xff]  }
 0x185   : > { %9545 = vmatprep.mubr.msk.bf16.mxu1 %vm9544_vm0, %v11980_v49  ;;  %10121 = vmatprep.mubr.msk.bf16.mxu0 %vm9544_vm0, %v11980_v49  ;;  %vm9554_vm0 = vmpackc.low %vm1045_vm14, %vm1037_vm13 }
 0x186   : > { %vm9556_vm2 = vmpackc.low %vm552_vm15, %vm544_vm1  ;;  %vm575_vm15 = vcmp.eq.s32.totalorder %v12333_v53, %v13006_v38  ;;  %vm592_vm1 = vcmp.eq.s32.totalorder %v12368_v61, %v12991_v12 }
 0x187   : > { %vm9562_vm13 = vmpackc.low %vm567_vm10, %vm559_vm9 }
 0x18c   : > { %9547 = vmatmul.mubr.msk.bf16.gmra.mrb[116].mxu1 %vm9546_vm5, %v11980_v49  ;;  %10123 = vmatmul.mubr.msk.bf16.gmra.mrb[116].mxu0 %vm9546_vm5, %v11980_v49  ;;  %vm560_vm5 = vcmp.eq.s32.totalorder %v12288_v39, %v12991_v12 }
 0x18d   : > { %9549 = vmatprep.mubr.msk.bf16.mxu1 %vm9548_vm6, %v11980_v49  ;;  %10125 = vmatprep.mubr.msk.bf16.mxu0 %vm9548_vm6, %v11980_v49  ;;  %vm568_vm6 = vcmp.eq.s32.totalorder %v12300_v45, %v12991_v12 }
 0x18e   : > { %vm9560_vm8 = vmpackc.low %vm568_vm6, %vm560_vm5  ;;  %vm591_vm5 = vcmp.eq.s32.totalorder %v12368_v61, %v13006_v38  ;;  %vm599_vm6 = vcmp.eq.s32.totalorder %v12366_v60, %v13006_v38 }
 0x18f   : > { %vm9570_vm9 = vmpackc.low %vm599_vm6, %vm591_vm5 }
 0x194   : > { %9551 = vmatmul.mubr.msk.bf16.gmra.mrb[120].mxu1 %vm9550_vm11, %v11980_v49  ;;  %10127 = vmatmul.mubr.msk.bf16.gmra.mrb[120].mxu0 %vm9550_vm11, %v11980_v49  ;;  %vm576_vm11 = vcmp.eq.s32.totalorder %v12333_v53, %v12991_v12 }
 0x195   : > { %9553 = vmatprep.mubr.msk.bf16.mxu1 %vm9552_vm12, %v11980_v49  ;;  %10129 = vmatprep.mubr.msk.bf16.mxu0 %vm9552_vm12, %v11980_v49  ;;  %vm584_vm12 = vcmp.eq.s32.totalorder %v12331_v52, %v12991_v12 }
 0x196   : > { %vm9564_vm14 = vmpackc.low %vm584_vm12, %vm576_vm11  ;;  %vm607_vm11 = vcmp.eq.s32.totalorder %v12402_v8, %v13006_v38  ;;  %vm615_vm12 = vcmp.eq.s32.totalorder %v12400_v7, %v13006_v38 }
 0x19c   : > { %9555 = vmatmul.mubr.msk.bf16.gmra.mrb[124].mxu1 %vm9554_vm0, %v11980_v49  ;;  %10131 = vmatmul.mubr.msk.bf16.gmra.mrb[124].mxu0 %vm9554_vm0, %v11980_v49  ;;  %vm583_vm0 = vcmp.eq.s32.totalorder %v12331_v52, %v13006_v38 }
 0x19d   : > { %9557 = vmatprep.mubr.msk.bf16.mxu1 %vm9556_vm2, %v11980_v49  ;;  %10133 = vmatprep.mubr.msk.bf16.mxu0 %vm9556_vm2, %v11980_v49  ;;  %vm600_vm2 = vcmp.eq.s32.totalorder %v12366_v60, %v12991_v12  ;;  %vm9566_vm3 = vmpackc.low %vm583_vm0, %vm575_vm15 }
 0x19e   : > { %vm9568_vm4 = vmpackc.low %vm600_vm2, %vm592_vm1  ;;  %vm623_vm1 = vcmp.eq.s32.totalorder %v12432_v16, %v13006_v38  ;;  %vm631_vm2 = vcmp.eq.s32.totalorder %v12430_v15, %v13006_v38 }
 0x19f   : > { %vm9574_vm15 = vmpackc.low %vm615_vm12, %vm607_vm11 }
 0x1a0   : > { %vm9578_vm5 = vmpackc.low %vm631_vm2, %vm623_vm1 }
 0x1a4   : > { %9559 = vmatmul.mubr.msk.bf16.vlgmr.msra.gmra.mrb[0].mxu1 %vm9558_vm7, %v11980_v49  ;;  %10135 = vmatmul.mubr.msk.bf16.vlgmr.msra.gmra.mrb[0].mxu0 %vm9558_vm7, %v11980_v49  ;;  %vm608_vm7 = vcmp.eq.s32.totalorder %v12402_v8, %v12991_v12 }
 0x1a5   : > { %3552 = vmatpush1.bf16.msra.mxu1 %v11465_v20  ;;  %5092 = vmatpush1.bf16.msra.mxu0 %v11466_v11  ;;  %v11469_v11 = vld [vmem:[%s17246_s5 + $0x110] sm:$0xff]  }
 0x1a6   : > { %9561 = vmatprep.mubr.msk.bf16.mxu1 %vm9560_vm8, %v11980_v49  ;;  %10137 = vmatprep.mubr.msk.bf16.mxu0 %vm9560_vm8, %v11980_v49  ;;  %v11470_v20 = vld [vmem:[%s17245_s4 + $0x110] sm:$0xff]   ;;  %vm616_vm8 = vcmp.eq.s32.totalorder %v12400_v7, %v12991_v12 }
 0x1a7   : > { %3553 = vmatprep.subr.bf16.mxu1 %v17433_v35  ;;  %5093 = vmatprep.subr.bf16.mxu0 %v17433_v35  ;;  %vm9572_vm10 = vmpackc.low %vm616_vm8, %vm608_vm7  ;;  %vm639_vm7 = vcmp.eq.s32.totalorder %v12466_v26, %v13006_v38  ;;  %vm647_vm8 = vcmp.eq.s32.totalorder %v12464_v25, %v13006_v38 }
 0x1a8   : > { %vm9582_vm11 = vmpackc.low %vm647_vm8, %vm639_vm7 }
 0x1a9   : > { %3554 = vmatpush1.bf16.msra.mxu1 %v11467_v46  ;;  %5094 = vmatpush1.bf16.msra.mxu0 %v11468_v40  ;;  %v11471_v40 = vld [vmem:[%s17246_s5 + $0x118] sm:$0xff]  }
 0x1aa   : > { %3555 = vmatprep.subr.bf16.mxu1 %v17433_v35  ;;  %5095 = vmatprep.subr.bf16.mxu0 %v17433_v35  ;;  %v11472_v46 = vld [vmem:[%s17245_s4 + $0x118] sm:$0xff]  }
 0x1ac   : > { %9563 = vmatmul.mubr.msk.bf16.gmra.mrb[4].mxu1 %vm9562_vm13, %v11980_v49  ;;  %10139 = vmatmul.mubr.msk.bf16.gmra.mrb[4].mxu0 %vm9562_vm13, %v11980_v49  ;;  %vm624_vm13 = vcmp.eq.s32.totalorder %v12432_v16, %v12991_v12 }
 0x1ad   : > { %9565 = vmatprep.mubr.msk.bf16.mxu1 %vm9564_vm14, %v11980_v49  ;;  %10141 = vmatprep.mubr.msk.bf16.mxu0 %vm9564_vm14, %v11980_v49  ;;  %vm632_vm14 = vcmp.eq.s32.totalorder %v12430_v15, %v12991_v12 }
 0x1ae   : > { %3556 = vmatpush1.bf16.msra.mxu1 %v11469_v11  ;;  %5096 = vmatpush1.bf16.msra.mxu0 %v11470_v20  ;;  %v11473_v11 = vld [vmem:[%s17246_s5 + $0x120] sm:$0xff]   ;;  %vm9576_vm0 = vmpackc.low %vm632_vm14, %vm624_vm13  ;;  %vm655_vm13 = vcmp.eq.s32.totalorder %v12496_v34, %v13006_v38  ;;  %vm663_vm14 = vcmp.eq.s32.totalorder %v12494_v33, %v13006_v38 }
 0x1af   : > { %3557 = vmatprep.subr.bf16.mxu1 %v17433_v35  ;;  %5097 = vmatprep.subr.bf16.mxu0 %v17433_v35  ;;  %v11474_v20 = vld [vmem:[%s17245_s4 + $0x120] sm:$0xff]   ;;  %vm9586_vm1 = vmpackc.low %vm663_vm14, %vm655_vm13 }
 0x1b2   : > { %3558 = vmatpush1.bf16.msra.mxu1 %v11471_v40  ;;  %5098 = vmatpush1.bf16.msra.mxu0 %v11472_v46  ;;  %v11475_v40 = vld [vmem:[%s17246_s5 + $0x128] sm:$0xff]  }
 0x1b3   : > { %3559 = vmatprep.subr.bf16.mxu1 %v17433_v35  ;;  %5099 = vmatprep.subr.bf16.mxu0 %v17433_v35  ;;  %v11476_v46 = vld [vmem:[%s17245_s4 + $0x128] sm:$0xff]  }
 0x1b4   : > { %9567 = vmatmul.mubr.msk.bf16.gmra.mrb[8].mxu1 %vm9566_vm3, %v11980_v49  ;;  %10143 = vmatmul.mubr.msk.bf16.gmra.mrb[8].mxu0 %vm9566_vm3, %v11980_v49  ;;  %vm640_vm3 = vcmp.eq.s32.totalorder %v12466_v26, %v12991_v12 }
 0x1b5   : > { %9569 = vmatprep.mubr.msk.bf16.mxu1 %vm9568_vm4, %v11980_v49  ;;  %10145 = vmatprep.mubr.msk.bf16.mxu0 %vm9568_vm4, %v11980_v49  ;;  %vm648_vm4 = vcmp.eq.s32.totalorder %v12464_v25, %v12991_v12 }
 0x1b6   : > { %3560 = vmatpush1.bf16.msra.mxu1 %v11473_v11  ;;  %5100 = vmatpush1.bf16.msra.mxu0 %v11474_v20  ;;  %v11477_v11 = vld [vmem:[%s17246_s5 + $0x130] sm:$0xff]   ;;  %vm9580_vm6 = vmpackc.low %vm648_vm4, %vm640_vm3  ;;  %vm671_vm3 = vcmp.eq.s32.totalorder %v12530_v51, %v13006_v38  ;;  %vm679_vm4 = vcmp.eq.s32.totalorder %v12528_v50, %v13006_v38 }
 0x1b7   : > { %3561 = vmatprep.subr.bf16.mxu1 %v17433_v35  ;;  %5101 = vmatprep.subr.bf16.mxu0 %v17433_v35  ;;  %v11478_v20 = vld [vmem:[%s17245_s4 + $0x130] sm:$0xff]   ;;  %vm9590_vm7 = vmpackc.low %vm679_vm4, %vm671_vm3 }
 0x1ba   : > { %3562 = vmatpush1.bf16.msra.mxu1 %v11475_v40  ;;  %5102 = vmatpush1.bf16.msra.mxu0 %v11476_v46  ;;  %v11479_v40 = vld [vmem:[%s17246_s5 + $0x138] sm:$0xff]  }
 0x1bb   : > { %3563 = vmatprep.subr.bf16.mxu1 %v17433_v35  ;;  %5103 = vmatprep.subr.bf16.mxu0 %v17433_v35  ;;  %v11480_v46 = vld [vmem:[%s17245_s4 + $0x138] sm:$0xff]  }
 0x1bc   : > { %9571 = vmatmul.mubr.msk.bf16.gmra.mrb[12].mxu1 %vm9570_vm9, %v11980_v49  ;;  %10147 = vmatmul.mubr.msk.bf16.gmra.mrb[12].mxu0 %vm9570_vm9, %v11980_v49  ;;  %vm656_vm9 = vcmp.eq.s32.totalorder %v12496_v34, %v12991_v12 }
 0x1bd   : > { %9573 = vmatprep.mubr.msk.bf16.mxu1 %vm9572_vm10, %v11980_v49  ;;  %10149 = vmatprep.mubr.msk.bf16.mxu0 %vm9572_vm10, %v11980_v49  ;;  %vm664_vm10 = vcmp.eq.s32.totalorder %v12494_v33, %v12991_v12 }
 0x1be   : > { %3564 = vmatpush1.bf16.msra.mxu1 %v11477_v11  ;;  %5104 = vmatpush1.bf16.msra.mxu0 %v11478_v20  ;;  %v11481_v11 = vld [vmem:[%s17246_s5 + $0x140] sm:$0xff]   ;;  %vm9584_vm12 = vmpackc.low %vm664_vm10, %vm656_vm9  ;;  %vm687_vm9 = vcmp.eq.s32.totalorder %v12560_v63, %v13006_v38  ;;  %vm695_vm10 = vcmp.eq.s32.totalorder %v12558_v62, %v13006_v38 }
 0x1bf   : > { %3565 = vmatprep.subr.bf16.mxu1 %v17433_v35  ;;  %5105 = vmatprep.subr.bf16.mxu0 %v17433_v35  ;;  %v11482_v20 = vld [vmem:[%s17245_s4 + $0x140] sm:$0xff]   ;;  %vm9594_vm13 = vmpackc.low %vm695_vm10, %vm687_vm9 }
 0x1c2   : > { %3566 = vmatpush1.bf16.msra.mxu1 %v11479_v40  ;;  %5106 = vmatpush1.bf16.msra.mxu0 %v11480_v46  ;;  %v11483_v40 = vld [vmem:[%s17246_s5 + $0x148] sm:$0xff]  }
 0x1c3   : > { %3567 = vmatprep.subr.bf16.mxu1 %v17433_v35  ;;  %5107 = vmatprep.subr.bf16.mxu0 %v17433_v35  ;;  %v11484_v46 = vld [vmem:[%s17245_s4 + $0x148] sm:$0xff]  }
 0x1c4   : > { %9575 = vmatmul.mubr.msk.bf16.gmra.mrb[16].mxu1 %vm9574_vm15, %v11980_v49  ;;  %10151 = vmatmul.mubr.msk.bf16.gmra.mrb[16].mxu0 %vm9574_vm15, %v11980_v49  ;;  %vm672_vm15 = vcmp.eq.s32.totalorder %v12530_v51, %v12991_v12 }
 0x1c5   : > { %9577 = vmatprep.mubr.msk.bf16.mxu1 %vm9576_vm0, %v11980_v49  ;;  %10153 = vmatprep.mubr.msk.bf16.mxu0 %vm9576_vm0, %v11980_v49  ;;  %vm680_vm0 = vcmp.eq.s32.totalorder %v12528_v50, %v12991_v12 }
 0x1c6   : > { %3568 = vmatpush1.bf16.msra.mxu1 %v11481_v11  ;;  %5108 = vmatpush1.bf16.msra.mxu0 %v11482_v20  ;;  %v11485_v11 = vld [vmem:[%s17246_s5 + $0x150] sm:$0xff]   ;;  %vm9588_vm2 = vmpackc.low %vm680_vm0, %vm672_vm15  ;;  %vm703_vm15 = vcmp.eq.s32.totalorder %v12588_v10, %v13006_v38  ;;  %vm711_vm0 = vcmp.eq.s32.totalorder %v12586_v9, %v13006_v38 }
 0x1c7   : > { %3569 = vmatprep.subr.bf16.mxu1 %v17433_v35  ;;  %5109 = vmatprep.subr.bf16.mxu0 %v17433_v35  ;;  %v11486_v20 = vld [vmem:[%s17245_s4 + $0x150] sm:$0xff]   ;;  %vm9598_vm3 = vmpackc.low %vm711_vm0, %vm703_vm15 }
 0x1ca   : > { %3570 = vmatpush1.bf16.msra.mxu1 %v11483_v40  ;;  %5110 = vmatpush1.bf16.msra.mxu0 %v11484_v46  ;;  %v11487_v40 = vld [vmem:[%s17246_s5 + $0x158] sm:$0xff]  }
 0x1cb   : > { %3571 = vmatprep.subr.bf16.mxu1 %v17433_v35  ;;  %5111 = vmatprep.subr.bf16.mxu0 %v17433_v35  ;;  %v11488_v46 = vld [vmem:[%s17245_s4 + $0x158] sm:$0xff]  }
 0x1cc   : > { %9579 = vmatmul.mubr.msk.bf16.gmra.mrb[20].mxu1 %vm9578_vm5, %v11980_v49  ;;  %10155 = vmatmul.mubr.msk.bf16.gmra.mrb[20].mxu0 %vm9578_vm5, %v11980_v49  ;;  %vm688_vm5 = vcmp.eq.s32.totalorder %v12560_v63, %v12991_v12 }
 0x1cd   : > { %9581 = vmatprep.mubr.msk.bf16.mxu1 %vm9580_vm6, %v11980_v49  ;;  %10157 = vmatprep.mubr.msk.bf16.mxu0 %vm9580_vm6, %v11980_v49  ;;  %vm696_vm6 = vcmp.eq.s32.totalorder %v12558_v62, %v12991_v12 }
 0x1ce   : > { %3572 = vmatpush1.bf16.msra.mxu1 %v11485_v11  ;;  %5112 = vmatpush1.bf16.msra.mxu0 %v11486_v20  ;;  %vm9592_vm8 = vmpackc.low %vm696_vm6, %vm688_vm5  ;;  %v11489_v11 = vld [vmem:[%s17246_s5 + $0x160] sm:$0xff]   ;;  %vm719_vm5 = vcmp.eq.s32.totalorder %v12610_v18, %v13006_v38  ;;  %vm727_vm6 = vcmp.eq.s32.totalorder %v12608_v17, %v13006_v38 }
 0x1cf   : > { %3573 = vmatprep.subr.bf16.mxu1 %v17433_v35  ;;  %5113 = vmatprep.subr.bf16.mxu0 %v17433_v35  ;;  %v11490_v20 = vld [vmem:[%s17245_s4 + $0x160] sm:$0xff]   ;;  %vm9602_vm9 = vmpackc.low %vm727_vm6, %vm719_vm5 }
 0x1d2   : > { %3574 = vmatpush1.bf16.msra.mxu1 %v11487_v40  ;;  %5114 = vmatpush1.bf16.msra.mxu0 %v11488_v46  ;;  %v11491_v40 = vld [vmem:[%s17246_s5 + $0x168] sm:$0xff]  }
 0x1d3   : > { %3575 = vmatprep.subr.bf16.mxu1 %v17433_v35  ;;  %5115 = vmatprep.subr.bf16.mxu0 %v17433_v35  ;;  %v11492_v46 = vld [vmem:[%s17245_s4 + $0x168] sm:$0xff]  }
 0x1d4   : > { %9583 = vmatmul.mubr.msk.bf16.gmra.mrb[24].mxu1 %vm9582_vm11, %v11980_v49  ;;  %10159 = vmatmul.mubr.msk.bf16.gmra.mrb[24].mxu0 %vm9582_vm11, %v11980_v49  ;;  %vm704_vm11 = vcmp.eq.s32.totalorder %v12588_v10, %v12991_v12 }
 0x1d5   : > { %9585 = vmatprep.mubr.msk.bf16.mxu1 %vm9584_vm12, %v11980_v49  ;;  %10161 = vmatprep.mubr.msk.bf16.mxu0 %vm9584_vm12, %v11980_v49  ;;  %vm712_vm12 = vcmp.eq.s32.totalorder %v12586_v9, %v12991_v12 }
 0x1d6   : > { %3576 = vmatpush1.bf16.msra.mxu1 %v11489_v11  ;;  %5116 = vmatpush1.bf16.msra.mxu0 %v11490_v20  ;;  %vm9596_vm14 = vmpackc.low %vm712_vm12, %vm704_vm11  ;;  %vm735_vm11 = vcmp.eq.s32.totalorder %v12636_v28, %v13006_v38  ;;  %vm743_vm12 = vcmp.eq.s32.totalorder %v12634_v27, %v13006_v38  ;;  %v11493_v11 = vld [vmem:[%s17246_s5 + $0x170] sm:$0xff]  }
 0x1d7   : > { %3577 = vmatprep.subr.bf16.mxu1 %v17433_v35  ;;  %5117 = vmatprep.subr.bf16.mxu0 %v17433_v35  ;;  %vm9606_vm15 = vmpackc.low %vm743_vm12, %vm735_vm11  ;;  %v11494_v20 = vld [vmem:[%s17245_s4 + $0x170] sm:$0xff]  }
 0x1da   : > { %3578 = vmatpush1.bf16.msra.mxu1 %v11491_v40  ;;  %5118 = vmatpush1.bf16.msra.mxu0 %v11492_v46  ;;  %v11495_v40 = vld [vmem:[%s17246_s5 + $0x178] sm:$0xff]  }
 0x1db   : > { %3579 = vmatprep.subr.bf16.mxu1 %v17433_v35  ;;  %5119 = vmatprep.subr.bf16.mxu0 %v17433_v35  ;;  %v11496_v46 = vld [vmem:[%s17245_s4 + $0x178] sm:$0xff]  }
 0x1dc   : > { %9587 = vmatmul.mubr.msk.bf16.gmra.mrb[28].mxu1 %vm9586_vm1, %v11980_v49  ;;  %10163 = vmatmul.mubr.msk.bf16.gmra.mrb[28].mxu0 %vm9586_vm1, %v11980_v49  ;;  %vm720_vm1 = vcmp.eq.s32.totalorder %v12610_v18, %v12991_v12 }
 0x1dd   : > { %9589 = vmatprep.mubr.msk.bf16.mxu1 %vm9588_vm2, %v11980_v49  ;;  %10165 = vmatprep.mubr.msk.bf16.mxu0 %vm9588_vm2, %v11980_v49  ;;  %vm728_vm2 = vcmp.eq.s32.totalorder %v12608_v17, %v12991_v12 }
 0x1de   : > { %vm9600_vm4 = vmpackc.low %vm728_vm2, %vm720_vm1  ;;  %3580 = vmatpush1.bf16.msra.mxu1 %v11493_v11  ;;  %5120 = vmatpush1.bf16.msra.mxu0 %v11494_v20  ;;  %vm751_vm1 = vcmp.eq.s32.totalorder %v12658_v37, %v13006_v38  ;;  %vm759_vm2 = vcmp.eq.s32.totalorder %v12656_v36, %v13006_v38  ;;  %v17434_v11 = vld [vmem:[#allocation9_spill] sm:$0xff]  ;;  %v17435_v20 = vld [vmem:[#allocation8_spill] sm:$0xff] }
 0x1df   : > { %3581 = vmatprep.subr.bf16.mxu1 %v17433_v35  ;;  %5121 = vmatprep.subr.bf16.mxu0 %v17433_v35  ;;  %vm9610_vm5 = vmpackc.low %vm759_vm2, %vm751_vm1 }
 0x1e2   : > { %3582 = vmatpush1.bf16.msra.mxu1 %v11495_v40  ;;  %5122 = vmatpush1.bf16.msra.mxu0 %v11496_v46  ;;  %v17436_v40 = vld [vmem:[#allocation11_spill] sm:$0xff]  ;;  %v17437_v46 = vld [vmem:[#allocation13_spill] sm:$0xff] }
 0x1e3   : > { %3840 = vmatprep.subr.bf16.mxu1 %v17433_v35  ;;  %5380 = vmatprep.subr.bf16.mxu0 %v17433_v35 }
 0x1e4   : > { %9591 = vmatmul.mubr.msk.bf16.gmra.mrb[32].mxu1 %vm9590_vm7, %v11980_v49  ;;  %10167 = vmatmul.mubr.msk.bf16.gmra.mrb[32].mxu0 %vm9590_vm7, %v11980_v49  ;;  %vm736_vm7 = vcmp.eq.s32.totalorder %v12636_v28, %v12991_v12 }
 0x1e5   : > { %9593 = vmatprep.mubr.msk.bf16.mxu1 %vm9592_vm8, %v11980_v49  ;;  %10169 = vmatprep.mubr.msk.bf16.mxu0 %vm9592_vm8, %v11980_v49  ;;  %vm744_vm8 = vcmp.eq.s32.totalorder %v12634_v27, %v12991_v12 }
 0x1e6   : > { %vm9604_vm10 = vmpackc.low %vm744_vm8, %vm736_vm7  ;;  %vm767_vm7 = vcmp.eq.s32.totalorder %v12684_v55, %v13006_v38  ;;  %vm775_vm8 = vcmp.eq.s32.totalorder %v12682_v54, %v13006_v38 }
 0x1e7   : > { %vm9614_vm11 = vmpackc.low %vm775_vm8, %vm767_vm7 }
 0x1ec   : > { %9595 = vmatmul.mubr.msk.bf16.gmra.mrb[36].mxu1 %vm9594_vm13, %v11980_v49  ;;  %10171 = vmatmul.mubr.msk.bf16.gmra.mrb[36].mxu0 %vm9594_vm13, %v11980_v49  ;;  %vm752_vm13 = vcmp.eq.s32.totalorder %v12658_v37, %v12991_v12 }
 0x1ed   : > { %9597 = vmatprep.mubr.msk.bf16.mxu1 %vm9596_vm14, %v11980_v49  ;;  %10173 = vmatprep.mubr.msk.bf16.mxu0 %vm9596_vm14, %v11980_v49  ;;  %vm760_vm14 = vcmp.eq.s32.totalorder %v12656_v36, %v12991_v12 }
 0x1ee   : > { %vm9608_vm0 = vmpackc.low %vm760_vm14, %vm752_vm13  ;;  %vm783_vm13 = vcmp.eq.s32.totalorder %v12706_v2, %v13006_v38  ;;  %vm791_vm14 = vcmp.eq.s32.totalorder %v12704_v1, %v13006_v38 }
 0x1ef   : > { %vm9618_vm1 = vmpackc.low %vm791_vm14, %vm783_vm13 }
 0x1f4   : > { %9599 = vmatmul.mubr.msk.bf16.gmra.mrb[40].mxu1 %vm9598_vm3, %v11980_v49  ;;  %10175 = vmatmul.mubr.msk.bf16.gmra.mrb[40].mxu0 %vm9598_vm3, %v11980_v49  ;;  %vm768_vm3 = vcmp.eq.s32.totalorder %v12684_v55, %v12991_v12 }
 0x1f5   : > { %9601 = vmatprep.mubr.msk.bf16.mxu1 %vm9600_vm4, %v11980_v49  ;;  %10177 = vmatprep.mubr.msk.bf16.mxu0 %vm9600_vm4, %v11980_v49  ;;  %vm776_vm4 = vcmp.eq.s32.totalorder %v12682_v54, %v12991_v12 }
 0x1f6   : > { %vm9612_vm6 = vmpackc.low %vm776_vm4, %vm768_vm3  ;;  %vm799_vm3 = vcmp.eq.s32.totalorder %v12732_v14, %v13006_v38  ;;  %vm807_vm4 = vcmp.eq.s32.totalorder %v12730_v13, %v13006_v38 }
 0x1f7   : > { %vm9622_vm7 = vmpackc.low %vm807_vm4, %vm799_vm3 }
 0x1fc   : > { %9603 = vmatmul.mubr.msk.bf16.gmra.mrb[44].mxu1 %vm9602_vm9, %v11980_v49  ;;  %10179 = vmatmul.mubr.msk.bf16.gmra.mrb[44].mxu0 %vm9602_vm9, %v11980_v49  ;;  %vm784_vm9 = vcmp.eq.s32.totalorder %v12706_v2, %v12991_v12 }
 0x1fd   : > { %9605 = vmatprep.mubr.msk.bf16.mxu1 %vm9604_vm10, %v11980_v49  ;;  %10181 = vmatprep.mubr.msk.bf16.mxu0 %vm9604_vm10, %v11980_v49  ;;  %vm792_vm10 = vcmp.eq.s32.totalorder %v12704_v1, %v12991_v12 }
 0x1fe   : > { %vm9616_vm12 = vmpackc.low %vm792_vm10, %vm784_vm9  ;;  %vm815_vm9 = vcmp.eq.s32.totalorder %v12752_v22, %v13006_v38  ;;  %vm823_vm10 = vcmp.eq.s32.totalorder %v12750_v21, %v13006_v38 }
 0x1ff   : > { %vm9626_vm13 = vmpackc.low %vm823_vm10, %vm815_vm9 }
 0x204   : > { %9607 = vmatmul.mubr.msk.bf16.gmra.mrb[48].mxu1 %vm9606_vm15, %v11980_v49  ;;  %10183 = vmatmul.mubr.msk.bf16.gmra.mrb[48].mxu0 %vm9606_vm15, %v11980_v49  ;;  %vm800_vm15 = vcmp.eq.s32.totalorder %v12732_v14, %v12991_v12 }
 0x205   : > { %9609 = vmatprep.mubr.msk.bf16.mxu1 %vm9608_vm0, %v11980_v49  ;;  %10185 = vmatprep.mubr.msk.bf16.mxu0 %vm9608_vm0, %v11980_v49  ;;  %vm808_vm0 = vcmp.eq.s32.totalorder %v12730_v13, %v12991_v12 }
 0x206   : > { %vm9620_vm2 = vmpackc.low %vm808_vm0, %vm800_vm15  ;;  %vm831_vm15 = vcmp.eq.s32.totalorder %v12768_v24, %v13006_v38  ;;  %vm839_vm0 = vcmp.eq.s32.totalorder %v12766_v23, %v13006_v38 }
 0x207   : > { %vm9630_vm3 = vmpackc.low %vm839_vm0, %vm831_vm15 }
 0x20c   : > { %9611 = vmatmul.mubr.msk.bf16.gmra.mrb[52].mxu1 %vm9610_vm5, %v11980_v49  ;;  %10187 = vmatmul.mubr.msk.bf16.gmra.mrb[52].mxu0 %vm9610_vm5, %v11980_v49  ;;  %vm816_vm5 = vcmp.eq.s32.totalorder %v12752_v22, %v12991_v12 }
 0x20d   : > { %9613 = vmatprep.mubr.msk.bf16.mxu1 %vm9612_vm6, %v11980_v49  ;;  %10189 = vmatprep.mubr.msk.bf16.mxu0 %vm9612_vm6, %v11980_v49  ;;  %vm824_vm6 = vcmp.eq.s32.totalorder %v12750_v21, %v12991_v12 }
 0x20e   : > { %vm9624_vm8 = vmpackc.low %vm824_vm6, %vm816_vm5  ;;  %vm847_vm5 = vcmp.eq.s32.totalorder %v12784_v30, %v13006_v38  ;;  %vm855_vm6 = vcmp.eq.s32.totalorder %v12782_v29, %v13006_v38 }
 0x20f   : > { %vm9634_vm9 = vmpackc.low %vm855_vm6, %vm847_vm5 }
 0x214   : > { %9615 = vmatmul.mubr.msk.bf16.gmra.mrb[56].mxu1 %vm9614_vm11, %v11980_v49  ;;  %10191 = vmatmul.mubr.msk.bf16.gmra.mrb[56].mxu0 %vm9614_vm11, %v11980_v49  ;;  %vm832_vm11 = vcmp.eq.s32.totalorder %v12768_v24, %v12991_v12 }
 0x215   : > { %9617 = vmatprep.mubr.msk.bf16.mxu1 %vm9616_vm12, %v11980_v49  ;;  %10193 = vmatprep.mubr.msk.bf16.mxu0 %vm9616_vm12, %v11980_v49  ;;  %vm840_vm12 = vcmp.eq.s32.totalorder %v12766_v23, %v12991_v12 }
 0x216   : > { %vm9628_vm14 = vmpackc.low %vm840_vm12, %vm832_vm11  ;;  %vm863_vm11 = vcmp.eq.s32.totalorder %v12800_v32, %v13006_v38  ;;  %vm871_vm12 = vcmp.eq.s32.totalorder %v12798_v31, %v13006_v38 }
 0x217   : > { %vm9638_vm15 = vmpackc.low %vm871_vm12, %vm863_vm11 }
 0x21c   : > { %9619 = vmatmul.mubr.msk.bf16.gmra.mrb[60].mxu1 %vm9618_vm1, %v11980_v49  ;;  %10195 = vmatmul.mubr.msk.bf16.gmra.mrb[60].mxu0 %vm9618_vm1, %v11980_v49  ;;  %vm848_vm1 = vcmp.eq.s32.totalorder %v12784_v30, %v12991_v12 }
 0x21d   : > { %9621 = vmatprep.mubr.msk.bf16.mxu1 %vm9620_vm2, %v11980_v49  ;;  %10197 = vmatprep.mubr.msk.bf16.mxu0 %vm9620_vm2, %v11980_v49  ;;  %vm856_vm2 = vcmp.eq.s32.totalorder %v12782_v29, %v12991_v12 }
 0x21e   : > { %vm9632_vm4 = vmpackc.low %vm856_vm2, %vm848_vm1  ;;  %vm879_vm1 = vcmp.eq.s32.totalorder %v12816_v42, %v13006_v38  ;;  %vm887_vm2 = vcmp.eq.s32.totalorder %v12814_v41, %v13006_v38 }
 0x21f   : > { %vm9642_vm5 = vmpackc.low %vm887_vm2, %vm879_vm1 }
 0x224   : > { %9623 = vmatmul.mubr.msk.bf16.gmra.mrb[64].mxu1 %vm9622_vm7, %v11980_v49  ;;  %10199 = vmatmul.mubr.msk.bf16.gmra.mrb[64].mxu0 %vm9622_vm7, %v11980_v49  ;;  %vm864_vm7 = vcmp.eq.s32.totalorder %v12800_v32, %v12991_v12 }
 0x225   : > { %9625 = vmatprep.mubr.msk.bf16.mxu1 %vm9624_vm8, %v11980_v49  ;;  %10201 = vmatprep.mubr.msk.bf16.mxu0 %vm9624_vm8, %v11980_v49  ;;  %vm872_vm8 = vcmp.eq.s32.totalorder %v12798_v31, %v12991_v12 }
 0x226   : > { %vm9636_vm10 = vmpackc.low %vm872_vm8, %vm864_vm7  ;;  %vm895_vm7 = vcmp.eq.s32.totalorder %v12832_v44, %v13006_v38  ;;  %vm903_vm8 = vcmp.eq.s32.totalorder %v12830_v43, %v13006_v38 }
 0x227   : > { %vm9646_vm11 = vmpackc.low %vm903_vm8, %vm895_vm7 }
 0x22c   : > { %9627 = vmatmul.mubr.msk.bf16.gmra.mrb[68].mxu1 %vm9626_vm13, %v11980_v49  ;;  %10203 = vmatmul.mubr.msk.bf16.gmra.mrb[68].mxu0 %vm9626_vm13, %v11980_v49  ;;  %vm880_vm13 = vcmp.eq.s32.totalorder %v12816_v42, %v12991_v12 }
 0x22d   : > { %9629 = vmatprep.mubr.msk.bf16.mxu1 %vm9628_vm14, %v11980_v49  ;;  %10205 = vmatprep.mubr.msk.bf16.mxu0 %vm9628_vm14, %v11980_v49  ;;  %vm888_vm14 = vcmp.eq.s32.totalorder %v12814_v41, %v12991_v12 }
 0x22e   : > { %vm9640_vm0 = vmpackc.low %vm888_vm14, %vm880_vm13  ;;  %vm911_vm13 = vcmp.eq.s32.totalorder %v12848_v48, %v13006_v38  ;;  %vm919_vm14 = vcmp.eq.s32.totalorder %v12846_v47, %v13006_v38 }
 0x22f   : > { %vm9650_vm1 = vmpackc.low %vm919_vm14, %vm911_vm13 }
 0x234   : > { %9631 = vmatmul.mubr.msk.bf16.gmra.mrb[72].mxu1 %vm9630_vm3, %v11980_v49  ;;  %10207 = vmatmul.mubr.msk.bf16.gmra.mrb[72].mxu0 %vm9630_vm3, %v11980_v49  ;;  %vm896_vm3 = vcmp.eq.s32.totalorder %v12832_v44, %v12991_v12 }
 0x235   : > { %9633 = vmatprep.mubr.msk.bf16.mxu1 %vm9632_vm4, %v11980_v49  ;;  %10209 = vmatprep.mubr.msk.bf16.mxu0 %vm9632_vm4, %v11980_v49  ;;  %vm904_vm4 = vcmp.eq.s32.totalorder %v12830_v43, %v12991_v12 }
 0x236   : > { %vm9644_vm6 = vmpackc.low %vm904_vm4, %vm896_vm3  ;;  %vm927_vm3 = vcmp.eq.s32.totalorder %v12864_v57, %v13006_v38  ;;  %vm935_vm4 = vcmp.eq.s32.totalorder %v12862_v56, %v13006_v38 }
 0x237   : > { %vm9654_vm7 = vmpackc.low %vm935_vm4, %vm927_vm3 }
 0x23c   : > { %9635 = vmatmul.mubr.msk.bf16.gmra.mrb[76].mxu1 %vm9634_vm9, %v11980_v49  ;;  %10211 = vmatmul.mubr.msk.bf16.gmra.mrb[76].mxu0 %vm9634_vm9, %v11980_v49  ;;  %vm912_vm9 = vcmp.eq.s32.totalorder %v12848_v48, %v12991_v12 }
 0x23d   : > { %9637 = vmatprep.mubr.msk.bf16.mxu1 %vm9636_vm10, %v11980_v49  ;;  %10213 = vmatprep.mubr.msk.bf16.mxu0 %vm9636_vm10, %v11980_v49  ;;  %vm920_vm10 = vcmp.eq.s32.totalorder %v12846_v47, %v12991_v12 }
 0x23e   : > { %vm9648_vm12 = vmpackc.low %vm920_vm10, %vm912_vm9  ;;  %vm943_vm9 = vcmp.eq.s32.totalorder %v12880_v59, %v13006_v38  ;;  %vm951_vm10 = vcmp.eq.s32.totalorder %v12878_v58, %v13006_v38 }
 0x23f   : > { %vm9658_vm13 = vmpackc.low %vm951_vm10, %vm943_vm9 }
 0x244   : > { %9639 = vmatmul.mubr.msk.bf16.gmra.mrb[80].mxu1 %vm9638_vm15, %v11980_v49  ;;  %10215 = vmatmul.mubr.msk.bf16.gmra.mrb[80].mxu0 %vm9638_vm15, %v11980_v49  ;;  %vm928_vm15 = vcmp.eq.s32.totalorder %v12864_v57, %v12991_v12 }
 0x245   : > { %9641 = vmatprep.mubr.msk.bf16.mxu1 %vm9640_vm0, %v11980_v49  ;;  %10217 = vmatprep.mubr.msk.bf16.mxu0 %vm9640_vm0, %v11980_v49  ;;  %vm936_vm0 = vcmp.eq.s32.totalorder %v12862_v56, %v12991_v12 }
 0x246   : > { %vm9652_vm2 = vmpackc.low %vm936_vm0, %vm928_vm15  ;;  %vm959_vm15 = vcmp.eq.s32.totalorder %v12896_v4, %v13006_v38  ;;  %vm967_vm0 = vcmp.eq.s32.totalorder %v12894_v3, %v13006_v38 }
 0x247   : > { %vm9662_vm3 = vmpackc.low %vm967_vm0, %vm959_vm15 }
 0x24c   : > { %9643 = vmatmul.mubr.msk.bf16.gmra.mrb[84].mxu1 %vm9642_vm5, %v11980_v49  ;;  %10219 = vmatmul.mubr.msk.bf16.gmra.mrb[84].mxu0 %vm9642_vm5, %v11980_v49  ;;  %vm944_vm5 = vcmp.eq.s32.totalorder %v12880_v59, %v12991_v12 }
 0x24d   : > { %9645 = vmatprep.mubr.msk.bf16.mxu1 %vm9644_vm6, %v11980_v49  ;;  %10221 = vmatprep.mubr.msk.bf16.mxu0 %vm9644_vm6, %v11980_v49  ;;  %vm952_vm6 = vcmp.eq.s32.totalorder %v12878_v58, %v12991_v12 }
 0x24e   : > { %vm9656_vm8 = vmpackc.low %vm952_vm6, %vm944_vm5  ;;  %vm975_vm5 = vcmp.eq.s32.totalorder %v12912_v6, %v13006_v38  ;;  %vm983_vm6 = vcmp.eq.s32.totalorder %v12910_v5, %v13006_v38 }
 0x24f   : > { %vm9666_vm9 = vmpackc.low %vm983_vm6, %vm975_vm5 }
 0x254   : > { %9647 = vmatmul.mubr.msk.bf16.gmra.mrb[88].mxu1 %vm9646_vm11, %v11980_v49  ;;  %10223 = vmatmul.mubr.msk.bf16.gmra.mrb[88].mxu0 %vm9646_vm11, %v11980_v49  ;;  %vm960_vm11 = vcmp.eq.s32.totalorder %v12896_v4, %v12991_v12 }
 0x255   : > { %9649 = vmatprep.mubr.msk.bf16.mxu1 %vm9648_vm12, %v11980_v49  ;;  %10225 = vmatprep.mubr.msk.bf16.mxu0 %vm9648_vm12, %v11980_v49  ;;  %vm968_vm12 = vcmp.eq.s32.totalorder %v12894_v3, %v12991_v12 }
 0x256   : > { %vm9660_vm14 = vmpackc.low %vm968_vm12, %vm960_vm11  ;;  %vm991_vm11 = vcmp.eq.s32.totalorder %v17434_v11, %v13006_v38  ;;  %vm999_vm12 = vcmp.eq.s32.totalorder %v17435_v20, %v13006_v38 }
 0x257   : > { %vm9670_vm15 = vmpackc.low %vm999_vm12, %vm991_vm11 }
 0x25c   : > { %9651 = vmatmul.mubr.msk.bf16.gmra.mrb[92].mxu1 %vm9650_vm1, %v11980_v49  ;;  %10227 = vmatmul.mubr.msk.bf16.gmra.mrb[92].mxu0 %vm9650_vm1, %v11980_v49  ;;  %vm976_vm1 = vcmp.eq.s32.totalorder %v12912_v6, %v12991_v12 }
 0x25d   : > { %9653 = vmatprep.mubr.msk.bf16.mxu1 %vm9652_vm2, %v11980_v49  ;;  %10229 = vmatprep.mubr.msk.bf16.mxu0 %vm9652_vm2, %v11980_v49  ;;  %vm984_vm2 = vcmp.eq.s32.totalorder %v12910_v5, %v12991_v12 }
 0x25e   : > { %vm9664_vm4 = vmpackc.low %vm984_vm2, %vm976_vm1  ;;  %vm1007_vm1 = vcmp.eq.s32.totalorder %v17436_v40, %v13006_v38  ;;  %vm1015_vm2 = vcmp.eq.s32.totalorder %v12942_v19, %v13006_v38 }
 0x25f   : > { %vm9674_vm5 = vmpackc.low %vm1015_vm2, %vm1007_vm1 }
 0x264   : > { %9655 = vmatmul.mubr.msk.bf16.gmra.mrb[96].mxu1 %vm9654_vm7, %v11980_v49  ;;  %10231 = vmatmul.mubr.msk.bf16.gmra.mrb[96].mxu0 %vm9654_vm7, %v11980_v49  ;;  %vm992_vm7 = vcmp.eq.s32.totalorder %v17434_v11, %v12991_v12 }
 0x265   : > { %9657 = vmatprep.mubr.msk.bf16.mxu1 %vm9656_vm8, %v11980_v49  ;;  %10233 = vmatprep.mubr.msk.bf16.mxu0 %vm9656_vm8, %v11980_v49  ;;  %vm1000_vm8 = vcmp.eq.s32.totalorder %v17435_v20, %v12991_v12 }
 0x266   : > { %vm9668_vm10 = vmpackc.low %vm1000_vm8, %vm992_vm7  ;;  %vm1023_vm7 = vcmp.eq.s32.totalorder %v17437_v46, %v13006_v38  ;;  %vm1031_vm8 = vcmp.eq.s32.totalorder %v12958_v0, %v13006_v38 }
 0x267   : > { %vm9678_vm11 = vmpackc.low %vm1031_vm8, %vm1023_vm7 }
 0x26c   : > { %9659 = vmatmul.mubr.msk.bf16.gmra.mrb[100].mxu1 %vm9658_vm13, %v11980_v49  ;;  %10235 = vmatmul.mubr.msk.bf16.gmra.mrb[100].mxu0 %vm9658_vm13, %v11980_v49  ;;  %vm1008_vm13 = vcmp.eq.s32.totalorder %v17436_v40, %v12991_v12  ;;  %v17439_v40 = vld [vmem:[#allocation14_spill] sm:$0xff] }
 0x26d   : > { %9661 = vmatprep.mubr.msk.bf16.mxu1 %vm9660_vm14, %v11980_v49  ;;  %10237 = vmatprep.mubr.msk.bf16.mxu0 %vm9660_vm14, %v11980_v49  ;;  %vm1016_vm14 = vcmp.eq.s32.totalorder %v12942_v19, %v12991_v12  ;;  %v17438_v19 = vld [vmem:[#allocation15_spill] sm:$0xff] }
 0x26e   : > { %vm9672_vm0 = vmpackc.low %vm1016_vm14, %vm1008_vm13  ;;  %vm1039_vm13 = vcmp.eq.s32.totalorder %v17438_v19, %v13006_v38  ;;  %vm1047_vm14 = vcmp.eq.s32.totalorder %v17439_v40, %v13006_v38  ;;  %v11497_v38 = vld [vmem:[%s17246_s5 + $0x180] sm:$0xff]  }
 0x274   : > { %9663 = vmatmul.mubr.msk.bf16.gmra.mrb[104].mxu1 %vm9662_vm3, %v11980_v49  ;;  %10239 = vmatmul.mubr.msk.bf16.gmra.mrb[104].mxu0 %vm9662_vm3, %v11980_v49  ;;  %vm1024_vm3 = vcmp.eq.s32.totalorder %v17437_v46, %v12991_v12  ;;  %v17440_v46 = vld [vmem:[#allocation5_spill] sm:$0xff] }
 0x275   : > { %9665 = vmatprep.mubr.msk.bf16.mxu1 %vm9664_vm4, %v11980_v49  ;;  %10241 = vmatprep.mubr.msk.bf16.mxu0 %vm9664_vm4, %v11980_v49  ;;  %vm1032_vm4 = vcmp.eq.s32.totalorder %v12958_v0, %v12991_v12  ;;  %v13509_v20 = vadd.s32 640, %v17440_v46  ;;  %v17442_v0 = vld [vmem:[#allocation6_spill] sm:$0xff] }
 0x276   : > { %vm9676_vm6 = vmpackc.low %vm1032_vm4, %vm1024_vm3 }
 0x277   : > { %vm546_vm1 = vcmp.eq.s32.totalorder %v17442_v0, %v13509_v20 }
 0x27c   : > { %9667 = vmatmul.mubr.msk.bf16.gmra.mrb[108].mxu1 %vm9666_vm9, %v11980_v49  ;;  %10243 = vmatmul.mubr.msk.bf16.gmra.mrb[108].mxu0 %vm9666_vm9, %v11980_v49  ;;  %vm1040_vm9 = vcmp.eq.s32.totalorder %v17438_v19, %v12991_v12  ;;  %v13524_v19 = vadd.s32 512, %v17440_v46 }
 0x27d   : > { %9669 = vmatprep.mubr.msk.bf16.mxu1 %vm9668_vm10, %v11980_v49  ;;  %10245 = vmatprep.mubr.msk.bf16.mxu0 %vm9668_vm10, %v11980_v49  ;;  %vm1048_vm10 = vcmp.eq.s32.totalorder %v17439_v40, %v12991_v12  ;;  %v17441_v12 = vld [vmem:[#allocation7_spill] sm:$0xff]  ;;  %v11498_v40 = vld [vmem:[%s17245_s4 + $0x180] sm:$0xff]  }
 0x27e   : > { %vm9680_vm12 = vmpackc.low %vm1048_vm10, %vm1040_vm9  ;;  %vm553_vm3 = vcmp.eq.s32.totalorder %v17441_v12, %v13524_v19  ;;  %vm545_vm4 = vcmp.eq.s32.totalorder %v17442_v0, %v13524_v19  ;;  %v11500_v0 = vld [vmem:[%s17245_s4 + $0x188] sm:$0xff]   ;;  %vm561_vm9 = vcmp.eq.s32.totalorder %v12288_v39, %v13524_v19  ;;  %vm569_vm10 = vcmp.eq.s32.totalorder %v12300_v45, %v13524_v19 }
 0x27f   : > { %vm9686_vm7 = vmpackc.low %vm553_vm3, %vm545_vm4 }
 0x284   : > { %9671 = vmatmul.mubr.msk.bf16.gmra.mrb[112].mxu1 %vm9670_vm15, %v11980_v49  ;;  %10247 = vmatmul.mubr.msk.bf16.gmra.mrb[112].mxu0 %vm9670_vm15, %v11980_v49  ;;  %vm554_vm15 = vcmp.eq.s32.totalorder %v17441_v12, %v13509_v20  ;;  %v11499_v12 = vld [vmem:[%s17246_s5 + $0x188] sm:$0xff]  }
 0x285   : > { %9673 = vmatprep.mubr.msk.bf16.mxu1 %vm9672_vm0, %v11980_v49  ;;  %10249 = vmatprep.mubr.msk.bf16.mxu0 %vm9672_vm0, %v11980_v49  ;;  %vm9682_vm0 = vmpackc.low %vm1047_vm14, %vm1039_vm13 }
 0x286   : > { %vm9684_vm2 = vmpackc.low %vm554_vm15, %vm546_vm1  ;;  %vm577_vm15 = vcmp.eq.s32.totalorder %v12333_v53, %v13524_v19  ;;  %vm594_vm1 = vcmp.eq.s32.totalorder %v12368_v61, %v13509_v20 }
 0x287   : > { %vm9690_vm13 = vmpackc.low %vm569_vm10, %vm561_vm9 }
 0x28c   : > { %9675 = vmatmul.mubr.msk.bf16.gmra.mrb[116].mxu1 %vm9674_vm5, %v11980_v49  ;;  %10251 = vmatmul.mubr.msk.bf16.gmra.mrb[116].mxu0 %vm9674_vm5, %v11980_v49  ;;  %vm562_vm5 = vcmp.eq.s32.totalorder %v12288_v39, %v13509_v20 }
 0x28d   : > { %9677 = vmatprep.mubr.msk.bf16.mxu1 %vm9676_vm6, %v11980_v49  ;;  %10253 = vmatprep.mubr.msk.bf16.mxu0 %vm9676_vm6, %v11980_v49  ;;  %vm570_vm6 = vcmp.eq.s32.totalorder %v12300_v45, %v13509_v20 }
 0x28e   : > { %vm9688_vm8 = vmpackc.low %vm570_vm6, %vm562_vm5  ;;  %vm593_vm5 = vcmp.eq.s32.totalorder %v12368_v61, %v13524_v19  ;;  %vm601_vm6 = vcmp.eq.s32.totalorder %v12366_v60, %v13524_v19 }
 0x28f   : > { %vm9698_vm9 = vmpackc.low %vm601_vm6, %vm593_vm5 }
 0x294   : > { %9679 = vmatmul.mubr.msk.bf16.gmra.mrb[120].mxu1 %vm9678_vm11, %v11980_v49  ;;  %10255 = vmatmul.mubr.msk.bf16.gmra.mrb[120].mxu0 %vm9678_vm11, %v11980_v49  ;;  %vm578_vm11 = vcmp.eq.s32.totalorder %v12333_v53, %v13509_v20 }
 0x295   : > { %9681 = vmatprep.mubr.msk.bf16.mxu1 %vm9680_vm12, %v11980_v49  ;;  %10257 = vmatprep.mubr.msk.bf16.mxu0 %vm9680_vm12, %v11980_v49  ;;  %vm586_vm12 = vcmp.eq.s32.totalorder %v12331_v52, %v13509_v20 }
 0x296   : > { %vm9692_vm14 = vmpackc.low %vm586_vm12, %vm578_vm11  ;;  %vm609_vm11 = vcmp.eq.s32.totalorder %v12402_v8, %v13524_v19  ;;  %vm617_vm12 = vcmp.eq.s32.totalorder %v12400_v7, %v13524_v19 }
 0x29c   : > { %9683 = vmatmul.mubr.msk.bf16.gmra.mrb[124].mxu1 %vm9682_vm0, %v11980_v49  ;;  %10259 = vmatmul.mubr.msk.bf16.gmra.mrb[124].mxu0 %vm9682_vm0, %v11980_v49  ;;  %vm585_vm0 = vcmp.eq.s32.totalorder %v12331_v52, %v13524_v19 }
 0x29d   : > { %9685 = vmatprep.mubr.msk.bf16.mxu1 %vm9684_vm2, %v11980_v49  ;;  %10261 = vmatprep.mubr.msk.bf16.mxu0 %vm9684_vm2, %v11980_v49  ;;  %vm602_vm2 = vcmp.eq.s32.totalorder %v12366_v60, %v13509_v20  ;;  %vm9694_vm3 = vmpackc.low %vm585_vm0, %vm577_vm15 }
 0x29e   : > { %vm9696_vm4 = vmpackc.low %vm602_vm2, %vm594_vm1  ;;  %vm625_vm1 = vcmp.eq.s32.totalorder %v12432_v16, %v13524_v19  ;;  %vm633_vm2 = vcmp.eq.s32.totalorder %v12430_v15, %v13524_v19 }
 0x29f   : > { %vm9702_vm15 = vmpackc.low %vm617_vm12, %vm609_vm11 }
 0x2a0   : > { %vm9706_vm5 = vmpackc.low %vm633_vm2, %vm625_vm1 }
 0x2a4   : > { %9687 = vmatmul.mubr.msk.bf16.vlgmr.msra.gmra.mrb[0].mxu1 %vm9686_vm7, %v11980_v49  ;;  %10263 = vmatmul.mubr.msk.bf16.vlgmr.msra.gmra.mrb[0].mxu0 %vm9686_vm7, %v11980_v49  ;;  %vm610_vm7 = vcmp.eq.s32.totalorder %v12402_v8, %v13509_v20 }
 0x2a5   : > { %3841 = vmatpush1.bf16.msra.mxu1 %v11497_v38  ;;  %5381 = vmatpush1.bf16.msra.mxu0 %v11498_v40  ;;  %v11501_v40 = vld [vmem:[%s17246_s5 + $0x190] sm:$0xff]  }
 0x2a6   : > { %9689 = vmatprep.mubr.msk.bf16.mxu1 %vm9688_vm8, %v11980_v49  ;;  %10265 = vmatprep.mubr.msk.bf16.mxu0 %vm9688_vm8, %v11980_v49  ;;  %v11502_v38 = vld [vmem:[%s17245_s4 + $0x190] sm:$0xff]   ;;  %vm618_vm8 = vcmp.eq.s32.totalorder %v12400_v7, %v13509_v20 }
 0x2a7   : > { %3842 = vmatprep.subr.bf16.mxu1 %v17433_v35  ;;  %5382 = vmatprep.subr.bf16.mxu0 %v17433_v35  ;;  %vm9700_vm10 = vmpackc.low %vm618_vm8, %vm610_vm7  ;;  %vm641_vm7 = vcmp.eq.s32.totalorder %v12466_v26, %v13524_v19  ;;  %vm649_vm8 = vcmp.eq.s32.totalorder %v12464_v25, %v13524_v19 }
 0x2a8   : > { %vm9710_vm11 = vmpackc.low %vm649_vm8, %vm641_vm7 }
 0x2a9   : > { %3843 = vmatpush1.bf16.msra.mxu1 %v11499_v12  ;;  %5383 = vmatpush1.bf16.msra.mxu0 %v11500_v0  ;;  %v11503_v0 = vld [vmem:[%s17246_s5 + $0x198] sm:$0xff]  }
 0x2aa   : > { %3844 = vmatprep.subr.bf16.mxu1 %v17433_v35  ;;  %5384 = vmatprep.subr.bf16.mxu0 %v17433_v35  ;;  %v11504_v12 = vld [vmem:[%s17245_s4 + $0x198] sm:$0xff]  }
 0x2ac   : > { %9691 = vmatmul.mubr.msk.bf16.gmra.mrb[4].mxu1 %vm9690_vm13, %v11980_v49  ;;  %10267 = vmatmul.mubr.msk.bf16.gmra.mrb[4].mxu0 %vm9690_vm13, %v11980_v49  ;;  %vm626_vm13 = vcmp.eq.s32.totalorder %v12432_v16, %v13509_v20 }
 0x2ad   : > { %9693 = vmatprep.mubr.msk.bf16.mxu1 %vm9692_vm14, %v11980_v49  ;;  %10269 = vmatprep.mubr.msk.bf16.mxu0 %vm9692_vm14, %v11980_v49  ;;  %vm634_vm14 = vcmp.eq.s32.totalorder %v12430_v15, %v13509_v20 }
 0x2ae   : > { %3845 = vmatpush1.bf16.msra.mxu1 %v11501_v40  ;;  %5385 = vmatpush1.bf16.msra.mxu0 %v11502_v38  ;;  %v11505_v40 = vld [vmem:[%s17246_s5 + $0x1a0] sm:$0xff]   ;;  %vm9704_vm0 = vmpackc.low %vm634_vm14, %vm626_vm13  ;;  %vm657_vm13 = vcmp.eq.s32.totalorder %v12496_v34, %v13524_v19  ;;  %vm665_vm14 = vcmp.eq.s32.totalorder %v12494_v33, %v13524_v19 }
 0x2af   : > { %3846 = vmatprep.subr.bf16.mxu1 %v17433_v35  ;;  %5386 = vmatprep.subr.bf16.mxu0 %v17433_v35  ;;  %v11506_v38 = vld [vmem:[%s17245_s4 + $0x1a0] sm:$0xff]   ;;  %vm9714_vm1 = vmpackc.low %vm665_vm14, %vm657_vm13 }
 0x2b2   : > { %3847 = vmatpush1.bf16.msra.mxu1 %v11503_v0  ;;  %5387 = vmatpush1.bf16.msra.mxu0 %v11504_v12  ;;  %v11507_v0 = vld [vmem:[%s17246_s5 + $0x1a8] sm:$0xff]  }
 0x2b3   : > { %3848 = vmatprep.subr.bf16.mxu1 %v17433_v35  ;;  %5388 = vmatprep.subr.bf16.mxu0 %v17433_v35  ;;  %v11508_v12 = vld [vmem:[%s17245_s4 + $0x1a8] sm:$0xff]  }
 0x2b4   : > { %9695 = vmatmul.mubr.msk.bf16.gmra.mrb[8].mxu1 %vm9694_vm3, %v11980_v49  ;;  %10271 = vmatmul.mubr.msk.bf16.gmra.mrb[8].mxu0 %vm9694_vm3, %v11980_v49  ;;  %vm642_vm3 = vcmp.eq.s32.totalorder %v12466_v26, %v13509_v20 }
 0x2b5   : > { %9697 = vmatprep.mubr.msk.bf16.mxu1 %vm9696_vm4, %v11980_v49  ;;  %10273 = vmatprep.mubr.msk.bf16.mxu0 %vm9696_vm4, %v11980_v49  ;;  %vm650_vm4 = vcmp.eq.s32.totalorder %v12464_v25, %v13509_v20 }
 0x2b6   : > { %3849 = vmatpush1.bf16.msra.mxu1 %v11505_v40  ;;  %5389 = vmatpush1.bf16.msra.mxu0 %v11506_v38  ;;  %v11509_v40 = vld [vmem:[%s17246_s5 + $0x1b0] sm:$0xff]   ;;  %vm9708_vm6 = vmpackc.low %vm650_vm4, %vm642_vm3  ;;  %vm673_vm3 = vcmp.eq.s32.totalorder %v12530_v51, %v13524_v19  ;;  %vm681_vm4 = vcmp.eq.s32.totalorder %v12528_v50, %v13524_v19 }
 0x2b7   : > { %3850 = vmatprep.subr.bf16.mxu1 %v17433_v35  ;;  %5390 = vmatprep.subr.bf16.mxu0 %v17433_v35  ;;  %v11510_v38 = vld [vmem:[%s17245_s4 + $0x1b0] sm:$0xff]   ;;  %vm9718_vm7 = vmpackc.low %vm681_vm4, %vm673_vm3 }
 0x2ba   : > { %3851 = vmatpush1.bf16.msra.mxu1 %v11507_v0  ;;  %5391 = vmatpush1.bf16.msra.mxu0 %v11508_v12  ;;  %v11511_v0 = vld [vmem:[%s17246_s5 + $0x1b8] sm:$0xff]  }
 0x2bb   : > { %3852 = vmatprep.subr.bf16.mxu1 %v17433_v35  ;;  %5392 = vmatprep.subr.bf16.mxu0 %v17433_v35  ;;  %v11512_v12 = vld [vmem:[%s17245_s4 + $0x1b8] sm:$0xff]  }
 0x2bc   : > { %9699 = vmatmul.mubr.msk.bf16.gmra.mrb[12].mxu1 %vm9698_vm9, %v11980_v49  ;;  %10275 = vmatmul.mubr.msk.bf16.gmra.mrb[12].mxu0 %vm9698_vm9, %v11980_v49  ;;  %vm658_vm9 = vcmp.eq.s32.totalorder %v12496_v34, %v13509_v20 }
 0x2bd   : > { %9701 = vmatprep.mubr.msk.bf16.mxu1 %vm9700_vm10, %v11980_v49  ;;  %10277 = vmatprep.mubr.msk.bf16.mxu0 %vm9700_vm10, %v11980_v49  ;;  %vm666_vm10 = vcmp.eq.s32.totalorder %v12494_v33, %v13509_v20 }
 0x2be   : > { %3853 = vmatpush1.bf16.msra.mxu1 %v11509_v40  ;;  %5393 = vmatpush1.bf16.msra.mxu0 %v11510_v38  ;;  %v11513_v40 = vld [vmem:[%s17246_s5 + $0x1c0] sm:$0xff]   ;;  %vm9712_vm12 = vmpackc.low %vm666_vm10, %vm658_vm9  ;;  %vm689_vm9 = vcmp.eq.s32.totalorder %v12560_v63, %v13524_v19  ;;  %vm697_vm10 = vcmp.eq.s32.totalorder %v12558_v62, %v13524_v19 }
 0x2bf   : > { %3854 = vmatprep.subr.bf16.mxu1 %v17433_v35  ;;  %5394 = vmatprep.subr.bf16.mxu0 %v17433_v35  ;;  %v11514_v38 = vld [vmem:[%s17245_s4 + $0x1c0] sm:$0xff]   ;;  %vm9722_vm13 = vmpackc.low %vm697_vm10, %vm689_vm9 }
 0x2c2   : > { %3855 = vmatpush1.bf16.msra.mxu1 %v11511_v0  ;;  %5395 = vmatpush1.bf16.msra.mxu0 %v11512_v12  ;;  %v11515_v0 = vld [vmem:[%s17246_s5 + $0x1c8] sm:$0xff]  }
 0x2c3   : > { %3856 = vmatprep.subr.bf16.mxu1 %v17433_v35  ;;  %5396 = vmatprep.subr.bf16.mxu0 %v17433_v35  ;;  %v11516_v12 = vld [vmem:[%s17245_s4 + $0x1c8] sm:$0xff]  }
 0x2c4   : > { %9703 = vmatmul.mubr.msk.bf16.gmra.mrb[16].mxu1 %vm9702_vm15, %v11980_v49  ;;  %10279 = vmatmul.mubr.msk.bf16.gmra.mrb[16].mxu0 %vm9702_vm15, %v11980_v49  ;;  %vm674_vm15 = vcmp.eq.s32.totalorder %v12530_v51, %v13509_v20 }
 0x2c5   : > { %9705 = vmatprep.mubr.msk.bf16.mxu1 %vm9704_vm0, %v11980_v49  ;;  %10281 = vmatprep.mubr.msk.bf16.mxu0 %vm9704_vm0, %v11980_v49  ;;  %vm682_vm0 = vcmp.eq.s32.totalorder %v12528_v50, %v13509_v20 }
 0x2c6   : > { %3857 = vmatpush1.bf16.msra.mxu1 %v11513_v40  ;;  %5397 = vmatpush1.bf16.msra.mxu0 %v11514_v38  ;;  %v11517_v40 = vld [vmem:[%s17246_s5 + $0x1d0] sm:$0xff]   ;;  %vm9716_vm2 = vmpackc.low %vm682_vm0, %vm674_vm15  ;;  %vm705_vm15 = vcmp.eq.s32.totalorder %v12588_v10, %v13524_v19  ;;  %vm713_vm0 = vcmp.eq.s32.totalorder %v12586_v9, %v13524_v19 }
 0x2c7   : > { %3858 = vmatprep.subr.bf16.mxu1 %v17433_v35  ;;  %5398 = vmatprep.subr.bf16.mxu0 %v17433_v35  ;;  %v11518_v38 = vld [vmem:[%s17245_s4 + $0x1d0] sm:$0xff]   ;;  %vm9726_vm3 = vmpackc.low %vm713_vm0, %vm705_vm15 }
 0x2ca   : > { %3859 = vmatpush1.bf16.msra.mxu1 %v11515_v0  ;;  %5399 = vmatpush1.bf16.msra.mxu0 %v11516_v12  ;;  %v11519_v0 = vld [vmem:[%s17246_s5 + $0x1d8] sm:$0xff]  }
 0x2cb   : > { %3860 = vmatprep.subr.bf16.mxu1 %v17433_v35  ;;  %5400 = vmatprep.subr.bf16.mxu0 %v17433_v35  ;;  %v11520_v12 = vld [vmem:[%s17245_s4 + $0x1d8] sm:$0xff]  }
 0x2cc   : > { %9707 = vmatmul.mubr.msk.bf16.gmra.mrb[20].mxu1 %vm9706_vm5, %v11980_v49  ;;  %10283 = vmatmul.mubr.msk.bf16.gmra.mrb[20].mxu0 %vm9706_vm5, %v11980_v49  ;;  %vm690_vm5 = vcmp.eq.s32.totalorder %v12560_v63, %v13509_v20 }
 0x2cd   : > { %9709 = vmatprep.mubr.msk.bf16.mxu1 %vm9708_vm6, %v11980_v49  ;;  %10285 = vmatprep.mubr.msk.bf16.mxu0 %vm9708_vm6, %v11980_v49  ;;  %vm698_vm6 = vcmp.eq.s32.totalorder %v12558_v62, %v13509_v20 }
 0x2ce   : > { %3861 = vmatpush1.bf16.msra.mxu1 %v11517_v40  ;;  %5401 = vmatpush1.bf16.msra.mxu0 %v11518_v38  ;;  %vm9720_vm8 = vmpackc.low %vm698_vm6, %vm690_vm5  ;;  %v11521_v40 = vld [vmem:[%s17246_s5 + $0x1e0] sm:$0xff]   ;;  %vm721_vm5 = vcmp.eq.s32.totalorder %v12610_v18, %v13524_v19  ;;  %vm729_vm6 = vcmp.eq.s32.totalorder %v12608_v17, %v13524_v19 }
 0x2cf   : > { %3862 = vmatprep.subr.bf16.mxu1 %v17433_v35  ;;  %5402 = vmatprep.subr.bf16.mxu0 %v17433_v35  ;;  %v11522_v38 = vld [vmem:[%s17245_s4 + $0x1e0] sm:$0xff]   ;;  %vm9730_vm9 = vmpackc.low %vm729_vm6, %vm721_vm5 }
 0x2d2   : > { %3863 = vmatpush1.bf16.msra.mxu1 %v11519_v0  ;;  %5403 = vmatpush1.bf16.msra.mxu0 %v11520_v12  ;;  %v11523_v0 = vld [vmem:[%s17246_s5 + $0x1e8] sm:$0xff]  }
 0x2d3   : > { %3864 = vmatprep.subr.bf16.mxu1 %v17433_v35  ;;  %5404 = vmatprep.subr.bf16.mxu0 %v17433_v35  ;;  %v11524_v12 = vld [vmem:[%s17245_s4 + $0x1e8] sm:$0xff]  }
 0x2d4   : > { %9711 = vmatmul.mubr.msk.bf16.gmra.mrb[24].mxu1 %vm9710_vm11, %v11980_v49  ;;  %10287 = vmatmul.mubr.msk.bf16.gmra.mrb[24].mxu0 %vm9710_vm11, %v11980_v49  ;;  %vm706_vm11 = vcmp.eq.s32.totalorder %v12588_v10, %v13509_v20 }
 0x2d5   : > { %9713 = vmatprep.mubr.msk.bf16.mxu1 %vm9712_vm12, %v11980_v49  ;;  %10289 = vmatprep.mubr.msk.bf16.mxu0 %vm9712_vm12, %v11980_v49  ;;  %vm714_vm12 = vcmp.eq.s32.totalorder %v12586_v9, %v13509_v20 }
 0x2d6   : > { %3865 = vmatpush1.bf16.msra.mxu1 %v11521_v40  ;;  %5405 = vmatpush1.bf16.msra.mxu0 %v11522_v38  ;;  %vm9724_vm14 = vmpackc.low %vm714_vm12, %vm706_vm11  ;;  %vm737_vm11 = vcmp.eq.s32.totalorder %v12636_v28, %v13524_v19  ;;  %vm745_vm12 = vcmp.eq.s32.totalorder %v12634_v27, %v13524_v19  ;;  %v11525_v40 = vld [vmem:[%s17246_s5 + $0x1f0] sm:$0xff]  }
 0x2d7   : > { %3866 = vmatprep.subr.bf16.mxu1 %v17433_v35  ;;  %5406 = vmatprep.subr.bf16.mxu0 %v17433_v35  ;;  %vm9734_vm15 = vmpackc.low %vm745_vm12, %vm737_vm11  ;;  %v11526_v38 = vld [vmem:[%s17245_s4 + $0x1f0] sm:$0xff]  }
 0x2da   : > { %3867 = vmatpush1.bf16.msra.mxu1 %v11523_v0  ;;  %5407 = vmatpush1.bf16.msra.mxu0 %v11524_v12  ;;  %v11528_v0 = vld [vmem:[%s17245_s4 + $0x1f8] sm:$0xff]  }
 0x2db   : > { %3868 = vmatprep.subr.bf16.mxu1 %v17433_v35  ;;  %5408 = vmatprep.subr.bf16.mxu0 %v17433_v35  ;;  %v17443_v12 = vld [vmem:[#allocation8_spill] sm:$0xff] }
 0x2dc   : > { %9715 = vmatmul.mubr.msk.bf16.gmra.mrb[28].mxu1 %vm9714_vm1, %v11980_v49  ;;  %10291 = vmatmul.mubr.msk.bf16.gmra.mrb[28].mxu0 %vm9714_vm1, %v11980_v49  ;;  %vm722_vm1 = vcmp.eq.s32.totalorder %v12610_v18, %v13509_v20 }
 0x2dd   : > { %9717 = vmatprep.mubr.msk.bf16.mxu1 %vm9716_vm2, %v11980_v49  ;;  %10293 = vmatprep.mubr.msk.bf16.mxu0 %vm9716_vm2, %v11980_v49  ;;  %vm730_vm2 = vcmp.eq.s32.totalorder %v12608_v17, %v13509_v20 }
 0x2de   : > { %vm9728_vm4 = vmpackc.low %vm730_vm2, %vm722_vm1  ;;  %3869 = vmatpush1.bf16.msra.mxu1 %v11525_v40  ;;  %5409 = vmatpush1.bf16.msra.mxu0 %v11526_v38  ;;  %vm753_vm1 = vcmp.eq.s32.totalorder %v12658_v37, %v13524_v19  ;;  %vm761_vm2 = vcmp.eq.s32.totalorder %v12656_v36, %v13524_v19  ;;  %v17444_v40 = vld [vmem:[#allocation11_spill] sm:$0xff]  ;;  %v17445_v38 = vld [vmem:[#allocation10_spill] sm:$0xff] }
 0x2df   : > { %3870 = vmatprep.subr.bf16.mxu1 %v17433_v35  ;;  %5410 = vmatprep.subr.bf16.mxu0 %v17433_v35  ;;  %vm9738_vm5 = vmpackc.low %vm761_vm2, %vm753_vm1  ;;  %v11527_v35 = vld [vmem:[%s17246_s5 + $0x1f8] sm:$0xff]  }
 0x2e2   : > { %3871 = vmatpush1.bf16.msra.mxu1 %v11527_v35  ;;  %5411 = vmatpush1.bf16.msra.mxu0 %v11528_v0  ;;  %v17446_v35 = vld [vmem:[#allocation13_spill] sm:$0xff]  ;;  %v17447_v0 = vld [vmem:[#allocation12_spill] sm:$0xff] }
 0x2e4   : > { %9719 = vmatmul.mubr.msk.bf16.gmra.mrb[32].mxu1 %vm9718_vm7, %v11980_v49  ;;  %10295 = vmatmul.mubr.msk.bf16.gmra.mrb[32].mxu0 %vm9718_vm7, %v11980_v49  ;;  %vm738_vm7 = vcmp.eq.s32.totalorder %v12636_v28, %v13509_v20 }
 0x2e5   : > { %9721 = vmatprep.mubr.msk.bf16.mxu1 %vm9720_vm8, %v11980_v49  ;;  %10297 = vmatprep.mubr.msk.bf16.mxu0 %vm9720_vm8, %v11980_v49  ;;  %vm746_vm8 = vcmp.eq.s32.totalorder %v12634_v27, %v13509_v20 }
 0x2e6   : > { %vm9732_vm10 = vmpackc.low %vm746_vm8, %vm738_vm7  ;;  %vm769_vm7 = vcmp.eq.s32.totalorder %v12684_v55, %v13524_v19  ;;  %vm777_vm8 = vcmp.eq.s32.totalorder %v12682_v54, %v13524_v19 }
 0x2e7   : > { %vm9742_vm11 = vmpackc.low %vm777_vm8, %vm769_vm7 }
 0x2ec   : > { %9723 = vmatmul.mubr.msk.bf16.gmra.mrb[36].mxu1 %vm9722_vm13, %v11980_v49  ;;  %10299 = vmatmul.mubr.msk.bf16.gmra.mrb[36].mxu0 %vm9722_vm13, %v11980_v49  ;;  %vm754_vm13 = vcmp.eq.s32.totalorder %v12658_v37, %v13509_v20 }
 0x2ed   : > { %9725 = vmatprep.mubr.msk.bf16.mxu1 %vm9724_vm14, %v11980_v49  ;;  %10301 = vmatprep.mubr.msk.bf16.mxu0 %vm9724_vm14, %v11980_v49  ;;  %vm762_vm14 = vcmp.eq.s32.totalorder %v12656_v36, %v13509_v20 }
 0x2ee   : > { %vm9736_vm0 = vmpackc.low %vm762_vm14, %vm754_vm13  ;;  %vm785_vm13 = vcmp.eq.s32.totalorder %v12706_v2, %v13524_v19  ;;  %vm793_vm14 = vcmp.eq.s32.totalorder %v12704_v1, %v13524_v19 }
 0x2ef   : > { %vm9746_vm1 = vmpackc.low %vm793_vm14, %vm785_vm13 }
 0x2f4   : > { %9727 = vmatmul.mubr.msk.bf16.gmra.mrb[40].mxu1 %vm9726_vm3, %v11980_v49  ;;  %10303 = vmatmul.mubr.msk.bf16.gmra.mrb[40].mxu0 %vm9726_vm3, %v11980_v49  ;;  %vm770_vm3 = vcmp.eq.s32.totalorder %v12684_v55, %v13509_v20 }
 0x2f5   : > { %9729 = vmatprep.mubr.msk.bf16.mxu1 %vm9728_vm4, %v11980_v49  ;;  %10305 = vmatprep.mubr.msk.bf16.mxu0 %vm9728_vm4, %v11980_v49  ;;  %vm778_vm4 = vcmp.eq.s32.totalorder %v12682_v54, %v13509_v20 }
 0x2f6   : > { %vm9740_vm6 = vmpackc.low %vm778_vm4, %vm770_vm3  ;;  %vm801_vm3 = vcmp.eq.s32.totalorder %v12732_v14, %v13524_v19  ;;  %vm809_vm4 = vcmp.eq.s32.totalorder %v12730_v13, %v13524_v19 }
 0x2f7   : > { %vm9750_vm7 = vmpackc.low %vm809_vm4, %vm801_vm3 }
 0x2fc   : > { %9731 = vmatmul.mubr.msk.bf16.gmra.mrb[44].mxu1 %vm9730_vm9, %v11980_v49  ;;  %10307 = vmatmul.mubr.msk.bf16.gmra.mrb[44].mxu0 %vm9730_vm9, %v11980_v49  ;;  %vm786_vm9 = vcmp.eq.s32.totalorder %v12706_v2, %v13509_v20 }
 0x2fd   : > { %9733 = vmatprep.mubr.msk.bf16.mxu1 %vm9732_vm10, %v11980_v49  ;;  %10309 = vmatprep.mubr.msk.bf16.mxu0 %vm9732_vm10, %v11980_v49  ;;  %vm794_vm10 = vcmp.eq.s32.totalorder %v12704_v1, %v13509_v20 }
 0x2fe   : > { %vm9744_vm12 = vmpackc.low %vm794_vm10, %vm786_vm9  ;;  %vm817_vm9 = vcmp.eq.s32.totalorder %v12752_v22, %v13524_v19  ;;  %vm825_vm10 = vcmp.eq.s32.totalorder %v12750_v21, %v13524_v19 }
 0x2ff   : > { %vm9754_vm13 = vmpackc.low %vm825_vm10, %vm817_vm9 }
 0x304   : > { %9735 = vmatmul.mubr.msk.bf16.gmra.mrb[48].mxu1 %vm9734_vm15, %v11980_v49  ;;  %10311 = vmatmul.mubr.msk.bf16.gmra.mrb[48].mxu0 %vm9734_vm15, %v11980_v49  ;;  %vm802_vm15 = vcmp.eq.s32.totalorder %v12732_v14, %v13509_v20 }
 0x305   : > { %9737 = vmatprep.mubr.msk.bf16.mxu1 %vm9736_vm0, %v11980_v49  ;;  %10313 = vmatprep.mubr.msk.bf16.mxu0 %vm9736_vm0, %v11980_v49  ;;  %vm810_vm0 = vcmp.eq.s32.totalorder %v12730_v13, %v13509_v20 }
 0x306   : > { %vm9748_vm2 = vmpackc.low %vm810_vm0, %vm802_vm15  ;;  %vm833_vm15 = vcmp.eq.s32.totalorder %v12768_v24, %v13524_v19  ;;  %vm841_vm0 = vcmp.eq.s32.totalorder %v12766_v23, %v13524_v19 }
 0x307   : > { %vm9758_vm3 = vmpackc.low %vm841_vm0, %vm833_vm15 }
 0x30c   : > { %9739 = vmatmul.mubr.msk.bf16.gmra.mrb[52].mxu1 %vm9738_vm5, %v11980_v49  ;;  %10315 = vmatmul.mubr.msk.bf16.gmra.mrb[52].mxu0 %vm9738_vm5, %v11980_v49  ;;  %vm818_vm5 = vcmp.eq.s32.totalorder %v12752_v22, %v13509_v20 }
 0x30d   : > { %9741 = vmatprep.mubr.msk.bf16.mxu1 %vm9740_vm6, %v11980_v49  ;;  %10317 = vmatprep.mubr.msk.bf16.mxu0 %vm9740_vm6, %v11980_v49  ;;  %vm826_vm6 = vcmp.eq.s32.totalorder %v12750_v21, %v13509_v20 }
 0x30e   : > { %vm9752_vm8 = vmpackc.low %vm826_vm6, %vm818_vm5  ;;  %vm849_vm5 = vcmp.eq.s32.totalorder %v12784_v30, %v13524_v19  ;;  %vm857_vm6 = vcmp.eq.s32.totalorder %v12782_v29, %v13524_v19 }
 0x30f   : > { %vm9762_vm9 = vmpackc.low %vm857_vm6, %vm849_vm5 }
 0x314   : > { %9743 = vmatmul.mubr.msk.bf16.gmra.mrb[56].mxu1 %vm9742_vm11, %v11980_v49  ;;  %10319 = vmatmul.mubr.msk.bf16.gmra.mrb[56].mxu0 %vm9742_vm11, %v11980_v49  ;;  %vm834_vm11 = vcmp.eq.s32.totalorder %v12768_v24, %v13509_v20 }
 0x315   : > { %9745 = vmatprep.mubr.msk.bf16.mxu1 %vm9744_vm12, %v11980_v49  ;;  %10321 = vmatprep.mubr.msk.bf16.mxu0 %vm9744_vm12, %v11980_v49  ;;  %vm842_vm12 = vcmp.eq.s32.totalorder %v12766_v23, %v13509_v20 }
 0x316   : > { %vm9756_vm14 = vmpackc.low %vm842_vm12, %vm834_vm11  ;;  %vm865_vm11 = vcmp.eq.s32.totalorder %v12800_v32, %v13524_v19  ;;  %vm873_vm12 = vcmp.eq.s32.totalorder %v12798_v31, %v13524_v19 }
 0x317   : > { %vm9766_vm15 = vmpackc.low %vm873_vm12, %vm865_vm11 }
 0x31c   : > { %9747 = vmatmul.mubr.msk.bf16.gmra.mrb[60].mxu1 %vm9746_vm1, %v11980_v49  ;;  %10323 = vmatmul.mubr.msk.bf16.gmra.mrb[60].mxu0 %vm9746_vm1, %v11980_v49  ;;  %vm850_vm1 = vcmp.eq.s32.totalorder %v12784_v30, %v13509_v20 }
 0x31d   : > { %9749 = vmatprep.mubr.msk.bf16.mxu1 %vm9748_vm2, %v11980_v49  ;;  %10325 = vmatprep.mubr.msk.bf16.mxu0 %vm9748_vm2, %v11980_v49  ;;  %vm858_vm2 = vcmp.eq.s32.totalorder %v12782_v29, %v13509_v20 }
 0x31e   : > { %vm9760_vm4 = vmpackc.low %vm858_vm2, %vm850_vm1  ;;  %vm881_vm1 = vcmp.eq.s32.totalorder %v12816_v42, %v13524_v19  ;;  %vm889_vm2 = vcmp.eq.s32.totalorder %v12814_v41, %v13524_v19 }
 0x31f   : > { %vm9770_vm5 = vmpackc.low %vm889_vm2, %vm881_vm1 }
 0x324   : > { %9751 = vmatmul.mubr.msk.bf16.gmra.mrb[64].mxu1 %vm9750_vm7, %v11980_v49  ;;  %10327 = vmatmul.mubr.msk.bf16.gmra.mrb[64].mxu0 %vm9750_vm7, %v11980_v49  ;;  %vm866_vm7 = vcmp.eq.s32.totalorder %v12800_v32, %v13509_v20 }
 0x325   : > { %9753 = vmatprep.mubr.msk.bf16.mxu1 %vm9752_vm8, %v11980_v49  ;;  %10329 = vmatprep.mubr.msk.bf16.mxu0 %vm9752_vm8, %v11980_v49  ;;  %vm874_vm8 = vcmp.eq.s32.totalorder %v12798_v31, %v13509_v20 }
 0x326   : > { %vm9764_vm10 = vmpackc.low %vm874_vm8, %vm866_vm7  ;;  %vm897_vm7 = vcmp.eq.s32.totalorder %v12832_v44, %v13524_v19  ;;  %vm905_vm8 = vcmp.eq.s32.totalorder %v12830_v43, %v13524_v19 }
 0x327   : > { %vm9774_vm11 = vmpackc.low %vm905_vm8, %vm897_vm7 }
 0x32c   : > { %9755 = vmatmul.mubr.msk.bf16.gmra.mrb[68].mxu1 %vm9754_vm13, %v11980_v49  ;;  %10331 = vmatmul.mubr.msk.bf16.gmra.mrb[68].mxu0 %vm9754_vm13, %v11980_v49  ;;  %vm882_vm13 = vcmp.eq.s32.totalorder %v12816_v42, %v13509_v20 }
 0x32d   : > { %9757 = vmatprep.mubr.msk.bf16.mxu1 %vm9756_vm14, %v11980_v49  ;;  %10333 = vmatprep.mubr.msk.bf16.mxu0 %vm9756_vm14, %v11980_v49  ;;  %vm890_vm14 = vcmp.eq.s32.totalorder %v12814_v41, %v13509_v20 }
 0x32e   : > { %vm9768_vm0 = vmpackc.low %vm890_vm14, %vm882_vm13  ;;  %vm913_vm13 = vcmp.eq.s32.totalorder %v12848_v48, %v13524_v19  ;;  %vm921_vm14 = vcmp.eq.s32.totalorder %v12846_v47, %v13524_v19 }
 0x32f   : > { %vm9778_vm1 = vmpackc.low %vm921_vm14, %vm913_vm13 }
 0x334   : > { %9759 = vmatmul.mubr.msk.bf16.gmra.mrb[72].mxu1 %vm9758_vm3, %v11980_v49  ;;  %10335 = vmatmul.mubr.msk.bf16.gmra.mrb[72].mxu0 %vm9758_vm3, %v11980_v49  ;;  %vm898_vm3 = vcmp.eq.s32.totalorder %v12832_v44, %v13509_v20 }
 0x335   : > { %9761 = vmatprep.mubr.msk.bf16.mxu1 %vm9760_vm4, %v11980_v49  ;;  %10337 = vmatprep.mubr.msk.bf16.mxu0 %vm9760_vm4, %v11980_v49  ;;  %vm906_vm4 = vcmp.eq.s32.totalorder %v12830_v43, %v13509_v20 }
 0x336   : > { %vm9772_vm6 = vmpackc.low %vm906_vm4, %vm898_vm3  ;;  %vm929_vm3 = vcmp.eq.s32.totalorder %v12864_v57, %v13524_v19  ;;  %vm937_vm4 = vcmp.eq.s32.totalorder %v12862_v56, %v13524_v19 }
 0x337   : > { %vm9782_vm7 = vmpackc.low %vm937_vm4, %vm929_vm3 }
 0x33c   : > { %9763 = vmatmul.mubr.msk.bf16.gmra.mrb[76].mxu1 %vm9762_vm9, %v11980_v49  ;;  %10339 = vmatmul.mubr.msk.bf16.gmra.mrb[76].mxu0 %vm9762_vm9, %v11980_v49  ;;  %vm914_vm9 = vcmp.eq.s32.totalorder %v12848_v48, %v13509_v20 }
 0x33d   : > { %9765 = vmatprep.mubr.msk.bf16.mxu1 %vm9764_vm10, %v11980_v49  ;;  %10341 = vmatprep.mubr.msk.bf16.mxu0 %vm9764_vm10, %v11980_v49  ;;  %vm922_vm10 = vcmp.eq.s32.totalorder %v12846_v47, %v13509_v20 }
 0x33e   : > { %vm9776_vm12 = vmpackc.low %vm922_vm10, %vm914_vm9  ;;  %vm945_vm9 = vcmp.eq.s32.totalorder %v12880_v59, %v13524_v19  ;;  %vm953_vm10 = vcmp.eq.s32.totalorder %v12878_v58, %v13524_v19 }
 0x33f   : > { %vm9786_vm13 = vmpackc.low %vm953_vm10, %vm945_vm9 }
 0x344   : > { %9767 = vmatmul.mubr.msk.bf16.gmra.mrb[80].mxu1 %vm9766_vm15, %v11980_v49  ;;  %10343 = vmatmul.mubr.msk.bf16.gmra.mrb[80].mxu0 %vm9766_vm15, %v11980_v49  ;;  %vm930_vm15 = vcmp.eq.s32.totalorder %v12864_v57, %v13509_v20 }
 0x345   : > { %9769 = vmatprep.mubr.msk.bf16.mxu1 %vm9768_vm0, %v11980_v49  ;;  %10345 = vmatprep.mubr.msk.bf16.mxu0 %vm9768_vm0, %v11980_v49  ;;  %vm938_vm0 = vcmp.eq.s32.totalorder %v12862_v56, %v13509_v20 }
 0x346   : > { %vm9780_vm2 = vmpackc.low %vm938_vm0, %vm930_vm15  ;;  %vm961_vm15 = vcmp.eq.s32.totalorder %v12896_v4, %v13524_v19  ;;  %vm969_vm0 = vcmp.eq.s32.totalorder %v12894_v3, %v13524_v19 }
 0x347   : > { %vm9790_vm3 = vmpackc.low %vm969_vm0, %vm961_vm15 }
 0x34c   : > { %9771 = vmatmul.mubr.msk.bf16.gmra.mrb[84].mxu1 %vm9770_vm5, %v11980_v49  ;;  %10347 = vmatmul.mubr.msk.bf16.gmra.mrb[84].mxu0 %vm9770_vm5, %v11980_v49  ;;  %vm946_vm5 = vcmp.eq.s32.totalorder %v12880_v59, %v13509_v20 }
 0x34d   : > { %9773 = vmatprep.mubr.msk.bf16.mxu1 %vm9772_vm6, %v11980_v49  ;;  %10349 = vmatprep.mubr.msk.bf16.mxu0 %vm9772_vm6, %v11980_v49  ;;  %vm954_vm6 = vcmp.eq.s32.totalorder %v12878_v58, %v13509_v20 }
 0x34e   : > { %vm9784_vm8 = vmpackc.low %vm954_vm6, %vm946_vm5  ;;  %vm977_vm5 = vcmp.eq.s32.totalorder %v12912_v6, %v13524_v19  ;;  %vm985_vm6 = vcmp.eq.s32.totalorder %v12910_v5, %v13524_v19 }
 0x34f   : > { %vm9794_vm9 = vmpackc.low %vm985_vm6, %vm977_vm5 }
 0x354   : > { %9775 = vmatmul.mubr.msk.bf16.gmra.mrb[88].mxu1 %vm9774_vm11, %v11980_v49  ;;  %10351 = vmatmul.mubr.msk.bf16.gmra.mrb[88].mxu0 %vm9774_vm11, %v11980_v49  ;;  %vm962_vm11 = vcmp.eq.s32.totalorder %v12896_v4, %v13509_v20 }
 0x355   : > { %9777 = vmatprep.mubr.msk.bf16.mxu1 %vm9776_vm12, %v11980_v49  ;;  %10353 = vmatprep.mubr.msk.bf16.mxu0 %vm9776_vm12, %v11980_v49  ;;  %vm970_vm12 = vcmp.eq.s32.totalorder %v12894_v3, %v13509_v20 }
 0x356   : > { %vm9788_vm14 = vmpackc.low %vm970_vm12, %vm962_vm11  ;;  %vm993_vm11 = vcmp.eq.s32.totalorder %v17434_v11, %v13524_v19  ;;  %vm1001_vm12 = vcmp.eq.s32.totalorder %v17443_v12, %v13524_v19 }
 0x357   : > { %vm9798_vm15 = vmpackc.low %vm1001_vm12, %vm993_vm11 }
 0x35c   : > { %9779 = vmatmul.mubr.msk.bf16.gmra.mrb[92].mxu1 %vm9778_vm1, %v11980_v49  ;;  %10355 = vmatmul.mubr.msk.bf16.gmra.mrb[92].mxu0 %vm9778_vm1, %v11980_v49  ;;  %vm978_vm1 = vcmp.eq.s32.totalorder %v12912_v6, %v13509_v20 }
 0x35d   : > { %9781 = vmatprep.mubr.msk.bf16.mxu1 %vm9780_vm2, %v11980_v49  ;;  %10357 = vmatprep.mubr.msk.bf16.mxu0 %vm9780_vm2, %v11980_v49  ;;  %vm986_vm2 = vcmp.eq.s32.totalorder %v12910_v5, %v13509_v20 }
 0x35e   : > { %vm9792_vm4 = vmpackc.low %vm986_vm2, %vm978_vm1  ;;  %vm1009_vm1 = vcmp.eq.s32.totalorder %v17444_v40, %v13524_v19  ;;  %vm1017_vm2 = vcmp.eq.s32.totalorder %v17445_v38, %v13524_v19 }
 0x35f   : > { %vm9802_vm5 = vmpackc.low %vm1017_vm2, %vm1009_vm1 }
 0x364   : > { %9783 = vmatmul.mubr.msk.bf16.gmra.mrb[96].mxu1 %vm9782_vm7, %v11980_v49  ;;  %10359 = vmatmul.mubr.msk.bf16.gmra.mrb[96].mxu0 %vm9782_vm7, %v11980_v49  ;;  %vm994_vm7 = vcmp.eq.s32.totalorder %v17434_v11, %v13509_v20 }
 0x365   : > { %9785 = vmatprep.mubr.msk.bf16.mxu1 %vm9784_vm8, %v11980_v49  ;;  %10361 = vmatprep.mubr.msk.bf16.mxu0 %vm9784_vm8, %v11980_v49  ;;  %vm1002_vm8 = vcmp.eq.s32.totalorder %v17443_v12, %v13509_v20 }
 0x366   : > { %vm9796_vm10 = vmpackc.low %vm1002_vm8, %vm994_vm7  ;;  %vm1025_vm7 = vcmp.eq.s32.totalorder %v17446_v35, %v13524_v19  ;;  %vm1033_vm8 = vcmp.eq.s32.totalorder %v17447_v0, %v13524_v19 }
 0x367   : > { %vm9806_vm11 = vmpackc.low %vm1033_vm8, %vm1025_vm7 }
 0x36c   : > { %9787 = vmatmul.mubr.msk.bf16.gmra.mrb[100].mxu1 %vm9786_vm13, %v11980_v49  ;;  %10363 = vmatmul.mubr.msk.bf16.gmra.mrb[100].mxu0 %vm9786_vm13, %v11980_v49  ;;  %vm1010_vm13 = vcmp.eq.s32.totalorder %v17444_v40, %v13509_v20  ;;  %v17449_v40 = vld [vmem:[#allocation14_spill] sm:$0xff] }
 0x36d   : > { %9789 = vmatprep.mubr.msk.bf16.mxu1 %vm9788_vm14, %v11980_v49  ;;  %10365 = vmatprep.mubr.msk.bf16.mxu0 %vm9788_vm14, %v11980_v49  ;;  %vm1018_vm14 = vcmp.eq.s32.totalorder %v17445_v38, %v13509_v20  ;;  %v17448_v38 = vld [vmem:[#allocation15_spill] sm:$0xff] }
 0x36e   : > { %vm9800_vm0 = vmpackc.low %vm1018_vm14, %vm1010_vm13  ;;  %vm1041_vm13 = vcmp.eq.s32.totalorder %v17448_v38, %v13524_v19  ;;  %vm1049_vm14 = vcmp.eq.s32.totalorder %v17449_v40, %v13524_v19 }
 0x374   : > { %9791 = vmatmul.mubr.msk.bf16.gmra.mrb[104].mxu1 %vm9790_vm3, %v11980_v49  ;;  %10367 = vmatmul.mubr.msk.bf16.gmra.mrb[104].mxu0 %vm9790_vm3, %v11980_v49  ;;  %vm1026_vm3 = vcmp.eq.s32.totalorder %v17446_v35, %v13509_v20  ;;  %v14025_v35 = vadd.s32 896, %v17440_v46 }
 0x375   : > { %9793 = vmatprep.mubr.msk.bf16.mxu1 %vm9792_vm4, %v11980_v49  ;;  %10369 = vmatprep.mubr.msk.bf16.mxu0 %vm9792_vm4, %v11980_v49  ;;  %vm1034_vm4 = vcmp.eq.s32.totalorder %v17447_v0, %v13509_v20  ;;  %v17451_v0 = vld [vmem:[#allocation6_spill] sm:$0xff] }
 0x376   : > { %vm9804_vm6 = vmpackc.low %vm1034_vm4, %vm1026_vm3  ;;  %vm548_vm1 = vcmp.eq.s32.totalorder %v17451_v0, %v14025_v35  ;;  %vm564_vm4 = vcmp.eq.s32.totalorder %v12288_v39, %v14025_v35 }
 0x37c   : > { %9795 = vmatmul.mubr.msk.bf16.gmra.mrb[108].mxu1 %vm9794_vm9, %v11980_v49  ;;  %10371 = vmatmul.mubr.msk.bf16.gmra.mrb[108].mxu0 %vm9794_vm9, %v11980_v49  ;;  %vm1042_vm9 = vcmp.eq.s32.totalorder %v17448_v38, %v13509_v20  ;;  %v14040_v38 = vadd.s32 768, %v17440_v46 }
 0x37d   : > { %9797 = vmatprep.mubr.msk.bf16.mxu1 %vm9796_vm10, %v11980_v49  ;;  %10373 = vmatprep.mubr.msk.bf16.mxu0 %vm9796_vm10, %v11980_v49  ;;  %vm1050_vm10 = vcmp.eq.s32.totalorder %v17449_v40, %v13509_v20  ;;  %v17450_v20 = vld [vmem:[#allocation7_spill] sm:$0xff] }
 0x37e   : > { %vm9808_vm12 = vmpackc.low %vm1050_vm10, %vm1042_vm9  ;;  %vm555_vm3 = vcmp.eq.s32.totalorder %v17450_v20, %v14040_v38  ;;  %vm563_vm9 = vcmp.eq.s32.totalorder %v12288_v39, %v14040_v38  ;;  %vm571_vm10 = vcmp.eq.s32.totalorder %v12300_v45, %v14040_v38  ;;  %v5738_v39 = vpop.permute.xlu0 %5737 }
 0x384   : > { %9799 = vmatmul.mubr.msk.bf16.gmra.mrb[112].mxu1 %vm9798_vm15, %v11980_v49  ;;  %10375 = vmatmul.mubr.msk.bf16.gmra.mrb[112].mxu0 %vm9798_vm15, %v11980_v49  ;;  %vm556_vm15 = vcmp.eq.s32.totalorder %v17450_v20, %v14025_v35 }
 0x385   : > { %9801 = vmatprep.mubr.msk.bf16.mxu1 %vm9800_vm0, %v11980_v49  ;;  %10377 = vmatprep.mubr.msk.bf16.mxu0 %vm9800_vm0, %v11980_v49  ;;  %vm9810_vm0 = vmpackc.low %vm1049_vm14, %vm1041_vm13 }
 0x386   : > { %vm9812_vm2 = vmpackc.low %vm556_vm15, %vm548_vm1  ;;  %vm579_vm15 = vcmp.eq.s32.totalorder %v12333_v53, %v14040_v38  ;;  %vm596_vm1 = vcmp.eq.s32.totalorder %v12368_v61, %v14025_v35 }
 0x387   : > { %vm9818_vm13 = vmpackc.low %vm571_vm10, %vm563_vm9 }
 0x38c   : > { %9803 = vmatmul.mubr.msk.bf16.gmra.mrb[116].mxu1 %vm9802_vm5, %v11980_v49  ;;  %10379 = vmatmul.mubr.msk.bf16.gmra.mrb[116].mxu0 %vm9802_vm5, %v11980_v49  ;;  %vm572_vm5 = vcmp.eq.s32.totalorder %v12300_v45, %v14025_v35 }
 0x38d   : > { %9805 = vmatprep.mubr.msk.bf16.mxu1 %vm9804_vm6, %v11980_v49  ;;  %10381 = vmatprep.mubr.msk.bf16.mxu0 %vm9804_vm6, %v11980_v49  ;;  %vm547_vm6 = vcmp.eq.s32.totalorder %v17451_v0, %v14040_v38  ;;  %vm9816_vm8 = vmpackc.low %vm572_vm5, %vm564_vm4  ;;  %vm595_vm5 = vcmp.eq.s32.totalorder %v12368_v61, %v14040_v38 }
 0x38e   : > { %vm9814_vm7 = vmpackc.low %vm555_vm3, %vm547_vm6  ;;  %vm603_vm6 = vcmp.eq.s32.totalorder %v12366_v60, %v14040_v38 }
 0x38f   : > { %vm9826_vm9 = vmpackc.low %vm603_vm6, %vm595_vm5 }
 0x394   : > { %9807 = vmatmul.mubr.msk.bf16.gmra.mrb[120].mxu1 %vm9806_vm11, %v11980_v49  ;;  %10383 = vmatmul.mubr.msk.bf16.gmra.mrb[120].mxu0 %vm9806_vm11, %v11980_v49  ;;  %vm580_vm11 = vcmp.eq.s32.totalorder %v12333_v53, %v14025_v35 }
 0x395   : > { %9809 = vmatprep.mubr.msk.bf16.mxu1 %vm9808_vm12, %v11980_v49  ;;  %10385 = vmatprep.mubr.msk.bf16.mxu0 %vm9808_vm12, %v11980_v49  ;;  %vm588_vm12 = vcmp.eq.s32.totalorder %v12331_v52, %v14025_v35 }
 0x396   : > { %vm9820_vm14 = vmpackc.low %vm588_vm12, %vm580_vm11  ;;  %vm611_vm11 = vcmp.eq.s32.totalorder %v12402_v8, %v14040_v38  ;;  %vm619_vm12 = vcmp.eq.s32.totalorder %v12400_v7, %v14040_v38 }
 0x39c   : > { %9811 = vmatmul.mubr.msk.bf16.gmra.mrb[124].mxu1 %vm9810_vm0, %v11980_v49  ;;  %10387 = vmatmul.mubr.msk.bf16.gmra.mrb[124].mxu0 %vm9810_vm0, %v11980_v49  ;;  %vm587_vm0 = vcmp.eq.s32.totalorder %v12331_v52, %v14040_v38 }
 0x39d   : > { %9813 = vmatprep.mubr.msk.bf16.mxu1 %vm9812_vm2, %v11980_v49  ;;  %10389 = vmatprep.mubr.msk.bf16.mxu0 %vm9812_vm2, %v11980_v49  ;;  %vm604_vm2 = vcmp.eq.s32.totalorder %v12366_v60, %v14025_v35  ;;  %vm9822_vm3 = vmpackc.low %vm587_vm0, %vm579_vm15 }
 0x39e   : > { %vm9824_vm4 = vmpackc.low %vm604_vm2, %vm596_vm1  ;;  %vm627_vm1 = vcmp.eq.s32.totalorder %v12432_v16, %v14040_v38  ;;  %vm635_vm2 = vcmp.eq.s32.totalorder %v12430_v15, %v14040_v38 }
 0x39f   : > { %vm9830_vm15 = vmpackc.low %vm619_vm12, %vm611_vm11 }
 0x3a0   : > { %vm9834_vm5 = vmpackc.low %vm635_vm2, %vm627_vm1 }
 0x3a4   : > { %9815 = vmatmul.mubr.msk.bf16.vlgmr.msra.gmra.mrb[0].mxu1 %vm9814_vm7, %v11980_v49  ;;  %10391 = vmatmul.mubr.msk.bf16.vlgmr.msra.gmra.mrb[0].mxu0 %vm9814_vm7, %v11980_v49  ;;  %vm612_vm7 = vcmp.eq.s32.totalorder %v12402_v8, %v14025_v35 }
 0x3a5   : > { %9817 = vmatprep.mubr.msk.bf16.mxu1 %vm9816_vm8, %v11980_v49  ;;  %10393 = vmatprep.mubr.msk.bf16.mxu0 %vm9816_vm8, %v11980_v49  ;;  %vm620_vm8 = vcmp.eq.s32.totalorder %v12400_v7, %v14025_v35 }
 0x3a6   : > { %vm9828_vm10 = vmpackc.low %vm620_vm8, %vm612_vm7  ;;  %vm643_vm7 = vcmp.eq.s32.totalorder %v12466_v26, %v14040_v38  ;;  %vm651_vm8 = vcmp.eq.s32.totalorder %v12464_v25, %v14040_v38 }
 0x3a7   : > { %vm9838_vm11 = vmpackc.low %vm651_vm8, %vm643_vm7 }
 0x3ac   : > { %9819 = vmatmul.mubr.msk.bf16.gmra.mrb[4].mxu1 %vm9818_vm13, %v11980_v49  ;;  %10395 = vmatmul.mubr.msk.bf16.gmra.mrb[4].mxu0 %vm9818_vm13, %v11980_v49  ;;  %vm628_vm13 = vcmp.eq.s32.totalorder %v12432_v16, %v14025_v35 }
 0x3ad   : > { %9821 = vmatprep.mubr.msk.bf16.mxu1 %vm9820_vm14, %v11980_v49  ;;  %10397 = vmatprep.mubr.msk.bf16.mxu0 %vm9820_vm14, %v11980_v49  ;;  %vm636_vm14 = vcmp.eq.s32.totalorder %v12430_v15, %v14025_v35 }
 0x3ae   : > { %vm9832_vm0 = vmpackc.low %vm636_vm14, %vm628_vm13  ;;  %vm659_vm13 = vcmp.eq.s32.totalorder %v12496_v34, %v14040_v38  ;;  %vm667_vm14 = vcmp.eq.s32.totalorder %v12494_v33, %v14040_v38 }
 0x3af   : > { %vm9842_vm1 = vmpackc.low %vm667_vm14, %vm659_vm13 }
 0x3b4   : > { %9823 = vmatmul.mubr.msk.bf16.gmra.mrb[8].mxu1 %vm9822_vm3, %v11980_v49  ;;  %10399 = vmatmul.mubr.msk.bf16.gmra.mrb[8].mxu0 %vm9822_vm3, %v11980_v49  ;;  %vm644_vm3 = vcmp.eq.s32.totalorder %v12466_v26, %v14025_v35 }
 0x3b5   : > { %9825 = vmatprep.mubr.msk.bf16.mxu1 %vm9824_vm4, %v11980_v49  ;;  %10401 = vmatprep.mubr.msk.bf16.mxu0 %vm9824_vm4, %v11980_v49  ;;  %vm652_vm4 = vcmp.eq.s32.totalorder %v12464_v25, %v14025_v35 }
 0x3b6   : > { %vm9836_vm6 = vmpackc.low %vm652_vm4, %vm644_vm3  ;;  %vm675_vm3 = vcmp.eq.s32.totalorder %v12530_v51, %v14040_v38  ;;  %vm683_vm4 = vcmp.eq.s32.totalorder %v12528_v50, %v14040_v38 }
 0x3b7   : > { %vm9846_vm7 = vmpackc.low %vm683_vm4, %vm675_vm3 }
 0x3bc   : > { %9827 = vmatmul.mubr.msk.bf16.gmra.mrb[12].mxu1 %vm9826_vm9, %v11980_v49  ;;  %10403 = vmatmul.mubr.msk.bf16.gmra.mrb[12].mxu0 %vm9826_vm9, %v11980_v49  ;;  %vm660_vm9 = vcmp.eq.s32.totalorder %v12496_v34, %v14025_v35 }
 0x3bd   : > { %9829 = vmatprep.mubr.msk.bf16.mxu1 %vm9828_vm10, %v11980_v49  ;;  %10405 = vmatprep.mubr.msk.bf16.mxu0 %vm9828_vm10, %v11980_v49  ;;  %vm668_vm10 = vcmp.eq.s32.totalorder %v12494_v33, %v14025_v35 }
 0x3be   : > { %vm9840_vm12 = vmpackc.low %vm668_vm10, %vm660_vm9  ;;  %vm691_vm9 = vcmp.eq.s32.totalorder %v12560_v63, %v14040_v38  ;;  %vm699_vm10 = vcmp.eq.s32.totalorder %v12558_v62, %v14040_v38 }
 0x3bf   : > { %vm9850_vm13 = vmpackc.low %vm699_vm10, %vm691_vm9 }
 0x3c4   : > { %9831 = vmatmul.mubr.msk.bf16.gmra.mrb[16].mxu1 %vm9830_vm15, %v11980_v49  ;;  %10407 = vmatmul.mubr.msk.bf16.gmra.mrb[16].mxu0 %vm9830_vm15, %v11980_v49  ;;  %vm676_vm15 = vcmp.eq.s32.totalorder %v12530_v51, %v14025_v35 }
 0x3c5   : > { %9833 = vmatprep.mubr.msk.bf16.mxu1 %vm9832_vm0, %v11980_v49  ;;  %10409 = vmatprep.mubr.msk.bf16.mxu0 %vm9832_vm0, %v11980_v49  ;;  %vm684_vm0 = vcmp.eq.s32.totalorder %v12528_v50, %v14025_v35 }
 0x3c6   : > { %vm9844_vm2 = vmpackc.low %vm684_vm0, %vm676_vm15  ;;  %vm707_vm15 = vcmp.eq.s32.totalorder %v12588_v10, %v14040_v38  ;;  %vm715_vm0 = vcmp.eq.s32.totalorder %v12586_v9, %v14040_v38 }
 0x3c7   : > { %vm9854_vm3 = vmpackc.low %vm715_vm0, %vm707_vm15 }
 0x3cc   : > { %9835 = vmatmul.mubr.msk.bf16.gmra.mrb[20].mxu1 %vm9834_vm5, %v11980_v49  ;;  %10411 = vmatmul.mubr.msk.bf16.gmra.mrb[20].mxu0 %vm9834_vm5, %v11980_v49  ;;  %vm692_vm5 = vcmp.eq.s32.totalorder %v12560_v63, %v14025_v35 }
 0x3cd   : > { %9837 = vmatprep.mubr.msk.bf16.mxu1 %vm9836_vm6, %v11980_v49  ;;  %10413 = vmatprep.mubr.msk.bf16.mxu0 %vm9836_vm6, %v11980_v49  ;;  %vm700_vm6 = vcmp.eq.s32.totalorder %v12558_v62, %v14025_v35  ;;  %v5743_v62 = vpop.permute.xlu1 %5742 }
 0x3ce   : > { %vm9848_vm8 = vmpackc.low %vm700_vm6, %vm692_vm5  ;;  %vm723_vm5 = vcmp.eq.s32.totalorder %v12610_v18, %v14040_v38  ;;  %vm731_vm6 = vcmp.eq.s32.totalorder %v12608_v17, %v14040_v38 }
 0x3cf   : > { %vm9858_vm9 = vmpackc.low %vm731_vm6, %vm723_vm5 }
 0x3d4   : > { %9839 = vmatmul.mubr.msk.bf16.gmra.mrb[24].mxu1 %vm9838_vm11, %v11980_v49  ;;  %10415 = vmatmul.mubr.msk.bf16.gmra.mrb[24].mxu0 %vm9838_vm11, %v11980_v49  ;;  %vm708_vm11 = vcmp.eq.s32.totalorder %v12588_v10, %v14025_v35 }
 0x3d5   : > { %9841 = vmatprep.mubr.msk.bf16.mxu1 %vm9840_vm12, %v11980_v49  ;;  %10417 = vmatprep.mubr.msk.bf16.mxu0 %vm9840_vm12, %v11980_v49  ;;  %vm716_vm12 = vcmp.eq.s32.totalorder %v12586_v9, %v14025_v35 }
 0x3d6   : > { %vm9852_vm14 = vmpackc.low %vm716_vm12, %vm708_vm11  ;;  %vm739_vm11 = vcmp.eq.s32.totalorder %v12636_v28, %v14040_v38  ;;  %vm747_vm12 = vcmp.eq.s32.totalorder %v12634_v27, %v14040_v38 }
 0x3d7   : > { %vm9862_vm15 = vmpackc.low %vm747_vm12, %vm739_vm11 }
 0x3dc   : > { %9843 = vmatmul.mubr.msk.bf16.gmra.mrb[28].mxu1 %vm9842_vm1, %v11980_v49  ;;  %10419 = vmatmul.mubr.msk.bf16.gmra.mrb[28].mxu0 %vm9842_vm1, %v11980_v49  ;;  %vm724_vm1 = vcmp.eq.s32.totalorder %v12610_v18, %v14025_v35  ;;  %v17452_v18 = vld [vmem:[#allocation11_spill] sm:$0xff] }
 0x3dd   : > { %9845 = vmatprep.mubr.msk.bf16.mxu1 %vm9844_vm2, %v11980_v49  ;;  %10421 = vmatprep.mubr.msk.bf16.mxu0 %vm9844_vm2, %v11980_v49  ;;  %vm732_vm2 = vcmp.eq.s32.totalorder %v12608_v17, %v14025_v35 }
 0x3de   : > { %vm9856_vm4 = vmpackc.low %vm732_vm2, %vm724_vm1  ;;  %vm755_vm1 = vcmp.eq.s32.totalorder %v12658_v37, %v14040_v38  ;;  %vm763_vm2 = vcmp.eq.s32.totalorder %v12656_v36, %v14040_v38 }
 0x3df   : > { %vm9866_vm5 = vmpackc.low %vm763_vm2, %vm755_vm1 }
 0x3e4   : > { %9847 = vmatmul.mubr.msk.bf16.gmra.mrb[32].mxu1 %vm9846_vm7, %v11980_v49  ;;  %10423 = vmatmul.mubr.msk.bf16.gmra.mrb[32].mxu0 %vm9846_vm7, %v11980_v49  ;;  %vm740_vm7 = vcmp.eq.s32.totalorder %v12636_v28, %v14025_v35 }
 0x3e5   : > { %9849 = vmatprep.mubr.msk.bf16.mxu1 %vm9848_vm8, %v11980_v49  ;;  %10425 = vmatprep.mubr.msk.bf16.mxu0 %vm9848_vm8, %v11980_v49  ;;  %vm748_vm8 = vcmp.eq.s32.totalorder %v12634_v27, %v14025_v35  ;;  %v17453_v27 = vld [vmem:[#allocation10_spill] sm:$0xff] }
 0x3e6   : > { %vm9860_vm10 = vmpackc.low %vm748_vm8, %vm740_vm7  ;;  %vm771_vm7 = vcmp.eq.s32.totalorder %v12684_v55, %v14040_v38  ;;  %vm779_vm8 = vcmp.eq.s32.totalorder %v12682_v54, %v14040_v38 }
 0x3e7   : > { %vm9870_vm11 = vmpackc.low %vm779_vm8, %vm771_vm7 }
 0x3ec   : > { %9851 = vmatmul.mubr.msk.bf16.gmra.mrb[36].mxu1 %vm9850_vm13, %v11980_v49  ;;  %10427 = vmatmul.mubr.msk.bf16.gmra.mrb[36].mxu0 %vm9850_vm13, %v11980_v49  ;;  %vm756_vm13 = vcmp.eq.s32.totalorder %v12658_v37, %v14025_v35 }
 0x3ed   : > { %9853 = vmatprep.mubr.msk.bf16.mxu1 %vm9852_vm14, %v11980_v49  ;;  %10429 = vmatprep.mubr.msk.bf16.mxu0 %vm9852_vm14, %v11980_v49  ;;  %vm764_vm14 = vcmp.eq.s32.totalorder %v12656_v36, %v14025_v35 }
 0x3ee   : > { %vm9864_vm0 = vmpackc.low %vm764_vm14, %vm756_vm13  ;;  %vm787_vm13 = vcmp.eq.s32.totalorder %v12706_v2, %v14040_v38  ;;  %vm795_vm14 = vcmp.eq.s32.totalorder %v12704_v1, %v14040_v38 }
 0x3ef   : > { %vm9874_vm1 = vmpackc.low %vm795_vm14, %vm787_vm13 }
 0x3f4   : > { %9855 = vmatmul.mubr.msk.bf16.gmra.mrb[40].mxu1 %vm9854_vm3, %v11980_v49  ;;  %10431 = vmatmul.mubr.msk.bf16.gmra.mrb[40].mxu0 %vm9854_vm3, %v11980_v49  ;;  %vm772_vm3 = vcmp.eq.s32.totalorder %v12684_v55, %v14025_v35 }
 0x3f5   : > { %9857 = vmatprep.mubr.msk.bf16.mxu1 %vm9856_vm4, %v11980_v49  ;;  %10433 = vmatprep.mubr.msk.bf16.mxu0 %vm9856_vm4, %v11980_v49  ;;  %vm780_vm4 = vcmp.eq.s32.totalorder %v12682_v54, %v14025_v35 }
 0x3f6   : > { %vm9868_vm6 = vmpackc.low %vm780_vm4, %vm772_vm3  ;;  %vm803_vm3 = vcmp.eq.s32.totalorder %v12732_v14, %v14040_v38  ;;  %vm811_vm4 = vcmp.eq.s32.totalorder %v12730_v13, %v14040_v38 }
 0x3f7   : > { %vm9878_vm7 = vmpackc.low %vm811_vm4, %vm803_vm3 }
 0x3fc   : > { %9859 = vmatmul.mubr.msk.bf16.gmra.mrb[44].mxu1 %vm9858_vm9, %v11980_v49  ;;  %10435 = vmatmul.mubr.msk.bf16.gmra.mrb[44].mxu0 %vm9858_vm9, %v11980_v49  ;;  %vm788_vm9 = vcmp.eq.s32.totalorder %v12706_v2, %v14025_v35 }
 0x3fd   : > { %9861 = vmatprep.mubr.msk.bf16.mxu1 %vm9860_vm10, %v11980_v49  ;;  %10437 = vmatprep.mubr.msk.bf16.mxu0 %vm9860_vm10, %v11980_v49  ;;  %vm796_vm10 = vcmp.eq.s32.totalorder %v12704_v1, %v14025_v35 }
 0x3fe   : > { %vm9872_vm12 = vmpackc.low %vm796_vm10, %vm788_vm9  ;;  %vm819_vm9 = vcmp.eq.s32.totalorder %v12752_v22, %v14040_v38  ;;  %vm827_vm10 = vcmp.eq.s32.totalorder %v12750_v21, %v14040_v38 }
 0x3ff   : > { %vm9882_vm13 = vmpackc.low %vm827_vm10, %vm819_vm9 }
 0x404   : > { %9863 = vmatmul.mubr.msk.bf16.gmra.mrb[48].mxu1 %vm9862_vm15, %v11980_v49  ;;  %10439 = vmatmul.mubr.msk.bf16.gmra.mrb[48].mxu0 %vm9862_vm15, %v11980_v49  ;;  %vm804_vm15 = vcmp.eq.s32.totalorder %v12732_v14, %v14025_v35 }
 0x405   : > { %9865 = vmatprep.mubr.msk.bf16.mxu1 %vm9864_vm0, %v11980_v49  ;;  %10441 = vmatprep.mubr.msk.bf16.mxu0 %vm9864_vm0, %v11980_v49  ;;  %vm812_vm0 = vcmp.eq.s32.totalorder %v12730_v13, %v14025_v35 }
 0x406   : > { %vm9876_vm2 = vmpackc.low %vm812_vm0, %vm804_vm15  ;;  %vm835_vm15 = vcmp.eq.s32.totalorder %v12768_v24, %v14040_v38  ;;  %vm843_vm0 = vcmp.eq.s32.totalorder %v12766_v23, %v14040_v38 }
 0x407   : > { %vm9886_vm3 = vmpackc.low %vm843_vm0, %vm835_vm15 }
 0x40c   : > { %9867 = vmatmul.mubr.msk.bf16.gmra.mrb[52].mxu1 %vm9866_vm5, %v11980_v49  ;;  %10443 = vmatmul.mubr.msk.bf16.gmra.mrb[52].mxu0 %vm9866_vm5, %v11980_v49  ;;  %vm820_vm5 = vcmp.eq.s32.totalorder %v12752_v22, %v14025_v35 }
 0x40d   : > { %9869 = vmatprep.mubr.msk.bf16.mxu1 %vm9868_vm6, %v11980_v49  ;;  %10445 = vmatprep.mubr.msk.bf16.mxu0 %vm9868_vm6, %v11980_v49  ;;  %vm828_vm6 = vcmp.eq.s32.totalorder %v12750_v21, %v14025_v35 }
 0x40e   : > { %vm9880_vm8 = vmpackc.low %vm828_vm6, %vm820_vm5  ;;  %vm851_vm5 = vcmp.eq.s32.totalorder %v12784_v30, %v14040_v38  ;;  %vm859_vm6 = vcmp.eq.s32.totalorder %v12782_v29, %v14040_v38 }
 0x40f   : > { %vm9890_vm9 = vmpackc.low %vm859_vm6, %vm851_vm5 }
 0x414   : > { %9871 = vmatmul.mubr.msk.bf16.gmra.mrb[56].mxu1 %vm9870_vm11, %v11980_v49  ;;  %10447 = vmatmul.mubr.msk.bf16.gmra.mrb[56].mxu0 %vm9870_vm11, %v11980_v49  ;;  %vm836_vm11 = vcmp.eq.s32.totalorder %v12768_v24, %v14025_v35 }
 0x415   : > { %9873 = vmatprep.mubr.msk.bf16.mxu1 %vm9872_vm12, %v11980_v49  ;;  %10449 = vmatprep.mubr.msk.bf16.mxu0 %vm9872_vm12, %v11980_v49  ;;  %vm844_vm12 = vcmp.eq.s32.totalorder %v12766_v23, %v14025_v35 }
 0x416   : > { %vm9884_vm14 = vmpackc.low %vm844_vm12, %vm836_vm11  ;;  %vm867_vm11 = vcmp.eq.s32.totalorder %v12800_v32, %v14040_v38  ;;  %vm875_vm12 = vcmp.eq.s32.totalorder %v12798_v31, %v14040_v38 }
 0x417   : > { %vm9894_vm15 = vmpackc.low %vm875_vm12, %vm867_vm11 }
 0x41c   : > { %9875 = vmatmul.mubr.msk.bf16.gmra.mrb[60].mxu1 %vm9874_vm1, %v11980_v49  ;;  %10451 = vmatmul.mubr.msk.bf16.gmra.mrb[60].mxu0 %vm9874_vm1, %v11980_v49  ;;  %vm852_vm1 = vcmp.eq.s32.totalorder %v12784_v30, %v14025_v35 }
 0x41d   : > { %9877 = vmatprep.mubr.msk.bf16.mxu1 %vm9876_vm2, %v11980_v49  ;;  %10453 = vmatprep.mubr.msk.bf16.mxu0 %vm9876_vm2, %v11980_v49  ;;  %vm860_vm2 = vcmp.eq.s32.totalorder %v12782_v29, %v14025_v35 }
 0x41e   : > { %vm9888_vm4 = vmpackc.low %vm860_vm2, %vm852_vm1  ;;  %vm883_vm1 = vcmp.eq.s32.totalorder %v12816_v42, %v14040_v38  ;;  %vm891_vm2 = vcmp.eq.s32.totalorder %v12814_v41, %v14040_v38 }
 0x41f   : > { %vm9898_vm5 = vmpackc.low %vm891_vm2, %vm883_vm1 }
 0x424   : > { %9879 = vmatmul.mubr.msk.bf16.gmra.mrb[64].mxu1 %vm9878_vm7, %v11980_v49  ;;  %10455 = vmatmul.mubr.msk.bf16.gmra.mrb[64].mxu0 %vm9878_vm7, %v11980_v49  ;;  %vm868_vm7 = vcmp.eq.s32.totalorder %v12800_v32, %v14025_v35  ;;  %v17455_v32 = vld [vmem:[#allocation12_spill] sm:$0xff] }
 0x425   : > { %9881 = vmatprep.mubr.msk.bf16.mxu1 %vm9880_vm8, %v11980_v49  ;;  %10457 = vmatprep.mubr.msk.bf16.mxu0 %vm9880_vm8, %v11980_v49  ;;  %vm876_vm8 = vcmp.eq.s32.totalorder %v12798_v31, %v14025_v35  ;;  %v17454_v31 = vld [vmem:[#allocation13_spill] sm:$0xff] }
 0x426   : > { %vm9892_vm10 = vmpackc.low %vm876_vm8, %vm868_vm7  ;;  %vm899_vm7 = vcmp.eq.s32.totalorder %v12832_v44, %v14040_v38  ;;  %vm907_vm8 = vcmp.eq.s32.totalorder %v12830_v43, %v14040_v38 }
 0x427   : > { %vm9902_vm11 = vmpackc.low %vm907_vm8, %vm899_vm7 }
 0x42c   : > { %9883 = vmatmul.mubr.msk.bf16.gmra.mrb[68].mxu1 %vm9882_vm13, %v11980_v49  ;;  %10459 = vmatmul.mubr.msk.bf16.gmra.mrb[68].mxu0 %vm9882_vm13, %v11980_v49  ;;  %vm884_vm13 = vcmp.eq.s32.totalorder %v12816_v42, %v14025_v35 }
 0x42d   : > { %9885 = vmatprep.mubr.msk.bf16.mxu1 %vm9884_vm14, %v11980_v49  ;;  %10461 = vmatprep.mubr.msk.bf16.mxu0 %vm9884_vm14, %v11980_v49  ;;  %vm892_vm14 = vcmp.eq.s32.totalorder %v12814_v41, %v14025_v35 }
 0x42e   : > { %vm9896_vm0 = vmpackc.low %vm892_vm14, %vm884_vm13  ;;  %vm915_vm13 = vcmp.eq.s32.totalorder %v12848_v48, %v14040_v38  ;;  %vm923_vm14 = vcmp.eq.s32.totalorder %v12846_v47, %v14040_v38 }
 0x42f   : > { %vm9906_vm1 = vmpackc.low %vm923_vm14, %vm915_vm13 }
 0x434   : > { %9887 = vmatmul.mubr.msk.bf16.gmra.mrb[72].mxu1 %vm9886_vm3, %v11980_v49  ;;  %10463 = vmatmul.mubr.msk.bf16.gmra.mrb[72].mxu0 %vm9886_vm3, %v11980_v49  ;;  %vm900_vm3 = vcmp.eq.s32.totalorder %v12832_v44, %v14025_v35 }
 0x435   : > { %9889 = vmatprep.mubr.msk.bf16.mxu1 %vm9888_vm4, %v11980_v49  ;;  %10465 = vmatprep.mubr.msk.bf16.mxu0 %vm9888_vm4, %v11980_v49  ;;  %vm908_vm4 = vcmp.eq.s32.totalorder %v12830_v43, %v14025_v35 }
 0x436   : > { %vm9900_vm6 = vmpackc.low %vm908_vm4, %vm900_vm3  ;;  %vm931_vm3 = vcmp.eq.s32.totalorder %v12864_v57, %v14040_v38  ;;  %vm939_vm4 = vcmp.eq.s32.totalorder %v12862_v56, %v14040_v38 }
 0x437   : > { %vm9910_vm7 = vmpackc.low %vm939_vm4, %vm931_vm3 }
 0x43c   : > { %9891 = vmatmul.mubr.msk.bf16.gmra.mrb[76].mxu1 %vm9890_vm9, %v11980_v49  ;;  %10467 = vmatmul.mubr.msk.bf16.gmra.mrb[76].mxu0 %vm9890_vm9, %v11980_v49  ;;  %vm916_vm9 = vcmp.eq.s32.totalorder %v12848_v48, %v14025_v35 }
 0x43d   : > { %9893 = vmatprep.mubr.msk.bf16.mxu1 %vm9892_vm10, %v11980_v49  ;;  %10469 = vmatprep.mubr.msk.bf16.mxu0 %vm9892_vm10, %v11980_v49  ;;  %vm924_vm10 = vcmp.eq.s32.totalorder %v12846_v47, %v14025_v35 }
 0x43e   : > { %vm9904_vm12 = vmpackc.low %vm924_vm10, %vm916_vm9  ;;  %vm947_vm9 = vcmp.eq.s32.totalorder %v12880_v59, %v14040_v38  ;;  %vm955_vm10 = vcmp.eq.s32.totalorder %v12878_v58, %v14040_v38 }
 0x43f   : > { %vm9914_vm13 = vmpackc.low %vm955_vm10, %vm947_vm9 }
 0x444   : > { %9895 = vmatmul.mubr.msk.bf16.gmra.mrb[80].mxu1 %vm9894_vm15, %v11980_v49  ;;  %10471 = vmatmul.mubr.msk.bf16.gmra.mrb[80].mxu0 %vm9894_vm15, %v11980_v49  ;;  %vm932_vm15 = vcmp.eq.s32.totalorder %v12864_v57, %v14025_v35 }
 0x445   : > { %9897 = vmatprep.mubr.msk.bf16.mxu1 %vm9896_vm0, %v11980_v49  ;;  %10473 = vmatprep.mubr.msk.bf16.mxu0 %vm9896_vm0, %v11980_v49  ;;  %vm940_vm0 = vcmp.eq.s32.totalorder %v12862_v56, %v14025_v35 }
 0x446   : > { %vm9908_vm2 = vmpackc.low %vm940_vm0, %vm932_vm15  ;;  %vm963_vm15 = vcmp.eq.s32.totalorder %v12896_v4, %v14040_v38  ;;  %vm971_vm0 = vcmp.eq.s32.totalorder %v12894_v3, %v14040_v38 }
 0x447   : > { %vm9918_vm3 = vmpackc.low %vm971_vm0, %vm963_vm15 }
 0x44c   : > { %9899 = vmatmul.mubr.msk.bf16.gmra.mrb[84].mxu1 %vm9898_vm5, %v11980_v49  ;;  %10475 = vmatmul.mubr.msk.bf16.gmra.mrb[84].mxu0 %vm9898_vm5, %v11980_v49  ;;  %vm948_vm5 = vcmp.eq.s32.totalorder %v12880_v59, %v14025_v35 }
 0x44d   : > { %9901 = vmatprep.mubr.msk.bf16.mxu1 %vm9900_vm6, %v11980_v49  ;;  %10477 = vmatprep.mubr.msk.bf16.mxu0 %vm9900_vm6, %v11980_v49  ;;  %vm956_vm6 = vcmp.eq.s32.totalorder %v12878_v58, %v14025_v35  ;;  %v5748_v58 = vpop.permute.xlu0 %5747 }
 0x44e   : > { %vm9912_vm8 = vmpackc.low %vm956_vm6, %vm948_vm5  ;;  %vm979_vm5 = vcmp.eq.s32.totalorder %v12912_v6, %v14040_v38  ;;  %vm987_vm6 = vcmp.eq.s32.totalorder %v12910_v5, %v14040_v38 }
 0x44f   : > { %vm9922_vm9 = vmpackc.low %vm987_vm6, %vm979_vm5 }
 0x454   : > { %9903 = vmatmul.mubr.msk.bf16.gmra.mrb[88].mxu1 %vm9902_vm11, %v11980_v49  ;;  %10479 = vmatmul.mubr.msk.bf16.gmra.mrb[88].mxu0 %vm9902_vm11, %v11980_v49  ;;  %vm964_vm11 = vcmp.eq.s32.totalorder %v12896_v4, %v14025_v35 }
 0x455   : > { %9905 = vmatprep.mubr.msk.bf16.mxu1 %vm9904_vm12, %v11980_v49  ;;  %10481 = vmatprep.mubr.msk.bf16.mxu0 %vm9904_vm12, %v11980_v49  ;;  %vm972_vm12 = vcmp.eq.s32.totalorder %v12894_v3, %v14025_v35 }
 0x456   : > { %vm9916_vm14 = vmpackc.low %vm972_vm12, %vm964_vm11  ;;  %vm995_vm11 = vcmp.eq.s32.totalorder %v17434_v11, %v14040_v38  ;;  %vm1003_vm12 = vcmp.eq.s32.totalorder %v17443_v12, %v14040_v38 }
 0x457   : > { %vm9926_vm15 = vmpackc.low %vm1003_vm12, %vm995_vm11 }
 0x45c   : > { %9907 = vmatmul.mubr.msk.bf16.gmra.mrb[92].mxu1 %vm9906_vm1, %v11980_v49  ;;  %10483 = vmatmul.mubr.msk.bf16.gmra.mrb[92].mxu0 %vm9906_vm1, %v11980_v49  ;;  %vm980_vm1 = vcmp.eq.s32.totalorder %v12912_v6, %v14025_v35  ;;  %v17456_v6 = vld [vmem:[#allocation15_spill] sm:$0xff] }
 0x45d   : > { %9909 = vmatprep.mubr.msk.bf16.mxu1 %vm9908_vm2, %v11980_v49  ;;  %10485 = vmatprep.mubr.msk.bf16.mxu0 %vm9908_vm2, %v11980_v49  ;;  %vm988_vm2 = vcmp.eq.s32.totalorder %v12910_v5, %v14025_v35 }
 0x45e   : > { %vm9920_vm4 = vmpackc.low %vm988_vm2, %vm980_vm1  ;;  %vm1011_vm1 = vcmp.eq.s32.totalorder %v17452_v18, %v14040_v38  ;;  %vm1019_vm2 = vcmp.eq.s32.totalorder %v17453_v27, %v14040_v38 }
 0x45f   : > { %vm9930_vm5 = vmpackc.low %vm1019_vm2, %vm1011_vm1 }
 0x464   : > { %9911 = vmatmul.mubr.msk.bf16.gmra.mrb[96].mxu1 %vm9910_vm7, %v11980_v49  ;;  %10487 = vmatmul.mubr.msk.bf16.gmra.mrb[96].mxu0 %vm9910_vm7, %v11980_v49  ;;  %vm996_vm7 = vcmp.eq.s32.totalorder %v17434_v11, %v14025_v35 }
 0x465   : > { %9913 = vmatprep.mubr.msk.bf16.mxu1 %vm9912_vm8, %v11980_v49  ;;  %10489 = vmatprep.mubr.msk.bf16.mxu0 %vm9912_vm8, %v11980_v49  ;;  %vm1004_vm8 = vcmp.eq.s32.totalorder %v17443_v12, %v14025_v35 }
 0x466   : > { %vm9924_vm10 = vmpackc.low %vm1004_vm8, %vm996_vm7  ;;  %vm1027_vm7 = vcmp.eq.s32.totalorder %v17454_v31, %v14040_v38  ;;  %vm1035_vm8 = vcmp.eq.s32.totalorder %v17455_v32, %v14040_v38 }
 0x467   : > { %vm9934_vm11 = vmpackc.low %vm1035_vm8, %vm1027_vm7 }
 0x46c   : > { %9915 = vmatmul.mubr.msk.bf16.gmra.mrb[100].mxu1 %vm9914_vm13, %v11980_v49  ;;  %10491 = vmatmul.mubr.msk.bf16.gmra.mrb[100].mxu0 %vm9914_vm13, %v11980_v49  ;;  %vm1012_vm13 = vcmp.eq.s32.totalorder %v17452_v18, %v14025_v35 }
 0x46d   : > { %9917 = vmatprep.mubr.msk.bf16.mxu1 %vm9916_vm14, %v11980_v49  ;;  %10493 = vmatprep.mubr.msk.bf16.mxu0 %vm9916_vm14, %v11980_v49  ;;  %vm1020_vm14 = vcmp.eq.s32.totalorder %v17453_v27, %v14025_v35 }
 0x46e   : > { %vm9928_vm0 = vmpackc.low %vm1020_vm14, %vm1012_vm13  ;;  %vm1043_vm13 = vcmp.eq.s32.totalorder %v17456_v6, %v14040_v38  ;;  %vm1051_vm14 = vcmp.eq.s32.totalorder %v17449_v40, %v14040_v38 }
 0x474   : > { %9919 = vmatmul.mubr.msk.bf16.gmra.mrb[104].mxu1 %vm9918_vm3, %v11980_v49  ;;  %10495 = vmatmul.mubr.msk.bf16.gmra.mrb[104].mxu0 %vm9918_vm3, %v11980_v49  ;;  %vm1028_vm3 = vcmp.eq.s32.totalorder %v17454_v31, %v14025_v35 }
 0x475   : > { %9921 = vmatprep.mubr.msk.bf16.mxu1 %vm9920_vm4, %v11980_v49  ;;  %10497 = vmatprep.mubr.msk.bf16.mxu0 %vm9920_vm4, %v11980_v49  ;;  %vm1036_vm4 = vcmp.eq.s32.totalorder %v17455_v32, %v14025_v35 }
 0x476   : > { %vm9932_vm6 = vmpackc.low %vm1036_vm4, %vm1028_vm3 }
 0x477   : > { %v3874_v45 = vpop.f32.mrb[0].mxu1  ;;  %v5414_v52 = vpop.f32.mrb[0].mxu0 }
 0x478   : > { %v10524_v53 = vadd.f32 %v5414_v52, %v3874_v45  ;;  %v3876_v60 = vpop.f32.mrb[1].mxu1  ;;  %v5416_v61 = vpop.f32.mrb[1].mxu0 }
 0x479   : > { %v3877_v7 = vpop.f32.mrb[2].mxu1  ;;  %v5417_v8 = vpop.f32.mrb[2].mxu0 }
 0x47a   : > { %v14374_v15 = vmul.f32 %v10524_v53, %v5738_v39  ;;  %v10525_v16 = vadd.f32 %v5417_v8, %v3877_v7  ;;  %v3879_v25 = vpop.f32.mrb[3].mxu1  ;;  %v5419_v26 = vpop.f32.mrb[3].mxu0 }
 0x47b   : > { %v5753_v45 = vpop.permute.xlu1 %5752  ;;  %v5758_v53 = vpop.permute.xlu0 %5757 }
 0x47c   : > { %v14377_v33 = vmul.f32 0.70710677, %v14374_v15  ;;  %9923 = vmatmul.mubr.msk.bf16.gmra.mrb[108].mxu1 %vm9922_vm9, %v11980_v49  ;;  %10499 = vmatmul.mubr.msk.bf16.gmra.mrb[108].mxu0 %vm9922_vm9, %v11980_v49  ;;  %v14397_v36 = vmul.f32 %v10525_v16, %v5743_v62  ;;  %vm1044_vm9 = vcmp.eq.s32.totalorder %v17456_v6, %v14025_v35 }
 0x47d   : > { %9925 = vmatprep.mubr.msk.bf16.mxu1 %vm9924_vm10, %v11980_v49  ;;  %10501 = vmatprep.mubr.msk.bf16.mxu0 %vm9924_vm10, %v11980_v49  ;;  %vm1052_vm10 = vcmp.eq.s32.totalorder %v17449_v40, %v14025_v35 }
 0x47e   : > { %v14384_v34 = vand.u32 2147483647, %v14377_v33  ;;  %v14404_v13 = vmul.f32 0.70710677, %v14397_v36  ;;  %vm9936_vm12 = vmpackc.low %vm1052_vm10, %vm1044_vm9 }
 0x47f   : > { %v3882_v50 = vpop.f32.mrb[4].mxu1  ;;  %v5422_v51 = vpop.f32.mrb[4].mxu0 }
 0x480   : > { %v6311_v63 = vmul.f32 0.3275911, %v14384_v34  ;;  %v14391_v9 = vadd.f32 %v5422_v51, %v3882_v50  ;;  %v3884_v10 = vpop.f32.mrb[5].mxu1  ;;  %v5424_v17 = vpop.f32.mrb[5].mxu0  ;;  %v14417_v41 = vand.u32 2147483647, %v14404_v13 }
 0x481   : > { %v3885_v37 = vpop.f32.mrb[6].mxu1  ;;  %v5425_v54 = vpop.f32.mrb[6].mxu0  ;;  %v7143_v16 = vsub.f32 0.0, %v14384_v34  ;;  %vm7528_vm1 = vcmp.ge.f32.partialorder %v14404_v13, 0.0 }
 0x482   : > { %v6375_v28 = vadd.f32 1.0, %v6311_v63  ;;  %v10527_v55 = vadd.f32 %v5425_v54, %v3885_v37  ;;  %v3887_v1 = vpop.f32.mrb[7].mxu1  ;;  %v5427_v2 = vpop.f32.mrb[7].mxu0  ;;  %v6312_v47 = vmul.f32 0.3275911, %v14417_v41  ;;  %v14444_v52 = vmul.f32 %v14391_v9, %v5748_v58 }
 0x483   : > { %v7207_v18 = vmul.f32 %v7143_v16, %v14384_v34  ;;  %v7144_v27 = vsub.f32 0.0, %v14417_v41  ;;  %v5763_v37 = vpop.permute.xlu1 %5762 }
 0x484   : > { %9927 = vmatmul.mubr.msk.bf16.gmra.mrb[112].mxu1 %vm9926_vm15, %v11980_v49  ;;  %10503 = vmatmul.mubr.msk.bf16.gmra.mrb[112].mxu0 %vm9926_vm15, %v11980_v49  ;;  %11529 = vrcp.f32 %v6375_v28  ;;  %v6376_v19 = vadd.f32 1.0, %v6312_v47  ;;  %v14448_v35 = vmul.f32 %v10527_v55, %v5753_v45  ;;  %v14457_v25 = vmul.f32 0.70710677, %v14444_v52  ;;  %vm9938_vm15 = vmpackc.low %vm1051_vm14, %vm1043_vm13 }
 0x485   : > { %9929 = vmatprep.mubr.msk.bf16.mxu1 %vm9928_vm0, %v11980_v49  ;;  %10505 = vmatprep.mubr.msk.bf16.mxu0 %vm9928_vm0, %v11980_v49  ;;  %vm7527_vm0 = vcmp.ge.f32.partialorder %v14377_v33, 0.0 }
 0x486   : > { %11531 = vrcp.f32 %v6376_v19  ;;  %v14462_v62 = vmul.f32 0.70710677, %v14448_v35  ;;  %v6249_v28 = vand.u32 2147483647, %v14457_v25  ;;  %vm7529_vm2 = vcmp.ge.f32.partialorder %v14457_v25, 0.0 }
 0x487   : > { %v3890_v14 = vpop.f32.mrb[8].mxu1  ;;  %v5430_v21 = vpop.f32.mrb[8].mxu0 }
 0x488   : > { %v14406_v22 = vadd.f32 %v5430_v21, %v3890_v14  ;;  %v3892_v23 = vpop.f32.mrb[9].mxu1  ;;  %v5432_v24 = vpop.f32.mrb[9].mxu0  ;;  %v6250_v54 = vand.u32 2147483647, %v14462_v62  ;;  %vm7530_vm3 = vcmp.ge.f32.partialorder %v14462_v62, 0.0 }
 0x489   : > { %v3893_v29 = vpop.f32.mrb[10].mxu1  ;;  %v5433_v30 = vpop.f32.mrb[10].mxu0  ;;  %v7271_v23 = vmul.f32 1.442695, %v7207_v18  ;;  %v7208_v24 = vmul.f32 %v7144_v27, %v14417_v41 }
 0x48a   : > { %v14419_v42 = vadd.f32 %v5433_v30, %v3893_v29  ;;  %v3895_v43 = vpop.f32.mrb[11].mxu1  ;;  %v5435_v44 = vpop.f32.mrb[11].mxu0  ;;  %v14467_v40 = vmul.f32 %v14406_v22, %v5758_v53  ;;  %v7145_v29 = vsub.f32 0.0, %v6249_v28 }
 0x48b   : > { %v5768_v14 = vpop.permute.xlu0 %5767  ;;  %v6313_v43 = vmul.f32 0.3275911, %v6249_v28  ;;  %v7146_v44 = vsub.f32 0.0, %v6250_v54  ;;  %v7273_v6 = vmul.f32 1.442695, %v7208_v24  ;;  %11533 = vpow2.f32 %v7271_v23 }
 0x48c   : > { %9931 = vmatmul.mubr.msk.bf16.gmra.mrb[116].mxu1 %vm9930_vm5, %v11980_v49  ;;  %10507 = vmatmul.mubr.msk.bf16.gmra.mrb[116].mxu0 %vm9930_vm5, %v11980_v49  ;;  %v14478_v21 = vmul.f32 0.70710677, %v14467_v40  ;;  %v7209_v19 = vmul.f32 %v7145_v29, %v6249_v28  ;;  %v14524_v29 = vmul.f32 0.5, %v14444_v52 }
 0x48d   : > { %9933 = vmatprep.mubr.msk.bf16.mxu1 %vm9932_vm6, %v11980_v49  ;;  %10509 = vmatprep.mubr.msk.bf16.mxu0 %vm9932_vm6, %v11980_v49  ;;  %11535 = vpow2.f32 %v7273_v6 }
 0x48e   : > { %v14426_v48 = vpop.eup %11529  ;;  %vm7531_vm4 = vcmp.ge.f32.partialorder %v14478_v21, 0.0 }
 0x48f   : > { %v3898_v56 = vpop.f32.mrb[12].mxu1  ;;  %v5438_v57 = vpop.f32.mrb[12].mxu0  ;;  %v6567_v12 = vmul.f32 1.0614054, %v14426_v48 }
 0x490   : > { %v3900_v59 = vpop.f32.mrb[13].mxu1  ;;  %v14432_v3 = vadd.f32 %v5438_v57, %v3898_v56  ;;  %v5440_v4 = vpop.f32.mrb[13].mxu0 }
 0x491   : > { %v3901_v5 = vpop.f32.mrb[14].mxu1  ;;  %v5441_v11 = vpop.f32.mrb[14].mxu0  ;;  %v6631_v39 = vadd.f32 -1.4531521, %v6567_v12  ;;  %v6251_v59 = vand.u32 2147483647, %v14478_v21 }
 0x492   : > { %v3903_v46 = vpop.f32.mrb[15].mxu1  ;;  %v14439_v0 = vadd.f32 %v5441_v11, %v3901_v5  ;;  %v5443_v20 = vpop.f32.mrb[15].mxu0  ;;  %v14495_v41 = vmul.f32 %v14432_v3, %v5768_v14  ;;  %v6314_v12 = vmul.f32 0.3275911, %v6250_v54 }
 0x493   : > { %v6695_v8 = vmul.f32 %v14426_v48, %v6631_v39  ;;  %v14475_v2 = vpop.eup %11531  ;;  %v5773_v11 = vpop.permute.xlu1 %5772  ;;  %v6377_v46 = vadd.f32 1.0, %v6313_v43  ;;  %v7210_v20 = vmul.f32 %v7146_v44, %v6250_v54  ;;  %v14498_v39 = vmul.f32 0.5, %v14374_v15 }
 0x494   : > { %9935 = vmatmul.mubr.msk.bf16.gmra.mrb[120].mxu1 %vm9934_vm11, %v11980_v49  ;;  %10511 = vmatmul.mubr.msk.bf16.gmra.mrb[120].mxu0 %vm9934_vm11, %v11980_v49  ;;  %v14501_v45 = vmul.f32 %v14439_v0, %v5773_v11  ;;  %v7147_v3 = vsub.f32 0.0, %v6251_v59  ;;  %v14505_v16 = vmul.f32 0.70710677, %v14495_v41  ;;  %v7275_v15 = vmul.f32 1.442695, %v7209_v19 }
 0x495   : > { %9937 = vmatprep.mubr.msk.bf16.mxu1 %vm9936_vm12, %v11980_v49  ;;  %10513 = vmatprep.mubr.msk.bf16.mxu0 %vm9936_vm12, %v11980_v49  ;;  %v6759_v38 = vadd.f32 1.4214138, %v6695_v8  ;;  %11537 = vrcp.f32 %v6377_v46  ;;  %v7277_v18 = vmul.f32 1.442695, %v7210_v20  ;;  %v6315_v54 = vmul.f32 0.3275911, %v6251_v59 }
 0x496   : > { %v6253_v23 = vand.u32 2147483647, %v14505_v16  ;;  %11539 = vpow2.f32 %v7275_v15  ;;  %vm7533_vm6 = vcmp.ge.f32.partialorder %v14505_v16, 0.0 }
 0x497   : > { %v3906_v60 = vpop.f32.mrb[16].mxu1  ;;  %v5446_v61 = vpop.f32.mrb[16].mxu0  ;;  %v6823_v34 = vmul.f32 %v14426_v48, %v6759_v38  ;;  %v6378_v38 = vadd.f32 1.0, %v6314_v12  ;;  %v6379_v52 = vadd.f32 1.0, %v6315_v54 }
 0x498   : > { %v3908_v7 = vpop.f32.mrb[17].mxu1  ;;  %v14459_v26 = vadd.f32 %v5446_v61, %v3906_v60  ;;  %v5448_v50 = vpop.f32.mrb[17].mxu0  ;;  %v7149_v6 = vsub.f32 0.0, %v6253_v23  ;;  %v6317_v19 = vmul.f32 0.3275911, %v6253_v23 }
 0x499   : > { %v3909_v51 = vpop.f32.mrb[18].mxu1  ;;  %v5449_v63 = vpop.f32.mrb[18].mxu0  ;;  %v6887_v5 = vadd.f32 -0.28449672, %v6823_v34  ;;  %11541 = vrcp.f32 %v6378_v38 }
 0x49a   : > { %v3911_v9 = vpop.f32.mrb[19].mxu1  ;;  %v14464_v10 = vadd.f32 %v5449_v63, %v3909_v51  ;;  %v5451_v17 = vpop.f32.mrb[19].mxu0  ;;  %v14509_v63 = vmul.f32 0.5, %v14397_v36  ;;  %11543 = vpow2.f32 %v7277_v18  ;;  %v6381_v54 = vadd.f32 1.0, %v6317_v19 }
 0x49b   : > { %v5778_v7 = vpop.permute.xlu0 %5777  ;;  %v6951_v51 = vmul.f32 %v14426_v48, %v6887_v5  ;;  %11545 = vrcp.f32 %v6379_v52 }
 0x49c   : > { %9939 = vmatmul.mubr.msk.bf16.gmra.mrb[124].mxu1 %vm9938_vm15, %v11980_v49  ;;  %10515 = vmatmul.mubr.msk.bf16.gmra.mrb[124].mxu0 %vm9938_vm15, %v11980_v49  ;;  %v14481_v49 = vmul.f32 %v14419_v42, %v5763_v37  ;;  %v6568_v42 = vmul.f32 1.0614054, %v14475_v2  ;;  %v14514_v27 = vmul.f32 %v14459_v26, %v5778_v7  ;;  %v14527_v26 = vmul.f32 0.5, %v14448_v35 }
 0x49d   : > { %v7015_v24 = vadd.f32 0.2548296, %v6951_v51 }
 0x49e   : > { %v14492_v4 = vmul.f32 0.70710677, %v14481_v49  ;;  %v6632_v61 = vadd.f32 -1.4531521, %v6568_v42  ;;  %v14537_v44 = vmul.f32 0.70710677, %v14514_v27  ;;  %v11534_v42 = vpop.eup %11533 }
 0x49f   : > { %v3914_v55 = vpop.f32.mrb[20].mxu1  ;;  %v5454_v1 = vpop.f32.mrb[20].mxu0 }
 0x4a0   : > { %v3916_v22 = vpop.f32.mrb[21].mxu1  ;;  %v14485_v30 = vadd.f32 %v5454_v1, %v3914_v55  ;;  %v5456_v31 = vpop.f32.mrb[21].mxu0  ;;  %v6252_v8 = vand.u32 2147483647, %v14492_v4  ;;  %v14517_v55 = vmul.f32 0.70710677, %v14501_v45  ;;  %v6696_v14 = vmul.f32 %v14475_v2, %v6632_v61 }
 0x4a1   : > { %v3917_v32 = vpop.f32.mrb[22].mxu1  ;;  %v5457_v47 = vpop.f32.mrb[22].mxu0  ;;  %v7211_v22 = vmul.f32 %v7147_v3, %v6251_v59  ;;  %v14530_v31 = vmul.f32 0.5, %v14467_v40  ;;  %v6255_v61 = vand.u32 2147483647, %v14537_v44  ;;  %vm7532_vm5 = vcmp.ge.f32.partialorder %v14492_v4, 0.0 }
 0x4a2   : > { %v3919_v56 = vpop.f32.mrb[23].mxu1  ;;  %v14487_v57 = vadd.f32 %v5457_v47, %v3917_v32  ;;  %v5459_v58 = vpop.f32.mrb[23].mxu0  ;;  %v7148_v34 = vsub.f32 0.0, %v6252_v8  ;;  %v14534_v32 = vmul.f32 0.5, %v14481_v49  ;;  %v6316_v43 = vmul.f32 0.3275911, %v6252_v8 }
 0x4a3   : > { %v7079_v47 = vmul.f32 %v14426_v48, %v7015_v24  ;;  %v6254_v56 = vand.u32 2147483647, %v14517_v55  ;;  %v6760_v35 = vadd.f32 1.4214138, %v6696_v14  ;;  %v5783_v40 = vpop.permute.xlu1 %5782  ;;  %v7279_v59 = vmul.f32 1.442695, %v7211_v22 }
 0x4a4   : > { %v7212_v5 = vmul.f32 %v7148_v34, %v6252_v8  ;;  %v14542_v11 = vmul.f32 %v14464_v10, %v5783_v40  ;;  %v7151_v24 = vsub.f32 0.0, %v6255_v61  ;;  %vm7534_vm7 = vcmp.ge.f32.partialorder %v14517_v55, 0.0 }
 0x4a5   : > { %v7399_v46 = vmul.f32 %v11534_v42, %v7079_v47  ;;  %v6824_v48 = vmul.f32 %v14475_v2, %v6760_v35  ;;  %v7150_v51 = vsub.f32 0.0, %v6254_v56  ;;  %11547 = vpow2.f32 %v7279_v59 }
 0x4a6   : > { %v7281_v18 = vmul.f32 1.442695, %v7212_v5  ;;  %v6318_v34 = vmul.f32 0.3275911, %v6254_v56  ;;  %vm7535_vm8 = vcmp.ge.f32.partialorder %v14537_v44, 0.0 }
 0x4a7   : > { %v3922_v53 = vpop.f32.mrb[24].mxu1  ;;  %v5462_v60 = vpop.f32.mrb[24].mxu0  ;;  %v7463_v10 = vsub.f32 1.0, %v7399_v46  ;;  %v6888_v15 = vadd.f32 -0.28449672, %v6824_v48  ;;  %v7214_v52 = vmul.f32 %v7150_v51, %v6254_v56 }
 0x4a8   : > { %v3924_v50 = vpop.f32.mrb[25].mxu1  ;;  %v14511_v0 = vadd.f32 %v5462_v60, %v3922_v53  ;;  %v5464_v9 = vpop.f32.mrb[25].mxu0  ;;  %v6380_v53 = vadd.f32 1.0, %v6316_v43  ;;  %v14546_v60 = vmul.f32 0.5, %v14495_v41 }
 0x4a9   : > { %v3925_v17 = vpop.f32.mrb[26].mxu1  ;;  %v5465_v28 = vpop.f32.mrb[26].mxu0  ;;  %v7591_v14 = vsub.f32 0.0, %v7463_v10  ;;  %v6952_v22 = vmul.f32 %v14475_v2, %v6888_v15 }
 0x4aa   : > { %v3927_v37 = vpop.f32.mrb[27].mxu1  ;;  %v14519_v36 = vadd.f32 %v5465_v28, %v3925_v17  ;;  %v5467_v1 = vpop.f32.mrb[27].mxu0  ;;  %v7213_v28 = vmul.f32 %v7149_v6, %v6253_v23  ;;  %11549 = vrcp.f32 %v6380_v53  ;;  %v14565_v23 = vmul.f32 0.5, %v14501_v45 }
 0x4ab   : > { %v11536_v50 = vpop.eup %11535  ;;  %v5788_v37 = vpop.permute.xlu0 %5787  ;;  %v14556_v1 = vmul.f32 0.70710677, %v14542_v11  ;;  %v7655_v35 = vsel %vm7527_vm0, %v7463_v10, %v7591_v14  ;;  %11551 = vpow2.f32 %v7281_v18  ;;  %v6319_v6 = vmul.f32 0.3275911, %v6255_v61 }
 0x4ac   : > { %v14551_v38 = vpop.eup %11537  ;;  %v14560_v43 = vmul.f32 %v14485_v30, %v5788_v37  ;;  %v5793_v59 = vpop.permute.xlu1 %5792  ;;  %v7283_v5 = vmul.f32 1.442695, %v7213_v28  ;;  %v7719_v30 = vadd.f32 1.0, %v7655_v35  ;;  %11553 = vrcp.f32 %v6381_v54 }
 0x4ad   : > { %v14562_v47 = vpop.eup %11539  ;;  %v14573_v45 = vmul.f32 0.5, %v14514_v27  ;;  %v6256_v33 = vand.u32 2147483647, %v14556_v1  ;;  %v7215_v53 = vmul.f32 %v7151_v24, %v6255_v61  ;;  %v7285_v27 = vmul.f32 1.442695, %v7214_v52 }
 0x4ae   : > { %v14570_v19 = vpop.eup %11541  ;;  %v14586_v15 = vmul.f32 %v14487_v57, %v5793_v59  ;;  %11555 = vpow2.f32 %v7283_v5  ;;  %v6383_v18 = vadd.f32 1.0, %v6319_v6  ;;  %v14605_v6 = vmul.f32 0.5, %v14542_v11 }
 0x4af   : > { %v3930_v58 = vpop.f32.mrb[28].mxu1  ;;  %v5470_v49 = vpop.f32.mrb[28].mxu0  ;;  %17457 = vst [vmem:[#allocation9_spill] sm:$0xff] %v14573_v45  ;;  %v6570_v28 = vmul.f32 1.0614054, %v14570_v19  ;;  %v7152_v54 = vsub.f32 0.0, %v6256_v33 }
 0x4b0   : > { %v3932_v12 = vpop.f32.mrb[29].mxu1  ;;  %v5472_v20 = vpop.f32.mrb[29].mxu0  ;;  %v14549_v7 = vadd.f32 %v5470_v49, %v3930_v58  ;;  %v7016_v58 = vadd.f32 0.2548296, %v6952_v22  ;;  %v6320_v37 = vmul.f32 0.3275911, %v6256_v33 }
 0x4b1   : > { %v3933_v3 = vpop.f32.mrb[30].mxu1  ;;  %v5473_v8 = vpop.f32.mrb[30].mxu0  ;;  %v6382_v20 = vadd.f32 1.0, %v6318_v34  ;;  %v7287_v34 = vmul.f32 1.442695, %v7215_v53  ;;  %17461 = vst [vmem:[#allocation7_spill] sm:$0xff] %v14605_v6  ;;  %v7216_v53 = vmul.f32 %v7152_v54, %v6256_v33 }
 0x4b2   : > { %v3935_v9 = vpop.f32.mrb[31].mxu1  ;;  %v5475_v17 = vpop.f32.mrb[31].mxu0  ;;  %v14553_v41 = vadd.f32 %v5473_v8, %v3933_v3  ;;  %v7080_v56 = vmul.f32 %v14475_v2, %v7016_v58  ;;  %v14580_v3 = vmul.f32 0.70710677, %v14560_v43  ;;  %v14583_v8 = vmul.f32 %v7719_v30, %v14498_v39 }
 0x4b3   : > { %v14577_v12 = vpop.eup %11543  ;;  %v6569_v2 = vmul.f32 1.0614054, %v14551_v38  ;;  %11557 = vrcp.f32 %v6382_v20  ;;  %v6634_v52 = vadd.f32 -1.4531521, %v6570_v28  ;;  %v14599_v35 = vmul.f32 0.70710677, %v14586_v15 }
 0x4b4   : > { %17458 = vst [vmem:[#allocation5_spill] sm:$0xff] %v14580_v3  ;;  %17459 = vst [vmem:[#allocation8_spill] sm:$0xff] %v14583_v8  ;;  %v7400_v9 = vmul.f32 %v11536_v50, %v7080_v56  ;;  %7847 = vadd.xlane.f32.xlu0 %v14583_v8  ;;  %v14593_v39 = vpop.eup %11545  ;;  %v5798_v50 = vpop.permute.xlu0 %5797  ;;  %v6257_v24 = vand.u32 2147483647, %v14580_v3  ;;  %11559 = vpow2.f32 %v7285_v27  ;;  %v6384_v20 = vadd.f32 1.0, %v6320_v37 }
 0x4b5   : > { %v6633_v22 = vadd.f32 -1.4531521, %v6569_v2  ;;  %v14595_v57 = vpop.eup %11547  ;;  %17460 = vst [vmem:[#allocation14_spill] sm:$0xff] %v14599_v35  ;;  %11561 = vrcp.f32 %v6383_v18  ;;  %v14608_v30 = vmul.f32 %v14511_v0, %v5798_v50  ;;  %v6571_v13 = vmul.f32 1.0614054, %v14593_v39  ;;  %v5803_v50 = vpop.permute.xlu1 %5802 }
 0x4b6   : > { %v7464_v14 = vsub.f32 1.0, %v7400_v9  ;;  %v14602_v5 = vpop.eup %11549  ;;  %11563 = vpow2.f32 %v7287_v34  ;;  %v6321_v11 = vmul.f32 0.3275911, %v6257_v24  ;;  %vm7536_vm9 = vcmp.ge.f32.partialorder %v14556_v1, 0.0 }
 0x4b7   : > { %v3938_v42 = vpop.f32.mrb[32].mxu1  ;;  %v5478_v40 = vpop.f32.mrb[32].mxu0  ;;  %11565 = vrcp.f32 %v6384_v20 }
 0x4b8   : > { %v3940_v49 = vpop.f32.mrb[33].mxu1  ;;  %v5480_v46 = vpop.f32.mrb[33].mxu0  ;;  %v14590_v61 = vadd.f32 %v5478_v40, %v3938_v42  ;;  %v7592_v58 = vsub.f32 0.0, %v7464_v14  ;;  %v6697_v42 = vmul.f32 %v14551_v38, %v6633_v22  ;;  %v6258_v22 = vand.u32 2147483647, %v14599_v35  ;;  %v17488_v1 = vld [vmem:[#allocation7_spill] sm:$0xff] }
 0x4b9   : > { %v3941_v48 = vpop.f32.mrb[34].mxu1  ;;  %v5481_v51 = vpop.f32.mrb[34].mxu0  ;;  %v6698_v49 = vmul.f32 %v14570_v19, %v6634_v52  ;;  %v7153_v52 = vsub.f32 0.0, %v6257_v24 }
 0x4ba   : > { %v3943_v10 = vpop.f32.mrb[35].mxu1  ;;  %v5483_v17 = vpop.f32.mrb[35].mxu0  ;;  %v6761_v27 = vadd.f32 1.4214138, %v6697_v42  ;;  %v14623_v37 = vadd.f32 %v5481_v51, %v3941_v48  ;;  %v6635_v48 = vadd.f32 -1.4531521, %v6571_v13 }
 0x4bb   : > { %v7656_v10 = vsel %vm7528_vm1, %v7464_v14, %v7592_v58  ;;  %v14617_v17 = vpop.eup %11551  ;;  %v6762_v18 = vadd.f32 1.4214138, %v6698_v49  ;;  %v14627_v58 = vmul.f32 0.70710677, %v14608_v30  ;;  %v14634_v49 = vmul.f32 %v14519_v36, %v5803_v50 }
 0x4bc   : > { %v7720_v0 = vadd.f32 1.0, %v7656_v10  ;;  %v14619_v28 = vpop.eup %11553  ;;  %v6825_v33 = vmul.f32 %v14551_v38, %v6761_v27  ;;  %v6572_v51 = vmul.f32 1.0614054, %v14602_v5  ;;  %v7289_v10 = vmul.f32 1.442695, %v7216_v53 }
 0x4bd   : > { %17462 = vst [vmem:[#allocation6_spill] sm:$0xff] %v14627_v58  ;;  %v6826_v42 = vmul.f32 %v14570_v19, %v6762_v18  ;;  %v6385_v27 = vadd.f32 1.0, %v6321_v11  ;;  %v6699_v36 = vmul.f32 %v14593_v39, %v6635_v48  ;;  %v7217_v8 = vmul.f32 %v7153_v52, %v6257_v24 }
 0x4be   : > { %v14630_v34 = vmul.f32 %v7720_v0, %v14509_v63  ;;  %v6322_v63 = vmul.f32 0.3275911, %v6258_v22  ;;  %v7154_v0 = vsub.f32 0.0, %v6258_v22  ;;  %v6259_v53 = vand.u32 2147483647, %v14627_v58 }
 0x4bf   : > { %v3946_v40 = vpop.f32.mrb[36].mxu1  ;;  %v5486_v59 = vpop.f32.mrb[36].mxu0  ;;  %v14658_v48 = vmul.f32 0.70710677, %v14634_v49  ;;  %11567 = vpow2.f32 %v7289_v10  ;;  %v7291_v10 = vmul.f32 1.442695, %v7217_v8 }
 0x4c0   : > { %v3948_v56 = vpop.f32.mrb[37].mxu1  ;;  %v5488_v46 = vpop.f32.mrb[37].mxu0  ;;  %17463 = vst [vmem:[#allocation11_spill] sm:$0xff] %v14630_v34  ;;  %7849 = vadd.xlane.f32.xlu1 %v14630_v34  ;;  %11569 = vrcp.f32 %v6385_v27  ;;  %v7155_v6 = vsub.f32 0.0, %v6259_v53 }
 0x4c1   : > { %v14613_v9 = vpop.f32.mrb[38].mxu1  ;;  %v14615_v2 = vpop.f32.mrb[38].mxu0  ;;  %v6889_v56 = vadd.f32 -0.28449672, %v6825_v33  ;;  %17465 = vst [vmem:[#allocation13_spill] sm:$0xff] %v14658_v48  ;;  %11571 = vpow2.f32 %v7291_v10 }
 0x4c2   : > { %v3951_v54 = vpop.f32.mrb[39].mxu1  ;;  %v5491_v14 = vpop.f32.mrb[39].mxu0 }
 0x4c3   : > { %v14637_v46 = vpop.eup %11555  ;;  %v6890_v54 = vadd.f32 -0.28449672, %v6826_v42  ;;  %v14640_v14 = vadd.f32 %v5486_v59, %v3946_v40  ;;  %v6953_v18 = vmul.f32 %v14551_v38, %v6889_v56  ;;  %v6636_v42 = vadd.f32 -1.4531521, %v6572_v51 }
 0x4c4   : > { %v14648_v13 = vpop.eup %11557  ;;  %v14655_v56 = vmul.f32 0.5, %v14560_v43  ;;  %v6763_v51 = vadd.f32 1.4214138, %v6699_v36  ;;  %v14670_v43 = vmul.f32 0.5, %v14586_v15  ;;  %v14681_v15 = vadd.f32 %v14615_v2, %v14613_v9  ;;  %v5813_v9 = vpop.permute.xlu1 %5812 }
 0x4c5   : > { %v6954_v11 = vmul.f32 %v14570_v19, %v6890_v54  ;;  %v14652_v34 = vpop.eup %11559  ;;  %v7017_v35 = vadd.f32 0.2548296, %v6953_v18  ;;  %v6700_v54 = vmul.f32 %v14602_v5, %v6636_v42  ;;  %v7218_v18 = vmul.f32 %v7154_v0, %v6258_v22  ;;  %v5808_v22 = vpop.permute.xlu0 %5807 }
 0x4c6   : > { %17464 = vst [vmem:[#allocation10_spill] sm:$0xff] %v14655_v56  ;;  %v14662_v24 = vpop.eup %11561  ;;  %17466 = vst [vmem:[#allocation12_spill] sm:$0xff] %v14670_v43  ;;  %v6323_v2 = vmul.f32 0.3275911, %v6259_v53 }
 0x4c7   : > { %v14644_v50 = vpop.f32.mrb[40].mxu1  ;;  %v14646_v33 = vpop.f32.mrb[40].mxu0  ;;  %v7018_v52 = vadd.f32 0.2548296, %v6954_v11  ;;  %v6827_v11 = vmul.f32 %v14593_v39, %v6763_v51  ;;  %v6764_v42 = vadd.f32 1.4214138, %v6700_v54 }
 0x4c8   : > { %v3956_v40 = vpop.f32.mrb[41].mxu1  ;;  %v5496_v59 = vpop.f32.mrb[41].mxu0  ;;  %v6387_v45 = vadd.f32 1.0, %v6323_v2 }
 0x4c9   : > { %v14660_v3 = vpop.f32.mrb[42].mxu1  ;;  %v14666_v40 = vpop.f32.mrb[42].mxu0  ;;  %v7081_v59 = vmul.f32 %v14551_v38, %v7017_v35  ;;  %v7082_v36 = vmul.f32 %v14570_v19, %v7018_v52  ;;  %v6386_v38 = vadd.f32 1.0, %v6322_v63  ;;  %v6891_v0 = vadd.f32 -0.28449672, %v6827_v11 }
 0x4ca   : > { %v3959_v20 = vpop.f32.mrb[43].mxu1  ;;  %v5499_v56 = vpop.f32.mrb[43].mxu0  ;;  %v6828_v8 = vmul.f32 %v14602_v5, %v6764_v42  ;;  %v7293_v19 = vmul.f32 1.442695, %v7218_v18  ;;  %v6069_v52 = vmul.f32 %v14549_v7, %v5808_v22  ;;  %v7219_v11 = vmul.f32 %v7155_v6, %v6259_v53 }
 0x4cb   : > { %v14673_v58 = vpop.eup %11563  ;;  %v6260_v20 = vand.u32 2147483647, %v14658_v48  ;;  %v7401_v27 = vmul.f32 %v14562_v47, %v7081_v59  ;;  %v7402_v35 = vmul.f32 %v14577_v12, %v7082_v36  ;;  %v14686_v56 = vmul.f32 0.5, %v14608_v30 }
 0x4cc   : > { %v6955_v63 = vmul.f32 %v14593_v39, %v6891_v0  ;;  %v6892_v12 = vadd.f32 -0.28449672, %v6828_v8  ;;  %11573 = vrcp.f32 %v6386_v38  ;;  %v14702_v10 = vmul.f32 0.70710677, %v6069_v52 }
 0x4cd   : > { %17467 = vst [vmem:[#allocation15_spill] sm:$0xff] %v14686_v56  ;;  %v7465_v51 = vsub.f32 1.0, %v7401_v27  ;;  %v7466_v59 = vsub.f32 1.0, %v7402_v35  ;;  %v6324_v18 = vmul.f32 0.3275911, %v6260_v20  ;;  %v14699_v35 = vpop.eup %11565  ;;  %v7156_v0 = vsub.f32 0.0, %v6260_v20 }
 0x4ce   : > { %v7019_v27 = vadd.f32 0.2548296, %v6955_v63  ;;  %v6956_v22 = vmul.f32 %v14602_v5, %v6892_v12  ;;  %17468 = vst [vmem:[#allocation16_spill] sm:$0xff] %v14702_v10  ;;  %v14705_v6 = vmul.f32 %v14553_v41, %v5813_v9  ;;  %v14709_v8 = vpop.eup %11567  ;;  %v7295_v41 = vmul.f32 1.442695, %v7219_v11 }
 0x4cf   : > { %v14689_v54 = vpop.f32.mrb[44].mxu1  ;;  %v14691_v47 = vpop.f32.mrb[44].mxu0  ;;  %v7593_v42 = vsub.f32 0.0, %v7465_v51  ;;  %v7594_v7 = vsub.f32 0.0, %v7466_v59  ;;  %v14718_v9 = vmul.f32 0.5, %v14634_v49  ;;  %11575 = vpow2.f32 %v7293_v19 }
 0x4d0   : > { %v3964_v36 = vpop.f32.mrb[45].mxu1  ;;  %v5504_v30 = vpop.f32.mrb[45].mxu0  ;;  %v7083_v12 = vmul.f32 %v14593_v39, %v7019_v27  ;;  %v14729_v2 = vmul.f32 0.70710677, %v14705_v6  ;;  %11577 = vrcp.f32 %v6387_v45 }
 0x4d1   : > { %v14694_v56 = vpop.f32.mrb[46].mxu1  ;;  %v14697_v43 = vpop.f32.mrb[46].mxu0  ;;  %v7657_v53 = vsel %vm7529_vm2, %v7465_v51, %v7593_v42  ;;  %v7020_v36 = vadd.f32 0.2548296, %v6956_v22  ;;  %v14720_v51 = vadd.f32 1.0, %v6324_v18  ;;  %v14746_v22 = vadd.f32 %v14646_v33, %v14644_v50 }
 0x4d2   : > { %v3967_v48 = vpop.f32.mrb[47].mxu1  ;;  %v5507_v38 = vpop.f32.mrb[47].mxu0  ;;  %v7721_v63 = vadd.f32 1.0, %v7657_v53  ;;  %v7403_v62 = vmul.f32 %v14595_v57, %v7083_v12  ;;  %17470 = vst [vmem:[#allocation18_spill] sm:$0xff] %v14729_v2  ;;  %v6573_v57 = vmul.f32 1.0614054, %v14619_v28  ;;  %11579 = vpow2.f32 %v7295_v41 }
 0x4d3   : > { %v7658_v48 = vsel %vm7530_vm3, %v7466_v59, %v7594_v7  ;;  %v14714_v30 = vpop.eup %11569  ;;  %v7084_v39 = vmul.f32 %v14602_v5, %v7020_v36  ;;  %v7220_v59 = vmul.f32 %v7156_v0, %v6260_v20  ;;  %v6261_v7 = vand.u32 2147483647, %v14702_v10 }
 0x4d4   : > { %v7722_v25 = vadd.f32 1.0, %v7658_v48  ;;  %v14723_v42 = vmul.f32 %v7721_v63, %v14524_v29  ;;  %v7467_v18 = vsub.f32 1.0, %v7403_v62  ;;  %v6574_v5 = vmul.f32 1.0614054, %v14648_v13 }
 0x4d5   : > { %v7404_v29 = vmul.f32 %v14617_v17, %v7084_v39  ;;  %v14739_v20 = vmul.f32 0.5, %v6069_v52  ;;  %v14750_v0 = vadd.f32 %v14666_v40, %v14660_v3  ;;  %v6637_v48 = vadd.f32 -1.4531521, %v6573_v57  ;;  %v14754_v52 = vpop.eup %11571  ;;  %v5818_v3 = vpop.permute.xlu0 %5817 }
 0x4d6   : > { %17469 = vst [vmem:[#allocation17_spill] sm:$0xff] %v14723_v42  ;;  %7851 = vadd.xlane.f32.xlu0 %v14723_v42  ;;  %v14742_v27 = vmul.f32 %v7722_v25, %v14527_v26  ;;  %v7595_v38 = vsub.f32 0.0, %v7467_v18  ;;  %v6638_v12 = vadd.f32 -1.4531521, %v6574_v5  ;;  %v6325_v26 = vmul.f32 0.3275911, %v6261_v7  ;;  %v14759_v33 = vpop.eup %11573 }
 0x4d7   : > { %v14731_v11 = vpop.f32.mrb[48].mxu1  ;;  %v14733_v49 = vpop.f32.mrb[48].mxu0  ;;  %17471 = vst [vmem:[#allocation19_spill] sm:$0xff] %v14739_v20  ;;  %v7468_v63 = vsub.f32 1.0, %v7404_v29  ;;  %v6262_v36 = vand.u32 2147483647, %v14729_v2  ;;  %v6701_v39 = vmul.f32 %v14619_v28, %v6637_v48  ;;  %v14767_v5 = vmul.f32 %v14590_v61, %v5818_v3 }
 0x4d8   : > { %v3972_v19 = vpop.f32.mrb[49].mxu1  ;;  %17472 = vst [vmem:[#allocation20_spill] sm:$0xff] %v14742_v27  ;;  %v5512_v53 = vpop.f32.mrb[49].mxu0  ;;  %v7659_v40 = vsel %vm7531_vm4, %v7467_v18, %v7595_v38  ;;  %v6702_v29 = vmul.f32 %v14648_v13, %v6638_v12  ;;  %v7157_v57 = vsub.f32 0.0, %v6261_v7  ;;  %v6389_v18 = vadd.f32 1.0, %v6325_v26 }
 0x4d9   : > { %v14752_v17 = vpop.f32.mrb[50].mxu1  ;;  %v14757_v25 = vpop.f32.mrb[50].mxu0  ;;  %v7596_v62 = vsub.f32 0.0, %v7468_v63  ;;  %v7723_v19 = vadd.f32 1.0, %v7659_v40  ;;  %v6765_v42 = vadd.f32 1.4214138, %v6701_v39  ;;  %11581 = vrcp.f32 %v14720_v51 }
 0x4da   : > { %v3975_v50 = vpop.f32.mrb[51].mxu1  ;;  %7853 = vadd.xlane.f32.xlu0 %v14742_v27  ;;  %v5515_v45 = vpop.f32.mrb[51].mxu0  ;;  %v6766_v21 = vadd.f32 1.4214138, %v6702_v29  ;;  %v7158_v3 = vsub.f32 0.0, %v6262_v36 }
 0x4db   : > { %v5823_v53 = vpop.permute.xlu1 %5822  ;;  %v7297_v50 = vmul.f32 1.442695, %v7220_v59  ;;  %v7660_v27 = vsel %vm7532_vm5, %v7468_v63, %v7596_v62  ;;  %v14775_v48 = vmul.f32 %v7723_v19, %v14530_v31  ;;  %v6829_v59 = vmul.f32 %v14619_v28, %v6765_v42  ;;  %v14784_v62 = vpop.eup %11575 }
 0x4dc   : > { %v14772_v38 = vmul.f32 %v14623_v37, %v5823_v53  ;;  %v7724_v41 = vadd.f32 1.0, %v7660_v27  ;;  %v6830_v4 = vmul.f32 %v14648_v13, %v6766_v21  ;;  %v6575_v63 = vmul.f32 1.0614054, %v14662_v24 }
 0x4dd   : > { %17473 = vst [vmem:[#allocation21_spill] sm:$0xff] %v14775_v48  ;;  %v7221_v37 = vmul.f32 %v7157_v57, %v6261_v7  ;;  %v14787_v31 = vmul.f32 0.70710677, %v14767_v5  ;;  %7855 = vadd.xlane.f32.xlu1 %v14775_v48  ;;  %v6576_v39 = vmul.f32 1.0614054, %v14699_v35  ;;  %v14798_v53 = vadd.f32 %v14691_v47, %v14689_v54  ;;  %v5828_v48 = vpop.permute.xlu0 %5827 }
 0x4de   : > { %v14791_v27 = vmul.f32 %v7724_v41, %v14534_v32  ;;  %v6326_v29 = vmul.f32 0.3275911, %v6262_v36  ;;  %v6893_v45 = vadd.f32 -0.28449672, %v6829_v59  ;;  %v6894_v19 = vadd.f32 -0.28449672, %v6830_v4 }
 0x4df   : > { %v14777_v12 = vpop.f32.mrb[52].mxu1  ;;  %v14779_v61 = vpop.f32.mrb[52].mxu0  ;;  %17474 = vst [vmem:[#allocation22_spill] sm:$0xff] %v14787_v31  ;;  %v14802_v7 = vmul.f32 0.70710677, %v14772_v38  ;;  %v14808_v41 = vmul.f32 0.5, %v14705_v6  ;;  %v7222_v59 = vmul.f32 %v7158_v3, %v6262_v36  ;;  %11583 = vpow2.f32 %v7297_v50 }
 0x4e0   : > { %v3980_v40 = vpop.f32.mrb[53].mxu1  ;;  %v5520_v26 = vpop.f32.mrb[53].mxu0  ;;  %17475 = vst [vmem:[#allocation23_spill] sm:$0xff] %v14791_v27  ;;  %7857 = vadd.xlane.f32.xlu0 %v14791_v27  ;;  %v6639_v32 = vadd.f32 -1.4531521, %v6575_v63  ;;  %v6957_v4 = vmul.f32 %v14619_v28, %v6893_v45  ;;  %v6958_v54 = vmul.f32 %v14648_v13, %v6894_v19  ;;  %11585 = vrcp.f32 %v6389_v18 }
 0x4e1   : > { %v14794_v42 = vpop.f32.mrb[54].mxu1  ;;  %17476 = vst [vmem:[#allocation24_spill] sm:$0xff] %v14802_v7  ;;  %v14805_v57 = vpop.f32.mrb[54].mxu0  ;;  %17477 = vst [vmem:[#allocation25_spill] sm:$0xff] %v14808_v41  ;;  %v7299_v51 = vmul.f32 1.442695, %v7221_v37 }
 0x4e2   : > { %v3983_v21 = vpop.f32.mrb[55].mxu1  ;;  %v5523_v47 = vpop.f32.mrb[55].mxu0  ;;  %v6263_v26 = vand.u32 2147483647, %v14787_v31  ;;  %v6703_v27 = vmul.f32 %v14662_v24, %v6639_v32  ;;  %v6640_v63 = vadd.f32 -1.4531521, %v6576_v39 }
 0x4e3   : > { %v14812_v40 = vpop.eup %11577  ;;  %v6390_v21 = vadd.f32 1.0, %v6326_v29  ;;  %v7021_v20 = vadd.f32 0.2548296, %v6957_v4  ;;  %v7022_v6 = vadd.f32 0.2548296, %v6958_v54  ;;  %v14827_v29 = vmul.f32 %v14640_v14, %v5828_v48 }
 0x4e4   : > { %v14816_v41 = vpop.eup %11579  ;;  %v6264_v36 = vand.u32 2147483647, %v14802_v7  ;;  %v6767_v3 = vadd.f32 1.4214138, %v6703_v27  ;;  %v6704_v37 = vmul.f32 %v14699_v35, %v6640_v63  ;;  %v7301_v50 = vmul.f32 1.442695, %v7222_v59 }
 0x4e5   : > { %v7085_v19 = vmul.f32 %v14619_v28, %v7021_v20  ;;  %v7086_v32 = vmul.f32 %v14648_v13, %v7022_v6  ;;  %11587 = vpow2.f32 %v7299_v51  ;;  %v6327_v18 = vmul.f32 0.3275911, %v6263_v26 }
 0x4e6   : > { %v6831_v27 = vmul.f32 %v14662_v24, %v6767_v3  ;;  %v6768_v47 = vadd.f32 1.4214138, %v6704_v37  ;;  %v7159_v7 = vsub.f32 0.0, %v6263_v26  ;;  %v14838_v14 = vadd.f32 %v14697_v43, %v14694_v56  ;;  %v5833_v43 = vpop.permute.xlu1 %5832 }
 0x4e7   : > { %v14822_v45 = vpop.f32.mrb[56].mxu1  ;;  %v14824_v39 = vpop.f32.mrb[56].mxu0  ;;  %v7405_v31 = vmul.f32 %v14637_v46, %v7085_v19  ;;  %v7406_v59 = vmul.f32 %v14652_v34, %v7086_v32  ;;  %v14843_v20 = vmul.f32 0.5, %v14767_v5  ;;  %v7160_v48 = vsub.f32 0.0, %v6264_v36 }
 0x4e8   : > { %v3988_v4 = vpop.f32.mrb[57].mxu1  ;;  %v5528_v54 = vpop.f32.mrb[57].mxu0  ;;  %v6895_v51 = vadd.f32 -0.28449672, %v6831_v27  ;;  %v6832_v6 = vmul.f32 %v14699_v35, %v6768_v47  ;;  %11589 = vrcp.f32 %v6390_v21  ;;  %v14847_v46 = vmul.f32 0.70710677, %v14827_v29 }
 0x4e9   : > { %v14832_v63 = vpop.f32.mrb[58].mxu1  ;;  %v14840_v28 = vpop.f32.mrb[58].mxu0  ;;  %17478 = vst [vmem:[#allocation26_spill] sm:$0xff] %v14843_v20  ;;  %v7469_v34 = vsub.f32 1.0, %v7405_v31  ;;  %v7470_v37 = vsub.f32 1.0, %v7406_v59  ;;  %11591 = vpow2.f32 %v7301_v50  ;;  %v6391_v56 = vadd.f32 1.0, %v6327_v18 }
 0x4ea   : > { %v3991_v13 = vpop.f32.mrb[59].mxu1  ;;  %v5531_v3 = vpop.f32.mrb[59].mxu0  ;;  %17479 = vst [vmem:[#allocation27_spill] sm:$0xff] %v14847_v46  ;;  %v6959_v32 = vmul.f32 %v14662_v24, %v6895_v51  ;;  %v6896_v5 = vadd.f32 -0.28449672, %v6832_v6  ;;  %v7223_v54 = vmul.f32 %v7159_v7, %v6263_v26  ;;  %v14853_v27 = vmul.f32 %v14681_v15, %v5833_v43 }
 0x4eb   : > { %v14849_v19 = vpop.eup %11581  ;;  %v5838_v4 = vpop.permute.xlu0 %5837  ;;  %v7597_v47 = vsub.f32 0.0, %v7469_v34  ;;  %v7598_v21 = vsub.f32 0.0, %v7470_v37  ;;  %v6328_v13 = vmul.f32 0.3275911, %v6264_v36  ;;  %v7224_v3 = vmul.f32 %v7160_v48, %v6264_v36 }
 0x4ec   : > { %v7023_v20 = vadd.f32 0.2548296, %v6959_v32  ;;  %v6960_v31 = vmul.f32 %v14699_v35, %v6896_v5  ;;  %v14860_v50 = vpop.eup %11583  ;;  %v6265_v7 = vand.u32 2147483647, %v14847_v46  ;;  %v6577_v36 = vmul.f32 1.0614054, %v14714_v30 }
 0x4ed   : > { %v7661_v15 = vsel %vm7533_vm6, %v7469_v34, %v7597_v47  ;;  %v7662_v26 = vsel %vm7534_vm7, %v7470_v37, %v7598_v21  ;;  %v14869_v51 = vpop.eup %11585  ;;  %v7303_v16 = vmul.f32 1.442695, %v7223_v54  ;;  %v14878_v55 = vmul.f32 0.5, %v14772_v38 }
 0x4ee   : > { %v7725_v6 = vadd.f32 1.0, %v7661_v15  ;;  %v7726_v43 = vadd.f32 1.0, %v7662_v26  ;;  %v7087_v32 = vmul.f32 %v14662_v24, %v7023_v20  ;;  %v7024_v5 = vadd.f32 0.2548296, %v6960_v31 }
 0x4ef   : > { %v14856_v59 = vpop.f32.mrb[60].mxu1  ;;  %v14858_v2 = vpop.f32.mrb[60].mxu0  ;;  %17480 = vst [vmem:[#allocation28_spill] sm:$0xff] %v14878_v55  ;;  %v14881_v34 = vmul.f32 0.70710677, %v14853_v27  ;;  %v14884_v37 = vmul.f32 %v14746_v22, %v5838_v4  ;;  %v6392_v15 = vadd.f32 1.0, %v6328_v13  ;;  %11593 = vrcp.f32 %v6391_v56 }
 0x4f0   : > { %v3996_v18 = vpop.f32.mrb[61].mxu1  ;;  %v5536_v48 = vpop.f32.mrb[61].mxu0  ;;  %v14889_v24 = vmul.f32 %v7725_v6, %v14546_v60  ;;  %v14892_v20 = vmul.f32 %v7726_v43, %v14565_v23  ;;  %v7407_v54 = vmul.f32 %v14673_v58, %v7087_v32  ;;  %v7088_v38 = vmul.f32 %v14699_v35, %v7024_v5 }
 0x4f1   : > { %v14872_v10 = vpop.f32.mrb[62].mxu1  ;;  %v14874_v46 = vpop.f32.mrb[62].mxu0  ;;  %17481 = vst [vmem:[#allocation29_spill] sm:$0xff] %v14881_v34  ;;  %v7305_v26 = vmul.f32 1.442695, %v7224_v3  ;;  %v7161_v18 = vsub.f32 0.0, %v6265_v7  ;;  %v14902_v23 = vadd.f32 %v14733_v49, %v14731_v11  ;;  %v14913_v6 = vadd.f32 %v14757_v25, %v14752_v17 }
 0x4f2   : > { %v3999_v47 = vpop.f32.mrb[63].mxu1  ;;  %v14886_v21 = vpop.eup %11587  ;;  %17482 = vst [vmem:[#allocation30_spill] sm:$0xff] %v14889_v24  ;;  %17483 = vst [vmem:[#allocation31_spill] sm:$0xff] %v14892_v20  ;;  %v6641_v48 = vadd.f32 -1.4531521, %v6577_v36  ;;  %7859 = vadd.xlane.f32.xlu1 %v14889_v24  ;;  %7861 = vadd.xlane.f32.xlu0 %v14892_v20  ;;  %v7471_v22 = vsub.f32 1.0, %v7407_v54  ;;  %v7408_v60 = vmul.f32 %v14709_v8, %v7088_v38  ;;  %11595 = vpow2.f32 %v7303_v16 }
 0x4f3   : > { %v5539_v31 = vpop.f32.mrb[63].mxu0  ;;  %v6578_v4 = vmul.f32 1.0614054, %v14759_v33  ;;  %v14904_v58 = vpop.eup %11589  ;;  %v6266_v13 = vand.u32 2147483647, %v14881_v34  ;;  %11597 = vrcp.f32 %v6392_v15  ;;  %v17491_v15 = vld [vmem:[#allocation5_spill] sm:$0xff] }
 0x4f4   : > { %v5843_v35 = vpop.permute.xlu1 %5842  ;;  %v14908_v3 = vmul.f32 0.70710677, %v14884_v37  ;;  %v6705_v36 = vmul.f32 %v14714_v30, %v6641_v48  ;;  %v14915_v8 = vpop.eup %11591  ;;  %v7599_v43 = vsub.f32 0.0, %v7471_v22  ;;  %v7472_v11 = vsub.f32 1.0, %v7408_v60 }
 0x4f5   : > { %v6642_v49 = vadd.f32 -1.4531521, %v6578_v4  ;;  %v6579_v54 = vmul.f32 1.0614054, %v14812_v40  ;;  %v6329_v48 = vmul.f32 0.3275911, %v6265_v7  ;;  %v7225_v4 = vmul.f32 %v7161_v18, %v6265_v7 }
 0x4f6   : > { %17484 = vst [vmem:[#allocation32_spill] sm:$0xff] %v14908_v3  ;;  %v6769_v47 = vadd.f32 1.4214138, %v6705_v36  ;;  %v7663_v17 = vsel %vm7535_vm8, %v7471_v22, %v7599_v43  ;;  %v7600_v25 = vsub.f32 0.0, %v7472_v11  ;;  %v7162_v24 = vsub.f32 0.0, %v6266_v13 }
 0x4f7   : > { %v14917_v32 = vpop.f32.mrb[64].mxu1  ;;  %v14919_v5 = vpop.f32.mrb[64].mxu0  ;;  %v6706_v56 = vmul.f32 %v14759_v33, %v6642_v49  ;;  %v7727_v34 = vadd.f32 1.0, %v7663_v17  ;;  %v6643_v43 = vadd.f32 -1.4531521, %v6579_v54  ;;  %v14940_v17 = vmul.f32 0.5, %v14827_v29 }
 0x4f8   : > { %v4004_v38 = vpop.f32.mrb[65].mxu1  ;;  %v5544_v31 = vpop.f32.mrb[65].mxu0  ;;  %v6833_v16 = vmul.f32 %v14714_v30, %v6769_v47  ;;  %v7664_v44 = vsel %vm7536_vm9, %v7472_v11, %v7600_v25  ;;  %v6267_v49 = vand.u32 2147483647, %v14908_v3  ;;  %v6393_v47 = vadd.f32 1.0, %v6329_v48 }
 0x4f9   : > { %v14925_v20 = vpop.f32.mrb[66].mxu1  ;;  %v14927_v60 = vpop.f32.mrb[66].mxu0  ;;  %v14931_v38 = vmul.f32 %v14750_v0, %v5843_v35  ;;  %v6770_v22 = vadd.f32 1.4214138, %v6706_v56  ;;  %v17486_v31 = vld [vmem:[#allocation9_spill] sm:$0xff]  ;;  %v7728_v7 = vadd.f32 1.0, %v7664_v44  ;;  %v6707_v29 = vmul.f32 %v14812_v40, %v6643_v43 }
 0x4fa   : > { %17485 = vst [vmem:[#allocation33_spill] sm:$0xff] %v14925_v20  ;;  %v4007_v36 = vpop.f32.mrb[67].mxu1  ;;  %v5547_v55 = vpop.f32.mrb[67].mxu0  ;;  %v14937_v20 = vmul.f32 %v7727_v34, %v17486_v31  ;;  %v6897_v18 = vadd.f32 -0.28449672, %v6833_v16  ;;  %11599 = vpow2.f32 %v7305_v26  ;;  %v7163_v56 = vsub.f32 0.0, %v6267_v49 }
 0x4fb   : > { %v6330_v55 = vmul.f32 0.3275911, %v6266_v13  ;;  %v6834_v0 = vmul.f32 %v14759_v33, %v6770_v22  ;;  %v7307_v35 = vmul.f32 1.442695, %v7225_v4  ;;  %v7226_v36 = vmul.f32 %v7162_v24, %v6266_v13  ;;  %v14958_v16 = vpop.eup %11593 }
 0x4fc   : > { %17487 = vst [vmem:[#allocation9_spill] sm:$0xff] %v14937_v20  ;;  %7863 = vadd.xlane.f32.xlu1 %v14937_v20  ;;  %v14945_v11 = vmul.f32 %v7728_v7, %v17488_v1  ;;  %v6961_v54 = vmul.f32 %v14714_v30, %v6897_v18  ;;  %v14949_v34 = vmul.f32 0.70710677, %v14931_v38  ;;  %v6580_v13 = vmul.f32 1.0614054, %v14849_v19  ;;  %v14965_v18 = vpop.eup %11595 }
 0x4fd   : > { %v6898_v25 = vadd.f32 -0.28449672, %v6834_v0  ;;  %vm7537_vm10 = vcmp.ge.f32.partialorder %v17491_v15, 0.0  ;;  %v14962_v44 = vmul.f32 0.5, %v14853_v27  ;;  %v6394_v22 = vadd.f32 1.0, %v6330_v55 }
 0x4fe   : > { %17489 = vst [vmem:[#allocation7_spill] sm:$0xff] %v14945_v11  ;;  %17490 = vst [vmem:[#allocation34_spill] sm:$0xff] %v14949_v34  ;;  %7865 = vadd.xlane.f32.xlu0 %v14945_v11  ;;  %v7025_v24 = vadd.f32 0.2548296, %v6961_v54  ;;  %v6771_v31 = vadd.f32 1.4214138, %v6707_v29  ;;  %11601 = vrcp.f32 %v6393_v47  ;;  %v7227_v47 = vmul.f32 %v7163_v56, %v6267_v49 }
 0x4ff   : > { %v14952_v48 = vpop.f32.mrb[68].mxu1  ;;  %v14956_v4 = vpop.f32.mrb[68].mxu0  ;;  %17492 = vst [vmem:[#allocation5_spill] sm:$0xff] %v14962_v44  ;;  %v6962_v43 = vmul.f32 %v14759_v33, %v6898_v25  ;;  %v7309_v0 = vmul.f32 1.442695, %v7226_v36  ;;  %11603 = vpow2.f32 %v7307_v35  ;;  %v17493_v44 = vld [vmem:[#allocation14_spill] sm:$0xff] }
 0x500   : > { %v4012_v26 = vpop.f32.mrb[69].mxu1  ;;  %v5552_v7 = vpop.f32.mrb[69].mxu0  ;;  %v7089_v1 = vmul.f32 %v14714_v30, %v7025_v24  ;;  %v6644_v54 = vadd.f32 -1.4531521, %v6580_v13  ;;  %v6268_v27 = vand.u32 2147483647, %v14949_v34  ;;  %v6835_v25 = vmul.f32 %v14812_v40, %v6771_v31 }
 0x501   : > { %v14968_v11 = vpop.f32.mrb[70].mxu1  ;;  %v14970_v20 = vpop.f32.mrb[70].mxu0  ;;  %v7026_v55 = vadd.f32 0.2548296, %v6962_v43  ;;  %vm7538_vm11 = vcmp.ge.f32.partialorder %v17493_v44, 0.0  ;;  %v14979_v24 = vadd.f32 %v14779_v61, %v14777_v12  ;;  %11605 = vrcp.f32 %v6394_v22 }
 0x502   : > { %v4015_v29 = vpop.f32.mrb[71].mxu1  ;;  %v5555_v26 = vpop.f32.mrb[71].mxu0  ;;  %v7409_v36 = vmul.f32 %v14754_v52, %v7089_v1  ;;  %v6708_v30 = vmul.f32 %v14849_v19, %v6644_v54  ;;  %v6899_v31 = vadd.f32 -0.28449672, %v6835_v25  ;;  %v6331_v56 = vmul.f32 0.3275911, %v6267_v49 }
 0x503   : > { %v5848_v7 = vpop.permute.xlu0 %5847  ;;  %v5853_v35 = vpop.permute.xlu1 %5852  ;;  %v7090_v43 = vmul.f32 %v14759_v33, %v7026_v55  ;;  %v14987_v29 = vadd.f32 %v14805_v57, %v14794_v42  ;;  %v6332_v12 = vmul.f32 0.3275911, %v6268_v27  ;;  %v7311_v55 = vmul.f32 1.442695, %v7227_v47 }
 0x504   : > { %v14982_v13 = vmul.f32 %v14798_v53, %v5848_v7  ;;  %v14990_v52 = vmul.f32 %v14838_v14, %v5853_v35  ;;  %v7473_v1 = vsub.f32 1.0, %v7409_v36  ;;  %v6772_v54 = vadd.f32 1.4214138, %v6708_v30  ;;  %v14999_v7 = vpop.eup %11597  ;;  %v17496_v35 = vld [vmem:[#allocation6_spill] sm:$0xff] }
 0x505   : > { %v7410_v61 = vmul.f32 %v14784_v62, %v7090_v43  ;;  %v6963_v53 = vmul.f32 %v14812_v40, %v6899_v31  ;;  %v7164_v25 = vsub.f32 0.0, %v6268_v27  ;;  %11607 = vpow2.f32 %v7309_v0  ;;  %v15004_v30 = vpop.eup %11599 }
 0x506   : > { %v7601_v42 = vsub.f32 0.0, %v7473_v1  ;;  %v6836_v57 = vmul.f32 %v14849_v19, %v6772_v54  ;;  %v15002_v22 = vmul.f32 0.70710677, %v14982_v13  ;;  %vm7539_vm12 = vcmp.ge.f32.partialorder %v17496_v35, 0.0 }
 0x507   : > { %v14994_v26 = vpop.f32.mrb[72].mxu1  ;;  %v14996_v33 = vpop.f32.mrb[72].mxu0  ;;  %v7474_v62 = vsub.f32 1.0, %v7410_v61  ;;  %v7027_v36 = vadd.f32 0.2548296, %v6963_v53  ;;  %v6395_v43 = vadd.f32 1.0, %v6331_v56  ;;  %v7228_v15 = vmul.f32 %v7164_v25, %v6268_v27 }
 0x508   : > { %17494 = vst [vmem:[#allocation14_spill] sm:$0xff] %v14994_v26  ;;  %17495 = vst [vmem:[#allocation35_spill] sm:$0xff] %v14996_v33  ;;  %v4020_v49 = vpop.f32.mrb[73].mxu1  ;;  %v5560_v14 = vpop.f32.mrb[73].mxu0  ;;  %v15008_v47 = vmul.f32 0.70710677, %v14990_v52  ;;  %v7665_v31 = vsel %vm7537_vm10, %v7473_v1, %v7601_v42 }
 0x509   : > { %v6900_v54 = vadd.f32 -0.28449672, %v6836_v57  ;;  %v15012_v49 = vpop.f32.mrb[74].mxu1  ;;  %v7729_v0 = vadd.f32 1.0, %v7665_v31  ;;  %v7602_v14 = vsub.f32 0.0, %v7474_v62  ;;  %v7091_v33 = vmul.f32 %v14812_v40, %v7027_v36  ;;  %v15016_v53 = vpop.f32.mrb[74].mxu0 }
 0x50a   : > { %v6581_v61 = vmul.f32 1.0614054, %v14869_v51  ;;  %17497 = vst [vmem:[#allocation6_spill] sm:$0xff] %v15016_v53  ;;  %v4023_v26 = vpop.f32.mrb[75].mxu1  ;;  %v15018_v34 = vpop.eup %11601  ;;  %v15021_v56 = vmul.f32 0.5, %v14884_v37  ;;  %v6396_v3 = vadd.f32 1.0, %v6332_v12  ;;  %11609 = vrcp.f32 %v6395_v43 }
 0x50b   : > { %v6964_v1 = vmul.f32 %v14849_v19, %v6900_v54  ;;  %v5563_v42 = vpop.f32.mrb[75].mxu0  ;;  %v15024_v57 = vpop.eup %11603  ;;  %v6269_v31 = vand.u32 2147483647, %v15002_v22  ;;  %v17499_v40 = vld [vmem:[#allocation10_spill] sm:$0xff]  ;;  %v7666_v26 = vsel %vm7538_vm11, %v7474_v62, %v7602_v14  ;;  %v7411_v53 = vmul.f32 %v14816_v41, %v7091_v33  ;;  %v17501_v12 = vld [vmem:[#allocation13_spill] sm:$0xff]  ;;  %v17503_v41 = vld [vmem:[#allocation12_spill] sm:$0xff] }
 0x50c   : > { %17498 = vst [vmem:[#allocation36_spill] sm:$0xff] %v15021_v56  ;;  %v15028_v36 = vmul.f32 %v7729_v0, %v17499_v40  ;;  %v7730_v37 = vadd.f32 1.0, %v7666_v26  ;;  %v6582_v27 = vmul.f32 1.0614054, %v14904_v58  ;;  %vm7540_vm13 = vcmp.ge.f32.partialorder %v17501_v12, 0.0  ;;  %v15048_v14 = vpop.eup %11605 }
 0x50d   : > { %v7028_v56 = vadd.f32 0.2548296, %v6964_v1  ;;  %11611 = vpow2.f32 %v7311_v55  ;;  %v6270_v25 = vand.u32 2147483647, %v15008_v47  ;;  %v7475_v54 = vsub.f32 1.0, %v7411_v53 }
 0x50e   : > { %17500 = vst [vmem:[#allocation10_spill] sm:$0xff] %v15028_v36  ;;  %7867 = vadd.xlane.f32.xlu1 %v15028_v36  ;;  %v6645_v0 = vadd.f32 -1.4531521, %v6581_v61  ;;  %v15040_v44 = vmul.f32 0.5, %v14931_v38  ;;  %11613 = vrcp.f32 %v6396_v3  ;;  %v15043_v33 = vmul.f32 %v7730_v37, %v17503_v41 }
 0x50f   : > { %v15037_v42 = vpop.f32.mrb[76].mxu1  ;;  %v7092_v62 = vmul.f32 %v14849_v19, %v7028_v56  ;;  %v15046_v43 = vpop.f32.mrb[76].mxu0  ;;  %v7313_v1 = vmul.f32 1.442695, %v7228_v15  ;;  %v7165_v40 = vsub.f32 0.0, %v6269_v31  ;;  %v7603_v53 = vsub.f32 0.0, %v7475_v54 }
 0x510   : > { %17502 = vst [vmem:[#allocation13_spill] sm:$0xff] %v15037_v42  ;;  %17504 = vst [vmem:[#allocation12_spill] sm:$0xff] %v15043_v33  ;;  %v4028_v55 = vpop.f32.mrb[77].mxu1  ;;  %v6709_v61 = vmul.f32 %v14869_v51, %v6645_v0  ;;  %v5568_v26 = vpop.f32.mrb[77].mxu0  ;;  %v6333_v38 = vmul.f32 0.3275911, %v6269_v31  ;;  %7869 = vadd.xlane.f32.xlu0 %v15043_v33  ;;  %v15057_v19 = vadd.f32 %v14824_v39, %v14822_v45 }
 0x511   : > { %17505 = vst [vmem:[#allocation37_spill] sm:$0xff] %v15046_v43  ;;  %v15051_v36 = vpop.f32.mrb[78].mxu1  ;;  %v7412_v3 = vmul.f32 %v14860_v50, %v7092_v62  ;;  %v6646_v37 = vadd.f32 -1.4531521, %v6582_v27  ;;  %v15059_v56 = vpop.f32.mrb[78].mxu0  ;;  %v7166_v0 = vsub.f32 0.0, %v6270_v25  ;;  %v7667_v26 = vsel %vm7539_vm12, %v7475_v54, %v7603_v53 }
 0x512   : > { %17506 = vst [vmem:[#allocation38_spill] sm:$0xff] %v15051_v36  ;;  %17507 = vst [vmem:[#allocation39_spill] sm:$0xff] %v15059_v56  ;;  %v4031_v15 = vpop.f32.mrb[79].mxu1  ;;  %v15061_v41 = vpop.eup %11607  ;;  %v6773_v36 = vadd.f32 1.4214138, %v6709_v61  ;;  %v15067_v33 = vadd.f32 %v14840_v28, %v14832_v63  ;;  %v7731_v45 = vadd.f32 1.0, %v7667_v26  ;;  %v7229_v56 = vmul.f32 %v7165_v40, %v6269_v31 }
 0x513   : > { %v5858_v55 = vpop.permute.xlu0 %5857  ;;  %v5571_v50 = vpop.f32.mrb[79].mxu0  ;;  %v7476_v39 = vsub.f32 1.0, %v7412_v3  ;;  %v6710_v62 = vmul.f32 %v14904_v58, %v6646_v37  ;;  %v6334_v43 = vmul.f32 0.3275911, %v6270_v25  ;;  %v6583_v35 = vmul.f32 1.0614054, %v14958_v16 }
 0x514   : > { %v6079_v27 = vmul.f32 %v14902_v23, %v5858_v55  ;;  %v5863_v15 = vpop.permute.xlu1 %5862  ;;  %v6837_v42 = vmul.f32 %v14869_v51, %v6773_v36  ;;  %v17508_v53 = vld [vmem:[#allocation15_spill] sm:$0xff]  ;;  %v6397_v23 = vadd.f32 1.0, %v6333_v38  ;;  %v7230_v55 = vmul.f32 %v7166_v0, %v6270_v25  ;;  %v15085_v36 = vpop.eup %11609 }
 0x515   : > { %v15074_v54 = vmul.f32 %v14913_v6, %v5863_v15  ;;  %v15077_v63 = vmul.f32 %v7731_v45, %v17508_v53  ;;  %v7604_v28 = vsub.f32 0.0, %v7476_v39  ;;  %v6774_v61 = vadd.f32 1.4214138, %v6710_v62 }
 0x516   : > { %v6901_v3 = vadd.f32 -0.28449672, %v6837_v42  ;;  %v15081_v37 = vadd.f32 %v14858_v2, %v14856_v59  ;;  %v15087_v40 = vmul.f32 0.70710677, %v6079_v27  ;;  %v6647_v38 = vadd.f32 -1.4531521, %v6583_v35 }
 0x517   : > { %17509 = vst [vmem:[#allocation15_spill] sm:$0xff] %v15077_v63  ;;  %v15083_v31 = vpop.f32.mrb[80].mxu1  ;;  %7871 = vadd.xlane.f32.xlu1 %v15077_v63  ;;  %v7668_v6 = vsel %vm7540_vm13, %v7476_v39, %v7604_v28  ;;  %v6838_v26 = vmul.f32 %v14904_v58, %v6774_v61  ;;  %v15093_v25 = vpop.f32.mrb[80].mxu0  ;;  %v15098_v2 = vmul.f32 0.5, %v14982_v13  ;;  %v7315_v59 = vmul.f32 1.442695, %v7229_v56 }
 0x518   : > { %17510 = vst [vmem:[#allocation40_spill] sm:$0xff] %v15093_v25  ;;  %v4036_v42 = vpop.f32.mrb[81].mxu1  ;;  %v15095_v0 = vpop.eup %11611  ;;  %v7732_v50 = vadd.f32 1.0, %v7668_v6  ;;  %v6965_v45 = vmul.f32 %v14869_v51, %v6901_v3  ;;  %v6398_v39 = vadd.f32 1.0, %v6334_v43  ;;  %v15106_v35 = vmul.f32 0.70710677, %v15074_v54 }
 0x519   : > { %v5576_v62 = vpop.f32.mrb[81].mxu0  ;;  %v15101_v15 = vpop.f32.mrb[82].mxu1  ;;  %v6902_v53 = vadd.f32 -0.28449672, %v6838_v26  ;;  %v6711_v28 = vmul.f32 %v14958_v16, %v6647_v38  ;;  %11615 = vpow2.f32 %v7313_v1  ;;  %v7317_v13 = vmul.f32 1.442695, %v7230_v55 }
 0x51a   : > { %17511 = vst [vmem:[#allocation41_spill] sm:$0xff] %v15101_v15  ;;  %v15103_v12 = vpop.eup %11613  ;;  %v15109_v61 = vpop.f32.mrb[82].mxu0  ;;  %v15112_v56 = vmul.f32 %v7732_v50, %v14718_v9  ;;  %v7029_v3 = vadd.f32 0.2548296, %v6965_v45  ;;  %v17514_v42 = vld [vmem:[#allocation16_spill] sm:$0xff]  ;;  %11617 = vrcp.f32 %v6397_v23  ;;  %v15118_v38 = vmul.f32 0.5, %v14990_v52 }
 0x51b   : > { %17512 = vst [vmem:[#allocation42_spill] sm:$0xff] %v15109_v61  ;;  %v4039_v6 = vpop.f32.mrb[83].mxu1  ;;  %vm7541_vm14 = vcmp.ge.f32.partialorder %v17514_v42, 0.0  ;;  %v6271_v43 = vand.u32 2147483647, %v15087_v40  ;;  %v6966_v62 = vmul.f32 %v14904_v58, %v6902_v53  ;;  %v5579_v26 = vpop.f32.mrb[83].mxu0  ;;  %11619 = vpow2.f32 %v7315_v59 }
 0x51c   : > { %17513 = vst [vmem:[#allocation43_spill] sm:$0xff] %v15112_v56  ;;  %v6775_v63 = vadd.f32 1.4214138, %v6711_v28  ;;  %7873 = vadd.xlane.f32.xlu0 %v15112_v56  ;;  %v7093_v9 = vmul.f32 %v14869_v51, %v7029_v3  ;;  %v6584_v1 = vmul.f32 1.0614054, %v14999_v7  ;;  %v5873_v55 = vpop.permute.xlu1 %5872  ;;  %v5868_v50 = vpop.permute.xlu0 %5867  ;;  %11621 = vrcp.f32 %v6398_v39  ;;  %v17515_v28 = vld [vmem:[#allocation18_spill] sm:$0xff] }
 0x51d   : > { %v6272_v23 = vand.u32 2147483647, %v15106_v35  ;;  %v7030_v45 = vadd.f32 0.2548296, %v6966_v62  ;;  %vm7542_vm15 = vcmp.ge.f32.partialorder %v17515_v28, 0.0  ;;  %v15126_v59 = vmul.f32 0.5, %v6079_v27 }
 0x51e   : > { %v6839_v53 = vmul.f32 %v14958_v16, %v6775_v63  ;;  %v15129_v52 = vmul.f32 %v14979_v24, %v5868_v50  ;;  %v7413_v6 = vmul.f32 %v14886_v21, %v7093_v9  ;;  %v6648_v51 = vadd.f32 -1.4531521, %v6584_v1 }
 0x51f   : > { %17516 = vst [vmem:[#allocation16_spill] sm:$0xff] %v15126_v59  ;;  %v15132_v3 = vpop.f32.mrb[84].mxu1  ;;  %v15134_v26 = vpop.f32.mrb[84].mxu0  ;;  %11623 = vpow2.f32 %v7317_v13  ;;  %v6335_v39 = vmul.f32 0.3275911, %v6271_v43  ;;  %v7094_v62 = vmul.f32 %v14904_v58, %v7030_v45  ;;  %v7167_v15 = vsub.f32 0.0, %v6271_v43 }
 0x520   : > { %17517 = vst [vmem:[#allocation18_spill] sm:$0xff] %v15132_v3  ;;  %17518 = vst [vmem:[#allocation44_spill] sm:$0xff] %v15134_v26  ;;  %v6903_v56 = vadd.f32 -0.28449672, %v6839_v53  ;;  %v4044_v63 = vpop.f32.mrb[85].mxu1  ;;  %v5584_v61 = vpop.f32.mrb[85].mxu0  ;;  %v15138_v27 = vmul.f32 %v14987_v29, %v5873_v55  ;;  %v6712_v50 = vmul.f32 %v14999_v7, %v6648_v51  ;;  %v15149_v58 = vadd.f32 %v14874_v46, %v14872_v10 }
 0x521   : > { %v7477_v24 = vsub.f32 1.0, %v7413_v6  ;;  %v15141_v21 = vpop.f32.mrb[86].mxu1  ;;  %v15143_v9 = vpop.f32.mrb[86].mxu0  ;;  %v6336_v1 = vmul.f32 0.3275911, %v6272_v23  ;;  %v7414_v13 = vmul.f32 %v14915_v8, %v7094_v62  ;;  %v15152_v29 = vmul.f32 0.5, %v15074_v54 }
 0x522   : > { %17519 = vst [vmem:[#allocation45_spill] sm:$0xff] %v15141_v21  ;;  %17520 = vst [vmem:[#allocation46_spill] sm:$0xff] %v15143_v9  ;;  %v6967_v26 = vmul.f32 %v14958_v16, %v6903_v56  ;;  %v4047_v61 = vpop.f32.mrb[87].mxu1  ;;  %v5587_v45 = vpop.f32.mrb[87].mxu0  ;;  %v15155_v55 = vmul.f32 0.70710677, %v15129_v52  ;;  %v7231_v10 = vmul.f32 %v7167_v15, %v6271_v43  ;;  %v15175_v42 = vadd.f32 %v14919_v5, %v14917_v32 }
 0x523   : > { %17521 = vst [vmem:[#allocation47_spill] sm:$0xff] %v15152_v29  ;;  %v7605_v53 = vsub.f32 0.0, %v7477_v24  ;;  %v6776_v6 = vadd.f32 1.4214138, %v6712_v50  ;;  %v6399_v51 = vadd.f32 1.0, %v6335_v39  ;;  %v7168_v63 = vsub.f32 0.0, %v6272_v23  ;;  %v15157_v62 = vpop.eup %11615  ;;  %v5878_v3 = vpop.permute.xlu0 %5877 }
 0x524   : > { %17522 = vst [vmem:[#allocation48_spill] sm:$0xff] %v15155_v55  ;;  %v7478_v9 = vsub.f32 1.0, %v7414_v13  ;;  %v7031_v8 = vadd.f32 0.2548296, %v6967_v26  ;;  %v17523_v56 = vld [vmem:[#allocation22_spill] sm:$0xff]  ;;  %v15166_v45 = vpop.eup %11617  ;;  %v6400_v15 = vadd.f32 1.0, %v6336_v1 }
 0x525   : > { %vm7543_vm0 = vcmp.ge.f32.partialorder %v17523_v56, 0.0  ;;  %v15161_v46 = vmul.f32 0.70710677, %v15138_v27  ;;  %v7669_v54 = vsel %vm7541_vm14, %v7477_v24, %v7605_v53  ;;  %v6840_v61 = vmul.f32 %v14999_v7, %v6776_v6  ;;  %v15170_v21 = vpop.eup %11619 }
 0x526   : > { %v7733_v50 = vadd.f32 1.0, %v7669_v54  ;;  %v7606_v39 = vsub.f32 0.0, %v7478_v9  ;;  %v7095_v13 = vmul.f32 %v14958_v16, %v7031_v8  ;;  %v6585_v26 = vmul.f32 1.0614054, %v15018_v34  ;;  %v15179_v53 = vpop.eup %11621  ;;  %v17525_v54 = vld [vmem:[#allocation19_spill] sm:$0xff] }
 0x527   : > { %v6273_v43 = vand.u32 2147483647, %v15155_v55  ;;  %v6904_v29 = vadd.f32 -0.28449672, %v6840_v61  ;;  %v15177_v24 = vpop.f32.mrb[88].mxu1  ;;  %v7232_v6 = vmul.f32 %v7168_v63, %v6272_v23  ;;  %v15187_v59 = vpop.f32.mrb[88].mxu0  ;;  %11625 = vrcp.f32 %v6399_v51 }
 0x528   : > { %17524 = vst [vmem:[#allocation22_spill] sm:$0xff] %v15177_v24  ;;  %v15182_v16 = vmul.f32 %v7733_v50, %v17525_v54  ;;  %v7670_v8 = vsel %vm7542_vm15, %v7478_v9, %v7606_v39  ;;  %v7415_v1 = vmul.f32 %v14965_v18, %v7095_v13  ;;  %v4052_v61 = vpop.f32.mrb[89].mxu1  ;;  %v7319_v55 = vmul.f32 1.442695, %v7231_v10  ;;  %v5592_v24 = vpop.f32.mrb[89].mxu0  ;;  %v17528_v10 = vld [vmem:[#allocation25_spill] sm:$0xff] }
 0x529   : > { %v7734_v32 = vadd.f32 1.0, %v7670_v8  ;;  %v6968_v5 = vmul.f32 %v14999_v7, %v6904_v29  ;;  %v15190_v25 = vpop.f32.mrb[90].mxu1  ;;  %v15192_v23 = vpop.eup %11623  ;;  %v6274_v50 = vand.u32 2147483647, %v15161_v46  ;;  %v15197_v18 = vmul.f32 %v15057_v19, %v5878_v3  ;;  %v17531_v54 = vld [vmem:[#allocation24_spill] sm:$0xff] }
 0x52a   : > { %17526 = vst [vmem:[#allocation19_spill] sm:$0xff] %v15182_v16  ;;  %17527 = vst [vmem:[#allocation49_spill] sm:$0xff] %v15190_v25  ;;  %v5883_v63 = vpop.permute.xlu1 %5882  ;;  %7875 = vadd.xlane.f32.xlu1 %v15182_v16  ;;  %v7479_v28 = vsub.f32 1.0, %v7415_v1  ;;  %v6649_v9 = vadd.f32 -1.4531521, %v6585_v26  ;;  %11627 = vrcp.f32 %v6400_v15  ;;  %v15202_v13 = vpop.f32.mrb[90].mxu0 }
 0x52b   : > { %v6337_v51 = vmul.f32 0.3275911, %v6273_v43  ;;  %v15200_v39 = vmul.f32 %v7734_v32, %v17528_v10  ;;  %v7032_v29 = vadd.f32 0.2548296, %v6968_v5  ;;  %17530 = vst [vmem:[#allocation50_spill] sm:$0xff] %v15202_v13  ;;  %v4055_v24 = vpop.f32.mrb[91].mxu1  ;;  %v15206_v61 = vmul.f32 %v15067_v33, %v5883_v63 }
 0x52c   : > { %vm7544_vm1 = vcmp.ge.f32.partialorder %v17531_v54, 0.0  ;;  %v7169_v8 = vsub.f32 0.0, %v6273_v43  ;;  %v7607_v16 = vsub.f32 0.0, %v7479_v28  ;;  %v6713_v19 = vmul.f32 %v15018_v34, %v6649_v9  ;;  %v5595_v3 = vpop.f32.mrb[91].mxu0 }
 0x52d   : > { %17529 = vst [vmem:[#allocation25_spill] sm:$0xff] %v15200_v39  ;;  %11629 = vpow2.f32 %v7319_v55  ;;  %v7321_v26 = vmul.f32 1.442695, %v7232_v6  ;;  %7877 = vadd.xlane.f32.xlu0 %v15200_v39  ;;  %v7096_v15 = vmul.f32 %v14999_v7, %v7032_v29  ;;  %v6586_v1 = vmul.f32 1.0614054, %v15048_v14 }
 0x52e   : > { %v6338_v32 = vmul.f32 0.3275911, %v6274_v50  ;;  %v15213_v5 = vmul.f32 0.70710677, %v15197_v18  ;;  %v7671_v33 = vsel %vm7543_vm0, %v7479_v28, %v7607_v16  ;;  %v6777_v63 = vadd.f32 1.4214138, %v6713_v19 }
 0x52f   : > { %v7170_v10 = vsub.f32 0.0, %v6274_v50  ;;  %v7735_v24 = vadd.f32 1.0, %v7671_v33  ;;  %v7416_v9 = vmul.f32 %v15004_v30, %v7096_v15  ;;  %v6650_v55 = vadd.f32 -1.4531521, %v6586_v1  ;;  %v15218_v6 = vpop.f32.mrb[92].mxu1  ;;  %v15220_v3 = vpop.f32.mrb[92].mxu0 }
 0x530   : > { %17532 = vst [vmem:[#allocation24_spill] sm:$0xff] %v15218_v6  ;;  %17533 = vst [vmem:[#allocation51_spill] sm:$0xff] %v15220_v3  ;;  %v6401_v7 = vadd.f32 1.0, %v6337_v51  ;;  %v7233_v29 = vmul.f32 %v7169_v8, %v6273_v43  ;;  %v15223_v39 = vmul.f32 0.70710677, %v15206_v61  ;;  %v6841_v13 = vmul.f32 %v15018_v34, %v6777_v63  ;;  %v4060_v25 = vpop.f32.mrb[93].mxu1 }
 0x531   : > { %v5600_v56 = vpop.f32.mrb[93].mxu0  ;;  %v17535_v16 = vld [vmem:[#allocation26_spill] sm:$0xff]  ;;  %v7480_v19 = vsub.f32 1.0, %v7416_v9  ;;  %v6714_v30 = vmul.f32 %v15048_v14, %v6650_v55  ;;  %v17537_v15 = vld [vmem:[#allocation33_spill] sm:$0xff]  ;;  %v15234_v33 = vpop.f32.mrb[94].mxu1  ;;  %11631 = vpow2.f32 %v7321_v26  ;;  %v15239_v51 = vmul.f32 0.5, %v15129_v52 }
 0x532   : > { %17534 = vst [vmem:[#allocation52_spill] sm:$0xff] %v15223_v39  ;;  %v15227_v28 = vmul.f32 %v7735_v24, %v17535_v16  ;;  %v15232_v1 = vadd.f32 %v14927_v60, %v17537_v15  ;;  %17538 = vst [vmem:[#allocation33_spill] sm:$0xff] %v15234_v33  ;;  %v15236_v43 = vpop.f32.mrb[94].mxu0  ;;  %v15242_v25 = vmul.f32 0.5, %v15138_v27  ;;  %v6905_v8 = vadd.f32 -0.28449672, %v6841_v13  ;;  %v15244_v24 = vpop.eup %11625 }
 0x533   : > { %17539 = vst [vmem:[#allocation53_spill] sm:$0xff] %v15236_v43  ;;  %v4063_v63 = vpop.f32.mrb[95].mxu1  ;;  %v7234_v9 = vmul.f32 %v7170_v10, %v6274_v50  ;;  %v6275_v55 = vand.u32 2147483647, %v15213_v5  ;;  %v7608_v60 = vsub.f32 0.0, %v7480_v19  ;;  %v5603_v16 = vpop.f32.mrb[95].mxu0  ;;  %11633 = vrcp.f32 %v6401_v7 }
 0x534   : > { %17536 = vst [vmem:[#allocation26_spill] sm:$0xff] %v15227_v28  ;;  %7879 = vadd.xlane.f32.xlu1 %v15227_v28  ;;  %v6778_v56 = vadd.f32 1.4214138, %v6714_v30  ;;  %v7323_v26 = vmul.f32 1.442695, %v7233_v29  ;;  %v6402_v15 = vadd.f32 1.0, %v6338_v32  ;;  %v6969_v52 = vmul.f32 %v15018_v34, %v6905_v8  ;;  %v15249_v43 = vpop.eup %11627  ;;  %v5888_v27 = vpop.permute.xlu0 %5887 }
 0x535   : > { %v6276_v13 = vand.u32 2147483647, %v15223_v39  ;;  %v7672_v50 = vsel %vm7544_vm1, %v7480_v19, %v7608_v60  ;;  %v6587_v63 = vmul.f32 1.0614054, %v15085_v36  ;;  %v15257_v30 = vmul.f32 %v15081_v37, %v5888_v27  ;;  %v17540_v8 = vld [vmem:[#allocation27_spill] sm:$0xff]  ;;  %v17541_v60 = vld [vmem:[#allocation28_spill] sm:$0xff] }
 0x536   : > { %v6842_v10 = vmul.f32 %v15048_v14, %v6778_v56  ;;  %v7736_v28 = vadd.f32 1.0, %v7672_v50  ;;  %v7033_v7 = vadd.f32 0.2548296, %v6969_v52  ;;  %v6588_v32 = vmul.f32 1.0614054, %v15103_v12 }
 0x537   : > { %v15260_v29 = vpop.eup %11629  ;;  %vm7545_vm2 = vcmp.ge.f32.partialorder %v17540_v8, 0.0  ;;  %v7325_v16 = vmul.f32 1.442695, %v7234_v9  ;;  %v6339_v33 = vmul.f32 0.3275911, %v6275_v55  ;;  %v15265_v54 = vadd.f32 %v14956_v4, %v14952_v48  ;;  %v15271_v52 = vpop.f32.mrb[96].mxu1 }
 0x538   : > { %v6906_v3 = vadd.f32 -0.28449672, %v6842_v10  ;;  %11635 = vrcp.f32 %v6402_v15  ;;  %v7171_v19 = vsub.f32 0.0, %v6275_v55  ;;  %v15268_v56 = vmul.f32 %v7736_v28, %v17541_v60  ;;  %17543 = vst [vmem:[#allocation28_spill] sm:$0xff] %v15271_v52  ;;  %v15273_v27 = vpop.f32.mrb[96].mxu0  ;;  %v4068_v39 = vpop.f32.mrb[97].mxu1 }
 0x539   : > { %v7097_v37 = vmul.f32 %v15018_v34, %v7033_v7  ;;  %17544 = vst [vmem:[#allocation54_spill] sm:$0xff] %v15273_v27  ;;  %v6340_v50 = vmul.f32 0.3275911, %v6276_v13  ;;  %v7172_v6 = vsub.f32 0.0, %v6276_v13  ;;  %v6651_v10 = vadd.f32 -1.4531521, %v6587_v63 }
 0x53a   : > { %17542 = vst [vmem:[#allocation27_spill] sm:$0xff] %v15268_v56  ;;  %v6970_v9 = vmul.f32 %v15048_v14, %v6906_v3  ;;  %11637 = vpow2.f32 %v7323_v26  ;;  %7881 = vadd.xlane.f32.xlu0 %v15268_v56  ;;  %v15278_v48 = vmul.f32 0.70710677, %v15257_v30  ;;  %v6652_v28 = vadd.f32 -1.4531521, %v6588_v32  ;;  %v5608_v34 = vpop.f32.mrb[97].mxu0 }
 0x53b   : > { %v7417_v4 = vmul.f32 %v15024_v57, %v7097_v37  ;;  %v15281_v15 = vpop.f32.mrb[98].mxu1  ;;  %11639 = vpow2.f32 %v7325_v16  ;;  %v6403_v7 = vadd.f32 1.0, %v6339_v33  ;;  %v6715_v27 = vmul.f32 %v15085_v36, %v6651_v10  ;;  %v15284_v3 = vpop.f32.mrb[98].mxu0  ;;  %v17547_v63 = vld [vmem:[#allocation29_spill] sm:$0xff] }
 0x53c   : > { %17545 = vst [vmem:[#allocation55_spill] sm:$0xff] %v15281_v15  ;;  %v7034_v60 = vadd.f32 0.2548296, %v6970_v9  ;;  %17546 = vst [vmem:[#allocation56_spill] sm:$0xff] %v15284_v3  ;;  %v4071_v39 = vpop.f32.mrb[99].mxu1  ;;  %v15286_v26 = vpop.eup %11631  ;;  %vm7546_vm3 = vcmp.ge.f32.partialorder %v17547_v63, 0.0  ;;  %v7235_v57 = vmul.f32 %v7171_v19, %v6275_v55  ;;  %v6716_v37 = vmul.f32 %v15103_v12, %v6652_v28 }
 0x53d   : > { %v15290_v56 = vmul.f32 0.5, %v15197_v18  ;;  %v7481_v32 = vsub.f32 1.0, %v7417_v4  ;;  %v5611_v34 = vpop.f32.mrb[99].mxu0  ;;  %v15294_v33 = vmul.f32 0.5, %v15206_v61  ;;  %v6404_v16 = vadd.f32 1.0, %v6340_v50  ;;  %v15297_v39 = vpop.eup %11633 }
 0x53e   : > { %v7098_v9 = vmul.f32 %v15048_v14, %v7034_v60  ;;  %v6779_v10 = vadd.f32 1.4214138, %v6715_v27  ;;  %v7236_v3 = vmul.f32 %v7172_v6, %v6276_v13  ;;  %v6277_v15 = vand.u32 2147483647, %v15278_v48  ;;  %v5898_v27 = vpop.permute.xlu0 %5897 }
 0x53f   : > { %17548 = vst [vmem:[#allocation29_spill] sm:$0xff] %v15290_v56  ;;  %v7609_v52 = vsub.f32 0.0, %v7481_v32  ;;  %v6780_v18 = vadd.f32 1.4214138, %v6716_v37  ;;  %v5893_v56 = vpop.permute.xlu1 %5892  ;;  %11641 = vrcp.f32 %v6403_v7  ;;  %v15304_v61 = vadd.f32 %v14970_v20, %v14968_v11 }
 0x540   : > { %v7418_v55 = vmul.f32 %v15061_v41, %v7098_v9  ;;  %v6843_v19 = vmul.f32 %v15085_v36, %v6779_v10  ;;  %v7327_v50 = vmul.f32 1.442695, %v7235_v57  ;;  %v15307_v14 = vmul.f32 %v15149_v58, %v5893_v56 }
 0x541   : > { %v7673_v6 = vsel %vm7545_vm2, %v7481_v32, %v7609_v52  ;;  %v6844_v13 = vmul.f32 %v15103_v12, %v6780_v18  ;;  %11643 = vrcp.f32 %v6404_v16  ;;  %v7173_v60 = vsub.f32 0.0, %v6277_v15  ;;  %v17550_v18 = vld [vmem:[#allocation32_spill] sm:$0xff] }
 0x542   : > { %v7737_v4 = vadd.f32 1.0, %v7673_v6  ;;  %v7482_v28 = vsub.f32 1.0, %v7418_v55  ;;  %v6907_v41 = vadd.f32 -0.28449672, %v6843_v19  ;;  %v15312_v7 = vpop.eup %11635  ;;  %v15315_v20 = vmul.f32 %v15175_v42, %v5898_v27 }
 0x543   : > { %v6908_v11 = vadd.f32 -0.28449672, %v6844_v13  ;;  %v6589_v58 = vmul.f32 1.0614054, %v15166_v45  ;;  %v7329_v56 = vmul.f32 1.442695, %v7236_v3  ;;  %11645 = vpow2.f32 %v7327_v50 }
 0x544   : > { %v15319_v8 = vmul.f32 %v7737_v4, %v14940_v17  ;;  %v7610_v52 = vsub.f32 0.0, %v7482_v28  ;;  %v6971_v57 = vmul.f32 %v15085_v36, %v6907_v41  ;;  %v15322_v32 = vpop.eup %11637  ;;  %v6341_v37 = vmul.f32 0.3275911, %v6277_v15  ;;  %v17552_v13 = vld [vmem:[#allocation34_spill] sm:$0xff] }
 0x545   : > { %v15325_v34 = vmul.f32 0.70710677, %v15307_v14  ;;  %v6972_v42 = vmul.f32 %v15103_v12, %v6908_v11  ;;  %v15328_v16 = vpop.eup %11639  ;;  %v6653_v9 = vadd.f32 -1.4531521, %v6589_v58  ;;  %v6590_v10 = vmul.f32 1.0614054, %v15179_v53 }
 0x546   : > { %17549 = vst [vmem:[#allocation57_spill] sm:$0xff] %v15319_v8  ;;  %7883 = vadd.xlane.f32.xlu1 %v15319_v8  ;;  %v7674_v17 = vsel %vm7546_vm3, %v7482_v28, %v7610_v52  ;;  %v7035_v3 = vadd.f32 0.2548296, %v6971_v57  ;;  %vm7547_vm4 = vcmp.ge.f32.partialorder %v17550_v18, 0.0  ;;  %v7237_v55 = vmul.f32 %v7173_v60, %v6277_v15  ;;  %v17553_v11 = vld [vmem:[#allocation5_spill] sm:$0xff]  ;;  %v15346_v60 = vpop.f32.mrb[100].mxu1 }
 0x547   : > { %v7738_v19 = vadd.f32 1.0, %v7674_v17  ;;  %v15336_v50 = vmul.f32 0.70710677, %v15315_v20  ;;  %v7036_v6 = vadd.f32 0.2548296, %v6972_v42  ;;  %vm7548_vm5 = vcmp.ge.f32.partialorder %v17552_v13, 0.0 }
 0x548   : > { %11647 = vpow2.f32 %v7329_v56  ;;  %v7099_v27 = vmul.f32 %v15085_v36, %v7035_v3  ;;  %v6717_v63 = vmul.f32 %v15166_v45, %v6653_v9  ;;  %v6654_v4 = vadd.f32 -1.4531521, %v6590_v10  ;;  %17555 = vst [vmem:[#allocation5_spill] sm:$0xff] %v15346_v60  ;;  %v15348_v52 = vpop.f32.mrb[100].mxu0  ;;  %v17557_v17 = vld [vmem:[#allocation14_spill] sm:$0xff]  ;;  %v4076_v9 = vpop.f32.mrb[101].mxu1 }
 0x549   : > { %17551 = vst [vmem:[#allocation32_spill] sm:$0xff] %v15336_v50  ;;  %v6405_v28 = vadd.f32 1.0, %v6341_v37  ;;  %v6278_v41 = vand.u32 2147483647, %v15325_v34  ;;  %v15343_v58 = vmul.f32 %v7738_v19, %v17553_v11  ;;  %v7100_v15 = vmul.f32 %v15103_v12, %v7036_v6  ;;  %17556 = vst [vmem:[#allocation58_spill] sm:$0xff] %v15348_v52  ;;  %v15350_v57 = vpop.eup %11641  ;;  %v17558_v37 = vld [vmem:[#allocation35_spill] sm:$0xff]  ;;  %v5903_v10 = vpop.permute.xlu1 %5902 }
 0x54a   : > { %v7419_v56 = vmul.f32 %v15095_v0, %v7099_v27  ;;  %v6781_v36 = vadd.f32 1.4214138, %v6717_v63  ;;  %v6718_v42 = vmul.f32 %v15179_v53, %v6654_v4  ;;  %v15356_v3 = vadd.f32 %v17558_v37, %v17557_v17  ;;  %v17559_v11 = vld [vmem:[#allocation6_spill] sm:$0xff]  ;;  %v5616_v0 = vpop.f32.mrb[101].mxu0 }
 0x54b   : > { %17554 = vst [vmem:[#allocation34_spill] sm:$0xff] %v15343_v58  ;;  %v7331_v19 = vmul.f32 1.442695, %v7237_v55  ;;  %7885 = vadd.xlane.f32.xlu0 %v15343_v58  ;;  %v6279_v12 = vand.u32 2147483647, %v15336_v50  ;;  %v7420_v6 = vmul.f32 %v15157_v62, %v7100_v15  ;;  %v15363_v8 = vadd.f32 %v17559_v11, %v15012_v49  ;;  %v15365_v27 = vpop.eup %11643  ;;  %v15372_v62 = vpop.f32.mrb[102].mxu1 }
 0x54c   : > { %v6088_v63 = vmul.f32 %v15232_v1, %v5903_v10  ;;  %v7483_v4 = vsub.f32 1.0, %v7419_v56  ;;  %v6845_v17 = vmul.f32 %v15166_v45, %v6781_v36  ;;  %v6782_v37 = vadd.f32 1.4214138, %v6718_v42  ;;  %17561 = vst [vmem:[#allocation35_spill] sm:$0xff] %v15372_v62  ;;  %v15374_v15 = vpop.f32.mrb[102].mxu0  ;;  %v4079_v1 = vpop.f32.mrb[103].mxu1 }
 0x54d   : > { %v15370_v55 = vmul.f32 0.5, %v15257_v30  ;;  %11649 = vrcp.f32 %v6405_v28  ;;  %v6342_v9 = vmul.f32 0.3275911, %v6278_v41  ;;  %v7484_v58 = vsub.f32 1.0, %v7420_v6  ;;  %17562 = vst [vmem:[#allocation6_spill] sm:$0xff] %v15374_v15  ;;  %v5619_v56 = vpop.f32.mrb[103].mxu0  ;;  %v15377_v10 = vpop.eup %11645 }
 0x54e   : > { %v7174_v49 = vsub.f32 0.0, %v6278_v41  ;;  %v7611_v11 = vsub.f32 0.0, %v7483_v4  ;;  %v6909_v0 = vadd.f32 -0.28449672, %v6845_v17  ;;  %v6846_v52 = vmul.f32 %v15179_v53, %v6782_v37  ;;  %v5908_v42 = vpop.permute.xlu0 %5907 }
 0x54f   : > { %17560 = vst [vmem:[#allocation14_spill] sm:$0xff] %v15370_v55  ;;  %11651 = vpow2.f32 %v7331_v19  ;;  %v15380_v30 = vmul.f32 0.5, %v15307_v14  ;;  %v7175_v28 = vsub.f32 0.0, %v6279_v12  ;;  %v7612_v36 = vsub.f32 0.0, %v7484_v58 }
 0x550   : > { %v15382_v6 = vmul.f32 0.70710677, %v6088_v63  ;;  %v7675_v15 = vsel %vm7547_vm4, %v7483_v4, %v7611_v11  ;;  %v6973_v17 = vmul.f32 %v15166_v45, %v6909_v0  ;;  %v6910_v62 = vadd.f32 -0.28449672, %v6846_v52 }
 0x551   : > { %17563 = vst [vmem:[#allocation59_spill] sm:$0xff] %v15380_v30  ;;  %v6406_v37 = vadd.f32 1.0, %v6342_v9  ;;  %v7739_v1 = vadd.f32 1.0, %v7675_v15  ;;  %v7676_v56 = vsel %vm7548_vm5, %v7484_v58, %v7612_v36  ;;  %v15390_v19 = vmul.f32 %v15265_v54, %v5908_v42  ;;  %v17564_v9 = vld [vmem:[#allocation36_spill] sm:$0xff]  ;;  %v5913_v58 = vpop.permute.xlu1 %5912 }
 0x552   : > { %v15392_v14 = vpop.eup %11647  ;;  %v7238_v60 = vmul.f32 %v7174_v49, %v6278_v41  ;;  %v7740_v50 = vadd.f32 1.0, %v7676_v56  ;;  %v7037_v30 = vadd.f32 0.2548296, %v6973_v17  ;;  %v6974_v55 = vmul.f32 %v15179_v53, %v6910_v62  ;;  %v17568_v56 = vld [vmem:[#allocation13_spill] sm:$0xff] }
 0x553   : > { %vm7549_vm6 = vcmp.ge.f32.partialorder %v15002_v22, 0.0  ;;  %v15397_v18 = vmul.f32 0.5, %v15315_v20  ;;  %v6343_v52 = vmul.f32 0.3275911, %v6279_v12  ;;  %v7239_v4 = vmul.f32 %v7175_v28, %v6279_v12 }
 0x554   : > { %v15400_v13 = vmul.f32 %v7739_v1, %v17564_v9  ;;  %v6280_v54 = vand.u32 2147483647, %v15382_v6  ;;  %v15404_v15 = vmul.f32 %v7740_v50, %v15040_v44  ;;  %v7101_v41 = vmul.f32 %v15166_v45, %v7037_v30  ;;  %v15438_v9 = vpop.f32.mrb[104].mxu0 }
 0x555   : > { %v7038_v49 = vadd.f32 0.2548296, %v6974_v55  ;;  %vm7550_vm7 = vcmp.ge.f32.partialorder %v15008_v47, 0.0  ;;  %11653 = vrcp.f32 %v6406_v37  ;;  %v15410_v20 = vmul.f32 0.70710677, %v15390_v19 }
 0x556   : > { %17565 = vst [vmem:[#allocation36_spill] sm:$0xff] %v15400_v13  ;;  %17566 = vst [vmem:[#allocation60_spill] sm:$0xff] %v15404_v15  ;;  %7887 = vadd.xlane.f32.xlu1 %v15400_v13  ;;  %v15413_v12 = vmul.f32 %v15304_v61, %v5913_v58  ;;  %v6591_v62 = vmul.f32 1.0614054, %v15244_v24  ;;  %v7333_v11 = vmul.f32 1.442695, %v7238_v60  ;;  %7889 = vadd.xlane.f32.xlu0 %v15404_v15 }
 0x557   : > { %v7421_v44 = vmul.f32 %v15170_v21, %v7101_v41  ;;  %v7102_v45 = vmul.f32 %v15179_v53, %v7038_v49  ;;  %v6592_v50 = vmul.f32 1.0614054, %v15249_v43  ;;  %v15420_v55 = vpop.eup %11649  ;;  %v6407_v0 = vadd.f32 1.0, %v6343_v52  ;;  %v17569_v52 = vld [vmem:[#allocation37_spill] sm:$0xff]  ;;  %v17572_v49 = vld [vmem:[#allocation38_spill] sm:$0xff] }
 0x558   : > { %v7335_v30 = vmul.f32 1.442695, %v7239_v4  ;;  %v15422_v28 = vmul.f32 0.5, %v6088_v63  ;;  %v6655_v36 = vadd.f32 -1.4531521, %v6591_v62  ;;  %v7176_v61 = vsub.f32 0.0, %v6280_v54 }
 0x559   : > { %v7485_v42 = vsub.f32 1.0, %v7421_v44  ;;  %v7422_v17 = vmul.f32 %v15192_v23, %v7102_v45  ;;  %v6656_v60 = vadd.f32 -1.4531521, %v6592_v50  ;;  %v15425_v37 = vpop.eup %11651  ;;  %v6281_v21 = vand.u32 2147483647, %v15410_v20  ;;  %v15436_v63 = vpop.f32.mrb[104].mxu1 }
 0x55a   : > { %17567 = vst [vmem:[#allocation61_spill] sm:$0xff] %v15422_v28  ;;  %v15429_v53 = vmul.f32 0.70710677, %v15413_v12  ;;  %v6719_v1 = vmul.f32 %v15244_v24, %v6655_v36  ;;  %v15434_v4 = vadd.f32 %v17569_v52, %v17568_v56  ;;  %17570 = vst [vmem:[#allocation13_spill] sm:$0xff] %v15436_v63  ;;  %v17573_v62 = vld [vmem:[#allocation39_spill] sm:$0xff]  ;;  %v4084_v45 = vpop.f32.mrb[105].mxu1  ;;  %11655 = vpow2.f32 %v7333_v11 }
 0x55b   : > { %17571 = vst [vmem:[#allocation37_spill] sm:$0xff] %v15438_v9  ;;  %v7613_v58 = vsub.f32 0.0, %v7485_v42  ;;  %v7486_v23 = vsub.f32 1.0, %v7422_v17  ;;  %v6720_v41 = vmul.f32 %v15249_v43, %v6656_v60  ;;  %v15443_v44 = vadd.f32 %v17573_v62, %v17572_v49  ;;  %v5624_v50 = vpop.f32.mrb[105].mxu0  ;;  %v15445_v13 = vpop.f32.mrb[106].mxu1 }
 0x55c   : > { %v6344_v36 = vmul.f32 0.3275911, %v6280_v54  ;;  %v6783_v15 = vadd.f32 1.4214138, %v6719_v1  ;;  %17574 = vst [vmem:[#allocation38_spill] sm:$0xff] %v15445_v13  ;;  %v15447_v56 = vpop.f32.mrb[106].mxu0  ;;  %11657 = vrcp.f32 %v6407_v0  ;;  %v7240_v28 = vmul.f32 %v7176_v61, %v6280_v54 }
 0x55d   : > { %17575 = vst [vmem:[#allocation39_spill] sm:$0xff] %v15447_v56  ;;  %v7677_v52 = vsel %vm7549_vm6, %v7485_v42, %v7613_v58  ;;  %v7614_v17 = vsub.f32 0.0, %v7486_v23  ;;  %v6784_v9 = vadd.f32 1.4214138, %v6720_v41  ;;  %v4087_v60 = vpop.f32.mrb[107].mxu1  ;;  %v5627_v63 = vpop.f32.mrb[107].mxu0  ;;  %11659 = vpow2.f32 %v7335_v30 }
 0x55e   : > { %v7177_v49 = vsub.f32 0.0, %v6281_v21  ;;  %v7741_v62 = vadd.f32 1.0, %v7677_v52  ;;  %v6847_v45 = vmul.f32 %v15244_v24, %v6783_v15  ;;  %v6282_v11 = vand.u32 2147483647, %v15429_v53  ;;  %v5918_v42 = vpop.permute.xlu0 %5917 }
 0x55f   : > { %v7678_v1 = vsel %vm7550_vm7, %v7486_v23, %v7614_v17  ;;  %v6848_v50 = vmul.f32 %v15249_v43, %v6784_v9  ;;  %v6593_v0 = vmul.f32 1.0614054, %v15297_v39  ;;  %v15457_v22 = vpop.eup %11653  ;;  %v6408_v58 = vadd.f32 1.0, %v6344_v36  ;;  %v5923_v17 = vpop.permute.xlu1 %5922 }
 0x560   : > { %v15460_v63 = vmul.f32 %v7741_v62, %v15098_v2  ;;  %v7742_v54 = vadd.f32 1.0, %v7678_v1  ;;  %v6911_v61 = vadd.f32 -0.28449672, %v6847_v45  ;;  %v6345_v15 = vmul.f32 0.3275911, %v6281_v21 }
 0x561   : > { %v15463_v41 = vmul.f32 %v15356_v3, %v5918_v42  ;;  %v6912_v47 = vadd.f32 -0.28449672, %v6848_v50  ;;  %v7337_v23 = vmul.f32 1.442695, %v7240_v28  ;;  %v7241_v52 = vmul.f32 %v7177_v49, %v6281_v21 }
 0x562   : > { %17576 = vst [vmem:[#allocation62_spill] sm:$0xff] %v15460_v63  ;;  %7891 = vadd.xlane.f32.xlu1 %v15460_v63  ;;  %v15467_v9 = vmul.f32 %v7742_v54, %v15118_v38  ;;  %v6975_v36 = vmul.f32 %v15244_v24, %v6911_v61  ;;  %v6346_v2 = vmul.f32 0.3275911, %v6282_v11  ;;  %v7178_v60 = vsub.f32 0.0, %v6282_v11  ;;  %v15487_v54 = vpop.f32.mrb[108].mxu0 }
 0x563   : > { %v6976_v62 = vmul.f32 %v15249_v43, %v6912_v47  ;;  %v6657_v30 = vadd.f32 -1.4531521, %v6593_v0  ;;  %11661 = vrcp.f32 %v6408_v58  ;;  %v15473_v3 = vmul.f32 %v15363_v8, %v5923_v17  ;;  %v15485_v58 = vpop.f32.mrb[108].mxu1  ;;  %17580 = vst [vmem:[#allocation66_spill] sm:$0xff] %v15487_v54 }
 0x564   : > { %17577 = vst [vmem:[#allocation63_spill] sm:$0xff] %v15467_v9  ;;  %7893 = vadd.xlane.f32.xlu0 %v15467_v9  ;;  %v7039_v28 = vadd.f32 0.2548296, %v6975_v36  ;;  %v6594_v21 = vmul.f32 1.0614054, %v15312_v7  ;;  %vm7551_vm8 = vcmp.ge.f32.partialorder %v15087_v40, 0.0  ;;  %v15481_v50 = vpop.eup %11655  ;;  %11663 = vpow2.f32 %v7337_v23 }
 0x565   : > { %v6409_v38 = vadd.f32 1.0, %v6345_v15  ;;  %v15478_v49 = vmul.f32 0.70710677, %v15463_v41  ;;  %v7040_v45 = vadd.f32 0.2548296, %v6976_v62  ;;  %v6721_v1 = vmul.f32 %v15297_v39, %v6657_v30  ;;  %17579 = vst [vmem:[#allocation65_spill] sm:$0xff] %v15485_v58 }
 0x566   : > { %vm7552_vm9 = vcmp.ge.f32.partialorder %v15106_v35, 0.0  ;;  %v7339_v0 = vmul.f32 1.442695, %v7241_v52  ;;  %v7103_v8 = vmul.f32 %v15244_v24, %v7039_v28  ;;  %v6658_v42 = vadd.f32 -1.4531521, %v6594_v21  ;;  %v15489_v61 = vpop.eup %11657  ;;  %v4092_v62 = vpop.f32.mrb[109].mxu1 }
 0x567   : > { %17578 = vst [vmem:[#allocation64_spill] sm:$0xff] %v15478_v49  ;;  %v6410_v15 = vadd.f32 1.0, %v6346_v2  ;;  %v7242_v47 = vmul.f32 %v7178_v60, %v6282_v11  ;;  %v7104_v36 = vmul.f32 %v15249_v43, %v7040_v45  ;;  %v6785_v17 = vadd.f32 1.4214138, %v6721_v1  ;;  %v17582_v52 = vld [vmem:[#allocation40_spill] sm:$0xff]  ;;  %v5632_v21 = vpop.f32.mrb[109].mxu0 }
 0x568   : > { %v15493_v30 = vmul.f32 0.70710677, %v15473_v3  ;;  %v7423_v23 = vmul.f32 %v15260_v29, %v7103_v8  ;;  %v6722_v24 = vmul.f32 %v15312_v7, %v6658_v42  ;;  %v15499_v28 = vadd.f32 %v17582_v52, %v15083_v31  ;;  %v17583_v2 = vld [vmem:[#allocation41_spill] sm:$0xff]  ;;  %v17584_v60 = vld [vmem:[#allocation42_spill] sm:$0xff]  ;;  %v15511_v42 = vpop.eup %11659  ;;  %v5928_v31 = vpop.permute.xlu0 %5927 }
 0x569   : > { %v6283_v9 = vand.u32 2147483647, %v15478_v49  ;;  %v7424_v11 = vmul.f32 %v15286_v26, %v7104_v36  ;;  %v6849_v43 = vmul.f32 %v15297_v39, %v6785_v17  ;;  %v15506_v45 = vadd.f32 %v17584_v60, %v17583_v2  ;;  %v15516_v17 = vpop.f32.mrb[110].mxu1 }
 0x56a   : > { %17581 = vst [vmem:[#allocation67_spill] sm:$0xff] %v15493_v30  ;;  %v15509_v1 = vmul.f32 0.5, %v15390_v19  ;;  %11665 = vrcp.f32 %v6409_v38  ;;  %v7487_v29 = vsub.f32 1.0, %v7423_v23  ;;  %v6786_v8 = vadd.f32 1.4214138, %v6722_v24  ;;  %17585 = vst [vmem:[#allocation40_spill] sm:$0xff] %v15516_v17 }
 0x56b   : > { %11667 = vpow2.f32 %v7339_v0  ;;  %v15514_v62 = vmul.f32 0.5, %v15413_v12  ;;  %v7488_v26 = vsub.f32 1.0, %v7424_v11  ;;  %v6913_v36 = vadd.f32 -0.28449672, %v6849_v43  ;;  %v15520_v38 = vpop.f32.mrb[110].mxu0  ;;  %v4095_v23 = vpop.f32.mrb[111].mxu1 }
 0x56c   : > { %11669 = vrcp.f32 %v6410_v15  ;;  %v6284_v52 = vand.u32 2147483647, %v15493_v30  ;;  %v7615_v21 = vsub.f32 0.0, %v7487_v29  ;;  %v6850_v19 = vmul.f32 %v15312_v7, %v6786_v8  ;;  %17586 = vst [vmem:[#allocation41_spill] sm:$0xff] %v15520_v38  ;;  %v5635_v12 = vpop.f32.mrb[111].mxu0  ;;  %v5933_v11 = vpop.permute.xlu1 %5932  ;;  %v17587_v38 = vld [vmem:[#allocation48_spill] sm:$0xff] }
 0x56d   : > { %v7341_v24 = vmul.f32 1.442695, %v7242_v47  ;;  %v6347_v2 = vmul.f32 0.3275911, %v6283_v9  ;;  %v7616_v60 = vsub.f32 0.0, %v7488_v26  ;;  %v6977_v0 = vmul.f32 %v15297_v39, %v6913_v36  ;;  %v15523_v63 = vpop.eup %11661 }
 0x56e   : > { %v7179_v43 = vsub.f32 0.0, %v6283_v9  ;;  %v7679_v15 = vsel %vm7551_vm8, %v7487_v29, %v7615_v21  ;;  %v15528_v17 = vmul.f32 %v15434_v4, %v5928_v31  ;;  %v6914_v8 = vadd.f32 -0.28449672, %v6850_v19  ;;  %v15535_v12 = vpop.eup %11663  ;;  %v17588_v31 = vld [vmem:[#allocation16_spill] sm:$0xff] }
 0x56f   : > { %v7743_v54 = vadd.f32 1.0, %v7679_v15  ;;  %v7680_v47 = vsel %vm7552_vm9, %v7488_v26, %v7616_v60  ;;  %v15533_v23 = vmul.f32 %v15443_v44, %v5933_v11  ;;  %v7041_v36 = vadd.f32 0.2548296, %v6977_v0  ;;  %v5938_v26 = vpop.permute.xlu0 %5937  ;;  %v17591_v60 = vld [vmem:[#allocation47_spill] sm:$0xff] }
 0x570   : > { %vm7553_vm10 = vcmp.ge.f32.partialorder %v17587_v38, 0.0  ;;  %v6348_v58 = vmul.f32 0.3275911, %v6284_v52  ;;  %v7744_v56 = vadd.f32 1.0, %v7680_v47  ;;  %v6978_v40 = vmul.f32 %v15312_v7, %v6914_v8 }
 0x571   : > { %v6595_v4 = vmul.f32 1.0614054, %v15350_v57  ;;  %v7180_v29 = vsub.f32 0.0, %v6284_v52  ;;  %v15541_v21 = vmul.f32 %v7743_v54, %v17588_v31  ;;  %v7105_v35 = vmul.f32 %v15297_v39, %v7041_v36 }
 0x572   : > { %v6596_v44 = vmul.f32 1.0614054, %v15365_v27  ;;  %v15546_v19 = vmul.f32 0.5, %v15463_v41  ;;  %v15549_v0 = vmul.f32 %v7744_v56, %v17591_v60  ;;  %v15552_v11 = vmul.f32 0.70710677, %v15528_v17 }
 0x573   : > { %17589 = vst [vmem:[#allocation42_spill] sm:$0xff] %v15541_v21  ;;  %v7042_v15 = vadd.f32 0.2548296, %v6978_v40  ;;  %vm7554_vm11 = vcmp.ge.f32.partialorder %v15161_v46, 0.0  ;;  %11671 = vpow2.f32 %v7341_v24  ;;  %v15556_v54 = vmul.f32 0.5, %v15473_v3  ;;  %7895 = vadd.xlane.f32.xlu1 %v15541_v21  ;;  %v5943_v3 = vpop.permute.xlu1 %5942 }
 0x574   : > { %17590 = vst [vmem:[#allocation48_spill] sm:$0xff] %v15546_v19  ;;  %17592 = vst [vmem:[#allocation16_spill] sm:$0xff] %v15549_v0  ;;  %v15560_v39 = vmul.f32 0.70710677, %v15533_v23  ;;  %v7425_v41 = vmul.f32 %v15322_v32, %v7105_v35  ;;  %v15563_v8 = vpop.eup %11665  ;;  %v6411_v56 = vadd.f32 1.0, %v6347_v2  ;;  %v7243_v47 = vmul.f32 %v7179_v43, %v6283_v9  ;;  %7897 = vadd.xlane.f32.xlu0 %v15549_v0  ;;  %v17596_v2 = vld [vmem:[#allocation18_spill] sm:$0xff] }
 0x575   : > { %17593 = vst [vmem:[#allocation47_spill] sm:$0xff] %v15552_v11  ;;  %17594 = vst [vmem:[#allocation68_spill] sm:$0xff] %v15556_v54  ;;  %v7106_v36 = vmul.f32 %v15312_v7, %v7042_v15  ;;  %v6659_v40 = vadd.f32 -1.4531521, %v6595_v4  ;;  %v15567_v24 = vpop.eup %11667  ;;  %v6412_v31 = vadd.f32 1.0, %v6348_v58  ;;  %v7244_v60 = vmul.f32 %v7180_v29, %v6284_v52  ;;  %v17597_v43 = vld [vmem:[#allocation44_spill] sm:$0xff] }
 0x576   : > { %17595 = vst [vmem:[#allocation69_spill] sm:$0xff] %v15560_v39  ;;  %v7489_v21 = vsub.f32 1.0, %v7425_v41  ;;  %v6660_v54 = vadd.f32 -1.4531521, %v6596_v44  ;;  %v15569_v19 = vpop.eup %11669  ;;  %v6285_v32 = vand.u32 2147483647, %v15552_v11  ;;  %v15576_v0 = vadd.f32 %v17597_v43, %v17596_v2 }
 0x577   : > { %v7426_v35 = vmul.f32 %v15328_v16, %v7106_v36  ;;  %v6723_v9 = vmul.f32 %v15350_v57, %v6659_v40  ;;  %v15578_v7 = vpop.f32.mrb[112].mxu1  ;;  %v15580_v4 = vpop.f32.mrb[112].mxu0  ;;  %v6286_v58 = vand.u32 2147483647, %v15560_v39  ;;  %v17600_v44 = vld [vmem:[#allocation45_spill] sm:$0xff]  ;;  %v17601_v15 = vld [vmem:[#allocation46_spill] sm:$0xff]  ;;  %11673 = vrcp.f32 %v6411_v56 }
 0x578   : > { %17598 = vst [vmem:[#allocation18_spill] sm:$0xff] %v15578_v7  ;;  %17599 = vst [vmem:[#allocation44_spill] sm:$0xff] %v15580_v4  ;;  %v7617_v52 = vsub.f32 0.0, %v7489_v21  ;;  %v6724_v29 = vmul.f32 %v15365_v27, %v6660_v54  ;;  %v15586_v41 = vadd.f32 %v17601_v15, %v17600_v44  ;;  %v4100_v16 = vpop.f32.mrb[113].mxu1  ;;  %v5640_v36 = vpop.f32.mrb[113].mxu0  ;;  %v7181_v56 = vsub.f32 0.0, %v6285_v32 }
 0x579   : > { %v15588_v40 = vpop.permute.xlu0 %5947  ;;  %v7490_v2 = vsub.f32 1.0, %v7426_v35  ;;  %v6787_v43 = vadd.f32 1.4214138, %v6723_v9  ;;  %v6597_v7 = vmul.f32 1.0614054, %v15420_v55  ;;  %v15594_v15 = vpop.f32.mrb[114].mxu1  ;;  %v15599_v9 = vmul.f32 %v15499_v28, %v5938_v26 }
 0x57a   : > { %v7343_v11 = vmul.f32 1.442695, %v7243_v47  ;;  %v7345_v4 = vmul.f32 1.442695, %v7244_v60  ;;  %v7681_v39 = vsel %vm7553_vm10, %v7489_v21, %v7617_v52  ;;  %v6788_v13 = vadd.f32 1.4214138, %v6724_v29  ;;  %v15602_v38 = vpop.permute.xlu1 %5952 }
 0x57b   : > { %v6349_v54 = vmul.f32 0.3275911, %v6285_v32  ;;  %v7745_v30 = vadd.f32 1.0, %v7681_v39  ;;  %v7618_v49 = vsub.f32 0.0, %v7490_v2  ;;  %v6851_v44 = vmul.f32 %v15350_v57, %v6787_v43  ;;  %17602 = vst [vmem:[#allocation45_spill] sm:$0xff] %v15594_v15  ;;  %v15596_v16 = vpop.f32.mrb[114].mxu0 }
 0x57c   : > { %17603 = vst [vmem:[#allocation46_spill] sm:$0xff] %v15596_v16  ;;  %v7182_v35 = vsub.f32 0.0, %v6286_v58  ;;  %v6852_v47 = vmul.f32 %v15365_v27, %v6788_v13  ;;  %v4103_v60 = vpop.f32.mrb[115].mxu1  ;;  %v6661_v29 = vadd.f32 -1.4531521, %v6597_v7  ;;  %v5643_v36 = vpop.f32.mrb[115].mxu0  ;;  %11675 = vrcp.f32 %v6412_v31 }
 0x57d   : > { %v15605_v21 = vmul.f32 %v7745_v30, %v15239_v51  ;;  %v7682_v39 = vsel %vm7554_vm11, %v7490_v2, %v7618_v49  ;;  %v6915_v52 = vadd.f32 -0.28449672, %v6851_v44  ;;  %v15609_v43 = vpop.eup %11671  ;;  %v6350_v16 = vmul.f32 0.3275911, %v6286_v58  ;;  %v15611_v15 = vpop.permute.xlu0 %5957 }
 0x57e   : > { %v7746_v28 = vadd.f32 1.0, %v7682_v39  ;;  %v6916_v26 = vadd.f32 -0.28449672, %v6852_v47  ;;  %v15615_v13 = vmul.f32 %v15506_v45, %v5943_v3  ;;  %v6725_v46 = vmul.f32 %v15420_v55, %v6661_v29  ;;  %v17606_v45 = vld [vmem:[#allocation22_spill] sm:$0xff]  ;;  %v15644_v36 = vpop.f32.mrb[116].mxu1 }
 0x57f   : > { %17604 = vst [vmem:[#allocation70_spill] sm:$0xff] %v15605_v21  ;;  %7899 = vadd.xlane.f32.xlu1 %v15605_v21  ;;  %v6979_v51 = vmul.f32 %v15350_v57, %v6915_v52  ;;  %v6598_v49 = vmul.f32 1.0614054, %v15457_v22  ;;  %v6413_v30 = vadd.f32 1.0, %v6349_v54  ;;  %v7245_v7 = vmul.f32 %v7181_v56, %v6285_v32  ;;  %v15635_v56 = vpop.permute.xlu1 %5962 }
 0x580   : > { %v15621_v31 = vmul.f32 %v7746_v28, %v15242_v25  ;;  %v6980_v2 = vmul.f32 %v15365_v27, %v6916_v26  ;;  %v7246_v44 = vmul.f32 %v7182_v35, %v6286_v58  ;;  %v15625_v47 = vmul.f32 0.70710677, %v15599_v9  ;;  %v17607_v58 = vld [vmem:[#allocation52_spill] sm:$0xff]  ;;  %v15646_v28 = vpop.f32.mrb[116].mxu0 }
 0x581   : > { %v7043_v60 = vadd.f32 0.2548296, %v6979_v51  ;;  %v15629_v3 = vadd.f32 %v15187_v59, %v17606_v45  ;;  %vm7555_vm12 = vcmp.ge.f32.partialorder %v15213_v5, 0.0  ;;  %11677 = vpow2.f32 %v7343_v11  ;;  %v15633_v54 = vpop.eup %11673  ;;  %17609 = vst [vmem:[#allocation52_spill] sm:$0xff] %v15644_v36  ;;  %17610 = vst [vmem:[#allocation72_spill] sm:$0xff] %v15646_v28  ;;  %v15648_v26 = vpop.permute.xlu0 %5967 }
 0x582   : > { %17605 = vst [vmem:[#allocation71_spill] sm:$0xff] %v15621_v31  ;;  %v6414_v39 = vadd.f32 1.0, %v6350_v16  ;;  %7901 = vadd.xlane.f32.xlu0 %v15621_v31  ;;  %v7044_v32 = vadd.f32 0.2548296, %v6980_v2  ;;  %v6789_v25 = vadd.f32 1.4214138, %v6725_v46  ;;  %11679 = vpow2.f32 %v7345_v4 }
 0x583   : > { %vm7556_vm13 = vcmp.ge.f32.partialorder %v17607_v58, 0.0  ;;  %v15639_v35 = vmul.f32 0.70710677, %v15615_v13  ;;  %v7107_v59 = vmul.f32 %v15350_v57, %v7043_v60  ;;  %v6662_v52 = vadd.f32 -1.4531521, %v6598_v49  ;;  %v5648_v2 = vpop.f32.mrb[117].mxu0 }
 0x584   : > { %11681 = vrcp.f32 %v6413_v30  ;;  %v7347_v11 = vmul.f32 1.442695, %v7245_v7  ;;  %v7108_v16 = vmul.f32 %v15365_v27, %v7044_v32  ;;  %v6853_v29 = vmul.f32 %v15420_v55, %v6789_v25  ;;  %v4108_v7 = vpop.f32.mrb[117].mxu1  ;;  %v17612_v25 = vld [vmem:[#allocation50_spill] sm:$0xff]  ;;  %v15688_v21 = vpop.f32.mrb[118].mxu0 }
 0x585   : > { %17608 = vst [vmem:[#allocation22_spill] sm:$0xff] %v15639_v35  ;;  %v7349_v51 = vmul.f32 1.442695, %v7246_v44  ;;  %v6287_v4 = vand.u32 2147483647, %v15625_v47  ;;  %v7427_v46 = vmul.f32 %v15377_v10, %v7107_v59  ;;  %v6726_v57 = vmul.f32 %v15457_v22, %v6662_v52  ;;  %v17611_v44 = vld [vmem:[#allocation49_spill] sm:$0xff]  ;;  %v15675_v2 = vpop.permute.xlu0 %5977 }
 0x586   : > { %v15654_v49 = vmul.f32 0.5, %v15528_v17  ;;  %11683 = vrcp.f32 %v6414_v39  ;;  %v7428_v27 = vmul.f32 %v15392_v14, %v7108_v16  ;;  %v6917_v30 = vadd.f32 -0.28449672, %v6853_v29  ;;  %v15662_v10 = vpop.eup %11675  ;;  %v15669_v29 = vpop.permute.xlu1 %5972  ;;  %17615 = vst [vmem:[#allocation73_spill] sm:$0xff] %v15688_v21 }
 0x587   : > { %v6288_v60 = vand.u32 2147483647, %v15639_v35  ;;  %v7491_v45 = vsub.f32 1.0, %v7427_v46  ;;  %v6790_v32 = vadd.f32 1.4214138, %v6726_v57  ;;  %v15660_v31 = vadd.f32 %v17612_v25, %v17611_v44 }
 0x588   : > { %11685 = vpow2.f32 %v7347_v11  ;;  %v15665_v17 = vmul.f32 0.5, %v15533_v23  ;;  %v7492_v39 = vsub.f32 1.0, %v7428_v27  ;;  %v6981_v14 = vmul.f32 %v15420_v55, %v6917_v30 }
 0x589   : > { %11687 = vpow2.f32 %v7349_v51  ;;  %v6351_v59 = vmul.f32 0.3275911, %v6287_v4  ;;  %v7619_v52 = vsub.f32 0.0, %v7491_v45  ;;  %v6854_v16 = vmul.f32 %v15457_v22, %v6790_v32  ;;  %v15680_v32 = vpop.f32.mrb[118].mxu1 }
 0x58a   : > { %17613 = vst [vmem:[#allocation49_spill] sm:$0xff] %v15665_v17  ;;  %v7183_v46 = vsub.f32 0.0, %v6287_v4  ;;  %v7620_v57 = vsub.f32 0.0, %v7492_v39  ;;  %v15673_v7 = vmul.f32 %v15576_v0, %v15588_v40  ;;  %v7045_v11 = vadd.f32 0.2548296, %v6981_v14  ;;  %17614 = vst [vmem:[#allocation50_spill] sm:$0xff] %v15680_v32 }
 0x58b   : > { %vm7557_vm14 = vcmp.ge.f32.partialorder %v15278_v48, 0.0  ;;  %v6352_v23 = vmul.f32 0.3275911, %v6288_v60  ;;  %v7184_v27 = vsub.f32 0.0, %v6288_v60  ;;  %v7683_v51 = vsel %vm7555_vm12, %v7491_v45, %v7619_v52  ;;  %v15682_v44 = vpop.eup %11677  ;;  %v4111_v28 = vpop.f32.mrb[119].mxu1 }
 0x58c   : > { %v6918_v30 = vadd.f32 -0.28449672, %v6854_v16  ;;  %v7747_v25 = vadd.f32 1.0, %v7683_v51  ;;  %v7684_v0 = vsel %vm7556_vm13, %v7492_v39, %v7620_v57  ;;  %v7109_v40 = vmul.f32 %v15420_v55, %v7045_v11  ;;  %v15690_v36 = vpop.eup %11679  ;;  %v5651_v51 = vpop.f32.mrb[119].mxu0  ;;  %v17617_v39 = vld [vmem:[#allocation29_spill] sm:$0xff] }
 0x58d   : > { %v6599_v14 = vmul.f32 1.0614054, %v15489_v61  ;;  %v6415_v5 = vadd.f32 1.0, %v6351_v59  ;;  %v7748_v45 = vadd.f32 1.0, %v7684_v0  ;;  %v15694_v52 = vmul.f32 %v15586_v41, %v15602_v38 }
 0x58e   : > { %v6982_v16 = vmul.f32 %v15457_v22, %v6918_v30  ;;  %v15697_v58 = vpop.eup %11681  ;;  %v15700_v55 = vmul.f32 0.5, %v15599_v9  ;;  %v15703_v57 = vmul.f32 %v7747_v25, %v17617_v39  ;;  %v15706_v28 = vmul.f32 0.70710677, %v15673_v7  ;;  %v15717_v9 = vpop.permute.xlu1 %5982 }
 0x58f   : > { %v7429_v59 = vmul.f32 %v15425_v37, %v7109_v40  ;;  %v7247_v11 = vmul.f32 %v7183_v46, %v6287_v4  ;;  %v15710_v41 = vmul.f32 0.5, %v15615_v13  ;;  %v15713_v38 = vmul.f32 %v7748_v45, %v15294_v33  ;;  %v15721_v4 = vpop.permute.xlu0 %5987  ;;  %v17624_v45 = vld [vmem:[#allocation51_spill] sm:$0xff] }
 0x590   : > { %17616 = vst [vmem:[#allocation74_spill] sm:$0xff] %v15700_v55  ;;  %17618 = vst [vmem:[#allocation29_spill] sm:$0xff] %v15703_v57  ;;  %v7046_v30 = vadd.f32 0.2548296, %v6982_v16  ;;  %v15715_v0 = vpop.eup %11683  ;;  %vm7558_vm15 = vcmp.ge.f32.partialorder %v15325_v34, 0.0  ;;  %v6416_v25 = vadd.f32 1.0, %v6352_v23  ;;  %v7248_v51 = vmul.f32 %v7184_v27, %v6288_v60  ;;  %7903 = vadd.xlane.f32.xlu1 %v15703_v57 }
 0x591   : > { %17619 = vst [vmem:[#allocation75_spill] sm:$0xff] %v15706_v28  ;;  %17620 = vst [vmem:[#allocation76_spill] sm:$0xff] %v15710_v41  ;;  %v7493_v39 = vsub.f32 1.0, %v7429_v59  ;;  %v6663_v37 = vadd.f32 -1.4531521, %v6599_v14  ;;  %11689 = vrcp.f32 %v6415_v5  ;;  %7905 = vadd.xlane.f32.xlu0 %v15713_v38  ;;  %v17623_v14 = vld [vmem:[#allocation24_spill] sm:$0xff] }
 0x592   : > { %17621 = vst [vmem:[#allocation77_spill] sm:$0xff] %v15713_v38  ;;  %v15725_v33 = vmul.f32 0.70710677, %v15694_v52  ;;  %v7110_v13 = vmul.f32 %v15457_v22, %v7046_v30  ;;  %v6600_v46 = vmul.f32 1.0614054, %v15523_v63  ;;  %v15729_v40 = vpop.eup %11685  ;;  %v15735_v16 = vadd.f32 %v17624_v45, %v17623_v14  ;;  %v17625_v38 = vld [vmem:[#allocation33_spill] sm:$0xff] }
 0x593   : > { %v6289_v60 = vand.u32 2147483647, %v15706_v28  ;;  %v7621_v23 = vsub.f32 0.0, %v7493_v39  ;;  %v6727_v27 = vmul.f32 %v15489_v61, %v6663_v37  ;;  %v15737_v5 = vpop.eup %11687  ;;  %v15742_v22 = vmul.f32 %v15629_v3, %v15611_v15  ;;  %v17626_v57 = vld [vmem:[#allocation53_spill] sm:$0xff] }
 0x594   : > { %17622 = vst [vmem:[#allocation78_spill] sm:$0xff] %v15725_v33  ;;  %v7430_v59 = vmul.f32 %v15481_v50, %v7110_v13  ;;  %v6664_v30 = vadd.f32 -1.4531521, %v6600_v46  ;;  %v15746_v21 = vadd.f32 %v17626_v57, %v17625_v38  ;;  %v7351_v32 = vmul.f32 1.442695, %v7247_v11  ;;  %v15751_v13 = vpop.permute.xlu1 %5992  ;;  %v15756_v11 = vpop.permute.xlu0 %5997  ;;  %v17627_v38 = vld [vmem:[#allocation14_spill] sm:$0xff] }
 0x595   : > { %11691 = vrcp.f32 %v6416_v25  ;;  %v7685_v37 = vsel %vm7557_vm14, %v7493_v39, %v7621_v23  ;;  %v6791_v14 = vadd.f32 1.4214138, %v6727_v27  ;;  %v7353_v45 = vmul.f32 1.442695, %v7248_v51 }
 0x596   : > { %v7749_v41 = vadd.f32 1.0, %v7685_v37  ;;  %v7494_v28 = vsub.f32 1.0, %v7430_v59  ;;  %v6728_v50 = vmul.f32 %v15523_v63, %v6664_v30  ;;  %v6353_v15 = vmul.f32 0.3275911, %v6289_v60  ;;  %v17630_v59 = vld [vmem:[#allocation28_spill] sm:$0xff]  ;;  %v17631_v30 = vld [vmem:[#allocation54_spill] sm:$0xff] }
 0x597   : > { %v6290_v3 = vand.u32 2147483647, %v15725_v33  ;;  %v6855_v46 = vmul.f32 %v15489_v61, %v6791_v14  ;;  %v6601_v57 = vmul.f32 1.0614054, %v15563_v8  ;;  %v15762_v51 = vmul.f32 0.70710677, %v15742_v22 }
 0x598   : > { %v15759_v48 = vmul.f32 %v7749_v41, %v17627_v38  ;;  %v7622_v25 = vsub.f32 0.0, %v7494_v28  ;;  %v6792_v39 = vadd.f32 1.4214138, %v6728_v50  ;;  %11693 = vpow2.f32 %v7351_v32  ;;  %v15772_v14 = vpop.f32.mrb[120].mxu1  ;;  %v15778_v38 = vpop.f32.mrb[120].mxu0 }
 0x599   : > { %17629 = vst [vmem:[#allocation51_spill] sm:$0xff] %v15762_v51  ;;  %v15766_v23 = vmul.f32 %v15660_v31, %v15635_v56  ;;  %v6919_v27 = vadd.f32 -0.28449672, %v6855_v46  ;;  %v15770_v37 = vadd.f32 %v17631_v30, %v17630_v59  ;;  %17632 = vst [vmem:[#allocation33_spill] sm:$0xff] %v15772_v14  ;;  %v7185_v33 = vsub.f32 0.0, %v6289_v60  ;;  %v4116_v31 = vpop.f32.mrb[121].mxu1 }
 0x59a   : > { %17628 = vst [vmem:[#allocation24_spill] sm:$0xff] %v15759_v48  ;;  %7907 = vadd.xlane.f32.xlu1 %v15759_v48  ;;  %v7686_v41 = vsel %vm7558_vm15, %v7494_v28, %v7622_v25  ;;  %v6856_v50 = vmul.f32 %v15523_v63, %v6792_v39  ;;  %v6665_v32 = vadd.f32 -1.4531521, %v6601_v57  ;;  %17633 = vst [vmem:[#allocation53_spill] sm:$0xff] %v15778_v38  ;;  %v6354_v56 = vmul.f32 0.3275911, %v6290_v3  ;;  %v15785_v28 = vpop.permute.xlu1 %6002  ;;  %v15795_v31 = vpop.permute.xlu0 %6007 }
 0x59b   : > { %v7186_v46 = vsub.f32 0.0, %v6290_v3  ;;  %v7750_v55 = vadd.f32 1.0, %v7686_v41  ;;  %v6983_v59 = vmul.f32 %v15489_v61, %v6919_v27  ;;  %v5656_v30 = vpop.f32.mrb[121].mxu0  ;;  %v15781_v35 = vpop.eup %11689  ;;  %v6417_v14 = vadd.f32 1.0, %v6353_v15  ;;  %v17634_v57 = vld [vmem:[#allocation59_spill] sm:$0xff]  ;;  %v17638_v15 = vld [vmem:[#allocation32_spill] sm:$0xff] }
 0x59c   : > { %v6291_v48 = vand.u32 2147483647, %v15762_v51  ;;  %v6920_v17 = vadd.f32 -0.28449672, %v6856_v50  ;;  %v6729_v34 = vmul.f32 %v15563_v8, %v6665_v32  ;;  %11695 = vpow2.f32 %v7353_v45  ;;  %v15793_v27 = vpop.f32.mrb[122].mxu1  ;;  %v15802_v38 = vpop.f32.mrb[122].mxu0 }
 0x59d   : > { %v15788_v25 = vmul.f32 %v7750_v55, %v17634_v57  ;;  %v15791_v39 = vmul.f32 0.70710677, %v15766_v23  ;;  %v7047_v41 = vadd.f32 0.2548296, %v6983_v59  ;;  %17637 = vst [vmem:[#allocation54_spill] sm:$0xff] %v15793_v27  ;;  %vm7559_vm0 = vcmp.ge.f32.partialorder %v17638_v15, 0.0 }
 0x59e   : > { %v15799_v50 = vmul.f32 0.5, %v15673_v7  ;;  %v7249_v32 = vmul.f32 %v7185_v33, %v6289_v60  ;;  %v6984_v30 = vmul.f32 %v15523_v63, %v6920_v17  ;;  %v6793_v45 = vadd.f32 1.4214138, %v6729_v34  ;;  %17640 = vst [vmem:[#allocation32_spill] sm:$0xff] %v15802_v38  ;;  %v4119_v7 = vpop.f32.mrb[123].mxu1 }
 0x59f   : > { %17635 = vst [vmem:[#allocation14_spill] sm:$0xff] %v15788_v25  ;;  %17636 = vst [vmem:[#allocation28_spill] sm:$0xff] %v15791_v39  ;;  %v15804_v55 = vpop.eup %11691  ;;  %v15807_v57 = vmul.f32 0.5, %v15694_v52  ;;  %v7250_v59 = vmul.f32 %v7186_v46, %v6290_v3  ;;  %7909 = vadd.xlane.f32.xlu0 %v15788_v25  ;;  %v7111_v27 = vmul.f32 %v15489_v61, %v7047_v41  ;;  %v6602_v51 = vmul.f32 1.0614054, %v15569_v19 }
 0x5a0   : > { %17639 = vst [vmem:[#allocation59_spill] sm:$0xff] %v15799_v50  ;;  %v5659_v50 = vpop.f32.mrb[123].mxu0  ;;  %11697 = vrcp.f32 %v6417_v14  ;;  %v6418_v33 = vadd.f32 1.0, %v6354_v56  ;;  %v7048_v17 = vadd.f32 0.2548296, %v6984_v30  ;;  %v6857_v60 = vmul.f32 %v15563_v8, %v6793_v45 }
 0x5a1   : > { %17641 = vst [vmem:[#allocation79_spill] sm:$0xff] %v15807_v57  ;;  %vm7560_vm1 = vcmp.ge.f32.partialorder %v15382_v6, 0.0  ;;  %v7187_v34 = vsub.f32 0.0, %v6291_v48  ;;  %v6292_v52 = vand.u32 2147483647, %v15791_v39  ;;  %v7431_v3 = vmul.f32 %v15511_v42, %v7111_v27  ;;  %v15823_v50 = vpop.permute.xlu1 %6012 }
 0x5a2   : > { %v6666_v46 = vadd.f32 -1.4531521, %v6602_v51  ;;  %v7355_v25 = vmul.f32 1.442695, %v7249_v32  ;;  %v7112_v61 = vmul.f32 %v15523_v63, %v7048_v17  ;;  %v15819_v41 = vmul.f32 %v15735_v16, %v15648_v26  ;;  %v15821_v56 = vpop.eup %11693  ;;  %v15830_v51 = vpop.permute.xlu0 %6017  ;;  %v17643_v16 = vld [vmem:[#allocation55_spill] sm:$0xff]  ;;  %v17644_v32 = vld [vmem:[#allocation56_spill] sm:$0xff] }
 0x5a3   : > { %v6921_v14 = vadd.f32 -0.28449672, %v6857_v60  ;;  %v7357_v30 = vmul.f32 1.442695, %v7250_v59  ;;  %v7495_v45 = vsub.f32 1.0, %v7431_v3  ;;  %v15827_v7 = vmul.f32 %v15746_v21, %v15669_v29  ;;  %17642 = vst [vmem:[#allocation80_spill] sm:$0xff] %v15830_v51 }
 0x5a4   : > { %v6730_v42 = vmul.f32 %v15569_v19, %v6666_v46  ;;  %v6355_v63 = vmul.f32 0.3275911, %v6291_v48  ;;  %v7432_v27 = vmul.f32 %v15535_v12, %v7112_v61  ;;  %v15836_v17 = vadd.f32 %v17644_v32, %v17643_v16 }
 0x5a5   : > { %v6985_v26 = vmul.f32 %v15563_v8, %v6921_v14  ;;  %v7251_v60 = vmul.f32 %v7187_v34, %v6291_v48  ;;  %v7188_v59 = vsub.f32 0.0, %v6292_v52  ;;  %v7623_v3 = vsub.f32 0.0, %v7495_v45  ;;  %v15850_v34 = vpop.f32.mrb[124].mxu1 }
 0x5a6   : > { %v6794_v38 = vadd.f32 1.4214138, %v6730_v42  ;;  %11699 = vrcp.f32 %v6418_v33  ;;  %v7496_v21 = vsub.f32 1.0, %v7432_v27  ;;  %v15839_v29 = vmul.f32 0.70710677, %v15819_v41  ;;  %v15841_v39 = vpop.eup %11695  ;;  %17647 = vst [vmem:[#allocation81_spill] sm:$0xff] %v15850_v34 }
 0x5a7   : > { %v7049_v46 = vadd.f32 0.2548296, %v6985_v26  ;;  %vm7561_vm2 = vcmp.ge.f32.partialorder %v15410_v20, 0.0  ;;  %11701 = vpow2.f32 %v7355_v25  ;;  %v7687_v12 = vsel %vm7559_vm0, %v7495_v45, %v7623_v3  ;;  %v15852_v33 = vpop.f32.mrb[124].mxu0  ;;  %v4124_v16 = vpop.f32.mrb[125].mxu1 }
 0x5a8   : > { %17645 = vst [vmem:[#allocation55_spill] sm:$0xff] %v15839_v29  ;;  %v15847_v61 = vmul.f32 0.70710677, %v15827_v7  ;;  %v6858_v48 = vmul.f32 %v15569_v19, %v6794_v38  ;;  %17648 = vst [vmem:[#allocation82_spill] sm:$0xff] %v15852_v33  ;;  %v6419_v14 = vadd.f32 1.0, %v6355_v63  ;;  %v7751_v42 = vadd.f32 1.0, %v7687_v12  ;;  %v15855_v25 = vpop.permute.xlu1 %6022  ;;  %v15859_v38 = vpop.permute.xlu0 %6027 }
 0x5a9   : > { %v7624_v27 = vsub.f32 0.0, %v7496_v21  ;;  %v7113_v26 = vmul.f32 %v15563_v8, %v7049_v46  ;;  %v5664_v32 = vpop.f32.mrb[125].mxu0  ;;  %v7359_v15 = vmul.f32 1.442695, %v7251_v60  ;;  %v6356_v45 = vmul.f32 0.3275911, %v6292_v52 }
 0x5aa   : > { %17646 = vst [vmem:[#allocation56_spill] sm:$0xff] %v15847_v61  ;;  %v7252_v3 = vmul.f32 %v7188_v59, %v6292_v52  ;;  %v6922_v57 = vadd.f32 -0.28449672, %v6858_v48  ;;  %v15857_v51 = vpop.eup %11697  ;;  %v15862_v34 = vmul.f32 %v7751_v42, %v15397_v18  ;;  %v6293_v8 = vand.u32 2147483647, %v15839_v29  ;;  %v15870_v59 = vpop.f32.mrb[126].mxu1 }
 0x5ab   : > { %v7688_v63 = vsel %vm7560_vm1, %v7496_v21, %v7624_v27  ;;  %v7433_v46 = vmul.f32 %v15567_v24, %v7113_v26  ;;  %11703 = vpow2.f32 %v7357_v30  ;;  %v6294_v60 = vand.u32 2147483647, %v15847_v61  ;;  %17650 = vst [vmem:[#allocation84_spill] sm:$0xff] %v15870_v59  ;;  %v15872_v48 = vpop.f32.mrb[126].mxu0  ;;  %v4127_v30 = vpop.f32.mrb[127].mxu1  ;;  %v17652_v42 = vld [vmem:[#allocation61_spill] sm:$0xff] }
 0x5ac   : > { %17649 = vst [vmem:[#allocation83_spill] sm:$0xff] %v15862_v34  ;;  %v7752_v12 = vadd.f32 1.0, %v7688_v63  ;;  %v6986_v52 = vmul.f32 %v15569_v19, %v6922_v57  ;;  %17651 = vst [vmem:[#allocation85_spill] sm:$0xff] %v15872_v48  ;;  %v15875_v18 = vmul.f32 0.5, %v15742_v22  ;;  %11705 = vrcp.f32 %v6419_v14  ;;  %7911 = vadd.xlane.f32.xlu1 %v15862_v34  ;;  %v5667_v26 = vpop.f32.mrb[127].mxu0  ;;  %v15886_v63 = vpop.permute.xlu1 %6032 }
 0x5ad   : > { %v7497_v6 = vsub.f32 1.0, %v7433_v46  ;;  %v15880_v24 = vmul.f32 %v15770_v37, %v15675_v2  ;;  %11707 = vpow2.f32 %v7359_v15  ;;  %v6420_v21 = vadd.f32 1.0, %v6356_v45  ;;  %v17656_v26 = vld [vmem:[#allocation58_spill] sm:$0xff] }
 0x5ae   : > { %v15883_v57 = vmul.f32 %v7752_v12, %v17652_v42  ;;  %v7050_v27 = vadd.f32 0.2548296, %v6986_v52  ;;  %vm7562_vm3 = vcmp.ge.f32.partialorder %v15429_v53, 0.0  ;;  %v7361_v22 = vmul.f32 1.442695, %v7252_v3  ;;  %v15894_v12 = vpop.permute.xlu0 %6037  ;;  %v17655_v42 = vld [vmem:[#allocation5_spill] sm:$0xff] }
 0x5af   : > { %v6357_v16 = vmul.f32 0.3275911, %v6293_v8  ;;  %v7189_v14 = vsub.f32 0.0, %v6293_v8  ;;  %v7625_v32 = vsub.f32 0.0, %v7497_v6  ;;  %v6358_v2 = vmul.f32 0.3275911, %v6294_v60 }
 0x5b0   : > { %17653 = vst [vmem:[#allocation61_spill] sm:$0xff] %v15883_v57  ;;  %7913 = vadd.xlane.f32.xlu0 %v15883_v57  ;;  %v7114_v37 = vmul.f32 %v15569_v19, %v7050_v27  ;;  %v6603_v15 = vmul.f32 1.0614054, %v15633_v54  ;;  %v6604_v45 = vmul.f32 1.0614054, %v15662_v10  ;;  %v15892_v46 = vpop.eup %11699  ;;  %v7190_v52 = vsub.f32 0.0, %v6294_v60 }
 0x5b1   : > { %v7689_v3 = vsel %vm7561_vm2, %v7497_v6, %v7625_v32  ;;  %v15899_v30 = vmul.f32 0.70710677, %v15880_v24  ;;  %v10574_v57 = vadd.f32 %v17656_v26, %v17655_v42  ;;  %v15903_v34 = vpop.eup %11701  ;;  %11709 = vrcp.f32 %v6420_v21 }
 0x5b2   : > { %v7753_v19 = vadd.f32 1.0, %v7689_v3  ;;  %v7434_v27 = vmul.f32 %v15609_v43, %v7114_v37  ;;  %v6667_v48 = vadd.f32 -1.4531521, %v6603_v15  ;;  %v6668_v59 = vadd.f32 -1.4531521, %v6604_v45  ;;  %v17658_v37 = vld [vmem:[#allocation35_spill] sm:$0xff] }
 0x5b3   : > { %17654 = vst [vmem:[#allocation86_spill] sm:$0xff] %v15899_v30  ;;  %v6421_v61 = vadd.f32 1.0, %v6357_v16  ;;  %v7253_v33 = vmul.f32 %v7189_v14, %v6293_v8  ;;  %v6104_v20 = vmul.f32 %v15836_v17, %v15717_v9  ;;  %11711 = vpow2.f32 %v7361_v22  ;;  %v17659_v15 = vld [vmem:[#allocation6_spill] sm:$0xff]  ;;  %v15918_v8 = vpop.permute.xlu1 %6042 }
 0x5b4   : > { %v15909_v6 = vmul.f32 %v7753_v19, %v15509_v1  ;;  %v7498_v32 = vsub.f32 1.0, %v7434_v27  ;;  %v6731_v29 = vmul.f32 %v15633_v54, %v6667_v48  ;;  %v6732_v42 = vmul.f32 %v15662_v10, %v6668_v59  ;;  %v15923_v59 = vpop.permute.xlu0 %6047 }
 0x5b5   : > { %v7254_v3 = vmul.f32 %v7190_v52, %v6294_v60  ;;  %v6295_v43 = vand.u32 2147483647, %v15899_v30  ;;  %v10575_v21 = vadd.f32 %v17659_v15, %v17658_v37  ;;  %v15916_v16 = vpop.eup %11703  ;;  %v6422_v9 = vadd.f32 1.0, %v6358_v2  ;;  %v17662_v15 = vld [vmem:[#allocation13_spill] sm:$0xff] }
 0x5b6   : > { %17657 = vst [vmem:[#allocation5_spill] sm:$0xff] %v15909_v6  ;;  %7915 = vadd.xlane.f32.xlu1 %v15909_v6  ;;  %v7626_v1 = vsub.f32 0.0, %v7498_v32  ;;  %v6795_v17 = vadd.f32 1.4214138, %v6731_v29  ;;  %v6796_v14 = vadd.f32 1.4214138, %v6732_v42  ;;  %v15921_v48 = vpop.eup %11705  ;;  %11713 = vrcp.f32 %v6421_v61 }
 0x5b7   : > { %v15926_v60 = vmul.f32 0.5, %v15766_v23  ;;  %v15929_v22 = vmul.f32 0.5, %v15819_v41  ;;  %v15931_v45 = vmul.f32 0.70710677, %v6104_v20  ;;  %v15933_v52 = vpop.eup %11707  ;;  %v7363_v2 = vmul.f32 1.442695, %v7253_v33 }
 0x5b8   : > { %v7690_v29 = vsel %vm7562_vm3, %v7498_v32, %v7626_v1  ;;  %v6859_v26 = vmul.f32 %v15633_v54, %v6795_v17  ;;  %v6860_v19 = vmul.f32 %v15662_v10, %v6796_v14  ;;  %v7365_v27 = vmul.f32 1.442695, %v7254_v3  ;;  %v17663_v6 = vld [vmem:[#allocation37_spill] sm:$0xff]  ;;  %v7848_v1 = vpop.xlane.xlu0 %7847  ;;  %v15951_v17 = vpop.permute.xlu1 %6052 }
 0x5b9   : > { %17660 = vst [vmem:[#allocation58_spill] sm:$0xff] %v15929_v22  ;;  %17661 = vst [vmem:[#allocation35_spill] sm:$0xff] %v15931_v45  ;;  %v7754_v42 = vadd.f32 1.0, %v7690_v29  ;;  %v7191_v23 = vsub.f32 0.0, %v6295_v43  ;;  %v15940_v37 = vmul.f32 %v10574_v57, %v15721_v4  ;;  %11715 = vrcp.f32 %v6422_v9 }
 0x5ba   : > { %v6923_v41 = vadd.f32 -0.28449672, %v6859_v26  ;;  %v6924_v61 = vadd.f32 -0.28449672, %v6860_v19  ;;  %v15944_v30 = vadd.f32 %v17663_v6, %v17662_v15  ;;  %v6359_v33 = vmul.f32 0.3275911, %v6295_v43 }
 0x5bb   : > { %v15947_v53 = vmul.f32 %v7754_v42, %v15514_v62  ;;  %v6296_v32 = vand.u32 2147483647, %v15931_v45  ;;  %v6605_v3 = vmul.f32 1.0614054, %v15697_v58  ;;  %17665 = vst [vmem:[#allocation13_spill] sm:$0xff] %v15951_v17  ;;  %11717 = vpow2.f32 %v7363_v2  ;;  %v15958_v9 = vpop.eup %11709 }
 0x5bc   : > { %v15954_v4 = vmul.f32 0.5, %v15827_v7  ;;  %v6987_v57 = vmul.f32 %v15633_v54, %v6923_v41  ;;  %v6988_v6 = vmul.f32 %v15662_v10, %v6924_v61  ;;  %11719 = vpow2.f32 %v7365_v27  ;;  %v17669_v41 = vld [vmem:[#allocation64_spill] sm:$0xff]  ;;  %v17670_v61 = vld [vmem:[#allocation67_spill] sm:$0xff] }
 0x5bd   : > { %17664 = vst [vmem:[#allocation6_spill] sm:$0xff] %v15947_v53  ;;  %7917 = vadd.xlane.f32.xlu0 %v15947_v53  ;;  %v7255_v62 = vmul.f32 %v7191_v23, %v6295_v43  ;;  %v15962_v14 = vmul.f32 0.70710677, %v15940_v37  ;;  %v6669_v29 = vadd.f32 -1.4531521, %v6605_v3  ;;  %v15965_v26 = vmul.f32 0.5, %v15880_v24  ;;  %v15967_v42 = vpop.eup %11711  ;;  %v7850_v3 = vpop.xlane.xlu1 %7849 }
 0x5be   : > { %17666 = vst [vmem:[#allocation37_spill] sm:$0xff] %v15954_v4  ;;  %v7975_v2 = vmul.f32 0.0078125, %v7848_v1  ;;  %v7051_v7 = vadd.f32 0.2548296, %v6987_v57  ;;  %v7052_v19 = vadd.f32 0.2548296, %v6988_v6 }
 0x5bf   : > { %17667 = vst [vmem:[#allocation87_spill] sm:$0xff] %v15962_v14  ;;  %17668 = vst [vmem:[#allocation88_spill] sm:$0xff] %v15965_v26  ;;  %vm7563_vm4 = vcmp.ge.f32.partialorder %v17669_v41, 0.0  ;;  %vm7564_vm5 = vcmp.ge.f32.partialorder %v17670_v61, 0.0  ;;  %v6423_v27 = vadd.f32 1.0, %v6359_v33  ;;  %v15971_v15 = vmul.f32 0.5, %v6104_v20 }
 0x5c0   : > { %v6360_v43 = vmul.f32 0.3275911, %v6296_v32  ;;  %v6733_v23 = vmul.f32 %v15697_v58, %v6669_v29  ;;  %v7192_v53 = vsub.f32 0.0, %v6296_v32  ;;  %v7115_v24 = vmul.f32 %v15633_v54, %v7051_v7  ;;  %v15977_v6 = vpop.eup %11713 }
 0x5c1   : > { %17671 = vst [vmem:[#allocation64_spill] sm:$0xff] %v15971_v15  ;;  %v7116_v1 = vmul.f32 %v15662_v10, %v7052_v19  ;;  %v6606_v57 = vmul.f32 1.0614054, %v15715_v0  ;;  %v7367_v26 = vmul.f32 1.442695, %v7255_v62  ;;  %v15981_v33 = vmul.f32 %v10575_v21, %v15751_v13  ;;  %v17672_v15 = vld [vmem:[#allocation8_spill] sm:$0xff] }
 0x5c2   : > { %v6297_v45 = vand.u32 2147483647, %v15962_v14  ;;  %v6797_v20 = vadd.f32 1.4214138, %v6733_v23  ;;  %v15984_v4 = vsub.f32 %v17672_v15, %v7975_v2  ;;  %v7435_v29 = vmul.f32 %v15682_v44, %v7115_v24  ;;  %v17676_v24 = vld [vmem:[#allocation39_spill] sm:$0xff] }
 0x5c3   : > { %v7436_v54 = vmul.f32 %v15690_v36, %v7116_v1  ;;  %v6670_v7 = vadd.f32 -1.4531521, %v6606_v57  ;;  %11721 = vrcp.f32 %v6423_v27  ;;  %v6424_v10 = vadd.f32 1.0, %v6360_v43  ;;  %v15989_v62 = vpop.eup %11715 }
 0x5c4   : > { %17673 = vst [vmem:[#allocation67_spill] sm:$0xff] %v15984_v4  ;;  %v7976_v19 = vmul.f32 0.0078125, %v7850_v3  ;;  %v6861_v22 = vmul.f32 %v15697_v58, %v6797_v20  ;;  %v7256_v14 = vmul.f32 %v7192_v53, %v6296_v32  ;;  %v7499_v17 = vsub.f32 1.0, %v7435_v29  ;;  %v17675_v3 = vld [vmem:[#allocation38_spill] sm:$0xff]  ;;  %v17678_v53 = vld [vmem:[#allocation11_spill] sm:$0xff] }
 0x5c5   : > { %v7500_v13 = vsub.f32 1.0, %v7436_v54  ;;  %v6734_v21 = vmul.f32 %v15715_v0, %v6670_v7  ;;  %11723 = vpow2.f32 %v7367_v26  ;;  %v6361_v2 = vmul.f32 0.3275911, %v6297_v45  ;;  %v15995_v36 = vpop.eup %11717  ;;  %v7852_v26 = vpop.xlane.xlu0 %7851 }
 0x5c6   : > { %v15993_v15 = vmul.f32 0.70710677, %v15981_v33  ;;  %v6925_v44 = vadd.f32 -0.28449672, %v6861_v22  ;;  %17674 = vst [vmem:[#allocation8_spill] sm:$0xff] %v15995_v36  ;;  %v7627_v27 = vsub.f32 0.0, %v7499_v17  ;;  %v10577_v1 = vadd.f32 %v17676_v24, %v17675_v3  ;;  %v15999_v57 = vpop.eup %11719 }
 0x5c7   : > { %v7628_v43 = vsub.f32 0.0, %v7500_v13  ;;  %v6798_v23 = vadd.f32 1.4214138, %v6734_v21  ;;  %17677 = vst [vmem:[#allocation38_spill] sm:$0xff] %v15999_v57  ;;  %11725 = vrcp.f32 %v6424_v10  ;;  %v16002_v32 = vsub.f32 %v17678_v53, %v7976_v19  ;;  %v17680_v53 = vld [vmem:[#allocation47_spill] sm:$0xff] }
 0x5c8   : > { %v6989_v20 = vmul.f32 %v15697_v58, %v6925_v44  ;;  %v16007_v22 = vmul.f32 %v15944_v30, %v15756_v11  ;;  %v7369_v29 = vmul.f32 1.442695, %v7256_v14  ;;  %v7691_v54 = vsel %vm7563_vm4, %v7499_v17, %v7627_v27  ;;  %v17681_v14 = vld [vmem:[#allocation48_spill] sm:$0xff] }
 0x5c9   : > { %17679 = vst [vmem:[#allocation39_spill] sm:$0xff] %v16002_v32  ;;  %v7692_v7 = vsel %vm7564_vm5, %v7500_v13, %v7628_v43  ;;  %v6862_v21 = vmul.f32 %v15715_v0, %v6798_v23  ;;  %v7755_v10 = vadd.f32 1.0, %v7691_v54  ;;  %v7193_v19 = vsub.f32 0.0, %v6297_v45  ;;  %v17683_v17 = vld [vmem:[#allocation68_spill] sm:$0xff] }
 0x5ca   : > { %v7756_v3 = vadd.f32 1.0, %v7692_v7  ;;  %v7053_v24 = vadd.f32 0.2548296, %v6989_v20  ;;  %vm7565_vm6 = vcmp.ge.f32.partialorder %v17680_v53, 0.0  ;;  %v6425_v44 = vadd.f32 1.0, %v6361_v2 }
 0x5cb   : > { %v6298_v57 = vand.u32 2147483647, %v15993_v15  ;;  %v7977_v11 = vmul.f32 0.0078125, %v7852_v26  ;;  %v6926_v30 = vadd.f32 -0.28449672, %v6862_v21  ;;  %v16017_v36 = vmul.f32 %v7755_v10, %v17681_v14  ;;  %v17687_v10 = vld [vmem:[#allocation65_spill] sm:$0xff] }
 0x5cc   : > { %v16020_v41 = vmul.f32 %v7756_v3, %v17683_v17  ;;  %v7117_v61 = vmul.f32 %v15697_v58, %v7053_v24  ;;  %v16024_v13 = vmul.f32 0.70710677, %v16007_v22  ;;  %11727 = vpow2.f32 %v7369_v29  ;;  %v17688_v3 = vld [vmem:[#allocation66_spill] sm:$0xff]  ;;  %v17689_v14 = vld [vmem:[#allocation69_spill] sm:$0xff] }
 0x5cd   : > { %17682 = vst [vmem:[#allocation11_spill] sm:$0xff] %v16017_v36  ;;  %v8103_v27 = vmul.f32 %v15984_v4, %v15984_v4  ;;  %v6990_v2 = vmul.f32 %v15715_v0, %v6926_v30  ;;  %v6607_v43 = vmul.f32 1.0614054, %v15781_v35  ;;  %v16030_v23 = vpop.eup %11721  ;;  %7919 = vadd.xlane.f32.xlu1 %v16017_v36  ;;  %v16035_v26 = vmul.f32 0.5, %v15940_v37  ;;  %v17690_v17 = vld [vmem:[#allocation17_spill] sm:$0xff] }
 0x5ce   : > { %17684 = vst [vmem:[#allocation47_spill] sm:$0xff] %v16020_v41  ;;  %17685 = vst [vmem:[#allocation48_spill] sm:$0xff] %v16024_v13  ;;  %7921 = vadd.xlane.f32.xlu0 %v16020_v41  ;;  %v7257_v58 = vmul.f32 %v7193_v19, %v6297_v45  ;;  %v8104_v20 = vmul.f32 %v16002_v32, %v16002_v32  ;;  %v7437_v29 = vmul.f32 %v15729_v40, %v7117_v61  ;;  %v7854_v19 = vpop.xlane.xlu0 %7853 }
 0x5cf   : > { %17686 = vst [vmem:[#allocation68_spill] sm:$0xff] %v16035_v26  ;;  %v7194_v54 = vsub.f32 0.0, %v6298_v57  ;;  %v7054_v7 = vadd.f32 0.2548296, %v6990_v2  ;;  %v6671_v21 = vadd.f32 -1.4531521, %v6607_v43  ;;  %v10578_v24 = vadd.f32 %v17688_v3, %v17687_v10  ;;  %v16042_v30 = vpop.eup %11723 }
 0x5d0   : > { %vm7566_vm7 = vcmp.ge.f32.partialorder %v17689_v14, 0.0  ;;  %11729 = vrcp.f32 %v6425_v44  ;;  %v16046_v37 = vsub.f32 %v17690_v17, %v7977_v11  ;;  %v7501_v45 = vsub.f32 1.0, %v7437_v29  ;;  %v17692_v17 = vld [vmem:[#allocation40_spill] sm:$0xff]  ;;  %v17693_v29 = vld [vmem:[#allocation41_spill] sm:$0xff] }
 0x5d1   : > { %v6299_v41 = vand.u32 2147483647, %v16024_v13  ;;  %v7118_v40 = vmul.f32 %v15715_v0, %v7054_v7  ;;  %v6108_v61 = vmul.f32 %v10577_v1, %v15785_v28  ;;  %v6735_v2 = vmul.f32 %v15781_v35, %v6671_v21  ;;  %v16053_v10 = vpop.eup %11725  ;;  %8167 = vadd.xlane.f32.xlu1 %v8103_v27 }
 0x5d2   : > { %17691 = vst [vmem:[#allocation65_spill] sm:$0xff] %v16046_v37  ;;  %v6608_v43 = vmul.f32 1.0614054, %v15804_v55  ;;  %v7371_v3 = vmul.f32 1.442695, %v7257_v58  ;;  %8169 = vadd.xlane.f32.xlu0 %v8104_v20  ;;  %v7629_v11 = vsub.f32 0.0, %v7501_v45  ;;  %v16057_v36 = vadd.f32 %v17693_v29, %v17692_v17 }
 0x5d3   : > { %v6362_v44 = vmul.f32 0.3275911, %v6298_v57  ;;  %v7258_v32 = vmul.f32 %v7194_v54, %v6298_v57  ;;  %v7978_v4 = vmul.f32 0.0078125, %v7854_v19  ;;  %v7438_v0 = vmul.f32 %v15737_v5, %v7118_v40 }
 0x5d4   : > { %v6799_v28 = vadd.f32 1.4214138, %v6735_v2  ;;  %v7693_v1 = vsel %vm7565_vm6, %v7501_v45, %v7629_v11  ;;  %v6363_v7 = vmul.f32 0.3275911, %v6299_v41  ;;  %v7195_v21 = vsub.f32 0.0, %v6299_v41  ;;  %v17695_v2 = vld [vmem:[#allocation20_spill] sm:$0xff] }
 0x5d5   : > { %v6672_v26 = vadd.f32 -1.4531521, %v6608_v43  ;;  %v7757_v58 = vadd.f32 1.0, %v7693_v1  ;;  %v7502_v27 = vsub.f32 1.0, %v7438_v0  ;;  %v16062_v13 = vmul.f32 0.70710677, %v6108_v61 }
 0x5d6   : > { %v6863_v20 = vmul.f32 %v15781_v35, %v6799_v28  ;;  %11731 = vpow2.f32 %v7371_v3  ;;  %v6426_v17 = vadd.f32 1.0, %v6362_v44  ;;  %v16066_v57 = vmul.f32 %v10578_v24, %v15795_v31  ;;  %v16069_v54 = vpop.eup %11727  ;;  %v7856_v44 = vpop.xlane.xlu1 %7855 }
 0x5d7   : > { %v6736_v5 = vmul.f32 %v15804_v55, %v6672_v26  ;;  %v7373_v53 = vmul.f32 1.442695, %v7258_v32  ;;  %v16072_v45 = vmul.f32 %v7757_v58, %v15654_v49  ;;  %v7630_v19 = vsub.f32 0.0, %v7502_v27 }
 0x5d8   : > { %v6927_v40 = vadd.f32 -0.28449672, %v6863_v20  ;;  %v16075_v43 = vsub.f32 %v17695_v2, %v7978_v4  ;;  %v6427_v11 = vadd.f32 1.0, %v6363_v7  ;;  %v8105_v3 = vmul.f32 %v16046_v37, %v16046_v37  ;;  %v17709_v37 = vld [vmem:[#allocation74_spill] sm:$0xff] }
 0x5d9   : > { %17694 = vst [vmem:[#allocation66_spill] sm:$0xff] %v16072_v45  ;;  %v6800_v31 = vadd.f32 1.4214138, %v6736_v5  ;;  %7923 = vadd.xlane.f32.xlu1 %v16072_v45  ;;  %v7694_v26 = vsel %vm7566_vm7, %v7502_v27, %v7630_v19  ;;  %v7259_v32 = vmul.f32 %v7195_v21, %v6299_v41  ;;  %v6300_v49 = vand.u32 2147483647, %v16062_v13  ;;  %v17697_v41 = vld [vmem:[#allocation49_spill] sm:$0xff]  ;;  %v7858_v5 = vpop.xlane.xlu0 %7857 }
 0x5da   : > { %17696 = vst [vmem:[#allocation69_spill] sm:$0xff] %v16075_v43  ;;  %v6991_v24 = vmul.f32 %v15781_v35, %v6927_v40  ;;  %v16084_v29 = vpop.eup %11729  ;;  %11733 = vrcp.f32 %v6426_v17  ;;  %v7758_v4 = vadd.f32 1.0, %v7694_v26  ;;  %v16087_v0 = vmul.f32 0.70710677, %v16066_v57 }
 0x5db   : > { %v6864_v28 = vmul.f32 %v15804_v55, %v6800_v31  ;;  %v16091_v1 = vmul.f32 0.5, %v15981_v33  ;;  %11735 = vpow2.f32 %v7373_v53  ;;  %v7979_v14 = vmul.f32 0.0078125, %v7856_v44  ;;  %v17699_v44 = vld [vmem:[#allocation21_spill] sm:$0xff] }
 0x5dc   : > { %v7055_v7 = vadd.f32 0.2548296, %v6991_v24  ;;  %vm7567_vm8 = vcmp.ge.f32.partialorder %v15625_v47, 0.0  ;;  %v16095_v21 = vmul.f32 %v7758_v4, %v17697_v41  ;;  %v16098_v58 = vmul.f32 0.5, %v16007_v22  ;;  %v17701_v4 = vld [vmem:[#allocation18_spill] sm:$0xff] }
 0x5dd   : > { %11737 = vrcp.f32 %v6427_v11  ;;  %v6928_v27 = vadd.f32 -0.28449672, %v6864_v28  ;;  %v7375_v20 = vmul.f32 1.442695, %v7259_v32  ;;  %8171 = vadd.xlane.f32.xlu1 %v8105_v3  ;;  %v7196_v17 = vsub.f32 0.0, %v6300_v49  ;;  %v17702_v28 = vld [vmem:[#allocation44_spill] sm:$0xff] }
 0x5de   : > { %17698 = vst [vmem:[#allocation17_spill] sm:$0xff] %v16095_v21  ;;  %v7119_v33 = vmul.f32 %v15781_v35, %v7055_v7  ;;  %v6609_v53 = vmul.f32 1.0614054, %v15857_v51  ;;  %7925 = vadd.xlane.f32.xlu0 %v16095_v21  ;;  %v16103_v19 = vmul.f32 0.5, %v6108_v61  ;;  %v8106_v40 = vmul.f32 %v16075_v43, %v16075_v43  ;;  %v17703_v41 = vld [vmem:[#allocation22_spill] sm:$0xff] }
 0x5df   : > { %v6301_v22 = vand.u32 2147483647, %v16087_v0  ;;  %v6992_v2 = vmul.f32 %v15804_v55, %v6928_v27  ;;  %v6364_v11 = vmul.f32 0.3275911, %v6300_v49  ;;  %v16110_v3 = vsub.f32 %v17699_v44, %v7979_v14 }
 0x5e0   : > { %v7439_v31 = vmul.f32 %v15821_v56, %v7119_v33  ;;  %v6673_v35 = vadd.f32 -1.4531521, %v6609_v53  ;;  %v16113_v26 = vpop.eup %11731  ;;  %v7980_v32 = vmul.f32 0.0078125, %v7858_v5  ;;  %v6110_v61 = vmul.f32 %v16057_v36, %v15823_v50  ;;  %v17704_v33 = vld [vmem:[#allocation45_spill] sm:$0xff]  ;;  %v17705_v53 = vld [vmem:[#allocation46_spill] sm:$0xff] }
 0x5e1   : > { %17700 = vst [vmem:[#allocation40_spill] sm:$0xff] %v16110_v3  ;;  %v7056_v24 = vadd.f32 0.2548296, %v6992_v2  ;;  %v10580_v7 = vadd.f32 %v17702_v28, %v17701_v4  ;;  %vm7568_vm9 = vcmp.ge.f32.partialorder %v17703_v41, 0.0  ;;  %v7260_v27 = vmul.f32 %v7196_v17, %v6300_v49  ;;  %v17706_v49 = vld [vmem:[#allocation23_spill] sm:$0xff] }
 0x5e2   : > { %v7503_v21 = vsub.f32 1.0, %v7439_v31  ;;  %v6737_v14 = vmul.f32 %v15857_v51, %v6673_v35  ;;  %v6610_v44 = vmul.f32 1.0614054, %v15892_v46  ;;  %11739 = vpow2.f32 %v7375_v20  ;;  %8173 = vadd.xlane.f32.xlu0 %v8106_v40 }
 0x5e3   : > { %v6365_v56 = vmul.f32 0.3275911, %v6301_v22  ;;  %v7120_v5 = vmul.f32 %v15804_v55, %v7056_v24  ;;  %v10581_v2 = vadd.f32 %v17705_v53, %v17704_v33  ;;  %v6428_v50 = vadd.f32 1.0, %v6364_v11  ;;  %v7860_v24 = vpop.xlane.xlu1 %7859 }
 0x5e4   : > { %v7631_v36 = vsub.f32 0.0, %v7503_v21  ;;  %v6801_v45 = vadd.f32 1.4214138, %v6737_v14  ;;  %v6674_v4 = vadd.f32 -1.4531521, %v6610_v44  ;;  %v16125_v28 = vpop.eup %11733  ;;  %v16128_v17 = vsub.f32 %v17706_v49, %v7980_v32 }
 0x5e5   : > { %v8107_v31 = vmul.f32 %v16110_v3, %v16110_v3  ;;  %v7440_v20 = vmul.f32 %v15841_v39, %v7120_v5  ;;  %v16133_v40 = vmul.f32 0.70710677, %v6110_v61  ;;  %v16135_v55 = vpop.eup %11735  ;;  %v7377_v35 = vmul.f32 1.442695, %v7260_v27  ;;  %v17708_v3 = vld [vmem:[#allocation80_spill] sm:$0xff] }
 0x5e6   : > { %17707 = vst [vmem:[#allocation41_spill] sm:$0xff] %v16128_v17  ;;  %v7695_v11 = vsel %vm7567_vm8, %v7503_v21, %v7631_v36  ;;  %v6865_v14 = vmul.f32 %v15857_v51, %v6801_v45  ;;  %v6738_v44 = vmul.f32 %v15892_v46, %v6674_v4  ;;  %v7197_v53 = vsub.f32 0.0, %v6301_v22 }
 0x5e7   : > { %v16141_v32 = vpop.eup %11737  ;;  %v7759_v33 = vadd.f32 1.0, %v7695_v11  ;;  %v7504_v49 = vsub.f32 1.0, %v7440_v20  ;;  %v16144_v39 = vmul.f32 %v10580_v7, %v17708_v3  ;;  %11741 = vrcp.f32 %v6428_v50 }
 0x5e8   : > { %v6429_v5 = vadd.f32 1.0, %v6365_v56  ;;  %v6929_v43 = vadd.f32 -0.28449672, %v6865_v14  ;;  %v6802_v27 = vadd.f32 1.4214138, %v6738_v44  ;;  %v7981_v36 = vmul.f32 0.0078125, %v7860_v24 }
 0x5e9   : > { %v16147_v47 = vmul.f32 %v7759_v33, %v17709_v37  ;;  %v7632_v21 = vsub.f32 0.0, %v7504_v49  ;;  %v6302_v45 = vand.u32 2147483647, %v16133_v40  ;;  %11743 = vpow2.f32 %v7377_v35  ;;  %v17713_v44 = vld [vmem:[#allocation75_spill] sm:$0xff]  ;;  %v17714_v33 = vld [vmem:[#allocation30_spill] sm:$0xff] }
 0x5ea   : > { %v16151_v4 = vmul.f32 0.5, %v16066_v57  ;;  %v6993_v20 = vmul.f32 %v15857_v51, %v6929_v43  ;;  %v6866_v3 = vmul.f32 %v15892_v46, %v6802_v27  ;;  %v7261_v7 = vmul.f32 %v7197_v53, %v6301_v22  ;;  %v7862_v57 = vpop.xlane.xlu0 %7861 }
 0x5eb   : > { %17710 = vst [vmem:[#allocation20_spill] sm:$0xff] %v16147_v47  ;;  %7927 = vadd.xlane.f32.xlu1 %v16147_v47  ;;  %v7696_v56 = vsel %vm7568_vm9, %v7504_v49, %v7632_v21  ;;  %v16159_v37 = vmul.f32 0.70710677, %v16144_v39  ;;  %v6611_v50 = vmul.f32 1.0614054, %v15921_v48  ;;  %v16162_v35 = vmul.f32 0.5, %v6110_v61 }
 0x5ec   : > { %17711 = vst [vmem:[#allocation49_spill] sm:$0xff] %v16151_v4  ;;  %v7760_v11 = vadd.f32 1.0, %v7696_v56  ;;  %v7057_v24 = vadd.f32 0.2548296, %v6993_v20  ;;  %v6930_v14 = vadd.f32 -0.28449672, %v6866_v3  ;;  %v16164_v43 = vpop.eup %11739  ;;  %11745 = vrcp.f32 %v6429_v5 }
 0x5ed   : > { %17712 = vst [vmem:[#allocation21_spill] sm:$0xff] %v16162_v35  ;;  %vm7569_vm10 = vcmp.ge.f32.partialorder %v17713_v44, 0.0  ;;  %v6366_v22 = vmul.f32 0.3275911, %v6302_v45  ;;  %v16168_v41 = vsub.f32 %v17714_v33, %v7981_v36  ;;  %v6675_v53 = vadd.f32 -1.4531521, %v6611_v50 }
 0x5ee   : > { %v17716_v49 = vld [vmem:[#allocation76_spill] sm:$0xff]  ;;  %v7198_v21 = vsub.f32 0.0, %v6302_v45  ;;  %v7121_v61 = vmul.f32 %v15857_v51, %v7057_v24  ;;  %v6994_v56 = vmul.f32 %v15892_v46, %v6930_v14  ;;  %v7379_v20 = vmul.f32 1.442695, %v7261_v7  ;;  %v17720_v24 = vld [vmem:[#allocation78_spill] sm:$0xff] }
 0x5ef   : > { %17715 = vst [vmem:[#allocation18_spill] sm:$0xff] %v16168_v41  ;;  %v16171_v27 = vmul.f32 %v7760_v11, %v17716_v49  ;;  %8175 = vadd.xlane.f32.xlu1 %v8107_v31  ;;  %v7982_v3 = vmul.f32 0.0078125, %v7862_v57  ;;  %v16176_v47 = vmul.f32 %v10581_v2, %v15855_v25  ;;  %v6739_v5 = vmul.f32 %v15921_v48, %v6675_v53  ;;  %v17718_v33 = vld [vmem:[#allocation52_spill] sm:$0xff] }
 0x5f0   : > { %v7441_v36 = vmul.f32 %v15903_v34, %v7121_v61  ;;  %v6303_v50 = vand.u32 2147483647, %v16159_v37  ;;  %v7058_v11 = vadd.f32 0.2548296, %v6994_v56  ;;  %v17719_v49 = vld [vmem:[#allocation72_spill] sm:$0xff]  ;;  %vm7570_vm11 = vcmp.ge.f32.partialorder %v17720_v24, 0.0 }
 0x5f1   : > { %17717 = vst [vmem:[#allocation44_spill] sm:$0xff] %v16171_v27  ;;  %7929 = vadd.xlane.f32.xlu0 %v16171_v27  ;;  %v10582_v51 = vadd.f32 %v17719_v49, %v17718_v33  ;;  %v6430_v7 = vadd.f32 1.0, %v6366_v22  ;;  %v8108_v31 = vmul.f32 %v16128_v17, %v16128_v17  ;;  %v6803_v25 = vadd.f32 1.4214138, %v6739_v5  ;;  %v16188_v57 = vpop.eup %11741  ;;  %v17721_v61 = vld [vmem:[#allocation50_spill] sm:$0xff]  ;;  %v17722_v56 = vld [vmem:[#allocation73_spill] sm:$0xff] }
 0x5f2   : > { %v6612_v2 = vmul.f32 1.0614054, %v15958_v9  ;;  %v7262_v14 = vmul.f32 %v7198_v21, %v6302_v45  ;;  %v7505_v53 = vsub.f32 1.0, %v7441_v36  ;;  %v7122_v34 = vmul.f32 %v15892_v46, %v7058_v11  ;;  %v17723_v33 = vld [vmem:[#allocation31_spill] sm:$0xff]  ;;  %v7864_v46 = vpop.xlane.xlu1 %7863 }
 0x5f3   : > { %v10583_v27 = vadd.f32 %v17722_v56, %v17721_v61  ;;  %11747 = vpow2.f32 %v7379_v20  ;;  %v16194_v49 = vsub.f32 %v17723_v33, %v7982_v3  ;;  %v6867_v22 = vmul.f32 %v15921_v48, %v6803_v25  ;;  %v16197_v17 = vpop.eup %11743 }
 0x5f4   : > { %v6676_v35 = vadd.f32 -1.4531521, %v6612_v2  ;;  %v7633_v5 = vsub.f32 0.0, %v7505_v53  ;;  %v7199_v4 = vsub.f32 0.0, %v6303_v50  ;;  %v7442_v45 = vmul.f32 %v15916_v16, %v7122_v34 }
 0x5f5   : > { %17724 = vst [vmem:[#allocation22_spill] sm:$0xff] %v16194_v49  ;;  %8177 = vadd.xlane.f32.xlu0 %v8108_v31  ;;  %v16201_v21 = vmul.f32 0.70710677, %v16176_v47  ;;  %11749 = vrcp.f32 %v6430_v7  ;;  %v6931_v36 = vadd.f32 -0.28449672, %v6867_v22  ;;  %v16204_v20 = vmul.f32 %v10582_v51, %v15859_v38  ;;  %v7866_v7 = vpop.xlane.xlu0 %7865  ;;  %v17726_v22 = vld [vmem:[#allocation59_spill] sm:$0xff] }
 0x5f6   : > { %v6740_v3 = vmul.f32 %v15958_v9, %v6676_v35  ;;  %v7381_v11 = vmul.f32 1.442695, %v7262_v14  ;;  %v7697_v25 = vsel %vm7569_vm10, %v7505_v53, %v7633_v5  ;;  %v8109_v31 = vmul.f32 %v16168_v41, %v16168_v41  ;;  %v16211_v16 = vpop.eup %11745 }
 0x5f7   : > { %17725 = vst [vmem:[#allocation45_spill] sm:$0xff] %v16201_v21  ;;  %v7506_v2 = vsub.f32 1.0, %v7442_v45  ;;  %v7761_v34 = vadd.f32 1.0, %v7697_v25  ;;  %v6367_v61 = vmul.f32 0.3275911, %v6303_v50  ;;  %v6995_v56 = vmul.f32 %v15921_v48, %v6931_v36  ;;  %v17728_v25 = vld [vmem:[#allocation51_spill] sm:$0xff] }
 0x5f8   : > { %v6804_v33 = vadd.f32 1.4214138, %v6740_v3  ;;  %v7263_v38 = vmul.f32 %v7199_v4, %v6303_v50  ;;  %v6304_v35 = vand.u32 2147483647, %v16201_v21  ;;  %v7983_v14 = vmul.f32 0.0078125, %v7864_v46 }
 0x5f9   : > { %v7634_v51 = vsub.f32 0.0, %v7506_v2  ;;  %v16216_v44 = vmul.f32 %v7761_v34, %v17726_v22  ;;  %v7059_v53 = vadd.f32 0.2548296, %v6995_v56  ;;  %v16219_v5 = vmul.f32 0.70710677, %v16204_v20 }
 0x5fa   : > { %v6868_v45 = vmul.f32 %v15958_v9, %v6804_v33  ;;  %vm7571_vm12 = vcmp.ge.f32.partialorder %v17728_v25, 0.0  ;;  %11751 = vpow2.f32 %v7381_v11  ;;  %v7984_v4 = vmul.f32 0.0078125, %v7866_v7  ;;  %v17730_v11 = vld [vmem:[#allocation9_spill] sm:$0xff] }
 0x5fb   : > { %17727 = vst [vmem:[#allocation46_spill] sm:$0xff] %v16216_v44  ;;  %v7698_v36 = vsel %vm7570_vm11, %v7506_v2, %v7634_v51  ;;  %v16226_v50 = vmul.f32 %v10583_v27, %v15886_v63  ;;  %7931 = vadd.xlane.f32.xlu1 %v16216_v44  ;;  %v6431_v46 = vadd.f32 1.0, %v6367_v61  ;;  %v7123_v34 = vmul.f32 %v15921_v48, %v7059_v53  ;;  %v17732_v2 = vld [vmem:[#allocation79_spill] sm:$0xff]  ;;  %v17740_v44 = vld [vmem:[#allocation54_spill] sm:$0xff] }
 0x5fc   : > { %v7762_v3 = vadd.f32 1.0, %v7698_v36  ;;  %v6932_v56 = vadd.f32 -0.28449672, %v6868_v45  ;;  %v16231_v22 = vmul.f32 0.5, %v16144_v39  ;;  %v7383_v33 = vmul.f32 1.442695, %v7263_v38 }
 0x5fd   : > { %17729 = vst [vmem:[#allocation23_spill] sm:$0xff] %v16226_v50  ;;  %v6368_v41 = vmul.f32 0.3275911, %v6304_v35  ;;  %v16234_v21 = vsub.f32 %v17730_v11, %v7983_v14  ;;  %v16236_v24 = vpop.eup %11747  ;;  %v7443_v27 = vmul.f32 %v15933_v52, %v7123_v34  ;;  %v6305_v61 = vand.u32 2147483647, %v16219_v5  ;;  %v17735_v38 = vld [vmem:[#allocation7_spill] sm:$0xff] }
 0x5fe   : > { %v16239_v63 = vmul.f32 %v7762_v3, %v17732_v2  ;;  %v6996_v48 = vmul.f32 %v15958_v9, %v6932_v56  ;;  %v16245_v7 = vmul.f32 0.5, %v16176_v47  ;;  %v7200_v39 = vsub.f32 0.0, %v6304_v35  ;;  %v17737_v3 = vld [vmem:[#allocation28_spill] sm:$0xff]  ;;  %v17738_v34 = vld [vmem:[#allocation33_spill] sm:$0xff] }
 0x5ff   : > { %17731 = vst [vmem:[#allocation80_spill] sm:$0xff] %v16234_v21  ;;  %v16248_v51 = vsub.f32 %v17735_v38, %v7984_v4  ;;  %v16251_v14 = vmul.f32 0.70710677, %v16226_v50  ;;  %v16253_v53 = vpop.eup %11749  ;;  %11753 = vrcp.f32 %v6431_v46  ;;  %8179 = vadd.xlane.f32.xlu1 %v8109_v31  ;;  %v7507_v52 = vsub.f32 1.0, %v7443_v27  ;;  %v17739_v56 = vld [vmem:[#allocation53_spill] sm:$0xff]  ;;  %v17741_v50 = vld [vmem:[#allocation32_spill] sm:$0xff] }
 0x600   : > { %17733 = vst [vmem:[#allocation74_spill] sm:$0xff] %v16239_v63  ;;  %17734 = vst [vmem:[#allocation75_spill] sm:$0xff] %v16245_v7  ;;  %7933 = vadd.xlane.f32.xlu0 %v16239_v63  ;;  %v7060_v45 = vadd.f32 0.2548296, %v6996_v48  ;;  %v6613_v36 = vmul.f32 1.0614054, %v15977_v6  ;;  %11755 = vpow2.f32 %v7383_v33  ;;  %v8110_v4 = vmul.f32 %v16194_v49, %v16194_v49 }
 0x601   : > { %17736 = vst [vmem:[#allocation30_spill] sm:$0xff] %v16248_v51  ;;  %vm7572_vm13 = vcmp.ge.f32.partialorder %v17737_v3, 0.0  ;;  %v6432_v47 = vadd.f32 1.0, %v6368_v41  ;;  %v10584_v11 = vadd.f32 %v17739_v56, %v17738_v34  ;;  %v7635_v2 = vsub.f32 0.0, %v7507_v52 }
 0x602   : > { %v7201_v38 = vsub.f32 0.0, %v6305_v61  ;;  %v7124_v31 = vmul.f32 %v15958_v9, %v7060_v45  ;;  %v6677_v46 = vadd.f32 -1.4531521, %v6613_v36  ;;  %v7264_v63 = vmul.f32 %v7200_v39, %v6304_v35 }
 0x603   : > { %v6306_v27 = vand.u32 2147483647, %v16251_v14  ;;  %v6614_v48 = vmul.f32 1.0614054, %v15989_v62  ;;  %v10585_v33 = vadd.f32 %v17741_v50, %v17740_v44  ;;  %v7699_v41 = vsel %vm7571_vm12, %v7507_v52, %v7635_v2  ;;  %v7868_v44 = vpop.xlane.xlu1 %7867 }
 0x604   : > { %8181 = vadd.xlane.f32.xlu0 %v8110_v4  ;;  %v6369_v49 = vmul.f32 0.3275911, %v6305_v61  ;;  %v7444_v34 = vmul.f32 %v15967_v42, %v7124_v31  ;;  %v6741_v56 = vmul.f32 %v15977_v6, %v6677_v46  ;;  %v16271_v7 = vpop.eup %11751  ;;  %11757 = vrcp.f32 %v6432_v47 }
 0x605   : > { %v7763_v9 = vadd.f32 1.0, %v7699_v41  ;;  %v8111_v35 = vmul.f32 %v16234_v21, %v16234_v21  ;;  %v6678_v39 = vadd.f32 -1.4531521, %v6614_v48  ;;  %v7265_v45 = vmul.f32 %v7201_v38, %v6305_v61  ;;  %v17758_v21 = vld [vmem:[#allocation8_spill] sm:$0xff] }
 0x606   : > { %v7508_v36 = vsub.f32 1.0, %v7444_v34  ;;  %v6805_v50 = vadd.f32 1.4214138, %v6741_v56  ;;  %v16276_v25 = vmul.f32 %v10584_v11, %v15894_v12  ;;  %v7385_v52 = vmul.f32 1.442695, %v7264_v63  ;;  %v7870_v12 = vpop.xlane.xlu0 %7869 }
 0x607   : > { %v16279_v42 = vmul.f32 %v7763_v9, %v15875_v18  ;;  %v6370_v4 = vmul.f32 0.3275911, %v6306_v27  ;;  %v6742_v2 = vmul.f32 %v15989_v62, %v6678_v39  ;;  %v6433_v47 = vadd.f32 1.0, %v6369_v49 }
 0x608   : > { %17742 = vst [vmem:[#allocation76_spill] sm:$0xff] %v16276_v25  ;;  %v7636_v31 = vsub.f32 0.0, %v7508_v36  ;;  %v7202_v46 = vsub.f32 0.0, %v6306_v27  ;;  %v6869_v41 = vmul.f32 %v15977_v6, %v6805_v50  ;;  %v16285_v61 = vmul.f32 0.5, %v16204_v20 }
 0x609   : > { %17743 = vst [vmem:[#allocation52_spill] sm:$0xff] %v16279_v42  ;;  %7935 = vadd.xlane.f32.xlu1 %v16279_v42  ;;  %v7985_v38 = vmul.f32 0.0078125, %v7868_v44  ;;  %v6806_v11 = vadd.f32 1.4214138, %v6742_v2  ;;  %v16288_v63 = vmul.f32 %v10585_v33, %v15918_v8  ;;  %v16290_v18 = vpop.eup %11753  ;;  %v7387_v48 = vmul.f32 1.442695, %v7265_v45 }
 0x60a   : > { %17744 = vst [vmem:[#allocation72_spill] sm:$0xff] %v16285_v61  ;;  %v7700_v49 = vsel %vm7572_vm13, %v7508_v36, %v7636_v31  ;;  %v6933_v34 = vadd.f32 -0.28449672, %v6869_v41  ;;  %v16295_v56 = vmul.f32 0.70710677, %v16276_v25  ;;  %v16297_v9 = vpop.eup %11755  ;;  %11759 = vpow2.f32 %v7385_v52  ;;  %v17748_v45 = vld [vmem:[#allocation10_spill] sm:$0xff] }
 0x60b   : > { %17745 = vst [vmem:[#allocation78_spill] sm:$0xff] %v16288_v63  ;;  %v7764_v20 = vadd.f32 1.0, %v7700_v49  ;;  %v6434_v39 = vadd.f32 1.0, %v6370_v4  ;;  %v6870_v44 = vmul.f32 %v15989_v62, %v6806_v11  ;;  %11761 = vrcp.f32 %v6433_v47  ;;  %v17752_v41 = vld [vmem:[#allocation81_spill] sm:$0xff] }
 0x60c   : > { %17746 = vst [vmem:[#allocation50_spill] sm:$0xff] %v16295_v56  ;;  %v7266_v8 = vmul.f32 %v7202_v46, %v6306_v27  ;;  %v7986_v33 = vmul.f32 0.0078125, %v7870_v12  ;;  %v6997_v50 = vmul.f32 %v15977_v6, %v6933_v34  ;;  %v16305_v36 = vsub.f32 %v17748_v45, %v7985_v38  ;;  %v17751_v46 = vld [vmem:[#allocation55_spill] sm:$0xff]  ;;  %v17753_v38 = vld [vmem:[#allocation82_spill] sm:$0xff]  ;;  %v7872_v45 = vpop.xlane.xlu1 %7871 }
 0x60d   : > { %8183 = vadd.xlane.f32.xlu1 %v8111_v35  ;;  %v16302_v3 = vmul.f32 %v7764_v20, %v15926_v60  ;;  %v6934_v2 = vadd.f32 -0.28449672, %v6870_v44  ;;  %v16308_v31 = vmul.f32 0.70710677, %v16288_v63  ;;  %11763 = vpow2.f32 %v7387_v48  ;;  %v17754_v48 = vld [vmem:[#allocation12_spill] sm:$0xff] }
 0x60e   : > { %17749 = vst [vmem:[#allocation31_spill] sm:$0xff] %v16305_v36  ;;  %v7061_v52 = vadd.f32 0.2548296, %v6997_v50  ;;  %v6307_v4 = vand.u32 2147483647, %v16295_v56  ;;  %v16312_v47 = vpop.eup %11757  ;;  %vm7573_vm14 = vcmp.ge.f32.partialorder %v17751_v46, 0.0  ;;  %11765 = vrcp.f32 %v6434_v39 }
 0x60f   : > { %17747 = vst [vmem:[#allocation73_spill] sm:$0xff] %v16302_v3  ;;  %17750 = vst [vmem:[#allocation59_spill] sm:$0xff] %v16308_v31  ;;  %v6615_v27 = vmul.f32 1.0614054, %v16030_v23  ;;  %7937 = vadd.xlane.f32.xlu0 %v16302_v3  ;;  %v8112_v60 = vmul.f32 %v16248_v51, %v16248_v51  ;;  %v6998_v35 = vmul.f32 %v15989_v62, %v6934_v2  ;;  %v7389_v11 = vmul.f32 1.442695, %v7266_v8 }
 0x610   : > { %v10586_v12 = vadd.f32 %v17753_v38, %v17752_v41  ;;  %v16322_v49 = vsub.f32 %v17754_v48, %v7986_v33  ;;  %v7125_v34 = vmul.f32 %v15977_v6, %v7061_v52  ;;  %v6308_v50 = vand.u32 2147483647, %v16308_v31  ;;  %v17757_v2 = vld [vmem:[#allocation56_spill] sm:$0xff]  ;;  %v17760_v48 = vld [vmem:[#allocation85_spill] sm:$0xff] }
 0x611   : > { %v6679_v20 = vadd.f32 -1.4531521, %v6615_v27  ;;  %v7062_v44 = vadd.f32 0.2548296, %v6998_v35  ;;  %v6616_v51 = vmul.f32 1.0614054, %v16053_v10  ;;  %v16337_v52 = vmul.f32 %v16305_v36, %v16305_v36 }
 0x612   : > { %17755 = vst [vmem:[#allocation51_spill] sm:$0xff] %v16322_v49  ;;  %v16327_v39 = vmul.f32 %v10586_v12, %v15923_v59  ;;  %vm7574_vm15 = vcmp.ge.f32.partialorder %v17757_v2, 0.0  ;;  %v7445_v41 = vmul.f32 %v17758_v21, %v7125_v34  ;;  %v7203_v8 = vsub.f32 0.0, %v6307_v4  ;;  %v17759_v38 = vld [vmem:[#allocation84_spill] sm:$0xff]  ;;  %v17763_v36 = vld [vmem:[#allocation13_spill] sm:$0xff] }
 0x613   : > { %v6743_v33 = vmul.f32 %v16030_v23, %v6679_v20  ;;  %v10587_v6 = vadd.f32 %v17760_v48, %v17759_v38  ;;  %8185 = vadd.xlane.f32.xlu0 %v8112_v60  ;;  %v7126_v59 = vmul.f32 %v15989_v62, %v7062_v44  ;;  %v6680_v35 = vadd.f32 -1.4531521, %v6616_v51  ;;  %v17762_v20 = vld [vmem:[#allocation38_spill] sm:$0xff]  ;;  %v7874_v60 = vpop.xlane.xlu0 %7873  ;;  %v17771_v2 = vld [vmem:[#allocation37_spill] sm:$0xff] }
 0x614   : > { %17756 = vst [vmem:[#allocation9_spill] sm:$0xff] %v16327_v39  ;;  %v16341_v27 = vmul.f32 0.70710677, %v16327_v39  ;;  %v7509_v12 = vsub.f32 1.0, %v7445_v41  ;;  %v6371_v3 = vmul.f32 0.3275911, %v6307_v4  ;;  %v16343_v42 = vpop.eup %11759  ;;  %v7267_v39 = vmul.f32 %v7203_v8, %v6307_v4 }
 0x615   : > { %v7987_v21 = vmul.f32 0.0078125, %v7872_v45  ;;  %v6807_v34 = vadd.f32 1.4214138, %v6743_v33  ;;  %v7446_v63 = vmul.f32 %v17762_v20, %v7126_v59  ;;  %v7204_v38 = vsub.f32 0.0, %v6308_v50  ;;  %v16350_v62 = vpop.eup %11761 }
 0x616   : > { %17761 = vst [vmem:[#allocation79_spill] sm:$0xff] %v16341_v27  ;;  %v6744_v48 = vmul.f32 %v16053_v10, %v6680_v35  ;;  %v16348_v31 = vmul.f32 %v10587_v6, %v17763_v36  ;;  %v7637_v44 = vsub.f32 0.0, %v7509_v12  ;;  %v6372_v51 = vmul.f32 0.3275911, %v6308_v50 }
 0x617   : > { %v6871_v41 = vmul.f32 %v16030_v23, %v6807_v34  ;;  %11767 = vpow2.f32 %v7389_v11  ;;  %v7510_v45 = vsub.f32 1.0, %v7446_v63  ;;  %v6309_v33 = vand.u32 2147483647, %v16341_v27  ;;  %v16354_v59 = vpop.eup %11763  ;;  %v17765_v11 = vld [vmem:[#allocation15_spill] sm:$0xff] }
 0x618   : > { %17764 = vst [vmem:[#allocation7_spill] sm:$0xff] %v16348_v31  ;;  %v6808_v25 = vadd.f32 1.4214138, %v6744_v48  ;;  %v7701_v35 = vsel %vm7573_vm14, %v7509_v12, %v7637_v44  ;;  %v6435_v20 = vadd.f32 1.0, %v6371_v3  ;;  %v7988_v36 = vmul.f32 0.0078125, %v7874_v60  ;;  %v16358_v56 = vpop.eup %11765  ;;  %v17767_v12 = vld [vmem:[#allocation58_spill] sm:$0xff] }
 0x619   : > { %v6935_v6 = vadd.f32 -0.28449672, %v6871_v41  ;;  %v7765_v61 = vadd.f32 1.0, %v7701_v35  ;;  %v7638_v4 = vsub.f32 0.0, %v7510_v45  ;;  %v7268_v8 = vmul.f32 %v7204_v38, %v6308_v50  ;;  %v17768_v38 = vld [vmem:[#allocation43_spill] sm:$0xff] }
 0x61a   : > { %v16361_v34 = vmul.f32 0.70710677, %v16348_v31  ;;  %v7391_v63 = vmul.f32 1.442695, %v7267_v39  ;;  %v16364_v27 = vsub.f32 %v17765_v11, %v7987_v21  ;;  %v6872_v46 = vmul.f32 %v16053_v10, %v6808_v25  ;;  %v17770_v21 = vld [vmem:[#allocation86_spill] sm:$0xff] }
 0x61b   : > { %v6999_v48 = vmul.f32 %v16030_v23, %v6935_v6  ;;  %v16369_v3 = vmul.f32 %v7765_v61, %v17767_v12  ;;  %v7702_v60 = vsel %vm7574_vm15, %v7510_v45, %v7638_v4  ;;  %v6436_v44 = vadd.f32 1.0, %v6372_v51  ;;  %v17772_v12 = vld [vmem:[#allocation35_spill] sm:$0xff] }
 0x61c   : > { %17766 = vst [vmem:[#allocation28_spill] sm:$0xff] %v16364_v27  ;;  %v7205_v41 = vsub.f32 0.0, %v6309_v33  ;;  %v7766_v50 = vadd.f32 1.0, %v7702_v60  ;;  %v16374_v35 = vsub.f32 %v17768_v38, %v7988_v36  ;;  %v6936_v31 = vadd.f32 -0.28449672, %v6872_v46  ;;  %v7876_v46 = vpop.xlane.xlu1 %7875 }
 0x61d   : > { %v7063_v39 = vadd.f32 0.2548296, %v6999_v48  ;;  %vm7575_vm0 = vcmp.ge.f32.partialorder %v17770_v21, 0.0  ;;  %7939 = vadd.xlane.f32.xlu1 %v16369_v3  ;;  %11769 = vrcp.f32 %v6435_v20  ;;  %v7393_v25 = vmul.f32 1.442695, %v7268_v8 }
 0x61e   : > { %17769 = vst [vmem:[#allocation33_spill] sm:$0xff] %v16374_v35  ;;  %v6373_v6 = vmul.f32 0.3275911, %v6309_v33  ;;  %v6310_v61 = vand.u32 2147483647, %v16361_v34  ;;  %11771 = vpow2.f32 %v7391_v63  ;;  %v16380_v45 = vmul.f32 %v7766_v50, %v17771_v2 }
 0x61f   : > { %v7127_v51 = vmul.f32 %v16030_v23, %v7063_v39  ;;  %v7000_v36 = vmul.f32 %v16053_v10, %v6936_v31  ;;  %11773 = vrcp.f32 %v6436_v44  ;;  %v8114_v4 = vmul.f32 %v16322_v49, %v16322_v49 }
 0x620   : > { %v7269_v11 = vmul.f32 %v7205_v41, %v6309_v33  ;;  %v6617_v48 = vmul.f32 1.0614054, %v16084_v29  ;;  %7941 = vadd.xlane.f32.xlu0 %v16380_v45  ;;  %v16391_v8 = vmul.f32 %v16364_v27, %v16364_v27  ;;  %v6618_v23 = vmul.f32 1.0614054, %v16125_v28 }
 0x621   : > { %v7447_v20 = vmul.f32 %v16042_v30, %v7127_v51  ;;  %v7064_v63 = vadd.f32 0.2548296, %v7000_v36  ;;  %v16394_v31 = vpop.eup %11767  ;;  %vm7576_vm1 = vcmp.ge.f32.partialorder %v17772_v12, 0.0  ;;  %8187 = vadd.xlane.f32.xlu1 %v16337_v52  ;;  %11775 = vpow2.f32 %v7393_v25 }
 0x622   : > { %v6437_v33 = vadd.f32 1.0, %v6373_v6  ;;  %v6374_v60 = vmul.f32 0.3275911, %v6310_v61  ;;  %v6681_v44 = vadd.f32 -1.4531521, %v6617_v48  ;;  %v7206_v2 = vsub.f32 0.0, %v6310_v61 }
 0x623   : > { %v7511_v41 = vsub.f32 1.0, %v7447_v20  ;;  %v7128_v30 = vmul.f32 %v16053_v10, %v7064_v63  ;;  %v6682_v50 = vadd.f32 -1.4531521, %v6618_v23  ;;  %v6619_v38 = vmul.f32 1.0614054, %v16141_v32 }
 0x624   : > { %v7395_v39 = vmul.f32 1.442695, %v7269_v11  ;;  %v7989_v51 = vmul.f32 0.0078125, %v7876_v46  ;;  %v6745_v36 = vmul.f32 %v16084_v29, %v6681_v44  ;;  %8189 = vadd.xlane.f32.xlu0 %v8114_v4  ;;  %11777 = vrcp.f32 %v6437_v33 }
 0x625   : > { %v7639_v27 = vsub.f32 0.0, %v7511_v41  ;;  %v7448_v49 = vmul.f32 %v16069_v54, %v7128_v30  ;;  %v6746_v52 = vmul.f32 %v16125_v28, %v6682_v50  ;;  %v6683_v25 = vadd.f32 -1.4531521, %v6619_v38  ;;  %v7878_v54 = vpop.xlane.xlu0 %7877 }
 0x626   : > { %v6438_v6 = vadd.f32 1.0, %v6374_v60  ;;  %v6809_v48 = vadd.f32 1.4214138, %v6745_v36  ;;  %v6620_v10 = vmul.f32 1.0614054, %v16188_v57  ;;  %11779 = vpow2.f32 %v7395_v39 }
 0x627   : > { %v7703_v20 = vsel %vm7575_vm0, %v7511_v41, %v7639_v27  ;;  %v7512_v11 = vsub.f32 1.0, %v7448_v49  ;;  %v6810_v63 = vadd.f32 1.4214138, %v6746_v52  ;;  %v6747_v46 = vmul.f32 %v16141_v32, %v6683_v25  ;;  %v16407_v23 = vpop.eup %11769  ;;  %v17773_v49 = vld [vmem:[#allocation88_spill] sm:$0xff] }
 0x628   : > { %v7767_v4 = vadd.f32 1.0, %v7703_v20  ;;  %v6873_v44 = vmul.f32 %v16084_v29, %v6809_v48  ;;  %v6684_v30 = vadd.f32 -1.4531521, %v6620_v10  ;;  %v16410_v33 = vpop.eup %11771  ;;  %v7270_v50 = vmul.f32 %v7206_v2, %v6310_v61 }
 0x629   : > { %v7640_v60 = vsub.f32 0.0, %v7512_v11  ;;  %v6874_v38 = vmul.f32 %v16125_v28, %v6810_v63  ;;  %v6811_v21 = vadd.f32 1.4214138, %v6747_v46  ;;  %v16413_v27 = vpop.eup %11773  ;;  %v6621_v39 = vmul.f32 1.0614054, %v16211_v16 }
 0x62a   : > { %v16416_v41 = vmul.f32 %v7767_v4, %v17773_v49  ;;  %v6937_v36 = vadd.f32 -0.28449672, %v6873_v44  ;;  %v6748_v52 = vmul.f32 %v16188_v57, %v6684_v30  ;;  %v7990_v48 = vmul.f32 0.0078125, %v7878_v54  ;;  %v17774_v44 = vld [vmem:[#allocation19_spill] sm:$0xff]  ;;  %v17776_v54 = vld [vmem:[#allocation64_spill] sm:$0xff] }
 0x62b   : > { %v7704_v25 = vsel %vm7576_vm1, %v7512_v11, %v7640_v60  ;;  %v6938_v10 = vadd.f32 -0.28449672, %v6874_v38  ;;  %v6875_v61 = vmul.f32 %v16141_v32, %v6811_v21  ;;  %v16423_v2 = vpop.eup %11775  ;;  %v6685_v4 = vadd.f32 -1.4531521, %v6621_v39 }
 0x62c   : > { %7943 = vadd.xlane.f32.xlu1 %v16416_v41  ;;  %v7768_v20 = vadd.f32 1.0, %v7704_v25  ;;  %v7001_v63 = vmul.f32 %v16084_v29, %v6937_v36  ;;  %v6812_v46 = vadd.f32 1.4214138, %v6748_v52  ;;  %11781 = vrcp.f32 %v6438_v6  ;;  %v17778_v25 = vld [vmem:[#allocation87_spill] sm:$0xff] }
 0x62d   : > { %v16428_v30 = vsub.f32 %v17774_v44, %v7989_v51  ;;  %v7002_v12 = vmul.f32 %v16125_v28, %v6938_v10  ;;  %v6939_v11 = vadd.f32 -0.28449672, %v6875_v61  ;;  %v6749_v49 = vmul.f32 %v16211_v16, %v6685_v4  ;;  %v17779_v10 = vld [vmem:[#allocation25_spill] sm:$0xff]  ;;  %v7880_v44 = vpop.xlane.xlu1 %7879 }
 0x62e   : > { %v16432_v60 = vmul.f32 %v7768_v20, %v17776_v54  ;;  %v7065_v38 = vadd.f32 0.2548296, %v7001_v63  ;;  %v6876_v21 = vmul.f32 %v16188_v57, %v6812_v46  ;;  %vm7577_vm2 = vcmp.ge.f32.partialorder %v17778_v25, 0.0  ;;  %v16441_v39 = vpop.eup %11777 }
 0x62f   : > { %17775 = vst [vmem:[#allocation53_spill] sm:$0xff] %v16428_v30  ;;  %v16437_v36 = vmul.f32 1.442695, %v7270_v50  ;;  %v7066_v52 = vadd.f32 0.2548296, %v7002_v12  ;;  %v7003_v6 = vmul.f32 %v16141_v32, %v6939_v11  ;;  %vm7578_vm3 = vcmp.ge.f32.partialorder %v15993_v15, 0.0 }
 0x630   : > { %17777 = vst [vmem:[#allocation54_spill] sm:$0xff] %v16432_v60  ;;  %v6622_v51 = vmul.f32 1.0614054, %v16253_v53  ;;  %8191 = vadd.xlane.f32.xlu1 %v16391_v8  ;;  %7945 = vadd.xlane.f32.xlu0 %v16432_v60  ;;  %v16447_v61 = vsub.f32 %v17779_v10, %v7990_v48  ;;  %v7129_v20 = vmul.f32 %v16084_v29, %v7065_v38  ;;  %v6940_v50 = vadd.f32 -0.28449672, %v6876_v21  ;;  %v16453_v54 = vpop.eup %11779  ;;  %v17780_v8 = vld [vmem:[#allocation48_spill] sm:$0xff] }
 0x631   : > { %v6813_v63 = vadd.f32 1.4214138, %v6749_v49  ;;  %v8116_v46 = vmul.f32 %v16374_v35, %v16374_v35  ;;  %v7130_v4 = vmul.f32 %v16125_v28, %v7066_v52  ;;  %v7067_v12 = vadd.f32 0.2548296, %v7003_v6  ;;  %v7882_v28 = vpop.xlane.xlu0 %7881 }
 0x632   : > { %v6686_v11 = vadd.f32 -1.4531521, %v6622_v51  ;;  %vm7579_vm4 = vcmp.ge.f32.partialorder %v17780_v8, 0.0  ;;  %v7449_v60 = vmul.f32 %v16113_v26, %v7129_v20  ;;  %v16459_v48 = vmul.f32 %v16428_v30, %v16428_v30 }
 0x633   : > { %v7004_v29 = vmul.f32 %v16188_v57, %v6940_v50  ;;  %v6877_v38 = vmul.f32 %v16211_v16, %v6813_v63  ;;  %v7450_v21 = vmul.f32 %v16135_v55, %v7130_v4  ;;  %v7131_v49 = vmul.f32 %v16141_v32, %v7067_v12 }
 0x634   : > { %v6750_v52 = vmul.f32 %v16253_v53, %v6686_v11  ;;  %v6623_v6 = vmul.f32 1.0614054, %v16290_v18  ;;  %v7513_v51 = vsub.f32 1.0, %v7449_v60  ;;  %8193 = vadd.xlane.f32.xlu0 %v8116_v46  ;;  %v7991_v26 = vmul.f32 0.0078125, %v7880_v44 }
 0x635   : > { %v7068_v10 = vadd.f32 0.2548296, %v7004_v29  ;;  %v6941_v20 = vadd.f32 -0.28449672, %v6877_v38  ;;  %vm7580_vm5 = vcmp.ge.f32.partialorder %v16062_v13, 0.0  ;;  %v7514_v30 = vsub.f32 1.0, %v7450_v21 }
 0x636   : > { %v7451_v50 = vmul.f32 %v16164_v43, %v7131_v49  ;;  %v6814_v63 = vadd.f32 1.4214138, %v6750_v52  ;;  %v6687_v35 = vadd.f32 -1.4531521, %v6623_v6  ;;  %v7641_v55 = vsub.f32 0.0, %v7513_v51  ;;  %v16471_v11 = vpop.eup %11781 }
 0x637   : > { %v7992_v4 = vmul.f32 0.0078125, %v7882_v28  ;;  %v7132_v32 = vmul.f32 %v16188_v57, %v7068_v10  ;;  %v7005_v12 = vmul.f32 %v16211_v16, %v6941_v20  ;;  %v7642_v60 = vsub.f32 0.0, %v7514_v30 }
 0x638   : > { %v7515_v46 = vsub.f32 1.0, %v7451_v50  ;;  %v6878_v44 = vmul.f32 %v16253_v53, %v6814_v63  ;;  %v6751_v29 = vmul.f32 %v16290_v18, %v6687_v35  ;;  %v7705_v38 = vsel %vm7577_vm2, %v7513_v51, %v7641_v55  ;;  %v7884_v50 = vpop.xlane.xlu1 %7883  ;;  %v7886_v35 = vpop.xlane.xlu0 %7885  ;;  %v17781_v63 = vld [vmem:[#allocation68_spill] sm:$0xff] }
 0x639   : > { %v7452_v43 = vmul.f32 %v16197_v17, %v7132_v32  ;;  %v7069_v21 = vadd.f32 0.2548296, %v7005_v12  ;;  %v6624_v28 = vmul.f32 1.0614054, %v16312_v47  ;;  %vm7581_vm6 = vcmp.ge.f32.partialorder %v16087_v0, 0.0 }
 0x63a   : > { %v7769_v57 = vadd.f32 1.0, %v7705_v38  ;;  %v7706_v49 = vsel %vm7578_vm3, %v7514_v30, %v7642_v60  ;;  %v7643_v52 = vsub.f32 0.0, %v7515_v46  ;;  %v6942_v6 = vadd.f32 -0.28449672, %v6878_v44  ;;  %v17782_v30 = vld [vmem:[#allocation26_spill] sm:$0xff] }
 0x63b   : > { %v7770_v10 = vadd.f32 1.0, %v7706_v49  ;;  %v7516_v20 = vsub.f32 1.0, %v7452_v43  ;;  %v7133_v25 = vmul.f32 %v16211_v16, %v7069_v21  ;;  %v6815_v51 = vadd.f32 1.4214138, %v6751_v29 }
 0x63c   : > { %v16484_v17 = vmul.f32 %v7769_v57, %v17781_v63  ;;  %v7707_v55 = vsel %vm7579_vm4, %v7515_v46, %v7643_v52  ;;  %v7006_v32 = vmul.f32 %v16253_v53, %v6942_v6  ;;  %v6688_v12 = vadd.f32 -1.4531521, %v6624_v28  ;;  %v7888_v28 = vpop.xlane.xlu1 %7887  ;;  %v7890_v57 = vpop.xlane.xlu0 %7889 }
 0x63d   : > { %v16490_v15 = vmul.f32 %v7770_v10, %v16091_v1  ;;  %v16493_v60 = vsub.f32 %v17782_v30, %v7991_v26  ;;  %v7644_v44 = vsub.f32 0.0, %v7516_v20  ;;  %v7453_v38 = vmul.f32 %v16236_v24, %v7133_v25  ;;  %v17783_v1 = vld [vmem:[#allocation27_spill] sm:$0xff] }
 0x63e   : > { %7947 = vadd.xlane.f32.xlu1 %v16484_v17  ;;  %v7771_v16 = vadd.f32 1.0, %v7707_v55  ;;  %v7070_v29 = vadd.f32 0.2548296, %v7006_v32  ;;  %v6879_v43 = vmul.f32 %v16290_v18, %v6815_v51  ;;  %v6752_v8 = vmul.f32 %v16312_v47, %v6688_v12  ;;  %v17784_v55 = vld [vmem:[#allocation57_spill] sm:$0xff] }
 0x63f   : > { %vm7582_vm7 = vcmp.ge.f32.partialorder %v16133_v40, 0.0  ;;  %7949 = vadd.xlane.f32.xlu0 %v16490_v15  ;;  %v16502_v46 = vsub.f32 %v17783_v1, %v7992_v4  ;;  %v7708_v26 = vsel %vm7580_vm5, %v7516_v20, %v7644_v44  ;;  %v7993_v21 = vmul.f32 0.0078125, %v7884_v50 }
 0x640   : > { %v7517_v24 = vsub.f32 1.0, %v7453_v38  ;;  %v7994_v49 = vmul.f32 0.0078125, %v7886_v35  ;;  %v7134_v52 = vmul.f32 %v16253_v53, %v7070_v29  ;;  %v6943_v6 = vadd.f32 -0.28449672, %v6879_v43 }
 0x641   : > { %v6816_v10 = vadd.f32 1.4214138, %v6752_v8  ;;  %v8118_v25 = vmul.f32 %v16447_v61, %v16447_v61  ;;  %v7772_v51 = vadd.f32 1.0, %v7708_v26  ;;  %v6625_v4 = vmul.f32 1.0614054, %v16350_v62 }
 0x642   : > { %v7645_v63 = vsub.f32 0.0, %v7517_v24  ;;  %8195 = vadd.xlane.f32.xlu1 %v16459_v48  ;;  %v16512_v13 = vmul.f32 %v7771_v16, %v16098_v58  ;;  %v7454_v20 = vmul.f32 %v16271_v7, %v7134_v52  ;;  %v7007_v50 = vmul.f32 %v16290_v18, %v6943_v6  ;;  %v16524_v48 = vpop.xlane.xlu1 %7891  ;;  %v16526_v58 = vpop.xlane.xlu0 %7893  ;;  %v17785_v7 = vld [vmem:[#allocation34_spill] sm:$0xff] }
 0x643   : > { %v6880_v53 = vmul.f32 %v16312_v47, %v6816_v10  ;;  %8197 = vadd.xlane.f32.xlu0 %v8118_v25  ;;  %v8119_v35 = vmul.f32 %v16493_v60, %v16493_v60  ;;  %v16520_v32 = vsub.f32 %v17784_v55, %v7993_v21  ;;  %v6689_v30 = vadd.f32 -1.4531521, %v6625_v4 }
 0x644   : > { %v7709_v12 = vsel %vm7581_vm6, %v7517_v24, %v7645_v63  ;;  %v16529_v44 = vsub.f32 %v17785_v7, %v7994_v49  ;;  %v7518_v38 = vsub.f32 1.0, %v7454_v20  ;;  %v7071_v16 = vadd.f32 0.2548296, %v7007_v50  ;;  %v17786_v50 = vld [vmem:[#allocation45_spill] sm:$0xff] }
 0x645   : > { %v6944_v29 = vadd.f32 -0.28449672, %v6880_v53  ;;  %vm7583_vm8 = vcmp.ge.f32.partialorder %v16159_v37, 0.0  ;;  %v16533_v43 = vmul.f32 %v7772_v51, %v16103_v19  ;;  %v7773_v8 = vadd.f32 1.0, %v7709_v12  ;;  %v17787_v53 = vld [vmem:[#allocation49_spill] sm:$0xff] }
 0x646   : > { %v6753_v0 = vmul.f32 %v16350_v62, %v6689_v30  ;;  %v6626_v1 = vmul.f32 1.0614054, %v16358_v56  ;;  %7951 = vadd.xlane.f32.xlu1 %v16512_v13  ;;  %v8120_v26 = vmul.f32 %v16502_v46, %v16502_v46  ;;  %v7646_v21 = vsub.f32 0.0, %v7518_v38  ;;  %v16543_v25 = vpop.xlane.xlu1 %7895  ;;  %v16545_v51 = vpop.xlane.xlu0 %7897 }
 0x647   : > { %v7135_v24 = vmul.f32 %v16290_v18, %v7071_v16  ;;  %v7008_v49 = vmul.f32 %v16312_v47, %v6944_v29  ;;  %7953 = vadd.xlane.f32.xlu0 %v16533_v43  ;;  %v7995_v52 = vmul.f32 0.0078125, %v7888_v28  ;;  %v7996_v19 = vmul.f32 0.0078125, %v7890_v57  ;;  %v17788_v16 = vld [vmem:[#allocation36_spill] sm:$0xff] }
 0x648   : > { %v6817_v6 = vadd.f32 1.4214138, %v6753_v0  ;;  %v6690_v10 = vadd.f32 -1.4531521, %v6626_v1  ;;  %v7710_v63 = vsel %vm7582_vm7, %v7518_v38, %v7646_v21  ;;  %v6627_v18 = vmul.f32 1.0614054, %v16407_v23 }
 0x649   : > { %v7455_v4 = vmul.f32 %v16297_v9, %v7135_v24  ;;  %v7072_v20 = vadd.f32 0.2548296, %v7008_v49  ;;  %vm7584_vm9 = vcmp.ge.f32.partialorder %v17786_v50, 0.0  ;;  %v16553_v55 = vmul.f32 %v7773_v8, %v17787_v53 }
 0x64a   : > { %v7774_v28 = vadd.f32 1.0, %v7710_v63  ;;  %v6881_v57 = vmul.f32 %v16350_v62, %v6817_v6  ;;  %v6754_v12 = vmul.f32 %v16358_v56, %v6690_v10  ;;  %8199 = vadd.xlane.f32.xlu1 %v8119_v35  ;;  %v6691_v7 = vadd.f32 -1.4531521, %v6627_v18  ;;  %v16564_v1 = vpop.xlane.xlu1 %7899  ;;  %v16566_v21 = vpop.xlane.xlu0 %7901  ;;  %v17789_v6 = vld [vmem:[#allocation21_spill] sm:$0xff]  ;;  %v17790_v10 = vld [vmem:[#allocation60_spill] sm:$0xff] }
 0x64b   : > { %v7519_v30 = vsub.f32 1.0, %v7455_v4  ;;  %v7136_v40 = vmul.f32 %v16312_v47, %v7072_v20  ;;  %v6628_v9 = vmul.f32 1.0614054, %v16413_v27  ;;  %8201 = vadd.xlane.f32.xlu0 %v8120_v26  ;;  %v8121_v38 = vmul.f32 %v16520_v32, %v16520_v32 }
 0x64c   : > { %v16562_v29 = vsub.f32 %v17788_v16, %v7995_v52  ;;  %v6945_v8 = vadd.f32 -0.28449672, %v6881_v57  ;;  %v6818_v0 = vadd.f32 1.4214138, %v6754_v12  ;;  %v6755_v47 = vmul.f32 %v16407_v23, %v6691_v7 }
 0x64d   : > { %v7647_v35 = vsub.f32 0.0, %v7519_v30  ;;  %v7456_v24 = vmul.f32 %v16343_v42, %v7136_v40  ;;  %v6692_v49 = vadd.f32 -1.4531521, %v6628_v9  ;;  %v16571_v26 = vmul.f32 %v7774_v28, %v17789_v6 }
 0x64e   : > { %v16574_v63 = vsub.f32 %v17790_v10, %v7996_v19  ;;  %v7009_v52 = vmul.f32 %v16350_v62, %v6945_v8  ;;  %v6882_v4 = vmul.f32 %v16358_v56, %v6818_v0  ;;  %7955 = vadd.xlane.f32.xlu1 %v16553_v55  ;;  %v6819_v42 = vadd.f32 1.4214138, %v6755_v47  ;;  %v16585_v40 = vpop.xlane.xlu1 %7903  ;;  %v16587_v7 = vpop.xlane.xlu0 %7905 }
 0x64f   : > { %v7711_v20 = vsel %vm7583_vm8, %v7519_v30, %v7647_v35  ;;  %v7520_v18 = vsub.f32 1.0, %v7456_v24  ;;  %v6756_v53 = vmul.f32 %v16413_v27, %v6692_v49  ;;  %7957 = vadd.xlane.f32.xlu0 %v16571_v26  ;;  %v8122_v19 = vmul.f32 %v16529_v44, %v16529_v44 }
 0x650   : > { %v7775_v28 = vadd.f32 1.0, %v7711_v20  ;;  %v7073_v57 = vadd.f32 0.2548296, %v7009_v52  ;;  %v6946_v12 = vadd.f32 -0.28449672, %v6882_v4  ;;  %vm7585_vm10 = vcmp.ge.f32.partialorder %v16219_v5, 0.0 }
 0x651   : > { %v7648_v37 = vsub.f32 0.0, %v7520_v18  ;;  %v6883_v30 = vmul.f32 %v16407_v23, %v6819_v42  ;;  %v6820_v9 = vadd.f32 1.4214138, %v6756_v53  ;;  %v6629_v16 = vmul.f32 1.0614054, %v16441_v39 }
 0x652   : > { %v16593_v8 = vmul.f32 %v7775_v28, %v16231_v22  ;;  %v7137_v0 = vmul.f32 %v16350_v62, %v7073_v57  ;;  %v7010_v35 = vmul.f32 %v16358_v56, %v6946_v12  ;;  %v6630_v24 = vmul.f32 1.0614054, %v16471_v11  ;;  %8203 = vadd.xlane.f32.xlu1 %v8121_v38  ;;  %v16602_v42 = vpop.xlane.xlu1 %7907  ;;  %v16604_v62 = vpop.xlane.xlu0 %7909  ;;  %v17791_v28 = vld [vmem:[#allocation75_spill] sm:$0xff] }
 0x653   : > { %v7712_v47 = vsel %vm7584_vm9, %v7520_v18, %v7648_v37  ;;  %v6947_v49 = vadd.f32 -0.28449672, %v6883_v30  ;;  %v6884_v6 = vmul.f32 %v16413_v27, %v6820_v9  ;;  %v6693_v10 = vadd.f32 -1.4531521, %v6629_v16  ;;  %8205 = vadd.xlane.f32.xlu0 %v8122_v19 }
 0x654   : > { %v7776_v52 = vadd.f32 1.0, %v7712_v47  ;;  %v7457_v4 = vmul.f32 %v16354_v59, %v7137_v0  ;;  %v7074_v22 = vadd.f32 0.2548296, %v7010_v35  ;;  %v6694_v20 = vadd.f32 -1.4531521, %v6630_v24  ;;  %v17792_v47 = vld [vmem:[#allocation62_spill] sm:$0xff] }
 0x655   : > { %v7997_v53 = vmul.f32 0.0078125, %v16524_v48  ;;  %v7011_v38 = vmul.f32 %v16407_v23, %v6947_v49  ;;  %v6948_v50 = vadd.f32 -0.28449672, %v6884_v6  ;;  %v6757_v18 = vmul.f32 %v16441_v39, %v6693_v10 }
 0x656   : > { %v16610_v57 = vmul.f32 %v7776_v52, %v17791_v28  ;;  %v7521_v19 = vsub.f32 1.0, %v7457_v4  ;;  %v7138_v12 = vmul.f32 %v16358_v56, %v7074_v22  ;;  %v6758_v59 = vmul.f32 %v16471_v11, %v6694_v20  ;;  %7959 = vadd.xlane.f32.xlu1 %v16593_v8  ;;  %v16621_v56 = vpop.xlane.xlu1 %7911  ;;  %v16623_v24 = vpop.xlane.xlu0 %7913 }
 0x657   : > { %v8123_v37 = vmul.f32 %v16562_v29, %v16562_v29  ;;  %v7075_v30 = vadd.f32 0.2548296, %v7011_v38  ;;  %v7012_v48 = vmul.f32 %v16413_v27, %v6948_v50  ;;  %v6821_v9 = vadd.f32 1.4214138, %v6757_v18 }
 0x658   : > { %11783 = vpow2.f32 %v16437_v36  ;;  %7961 = vadd.xlane.f32.xlu0 %v16610_v57  ;;  %v7649_v16 = vsub.f32 0.0, %v7521_v19  ;;  %v7458_v0 = vmul.f32 %v16394_v31, %v7138_v12  ;;  %v6822_v35 = vadd.f32 1.4214138, %v6758_v59  ;;  %v17793_v12 = vld [vmem:[#allocation72_spill] sm:$0xff] }
 0x659   : > { %v16626_v49 = vsub.f32 %v17792_v47, %v7997_v53  ;;  %v7139_v6 = vmul.f32 %v16407_v23, %v7075_v30  ;;  %v7076_v10 = vadd.f32 0.2548296, %v7012_v48  ;;  %v6885_v52 = vmul.f32 %v16441_v39, %v6821_v9  ;;  %v17794_v30 = vld [vmem:[#allocation23_spill] sm:$0xff] }
 0x65a   : > { %v7713_v36 = vsel %vm7585_vm10, %v7521_v19, %v7649_v16  ;;  %v8124_v4 = vmul.f32 %v16574_v63, %v16574_v63  ;;  %v7522_v31 = vsub.f32 1.0, %v7458_v0  ;;  %v6886_v22 = vmul.f32 %v16471_v11, %v6822_v35  ;;  %8207 = vadd.xlane.f32.xlu1 %v8123_v37  ;;  %v16639_v28 = vpop.xlane.xlu1 %7915  ;;  %v16641_v19 = vpop.xlane.xlu0 %7917 }
 0x65b   : > { %v7777_v20 = vadd.f32 1.0, %v7713_v36  ;;  %v7459_v38 = vmul.f32 %v16410_v33, %v7139_v6  ;;  %v7140_v53 = vmul.f32 %v16413_v27, %v7076_v10  ;;  %v6949_v50 = vadd.f32 -0.28449672, %v6885_v52  ;;  %v17795_v6 = vld [vmem:[#allocation50_spill] sm:$0xff]  ;;  %v17796_v10 = vld [vmem:[#allocation63_spill] sm:$0xff] }
 0x65c   : > { %vm7586_vm11 = vcmp.ge.f32.partialorder %v16251_v14, 0.0  ;;  %v7998_v23 = vmul.f32 0.0078125, %v16526_v58  ;;  %8209 = vadd.xlane.f32.xlu0 %v8124_v4  ;;  %v7650_v5 = vsub.f32 0.0, %v7522_v31  ;;  %v6950_v18 = vadd.f32 -0.28449672, %v6886_v22 }
 0x65d   : > { %v16644_v59 = vmul.f32 %v7777_v20, %v17793_v12  ;;  %v7523_v37 = vsub.f32 1.0, %v7459_v38  ;;  %v7460_v33 = vmul.f32 %v16423_v2, %v7140_v53  ;;  %v7013_v27 = vmul.f32 %v16441_v39, %v6949_v50  ;;  %v17797_v50 = vld [vmem:[#allocation76_spill] sm:$0xff] }
 0x65e   : > { %v6178_v48 = vmul.f32 0.5, %v17794_v30  ;;  %v8125_v14 = vmul.f32 %v16626_v49, %v16626_v49  ;;  %v7714_v58 = vsel %vm7586_vm11, %v7522_v31, %v7650_v5  ;;  %v7014_v9 = vmul.f32 %v16471_v11, %v6950_v18  ;;  %v16657_v36 = vpop.xlane.xlu1 %7919  ;;  %v16659_v4 = vpop.xlane.xlu0 %7921  ;;  %v17798_v18 = vld [vmem:[#allocation59_spill] sm:$0xff] }
 0x65f   : > { %7963 = vadd.xlane.f32.xlu1 %v16644_v59  ;;  %v7778_v16 = vadd.f32 1.0, %v7714_v58  ;;  %v7651_v0 = vsub.f32 0.0, %v7523_v37  ;;  %v7524_v35 = vsub.f32 1.0, %v7460_v33  ;;  %v7077_v47 = vadd.f32 0.2548296, %v7013_v27 }
 0x660   : > { %vm7587_vm12 = vcmp.ge.f32.partialorder %v17795_v6, 0.0  ;;  %v16655_v2 = vsub.f32 %v17796_v10, %v7998_v23  ;;  %v7078_v52 = vadd.f32 0.2548296, %v7014_v9  ;;  %v6179_v5 = vmul.f32 0.5, %v17797_v50 }
 0x661   : > { %v16661_v22 = vmul.f32 %v7778_v16, %v6178_v48  ;;  %v7715_v31 = vsel %vm7587_vm12, %v7523_v37, %v7651_v0  ;;  %v7652_v20 = vsub.f32 0.0, %v7524_v35  ;;  %v7141_v38 = vmul.f32 %v16441_v39, %v7077_v47  ;;  %v17799_v47 = vld [vmem:[#allocation78_spill] sm:$0xff] }
 0x662   : > { %v11784_v53 = vpop.eup %11783  ;;  %vm7588_vm13 = vcmp.ge.f32.partialorder %v17798_v18, 0.0  ;;  %v7779_v12 = vadd.f32 1.0, %v7715_v31  ;;  %v7142_v23 = vmul.f32 %v16471_v11, %v7078_v52  ;;  %v8126_v39 = vmul.f32 %v16655_v2, %v16655_v2  ;;  %v8168_v9 = vpop.xlane.xlu1 %8167  ;;  %v17800_v11 = vld [vmem:[#allocation79_spill] sm:$0xff] }
 0x663   : > { %8211 = vadd.xlane.f32.xlu1 %v8125_v14  ;;  %7965 = vadd.xlane.f32.xlu0 %v16661_v22  ;;  %v7716_v33 = vsel %vm7588_vm13, %v7524_v35, %v7652_v20  ;;  %v7461_v27 = vmul.f32 %v16453_v54, %v7141_v38  ;;  %v8170_v0 = vpop.xlane.xlu0 %8169  ;;  %v6180_v6 = vmul.f32 0.5, %v17799_v47  ;;  %vm7589_vm14 = vcmp.ge.f32.partialorder %v17800_v11, 0.0  ;;  %v17805_v11 = vld [vmem:[#allocation70_spill] sm:$0xff] }
 0x664   : > { %v16669_v30 = vmul.f32 %v7779_v12, %v6179_v5  ;;  %v7462_v37 = vmul.f32 %v11784_v53, %v7142_v23  ;;  %v7780_v48 = vadd.f32 1.0, %v7716_v33  ;;  %vm7590_vm15 = vcmp.ge.f32.partialorder %v16361_v34, 0.0  ;;  %v17801_v53 = vld [vmem:[#allocation9_spill] sm:$0xff]  ;;  %v17802_v12 = vld [vmem:[#allocation7_spill] sm:$0xff] }
 0x665   : > { %v7525_v58 = vsub.f32 1.0, %v7461_v27  ;;  %v7999_v54 = vmul.f32 0.0078125, %v16543_v25  ;;  %v8000_v35 = vmul.f32 0.0078125, %v16545_v51  ;;  %v8295_v20 = vmul.f32 0.0078125, %v8168_v9  ;;  %v17803_v51 = vld [vmem:[#allocation42_spill] sm:$0xff] }
 0x666   : > { %v7526_v16 = vsub.f32 1.0, %v7462_v37  ;;  %v16679_v52 = vmul.f32 %v7780_v48, %v6180_v6  ;;  %v8296_v38 = vmul.f32 0.0078125, %v8170_v0  ;;  %v6181_v50 = vmul.f32 0.5, %v17801_v53  ;;  %v16684_v25 = vpop.xlane.xlu1 %7923 }
 0x667   : > { %7967 = vadd.xlane.f32.xlu1 %v16669_v30  ;;  %8213 = vadd.xlane.f32.xlu0 %v8126_v39  ;;  %v7653_v14 = vsub.f32 0.0, %v7525_v58  ;;  %v6182_v23 = vmul.f32 0.5, %v17802_v12  ;;  %v8359_v34 = vadd.f32 1e-05, %v8295_v20  ;;  %v16687_v37 = vsub.f32 %v17803_v51, %v7999_v54 }
 0x668   : > { %v7654_v10 = vsub.f32 0.0, %v7526_v16  ;;  %v8360_v27 = vadd.f32 1e-05, %v8296_v38  ;;  %v8001_v39 = vmul.f32 0.0078125, %v16564_v1  ;;  %v8003_v47 = vmul.f32 0.0078125, %v16585_v40 }
 0x669   : > { %v7717_v31 = vsel %vm7589_vm14, %v7525_v58, %v7653_v14  ;;  %v17804_v58 = vld [vmem:[#allocation16_spill] sm:$0xff]  ;;  %11785 = vrsqrt.f32 %v8359_v34  ;;  %v8004_v6 = vmul.f32 0.0078125, %v16587_v7  ;;  %v8127_v54 = vmul.f32 %v16687_v37, %v16687_v37  ;;  %v17807_v7 = vld [vmem:[#allocation29_spill] sm:$0xff] }
 0x66a   : > { %v7781_v5 = vadd.f32 1.0, %v7717_v31  ;;  %v7718_v18 = vsel %vm7590_vm15, %v7526_v16, %v7654_v10  ;;  %v16693_v9 = vsub.f32 %v17804_v58, %v8000_v35  ;;  %v8002_v16 = vmul.f32 0.0078125, %v16566_v21  ;;  %v8172_v1 = vpop.xlane.xlu1 %8171  ;;  %v17806_v10 = vld [vmem:[#allocation71_spill] sm:$0xff] }
 0x66b   : > { %7969 = vadd.xlane.f32.xlu0 %v16679_v52  ;;  %v7782_v33 = vadd.f32 1.0, %v7718_v18  ;;  %11787 = vrsqrt.f32 %v8360_v27  ;;  %v16703_v14 = vsub.f32 %v17805_v11, %v8001_v39  ;;  %v16707_v21 = vpop.xlane.xlu0 %7925  ;;  %v8297_v35 = vmul.f32 0.0078125, %v8172_v1  ;;  %v16742_v1 = vld [vmem:[%s17243_s2] ss:$0 sm:$0xff] }
 0x66c   : > { %v16690_v48 = vmul.f32 %v7781_v5, %v6181_v50  ;;  %v16710_v31 = vsub.f32 %v17806_v10, %v8002_v16  ;;  %v8128_v40 = vmul.f32 %v16693_v9, %v16693_v9  ;;  %v8005_v20 = vmul.f32 0.0078125, %v16602_v42  ;;  %v17808_v50 = vld [vmem:[#allocation77_spill] sm:$0xff]  ;;  %v17810_v16 = vld [vmem:[#allocation14_spill] sm:$0xff] }
 0x66d   : > { %v16696_v0 = vmul.f32 %v7782_v33, %v6182_v23  ;;  %v16716_v38 = vsub.f32 %v17807_v7, %v8003_v47  ;;  %v8361_v53 = vadd.f32 1e-05, %v8297_v35  ;;  %v16719_v5 = vsub.f32 %v17808_v50, %v8004_v6  ;;  %v17809_v33 = vld [vmem:[#allocation24_spill] sm:$0xff]  ;;  %v17813_v7 = vld [vmem:[#allocation83_spill] sm:$0xff] }
 0x66e   : > { %7971 = vadd.xlane.f32.xlu1 %v16690_v48  ;;  %v8006_v18 = vmul.f32 0.0078125, %v16604_v62  ;;  %v8129_v12 = vmul.f32 %v16703_v14, %v16703_v14  ;;  %v8130_v42 = vmul.f32 %v16710_v31, %v16710_v31  ;;  %v16727_v34 = vsub.f32 %v17809_v33, %v8005_v20 }
 0x66f   : > { %7973 = vadd.xlane.f32.xlu0 %v16696_v0  ;;  %11789 = vrsqrt.f32 %v8361_v53  ;;  %v8174_v23 = vpop.xlane.xlu0 %8173  ;;  %v8131_v51 = vmul.f32 %v16716_v38, %v16716_v38  ;;  %v8007_v62 = vmul.f32 0.0078125, %v16621_v56  ;;  %v8132_v58 = vmul.f32 %v16719_v5, %v16719_v5  ;;  %v17811_v56 = vld [vmem:[#allocation67_spill] sm:$0xff] }
 0x670   : > { %v8298_v27 = vmul.f32 0.0078125, %v8174_v23  ;;  %v16736_v47 = vsub.f32 %v17810_v16, %v8006_v18  ;;  %v8008_v6 = vmul.f32 0.0078125, %v16623_v24  ;;  %v8133_v10 = vmul.f32 %v16727_v34, %v16727_v34  ;;  %v17812_v24 = vld [vmem:[#allocation39_spill] sm:$0xff] }
 0x671   : > { %v16756_v53 = vsub.f32 %v17813_v7, %v8007_v62  ;;  %v8009_v50 = vmul.f32 0.0078125, %v16639_v28  ;;  %v8010_v18 = vmul.f32 0.0078125, %v16641_v19  ;;  %v8011_v62 = vmul.f32 0.0078125, %v16657_v36 }
 0x672   : > { %8215 = vadd.xlane.f32.xlu1 %v8127_v54  ;;  %v8362_v11 = vadd.f32 1e-05, %v8298_v27  ;;  %v8134_v23 = vmul.f32 %v16736_v47, %v16736_v47 }
 0x673   : > { %8217 = vadd.xlane.f32.xlu0 %v8128_v40  ;;  %v11786_v39 = vpop.eup %11785  ;;  %v16752_v40 = vld [vmem:[%s17244_s3] ss:$0 sm:$0xff]  ;;  %v8135_v19 = vmul.f32 %v16756_v53, %v16756_v53 }
 0x674   : > { %v8487_v35 = vmul.f32 %v11786_v39, %v17811_v56  ;;  %11791 = vrsqrt.f32 %v8362_v11  ;;  %v8012_v56 = vmul.f32 0.0078125, %v16659_v4  ;;  %v8013_v4 = vmul.f32 0.0078125, %v16684_v25  ;;  %v17821_v25 = vld [vmem:[#allocation66_spill] sm:$0xff] }
 0x675   : > { %v11788_v54 = vpop.eup %11787 }
 0x676   : > { %8219 = vadd.xlane.f32.xlu1 %v8129_v12  ;;  %v8488_v20 = vmul.f32 %v11788_v54, %v17812_v24  ;;  %v8557_v12 = vmul.f32 %v16742_v1, %v8487_v35  ;;  %v17816_v54 = vld [vmem:[#allocation6_spill] sm:$0xff]  ;;  %v17817_v35 = vld [vmem:[#allocation65_spill] sm:$0xff] }
 0x677   : > { %8221 = vadd.xlane.f32.xlu0 %v8130_v42  ;;  %v17814_v42 = vld [vmem:[#allocation61_spill] sm:$0xff] }
 0x678   : > { %v16764_v33 = vsub.f32 %v17814_v42, %v8008_v6  ;;  %v8558_v27 = vmul.f32 %v16742_v1, %v8488_v20  ;;  %v7928_v39 = vpop.xlane.xlu1 %7927  ;;  %v16776_v6 = vsub.f32 %v17816_v54, %v8010_v18  ;;  %v17818_v20 = vld [vmem:[#allocation11_spill] sm:$0xff]  ;;  %v17820_v54 = vld [vmem:[#allocation69_spill] sm:$0xff] }
 0x679   : > { %v11790_v16 = vpop.eup %11789  ;;  %v16787_v7 = vsub.f32 %v17818_v20, %v8011_v62  ;;  %v8014_v62 = vmul.f32 0.0078125, %v16707_v21 }
 0x67a   : > { %8223 = vadd.xlane.f32.xlu1 %v8131_v51  ;;  %v8627_v51 = vadd.f32 %v16752_v40, %v8557_v12  ;;  %v8628_v28 = vadd.f32 %v16752_v40, %v8558_v27  ;;  %v8136_v36 = vmul.f32 %v16764_v33, %v16764_v33  ;;  %v8138_v42 = vmul.f32 %v16776_v6, %v16776_v6 }
 0x67b   : > { %8225 = vadd.xlane.f32.xlu0 %v8132_v58  ;;  %v17815_v58 = vld [vmem:[#allocation5_spill] sm:$0xff] }
 0x67c   : > { %v16773_v11 = vsub.f32 %v17815_v58, %v8009_v50  ;;  %8691 = vst [vmem:[%s16778_s11] sm:$0xff] %v8627_v51  ;;  %8692 = vst [vmem:[%s16778_s11 + $0x8] sm:$0xff] %v8628_v28  ;;  %v8176_v24 = vpop.xlane.xlu1 %8175  ;;  %v17819_v51 = vld [vmem:[#allocation47_spill] sm:$0xff] }
 0x67d   : > { %v8299_v18 = vmul.f32 0.0078125, %v8176_v24  ;;  %v16796_v28 = vsub.f32 %v17819_v51, %v8012_v56  ;;  %v8015_v56 = vmul.f32 0.0078125, %v7928_v39 }
 0x67e   : > { %8227 = vadd.xlane.f32.xlu1 %v8133_v10  ;;  %v8489_v10 = vmul.f32 %v11790_v16, %v17817_v35  ;;  %v7930_v12 = vpop.xlane.xlu0 %7929  ;;  %v11792_v27 = vpop.eup %11791  ;;  %v8139_v35 = vmul.f32 %v16787_v7, %v16787_v7 }
 0x67f   : > { %8229 = vadd.xlane.f32.xlu0 %v8134_v23  ;;  %v8137_v23 = vmul.f32 %v16773_v11, %v16773_v11  ;;  %v8363_v58 = vadd.f32 1e-05, %v8299_v18  ;;  %v8140_v20 = vmul.f32 %v16796_v28, %v16796_v28 }
 0x680   : > { %v8559_v50 = vmul.f32 %v16742_v1, %v8489_v10 }
 0x681   : > { %11793 = vrsqrt.f32 %v8363_v58  ;;  %v17824_v58 = vld [vmem:[#allocation44_spill] sm:$0xff] }
 0x682   : > { %8231 = vadd.xlane.f32.xlu1 %v8135_v19  ;;  %v8629_v16 = vadd.f32 %v16752_v40, %v8559_v50  ;;  %v8490_v19 = vmul.f32 %v11792_v27, %v17820_v54  ;;  %v8178_v10 = vpop.xlane.xlu0 %8177  ;;  %v17822_v50 = vld [vmem:[#allocation17_spill] sm:$0xff]  ;;  %v8016_v27 = vmul.f32 0.0078125, %v7930_v12 }
 0x683   : > { %8233 = vadd.xlane.f32.xlu0 %v8136_v36  ;;  %v16805_v36 = vsub.f32 %v17821_v25, %v8013_v4  ;;  %v8300_v21 = vmul.f32 0.0078125, %v8178_v10  ;;  %v16811_v18 = vsub.f32 %v17822_v50, %v8014_v62  ;;  %v17823_v4 = vld [vmem:[#allocation20_spill] sm:$0xff]  ;;  %v17825_v10 = vld [vmem:[#allocation46_spill] sm:$0xff] }
 0x684   : > { %8693 = vst [vmem:[%s16778_s11 + $0x10] sm:$0xff] %v8629_v16  ;;  %v8560_v24 = vmul.f32 %v16742_v1, %v8490_v19  ;;  %v16817_v39 = vsub.f32 %v17823_v4, %v8015_v56  ;;  %v16823_v62 = vsub.f32 %v17824_v58, %v8016_v27 }
 0x685   : > { %v8364_v16 = vadd.f32 1e-05, %v8300_v21 }
 0x686   : > { %8235 = vadd.xlane.f32.xlu1 %v8137_v23  ;;  %v8630_v51 = vadd.f32 %v16752_v40, %v8560_v24  ;;  %v8141_v23 = vmul.f32 %v16805_v36, %v16805_v36  ;;  %v8143_v19 = vmul.f32 %v16817_v39, %v16817_v39  ;;  %v8144_v56 = vmul.f32 %v16823_v62, %v16823_v62  ;;  %v17826_v24 = vld [vmem:[#allocation40_spill] sm:$0xff] }
 0x687   : > { %8237 = vadd.xlane.f32.xlu0 %v8138_v42  ;;  %11795 = vrsqrt.f32 %v8364_v16  ;;  %v8142_v42 = vmul.f32 %v16811_v18, %v16811_v18 }
 0x688   : > { %8694 = vst [vmem:[%s16778_s11 + $0x18] sm:$0xff] %v8630_v51  ;;  %v7932_v12 = vpop.xlane.xlu1 %7931 }
 0x689   : > { %v8017_v54 = vmul.f32 0.0078125, %v7932_v12 }
 0x68a   : > { %8239 = vadd.xlane.f32.xlu1 %v8139_v35 }
 0x68b   : > { %8241 = vadd.xlane.f32.xlu0 %v8140_v20  ;;  %v11794_v35 = vpop.eup %11793  ;;  %v16828_v25 = vsub.f32 %v17825_v10, %v8017_v54  ;;  %v17829_v10 = vld [vmem:[#allocation41_spill] sm:$0xff] }
 0x68c   : > { %v8491_v21 = vmul.f32 %v11794_v35, %v17826_v24  ;;  %v8180_v20 = vpop.xlane.xlu1 %8179 }
 0x68d   : > { %v7934_v50 = vpop.xlane.xlu0 %7933  ;;  %v8301_v27 = vmul.f32 0.0078125, %v8180_v20 }
 0x68e   : > { %8243 = vadd.xlane.f32.xlu1 %v8141_v23  ;;  %v8018_v51 = vmul.f32 0.0078125, %v7934_v50  ;;  %v8561_v16 = vmul.f32 %v16742_v1, %v8491_v21  ;;  %v8145_v23 = vmul.f32 %v16828_v25, %v16828_v25 }
 0x68f   : > { %8245 = vadd.xlane.f32.xlu0 %v8142_v42  ;;  %v8365_v4 = vadd.f32 1e-05, %v8301_v27  ;;  %v17827_v42 = vld [vmem:[#allocation74_spill] sm:$0xff] }
 0x690   : > { %v16837_v58 = vsub.f32 %v17827_v42, %v8018_v51  ;;  %v8631_v54 = vadd.f32 %v16752_v40, %v8561_v16  ;;  %v17830_v16 = vld [vmem:[#allocation52_spill] sm:$0xff] }
 0x691   : > { %v11796_v12 = vpop.eup %11795  ;;  %v8182_v35 = vpop.xlane.xlu0 %8181  ;;  %11797 = vrsqrt.f32 %v8365_v4 }
 0x692   : > { %8247 = vadd.xlane.f32.xlu1 %v8143_v19  ;;  %17828 = vst [vmem:[#allocation32_spill] sm:$0xff] %v16837_v58  ;;  %v8492_v24 = vmul.f32 %v11796_v12, %v17829_v10  ;;  %v8302_v20 = vmul.f32 0.0078125, %v8182_v35  ;;  %v8146_v19 = vmul.f32 %v16837_v58, %v16837_v58  ;;  %8695 = vst [vmem:[%s16778_s11 + $0x20] sm:$0xff] %v8631_v54  ;;  %v17832_v10 = vld [vmem:[#allocation18_spill] sm:$0xff] }
 0x693   : > { %8249 = vadd.xlane.f32.xlu0 %v8144_v56 }
 0x694   : > { %v8562_v56 = vmul.f32 %v16742_v1, %v8492_v24  ;;  %v8366_v21 = vadd.f32 1e-05, %v8302_v20 }
 0x696   : > { %8251 = vadd.xlane.f32.xlu1 %v8145_v23  ;;  %v8632_v50 = vadd.f32 %v16752_v40, %v8562_v56  ;;  %v7936_v27 = vpop.xlane.xlu1 %7935  ;;  %11799 = vrsqrt.f32 %v8366_v21  ;;  %v17833_v21 = vld [vmem:[#allocation73_spill] sm:$0xff] }
 0x697   : > { %8253 = vadd.xlane.f32.xlu0 %v8146_v19  ;;  %v8019_v51 = vmul.f32 0.0078125, %v7936_v27 }
 0x698   : > { %8696 = vst [vmem:[%s16778_s11 + $0x28] sm:$0xff] %v8632_v50 }
 0x699   : > { %v16848_v42 = vsub.f32 %v17830_v16, %v8019_v51 }
 0x69a   : > { %v8184_v4 = vpop.xlane.xlu1 %8183 }
 0x69b   : > { %17831 = vst [vmem:[#allocation10_spill] sm:$0xff] %v16848_v42  ;;  %v8303_v12 = vmul.f32 0.0078125, %v8184_v4  ;;  %v8147_v35 = vmul.f32 %v16848_v42, %v16848_v42  ;;  %v11798_v23 = vpop.eup %11797  ;;  %v17834_v4 = vld [vmem:[#allocation22_spill] sm:$0xff] }
 0x69c   : > { %v7938_v54 = vpop.xlane.xlu0 %7937  ;;  %v8493_v24 = vmul.f32 %v11798_v23, %v17832_v10 }
 0x69d   : > { %v8367_v20 = vadd.f32 1e-05, %v8303_v12  ;;  %v8020_v19 = vmul.f32 0.0078125, %v7938_v54  ;;  %8255 = vadd.xlane.f32.xlu1 %v8147_v35 }
 0x69e   : > { %v8563_v56 = vmul.f32 %v16742_v1, %v8493_v24  ;;  %v17835_v24 = vld [vmem:[#allocation80_spill] sm:$0xff] }
 0x69f   : > { %11801 = vrsqrt.f32 %v8367_v20  ;;  %v16855_v50 = vsub.f32 %v17833_v21, %v8020_v19 }
 0x6a0   : > { %v11800_v27 = vpop.eup %11799  ;;  %v8186_v51 = vpop.xlane.xlu0 %8185  ;;  %v8633_v16 = vadd.f32 %v16752_v40, %v8563_v56 }
 0x6a1   : > { %v8494_v42 = vmul.f32 %v11800_v27, %v17834_v4  ;;  %v8304_v58 = vmul.f32 0.0078125, %v8186_v51  ;;  %v8148_v23 = vmul.f32 %v16855_v50, %v16855_v50 }
 0x6a2   : > { %8697 = vst [vmem:[%s16778_s11 + $0x30] sm:$0xff] %v8633_v16 }
 0x6a3   : > { %v8564_v12 = vmul.f32 %v16742_v1, %v8494_v42  ;;  %v8368_v35 = vadd.f32 1e-05, %v8304_v58  ;;  %8257 = vadd.xlane.f32.xlu0 %v8148_v23 }
 0x6a5   : > { %v8634_v54 = vadd.f32 %v16752_v40, %v8564_v12  ;;  %11803 = vrsqrt.f32 %v8368_v35  ;;  %v17836_v35 = vld [vmem:[#allocation30_spill] sm:$0xff] }
 0x6a7   : > { %8698 = vst [vmem:[%s16778_s11 + $0x38] sm:$0xff] %v8634_v54 }
 0x6a9   : > { %v11802_v10 = vpop.eup %11801 }
 0x6aa   : > { %v8495_v20 = vmul.f32 %v11802_v10, %v17835_v24  ;;  %v7940_v19 = vpop.xlane.xlu1 %7939 }
 0x6ab   : > { %v8021_v56 = vmul.f32 0.0078125, %v7940_v19 }
 0x6ac   : > { %v8565_v21 = vmul.f32 %v16742_v1, %v8495_v20 }
 0x6ad   : > { %v16868_v27 = vsub.f32 %v16369_v3, %v8021_v56  ;;  %v7942_v51 = vpop.xlane.xlu0 %7941 }
 0x6ae   : > { %v8635_v42 = vadd.f32 %v16752_v40, %v8565_v21  ;;  %v8188_v58 = vpop.xlane.xlu1 %8187  ;;  %v8022_v16 = vmul.f32 0.0078125, %v7942_v51 }
 0x6af   : > { %v11804_v4 = vpop.eup %11803  ;;  %v8305_v23 = vmul.f32 0.0078125, %v8188_v58  ;;  %v8149_v12 = vmul.f32 %v16868_v27, %v16868_v27 }
 0x6b0   : > { %8699 = vst [vmem:[%s16778_s11 + $0x40] sm:$0xff] %v8635_v42  ;;  %v8496_v54 = vmul.f32 %v11804_v4, %v17836_v35  ;;  %v16876_v10 = vsub.f32 %v16380_v45, %v8022_v16 }
 0x6b1   : > { %v8369_v24 = vadd.f32 1e-05, %v8305_v23  ;;  %8259 = vadd.xlane.f32.xlu1 %v8149_v12  ;;  %v8190_v3 = vpop.xlane.xlu0 %8189 }
 0x6b2   : > { %v8566_v20 = vmul.f32 %v16742_v1, %v8496_v54  ;;  %v8306_v19 = vmul.f32 0.0078125, %v8190_v3  ;;  %v8150_v56 = vmul.f32 %v16876_v10, %v16876_v10 }
 0x6b3   : > { %11805 = vrsqrt.f32 %v8369_v24  ;;  %v17838_v24 = vld [vmem:[#allocation31_spill] sm:$0xff] }
 0x6b4   : > { %v8636_v21 = vadd.f32 %v16752_v40, %v8566_v20  ;;  %v8370_v51 = vadd.f32 1e-05, %v8306_v19  ;;  %8261 = vadd.xlane.f32.xlu0 %v8150_v56  ;;  %v17839_v19 = vld [vmem:[#allocation54_spill] sm:$0xff] }
 0x6b6   : > { %8700 = vst [vmem:[%s16778_s11 + $0x48] sm:$0xff] %v8636_v21  ;;  %11807 = vrsqrt.f32 %v8370_v51 }
 0x6b9   : > { %v7944_v42 = vpop.xlane.xlu1 %7943 }
 0x6ba   : > { %v8023_v58 = vmul.f32 0.0078125, %v7944_v42  ;;  %v17840_v42 = vld [vmem:[#allocation51_spill] sm:$0xff] }
 0x6bc   : > { %v16884_v45 = vsub.f32 %v16416_v41, %v8023_v58 }
 0x6bd   : > { %v8192_v16 = vpop.xlane.xlu1 %8191  ;;  %v7946_v4 = vpop.xlane.xlu0 %7945 }
 0x6be   : > { %17837 = vst [vmem:[#allocation55_spill] sm:$0xff] %v16884_v45  ;;  %v11806_v23 = vpop.eup %11805  ;;  %v8307_v12 = vmul.f32 0.0078125, %v8192_v16  ;;  %v8024_v35 = vmul.f32 0.0078125, %v7946_v4  ;;  %v8151_v54 = vmul.f32 %v16884_v45, %v16884_v45 }
 0x6bf   : > { %v8497_v3 = vmul.f32 %v11806_v23, %v17838_v24 }
 0x6c0   : > { %v8371_v20 = vadd.f32 1e-05, %v8307_v12  ;;  %v16890_v56 = vsub.f32 %v17839_v19, %v8024_v35  ;;  %8263 = vadd.xlane.f32.xlu1 %v8151_v54  ;;  %v11808_v21 = vpop.eup %11807 }
 0x6c1   : > { %v8567_v41 = vmul.f32 %v16742_v1, %v8497_v3  ;;  %v8194_v51 = vpop.xlane.xlu0 %8193  ;;  %v8498_v58 = vmul.f32 %v11808_v21, %v17840_v42  ;;  %v17841_v21 = vld [vmem:[#allocation28_spill] sm:$0xff] }
 0x6c2   : > { %11809 = vrsqrt.f32 %v8371_v20  ;;  %v8308_v16 = vmul.f32 0.0078125, %v8194_v51  ;;  %v8152_v4 = vmul.f32 %v16890_v56, %v16890_v56 }
 0x6c3   : > { %v8637_v45 = vadd.f32 %v16752_v40, %v8567_v41  ;;  %v8568_v23 = vmul.f32 %v16742_v1, %v8498_v58 }
 0x6c4   : > { %v8372_v12 = vadd.f32 1e-05, %v8308_v16  ;;  %8265 = vadd.xlane.f32.xlu0 %v8152_v4 }
 0x6c5   : > { %8701 = vst [vmem:[%s16778_s11 + $0x50] sm:$0xff] %v8637_v45  ;;  %v8638_v35 = vadd.f32 %v16752_v40, %v8568_v23 }
 0x6c6   : > { %11811 = vrsqrt.f32 %v8372_v12 }
 0x6c7   : > { %8702 = vst [vmem:[%s16778_s11 + $0x58] sm:$0xff] %v8638_v35 }
 0x6cb   : > { %v7948_v54 = vpop.xlane.xlu1 %7947 }
 0x6cc   : > { %v8025_v24 = vmul.f32 0.0078125, %v7948_v54  ;;  %v7950_v3 = vpop.xlane.xlu0 %7949  ;;  %v11810_v19 = vpop.eup %11809 }
 0x6cd   : > { %v8026_v20 = vmul.f32 0.0078125, %v7950_v3  ;;  %v8499_v51 = vmul.f32 %v11810_v19, %v17841_v21 }
 0x6ce   : > { %v16903_v42 = vsub.f32 %v16484_v17, %v8025_v24  ;;  %v17843_v24 = vld [vmem:[#allocation33_spill] sm:$0xff] }
 0x6cf   : > { %v8196_v41 = vpop.xlane.xlu1 %8195  ;;  %v16906_v58 = vsub.f32 %v16490_v15, %v8026_v20  ;;  %v8569_v45 = vmul.f32 %v16742_v1, %v8499_v51 }
 0x6d0   : > { %v8309_v16 = vmul.f32 0.0078125, %v8196_v41  ;;  %v8153_v4 = vmul.f32 %v16903_v42, %v16903_v42  ;;  %v8198_v23 = vpop.xlane.xlu0 %8197  ;;  %v11812_v12 = vpop.eup %11811 }
 0x6d1   : > { %17842 = vst [vmem:[#allocation81_spill] sm:$0xff] %v16906_v58  ;;  %v8310_v35 = vmul.f32 0.0078125, %v8198_v23  ;;  %v8154_v54 = vmul.f32 %v16906_v58, %v16906_v58  ;;  %v8639_v17 = vadd.f32 %v16752_v40, %v8569_v45  ;;  %v8500_v3 = vmul.f32 %v11812_v12, %v17843_v24 }
 0x6d2   : > { %v8373_v19 = vadd.f32 1e-05, %v8309_v16  ;;  %8267 = vadd.xlane.f32.xlu1 %v8153_v4 }
 0x6d3   : > { %v7952_v15 = vpop.xlane.xlu1 %7951  ;;  %v8374_v20 = vadd.f32 1e-05, %v8310_v35  ;;  %8269 = vadd.xlane.f32.xlu0 %v8154_v54  ;;  %8703 = vst [vmem:[%s16778_s11 + $0x60] sm:$0xff] %v8639_v17  ;;  %v8570_v21 = vmul.f32 %v16742_v1, %v8500_v3 }
 0x6d4   : > { %11813 = vrsqrt.f32 %v8373_v19  ;;  %v8027_v51 = vmul.f32 0.0078125, %v7952_v15  ;;  %v7954_v41 = vpop.xlane.xlu0 %7953 }
 0x6d5   : > { %11815 = vrsqrt.f32 %v8374_v20  ;;  %v8028_v23 = vmul.f32 0.0078125, %v7954_v41  ;;  %v8640_v58 = vadd.f32 %v16752_v40, %v8570_v21  ;;  %v17844_v41 = vld [vmem:[#allocation53_spill] sm:$0xff] }
 0x6d6   : > { %v16919_v45 = vsub.f32 %v16512_v13, %v8027_v51 }
 0x6d7   : > { %v8200_v12 = vpop.xlane.xlu1 %8199  ;;  %v16922_v16 = vsub.f32 %v16533_v43, %v8028_v23  ;;  %8704 = vst [vmem:[%s16778_s11 + $0x68] sm:$0xff] %v8640_v58 }
 0x6d8   : > { %v8311_v4 = vmul.f32 0.0078125, %v8200_v12  ;;  %v8155_v35 = vmul.f32 %v16919_v45, %v16919_v45  ;;  %v8202_v54 = vpop.xlane.xlu0 %8201 }
 0x6d9   : > { %v8312_v17 = vmul.f32 0.0078125, %v8202_v54  ;;  %v8156_v24 = vmul.f32 %v16922_v16, %v16922_v16 }
 0x6da   : > { %v8375_v3 = vadd.f32 1e-05, %v8311_v4  ;;  %8271 = vadd.xlane.f32.xlu1 %v8155_v35 }
 0x6db   : > { %v7956_v19 = vpop.xlane.xlu1 %7955  ;;  %v8376_v15 = vadd.f32 1e-05, %v8312_v17  ;;  %8273 = vadd.xlane.f32.xlu0 %v8156_v24 }
 0x6dc   : > { %11817 = vrsqrt.f32 %v8375_v3  ;;  %v8029_v13 = vmul.f32 0.0078125, %v7956_v19  ;;  %v7958_v20 = vpop.xlane.xlu0 %7957 }
 0x6dd   : > { %11819 = vrsqrt.f32 %v8376_v15  ;;  %v8030_v43 = vmul.f32 0.0078125, %v7958_v20 }
 0x6de   : > { %v11814_v58 = vpop.eup %11813  ;;  %v16930_v21 = vsub.f32 %v16553_v55, %v8029_v13 }
 0x6df   : > { %v11816_v51 = vpop.eup %11815  ;;  %v8501_v23 = vmul.f32 %v11814_v58, %v17844_v41  ;;  %v8204_v12 = vpop.xlane.xlu1 %8203  ;;  %v16934_v54 = vsub.f32 %v16571_v26, %v8030_v43 }
 0x6e0   : > { %v8502_v4 = vmul.f32 %v11816_v51, %v16447_v61  ;;  %v8313_v35 = vmul.f32 0.0078125, %v8204_v12  ;;  %v8157_v17 = vmul.f32 %v16930_v21, %v16930_v21  ;;  %v8206_v24 = vpop.xlane.xlu0 %8205 }
 0x6e1   : > { %v8571_v3 = vmul.f32 %v16742_v1, %v8501_v23  ;;  %v8314_v19 = vmul.f32 0.0078125, %v8206_v24  ;;  %v8158_v55 = vmul.f32 %v16934_v54, %v16934_v54 }
 0x6e2   : > { %v8572_v15 = vmul.f32 %v16742_v1, %v8502_v4  ;;  %v8377_v13 = vadd.f32 1e-05, %v8313_v35  ;;  %8275 = vadd.xlane.f32.xlu1 %v8157_v17 }
 0x6e3   : > { %v8641_v26 = vadd.f32 %v16752_v40, %v8571_v3  ;;  %v7960_v61 = vpop.xlane.xlu1 %7959  ;;  %v8378_v20 = vadd.f32 1e-05, %v8314_v19  ;;  %8277 = vadd.xlane.f32.xlu0 %v8158_v55 }
 0x6e4   : > { %v8642_v43 = vadd.f32 %v16752_v40, %v8572_v15  ;;  %11821 = vrsqrt.f32 %v8377_v13  ;;  %v8031_v58 = vmul.f32 0.0078125, %v7960_v61 }
 0x6e5   : > { %v7962_v51 = vpop.xlane.xlu0 %7961  ;;  %8705 = vst [vmem:[%s16778_s11 + $0x70] sm:$0xff] %v8641_v26  ;;  %11823 = vrsqrt.f32 %v8378_v20 }
 0x6e6   : > { %v8032_v41 = vmul.f32 0.0078125, %v7962_v51  ;;  %v11818_v23 = vpop.eup %11817  ;;  %8706 = vst [vmem:[%s16778_s11 + $0x78] sm:$0xff] %v8642_v43  ;;  %v16948_v12 = vsub.f32 %v16593_v8, %v8031_v58 }
 0x6e7   : > { %v11820_v4 = vpop.eup %11819  ;;  %v8503_v35 = vmul.f32 %v11818_v23, %v16493_v60  ;;  %v8208_v17 = vpop.xlane.xlu1 %8207 }
 0x6e8   : > { %v16952_v24 = vsub.f32 %v16610_v57, %v8032_v41  ;;  %v8504_v3 = vmul.f32 %v11820_v4, %v16502_v46  ;;  %v8315_v19 = vmul.f32 0.0078125, %v8208_v17  ;;  %v8159_v55 = vmul.f32 %v16948_v12, %v16948_v12 }
 0x6e9   : > { %v8210_v15 = vpop.xlane.xlu0 %8209  ;;  %v8573_v13 = vmul.f32 %v16742_v1, %v8503_v35 }
 0x6ea   : > { %v8316_v8 = vmul.f32 0.0078125, %v8210_v15  ;;  %v8160_v26 = vmul.f32 %v16952_v24, %v16952_v24  ;;  %v8574_v60 = vmul.f32 %v16742_v1, %v8504_v3  ;;  %v8379_v61 = vadd.f32 1e-05, %v8315_v19  ;;  %8279 = vadd.xlane.f32.xlu1 %v8159_v55 }
 0x6eb   : > { %v8643_v57 = vadd.f32 %v16752_v40, %v8573_v13 }
 0x6ec   : > { %v7964_v46 = vpop.xlane.xlu1 %7963  ;;  %v8380_v20 = vadd.f32 1e-05, %v8316_v8  ;;  %8281 = vadd.xlane.f32.xlu0 %v8160_v26  ;;  %v8644_v43 = vadd.f32 %v16752_v40, %v8574_v60  ;;  %11825 = vrsqrt.f32 %v8379_v61 }
 0x6ed   : > { %v8033_v58 = vmul.f32 0.0078125, %v7964_v46  ;;  %8707 = vst [vmem:[%s16778_s11 + $0x80] sm:$0xff] %v8643_v57 }
 0x6ee   : > { %11827 = vrsqrt.f32 %v8380_v20  ;;  %v11822_v51 = vpop.eup %11821  ;;  %8708 = vst [vmem:[%s16778_s11 + $0x88] sm:$0xff] %v8644_v43 }
 0x6ef   : > { %v16966_v41 = vsub.f32 %v16644_v59, %v8033_v58  ;;  %v11824_v23 = vpop.eup %11823  ;;  %v8505_v4 = vmul.f32 %v11822_v51, %v16520_v32 }
 0x6f0   : > { %v8212_v35 = vpop.xlane.xlu1 %8211  ;;  %v7966_v17 = vpop.xlane.xlu0 %7965  ;;  %v8506_v3 = vmul.f32 %v11824_v23, %v16529_v44 }
 0x6f1   : > { %v8317_v19 = vmul.f32 0.0078125, %v8212_v35  ;;  %v8034_v55 = vmul.f32 0.0078125, %v7966_v17  ;;  %v8161_v15 = vmul.f32 %v16966_v41, %v16966_v41  ;;  %v8575_v13 = vmul.f32 %v16742_v1, %v8505_v4 }
 0x6f2   : > { %v8576_v8 = vmul.f32 %v16742_v1, %v8506_v3 }
 0x6f3   : > { %v8381_v59 = vadd.f32 1e-05, %v8317_v19  ;;  %v16975_v26 = vsub.f32 %v16661_v22, %v8034_v55  ;;  %8283 = vadd.xlane.f32.xlu1 %v8161_v15  ;;  %v8645_v32 = vadd.f32 %v16752_v40, %v8575_v13 }
 0x6f4   : > { %v7968_v60 = vpop.xlane.xlu1 %7967  ;;  %v8214_v44 = vpop.xlane.xlu0 %8213  ;;  %v8646_v61 = vadd.f32 %v16752_v40, %v8576_v8 }
 0x6f5   : > { %11829 = vrsqrt.f32 %v8381_v59  ;;  %v8035_v57 = vmul.f32 0.0078125, %v7968_v60  ;;  %v8318_v46 = vmul.f32 0.0078125, %v8214_v44  ;;  %8709 = vst [vmem:[%s16778_s11 + $0x90] sm:$0xff] %v8645_v32  ;;  %v8162_v20 = vmul.f32 %v16975_v26, %v16975_v26 }
 0x6f6   : > { %v11826_v43 = vpop.eup %11825  ;;  %8710 = vst [vmem:[%s16778_s11 + $0x98] sm:$0xff] %v8646_v61 }
 0x6f7   : > { %v16984_v58 = vsub.f32 %v16669_v30, %v8035_v57  ;;  %v8382_v22 = vadd.f32 1e-05, %v8318_v46  ;;  %v8507_v23 = vmul.f32 %v11826_v43, %v16562_v29  ;;  %8285 = vadd.xlane.f32.xlu0 %v8162_v20 }
 0x6f8   : > { %v11828_v51 = vpop.eup %11827  ;;  %v7970_v4 = vpop.xlane.xlu0 %7969 }
 0x6f9   : > { %v8508_v35 = vmul.f32 %v11828_v51, %v16574_v63  ;;  %11831 = vrsqrt.f32 %v8382_v22  ;;  %v8036_v17 = vmul.f32 0.0078125, %v7970_v4  ;;  %v8163_v3 = vmul.f32 %v16984_v58, %v16984_v58 }
 0x6fa   : > { %v8577_v19 = vmul.f32 %v16742_v1, %v8507_v23 }
 0x6fb   : > { %v8578_v30 = vmul.f32 %v16742_v1, %v8508_v35  ;;  %v16993_v55 = vsub.f32 %v16679_v52, %v8036_v17  ;;  %8287 = vadd.xlane.f32.xlu1 %v8163_v3  ;;  %v7972_v29 = vpop.xlane.xlu1 %7971 }
 0x6fc   : > { %v8647_v15 = vadd.f32 %v16752_v40, %v8577_v19  ;;  %v8037_v13 = vmul.f32 0.0078125, %v7972_v29  ;;  %v7974_v8 = vpop.xlane.xlu0 %7973 }
 0x6fd   : > { %v8648_v63 = vadd.f32 %v16752_v40, %v8578_v30  ;;  %v8038_v59 = vmul.f32 0.0078125, %v7974_v8  ;;  %v8164_v32 = vmul.f32 %v16993_v55, %v16993_v55 }
 0x6fe   : > { %8711 = vst [vmem:[%s16778_s11 + $0xa0] sm:$0xff] %v8647_v15  ;;  %v17001_v60 = vsub.f32 %v16690_v48, %v8037_v13 }
 0x6ff   : > { %v11830_v44 = vpop.eup %11829  ;;  %8712 = vst [vmem:[%s16778_s11 + $0xa8] sm:$0xff] %v8648_v63  ;;  %v17005_v52 = vsub.f32 %v16696_v0, %v8038_v59  ;;  %8289 = vadd.xlane.f32.xlu0 %v8164_v32  ;;  %v8216_v61 = vpop.xlane.xlu1 %8215 }
 0x700   : > { %v8509_v57 = vmul.f32 %v11830_v44, %v16626_v49  ;;  %v8319_v46 = vmul.f32 0.0078125, %v8216_v61  ;;  %v8218_v20 = vpop.xlane.xlu0 %8217  ;;  %v8165_v43 = vmul.f32 %v17001_v60, %v17001_v60 }
 0x701   : > { %v8320_v22 = vmul.f32 0.0078125, %v8218_v20  ;;  %v8166_v48 = vmul.f32 %v17005_v52, %v17005_v52 }
 0x702   : > { %v8579_v51 = vmul.f32 %v16742_v1, %v8509_v57  ;;  %v8383_v23 = vadd.f32 1e-05, %v8319_v46  ;;  %8291 = vadd.xlane.f32.xlu1 %v8165_v43 }
 0x703   : > { %v11832_v0 = vpop.eup %11831  ;;  %v8384_v4 = vadd.f32 1e-05, %v8320_v22  ;;  %v8220_v35 = vpop.xlane.xlu1 %8219  ;;  %8293 = vadd.xlane.f32.xlu0 %v8166_v48 }
 0x704   : > { %v8649_v49 = vadd.f32 %v16752_v40, %v8579_v51  ;;  %v8510_v17 = vmul.f32 %v11832_v0, %v16655_v2  ;;  %11833 = vrsqrt.f32 %v8383_v23  ;;  %v8321_v3 = vmul.f32 0.0078125, %v8220_v35  ;;  %v8222_v19 = vpop.xlane.xlu0 %8221 }
 0x705   : > { %11835 = vrsqrt.f32 %v8384_v4  ;;  %v8322_v30 = vmul.f32 0.0078125, %v8222_v19 }
 0x706   : > { %8713 = vst [vmem:[%s16778_s11 + $0xb0] sm:$0xff] %v8649_v49  ;;  %v8580_v29 = vmul.f32 %v16742_v1, %v8510_v17  ;;  %v8385_v15 = vadd.f32 1e-05, %v8321_v3 }
 0x707   : > { %v8386_v13 = vadd.f32 1e-05, %v8322_v30  ;;  %v8224_v8 = vpop.xlane.xlu1 %8223 }
 0x708   : > { %v8650_v63 = vadd.f32 %v16752_v40, %v8580_v29  ;;  %11837 = vrsqrt.f32 %v8385_v15  ;;  %v8323_v59 = vmul.f32 0.0078125, %v8224_v8  ;;  %v8226_v32 = vpop.xlane.xlu0 %8225 }
 0x709   : > { %11839 = vrsqrt.f32 %v8386_v13  ;;  %v8324_v44 = vmul.f32 0.0078125, %v8226_v32 }
 0x70a   : > { %8714 = vst [vmem:[%s16778_s11 + $0xb8] sm:$0xff] %v8650_v63  ;;  %v8387_v2 = vadd.f32 1e-05, %v8323_v59 }
 0x70b   : > { %v8388_v61 = vadd.f32 1e-05, %v8324_v44  ;;  %v8228_v57 = vpop.xlane.xlu1 %8227 }
 0x70c   : > { %11841 = vrsqrt.f32 %v8387_v2  ;;  %v8325_v46 = vmul.f32 0.0078125, %v8228_v57  ;;  %v8230_v20 = vpop.xlane.xlu0 %8229 }
 0x70d   : > { %11843 = vrsqrt.f32 %v8388_v61  ;;  %v8326_v43 = vmul.f32 0.0078125, %v8230_v20 }
 0x70e   : > { %v11834_v22 = vpop.eup %11833  ;;  %v8389_v48 = vadd.f32 1e-05, %v8325_v46 }
 0x70f   : > { %v11836_v51 = vpop.eup %11835  ;;  %v8511_v23 = vmul.f32 %v11834_v22, %v16687_v37  ;;  %v8390_v0 = vadd.f32 1e-05, %v8326_v43  ;;  %v8232_v4 = vpop.xlane.xlu1 %8231 }
 0x710   : > { %v8512_v35 = vmul.f32 %v11836_v51, %v16693_v9  ;;  %11845 = vrsqrt.f32 %v8389_v48  ;;  %v8327_v49 = vmul.f32 0.0078125, %v8232_v4  ;;  %v8234_v17 = vpop.xlane.xlu0 %8233 }
 0x711   : > { %v8581_v3 = vmul.f32 %v16742_v1, %v8511_v23  ;;  %11847 = vrsqrt.f32 %v8390_v0  ;;  %v8328_v19 = vmul.f32 0.0078125, %v8234_v17 }
 0x712   : > { %v11838_v30 = vpop.eup %11837  ;;  %v8582_v29 = vmul.f32 %v16742_v1, %v8512_v35  ;;  %v8391_v15 = vadd.f32 1e-05, %v8327_v49 }
 0x713   : > { %v11840_v13 = vpop.eup %11839  ;;  %v8651_v37 = vadd.f32 %v16752_v40, %v8581_v3  ;;  %v8513_v8 = vmul.f32 %v11838_v30, %v16703_v14  ;;  %v8392_v63 = vadd.f32 1e-05, %v8328_v19  ;;  %v8236_v9 = vpop.xlane.xlu1 %8235 }
 0x714   : > { %v8652_v59 = vadd.f32 %v16752_v40, %v8582_v29  ;;  %v8514_v32 = vmul.f32 %v11840_v13, %v16710_v31  ;;  %11849 = vrsqrt.f32 %v8391_v15  ;;  %v8329_v44 = vmul.f32 0.0078125, %v8236_v9  ;;  %v8238_v2 = vpop.xlane.xlu0 %8237 }
 0x715   : > { %8715 = vst [vmem:[%s16778_s11 + $0xc0] sm:$0xff] %v8651_v37  ;;  %v8583_v61 = vmul.f32 %v16742_v1, %v8513_v8  ;;  %11851 = vrsqrt.f32 %v8392_v63  ;;  %v8330_v57 = vmul.f32 0.0078125, %v8238_v2 }
 0x716   : > { %v11842_v46 = vpop.eup %11841  ;;  %8716 = vst [vmem:[%s16778_s11 + $0xc8] sm:$0xff] %v8652_v59  ;;  %v8584_v20 = vmul.f32 %v16742_v1, %v8514_v32  ;;  %v8393_v14 = vadd.f32 1e-05, %v8329_v44 }
 0x717   : > { %v11844_v43 = vpop.eup %11843  ;;  %v8653_v22 = vadd.f32 %v16752_v40, %v8583_v61  ;;  %v8515_v31 = vmul.f32 %v11842_v46, %v16716_v38  ;;  %v8394_v48 = vadd.f32 1e-05, %v8330_v57  ;;  %v8240_v51 = vpop.xlane.xlu1 %8239 }
 0x718   : > { %v8654_v23 = vadd.f32 %v16752_v40, %v8584_v20  ;;  %v8516_v0 = vmul.f32 %v11844_v43, %v16719_v5  ;;  %11853 = vrsqrt.f32 %v8393_v14  ;;  %v8331_v4 = vmul.f32 0.0078125, %v8240_v51  ;;  %v8242_v35 = vpop.xlane.xlu0 %8241 }
 0x719   : > { %8717 = vst [vmem:[%s16778_s11 + $0xd0] sm:$0xff] %v8653_v22  ;;  %v8585_v49 = vmul.f32 %v16742_v1, %v8515_v31  ;;  %11855 = vrsqrt.f32 %v8394_v48  ;;  %v8332_v17 = vmul.f32 0.0078125, %v8242_v35 }
 0x71a   : > { %v11846_v3 = vpop.eup %11845  ;;  %8718 = vst [vmem:[%s16778_s11 + $0xd8] sm:$0xff] %v8654_v23  ;;  %v8586_v19 = vmul.f32 %v16742_v1, %v8516_v0  ;;  %v8395_v38 = vadd.f32 1e-05, %v8331_v4 }
 0x71b   : > { %v11848_v30 = vpop.eup %11847  ;;  %v8655_v29 = vadd.f32 %v16752_v40, %v8585_v49  ;;  %v8517_v5 = vmul.f32 %v11846_v3, %v16727_v34  ;;  %v8396_v15 = vadd.f32 1e-05, %v8332_v17  ;;  %v8244_v13 = vpop.xlane.xlu1 %8243 }
 0x71c   : > { %v8656_v37 = vadd.f32 %v16752_v40, %v8586_v19  ;;  %v8518_v8 = vmul.f32 %v11848_v30, %v16736_v47  ;;  %11857 = vrsqrt.f32 %v8395_v38  ;;  %v8333_v63 = vmul.f32 0.0078125, %v8244_v13  ;;  %v8246_v9 = vpop.xlane.xlu0 %8245 }
 0x71d   : > { %8719 = vst [vmem:[%s16778_s11 + $0xe0] sm:$0xff] %v8655_v29  ;;  %v8587_v59 = vmul.f32 %v16742_v1, %v8517_v5  ;;  %11859 = vrsqrt.f32 %v8396_v15  ;;  %v8334_v32 = vmul.f32 0.0078125, %v8246_v9 }
 0x71e   : > { %v11850_v44 = vpop.eup %11849  ;;  %8720 = vst [vmem:[%s16778_s11 + $0xe8] sm:$0xff] %v8656_v37  ;;  %v8588_v2 = vmul.f32 %v16742_v1, %v8518_v8  ;;  %v8397_v34 = vadd.f32 1e-05, %v8333_v63 }
 0x71f   : > { %v11852_v61 = vpop.eup %11851  ;;  %v8657_v57 = vadd.f32 %v16752_v40, %v8587_v59  ;;  %v8519_v47 = vmul.f32 %v11850_v44, %v16756_v53  ;;  %v8398_v46 = vadd.f32 1e-05, %v8334_v32  ;;  %v8248_v20 = vpop.xlane.xlu1 %8247 }
 0x720   : > { %v8658_v14 = vadd.f32 %v16752_v40, %v8588_v2  ;;  %v8520_v43 = vmul.f32 %v11852_v61, %v16764_v33  ;;  %11861 = vrsqrt.f32 %v8397_v34  ;;  %v8335_v22 = vmul.f32 0.0078125, %v8248_v20  ;;  %v8250_v31 = vpop.xlane.xlu0 %8249 }
 0x721   : > { %8721 = vst [vmem:[%s16778_s11 + $0xf0] sm:$0xff] %v8657_v57  ;;  %v8589_v48 = vmul.f32 %v16742_v1, %v8519_v47  ;;  %11863 = vrsqrt.f32 %v8398_v46  ;;  %v8336_v51 = vmul.f32 0.0078125, %v8250_v31 }
 0x722   : > { %v11854_v23 = vpop.eup %11853  ;;  %8722 = vst [vmem:[%s16778_s11 + $0xf8] sm:$0xff] %v8658_v14  ;;  %v8590_v0 = vmul.f32 %v16742_v1, %v8520_v43  ;;  %v8399_v53 = vadd.f32 1e-05, %v8335_v22 }
 0x723   : > { %v11856_v4 = vpop.eup %11855  ;;  %v8659_v35 = vadd.f32 %v16752_v40, %v8589_v48  ;;  %v8521_v33 = vmul.f32 %v11854_v23, %v16773_v11  ;;  %v8400_v49 = vadd.f32 1e-05, %v8336_v51  ;;  %v8252_v17 = vpop.xlane.xlu1 %8251 }
 0x724   : > { %v8660_v3 = vadd.f32 %v16752_v40, %v8590_v0  ;;  %v8522_v19 = vmul.f32 %v11856_v4, %v16776_v6  ;;  %11865 = vrsqrt.f32 %v8399_v53  ;;  %v8337_v38 = vmul.f32 0.0078125, %v8252_v17  ;;  %v8254_v30 = vpop.xlane.xlu0 %8253 }
 0x725   : > { %8723 = vst [vmem:[%s16778_s11 + $0x100] sm:$0xff] %v8659_v35  ;;  %v8591_v29 = vmul.f32 %v16742_v1, %v8521_v33  ;;  %11867 = vrsqrt.f32 %v8400_v49  ;;  %v8338_v5 = vmul.f32 0.0078125, %v8254_v30  ;;  %v17845_v49 = vld [vmem:[#allocation32_spill] sm:$0xff] }
 0x726   : > { %v11858_v15 = vpop.eup %11857  ;;  %8724 = vst [vmem:[%s16778_s11 + $0x108] sm:$0xff] %v8660_v3  ;;  %v8592_v11 = vmul.f32 %v16742_v1, %v8522_v19  ;;  %v8401_v13 = vadd.f32 1e-05, %v8337_v38 }
 0x727   : > { %v11860_v37 = vpop.eup %11859  ;;  %v8661_v8 = vadd.f32 %v16752_v40, %v8591_v29  ;;  %v8523_v6 = vmul.f32 %v11858_v15, %v16787_v7  ;;  %v8402_v63 = vadd.f32 1e-05, %v8338_v5  ;;  %v17846_v15 = vld [vmem:[#allocation10_spill] sm:$0xff] }
 0x728   : > { %v8662_v9 = vadd.f32 %v16752_v40, %v8592_v11  ;;  %v8524_v59 = vmul.f32 %v11860_v37, %v16796_v28  ;;  %11869 = vrsqrt.f32 %v8401_v13  ;;  %v17079_v28 = vld [vmem:[%s17243_s2] ss:$0 sm:$0xff] }
 0x729   : > { %8725 = vst [vmem:[%s16778_s11 + $0x110] sm:$0xff] %v8661_v8  ;;  %v8593_v32 = vmul.f32 %v16742_v1, %v8523_v6  ;;  %11871 = vrsqrt.f32 %v8402_v63 }
 0x72a   : > { %v11862_v44 = vpop.eup %11861  ;;  %8726 = vst [vmem:[%s16778_s11 + $0x118] sm:$0xff] %v8662_v9  ;;  %v8594_v2 = vmul.f32 %v16742_v1, %v8524_v59  ;;  %v8256_v1 = vpop.xlane.xlu1 %8255 }
 0x72b   : > { %v11864_v34 = vpop.eup %11863  ;;  %v8663_v61 = vadd.f32 %v16752_v40, %v8593_v32  ;;  %v8525_v7 = vmul.f32 %v11862_v44, %v16805_v36  ;;  %v8339_v36 = vmul.f32 0.0078125, %v8256_v1 }
 0x72c   : > { %v8664_v57 = vadd.f32 %v16752_v40, %v8594_v2  ;;  %v8526_v47 = vmul.f32 %v11864_v34, %v16811_v18  ;;  %v17087_v40 = vld [vmem:[%s17244_s3] ss:$0 sm:$0xff] }
 0x72d   : > { %8727 = vst [vmem:[%s16778_s11 + $0x120] sm:$0xff] %v8663_v61  ;;  %v8595_v46 = vmul.f32 %v17079_v28, %v8525_v7  ;;  %v8403_v51 = vadd.f32 1e-05, %v8339_v36 }
 0x72e   : > { %v11866_v20 = vpop.eup %11865  ;;  %8728 = vst [vmem:[%s16778_s11 + $0x128] sm:$0xff] %v8664_v57  ;;  %v8596_v14 = vmul.f32 %v17079_v28, %v8526_v47 }
 0x72f   : > { %v11868_v43 = vpop.eup %11867  ;;  %v8665_v18 = vadd.f32 %v17087_v40, %v8595_v46  ;;  %v8527_v22 = vmul.f32 %v11866_v20, %v16817_v39  ;;  %11873 = vrsqrt.f32 %v8403_v51  ;;  %v17847_v51 = vld [vmem:[#allocation55_spill] sm:$0xff] }
 0x730   : > { %v8666_v31 = vadd.f32 %v17087_v40, %v8596_v14  ;;  %v8528_v48 = vmul.f32 %v11868_v43, %v16823_v62  ;;  %v8258_v33 = vpop.xlane.xlu0 %8257 }
 0x731   : > { %8729 = vst [vmem:[%s16778_s11 + $0x130] sm:$0xff] %v8665_v18  ;;  %v8597_v23 = vmul.f32 %v17079_v28, %v8527_v22  ;;  %v8340_v3 = vmul.f32 0.0078125, %v8258_v33 }
 0x732   : > { %v11870_v0 = vpop.eup %11869  ;;  %8730 = vst [vmem:[%s16778_s11 + $0x138] sm:$0xff] %v8666_v31  ;;  %v8598_v53 = vmul.f32 %v17079_v28, %v8528_v48 }
 0x733   : > { %v11872_v4 = vpop.eup %11871  ;;  %v8667_v39 = vadd.f32 %v17087_v40, %v8597_v23  ;;  %v8529_v35 = vmul.f32 %v11870_v0, %v16828_v25  ;;  %v8404_v30 = vadd.f32 1e-05, %v8340_v3 }
 0x734   : > { %v8668_v62 = vadd.f32 %v17087_v40, %v8598_v53  ;;  %v8530_v17 = vmul.f32 %v11872_v4, %v17845_v49 }
 0x735   : > { %8731 = vst [vmem:[%s16778_s11 + $0x140] sm:$0xff] %v8667_v39  ;;  %v8599_v19 = vmul.f32 %v17079_v28, %v8529_v35  ;;  %11875 = vrsqrt.f32 %v8404_v30 }
 0x736   : > { %8732 = vst [vmem:[%s16778_s11 + $0x148] sm:$0xff] %v8668_v62  ;;  %v8600_v38 = vmul.f32 %v17079_v28, %v8530_v17 }
 0x737   : > { %v8669_v29 = vadd.f32 %v17087_v40, %v8599_v19 }
 0x738   : > { %v8670_v5 = vadd.f32 %v17087_v40, %v8600_v38 }
 0x739   : > { %8733 = vst [vmem:[%s16778_s11 + $0x150] sm:$0xff] %v8669_v29  ;;  %v11874_v25 = vpop.eup %11873 }
 0x73a   : > { %8734 = vst [vmem:[%s16778_s11 + $0x158] sm:$0xff] %v8670_v5  ;;  %v8531_v11 = vmul.f32 %v11874_v25, %v17846_v15 }
 0x73c   : > { %v8601_v13 = vmul.f32 %v17079_v28, %v8531_v11 }
 0x73e   : > { %v8671_v37 = vadd.f32 %v17087_v40, %v8601_v13  ;;  %v8260_v8 = vpop.xlane.xlu1 %8259 }
 0x73f   : > { %v11876_v6 = vpop.eup %11875  ;;  %v8341_v63 = vmul.f32 0.0078125, %v8260_v8  ;;  %v17848_v8 = vld [vmem:[#allocation81_spill] sm:$0xff] }
 0x740   : > { %8735 = vst [vmem:[%s16778_s11 + $0x160] sm:$0xff] %v8671_v37  ;;  %v8532_v9 = vmul.f32 %v11876_v6, %v16855_v50 }
 0x741   : > { %v8405_v59 = vadd.f32 1e-05, %v8341_v63  ;;  %v8262_v32 = vpop.xlane.xlu0 %8261 }
 0x742   : > { %v8602_v44 = vmul.f32 %v17079_v28, %v8532_v9  ;;  %v8342_v2 = vmul.f32 0.0078125, %v8262_v32 }
 0x743   : > { %11877 = vrsqrt.f32 %v8405_v59 }
 0x744   : > { %v8672_v34 = vadd.f32 %v17087_v40, %v8602_v44  ;;  %v8406_v61 = vadd.f32 1e-05, %v8342_v2 }
 0x746   : > { %8736 = vst [vmem:[%s16778_s11 + $0x168] sm:$0xff] %v8672_v34  ;;  %11879 = vrsqrt.f32 %v8406_v61 }
 0x74d   : > { %v8264_v7 = vpop.xlane.xlu1 %8263  ;;  %v11878_v57 = vpop.eup %11877 }
 0x74e   : > { %v8343_v47 = vmul.f32 0.0078125, %v8264_v7  ;;  %v8533_v46 = vmul.f32 %v11878_v57, %v16868_v27 }
 0x750   : > { %v8407_v1 = vadd.f32 1e-05, %v8343_v47  ;;  %v11880_v50 = vpop.eup %11879  ;;  %v8603_v20 = vmul.f32 %v17079_v28, %v8533_v46 }
 0x751   : > { %v8266_v14 = vpop.xlane.xlu0 %8265  ;;  %v8534_v36 = vmul.f32 %v11880_v50, %v16876_v10 }
 0x752   : > { %11881 = vrsqrt.f32 %v8407_v1  ;;  %v8344_v43 = vmul.f32 0.0078125, %v8266_v14  ;;  %v8673_v18 = vadd.f32 %v17087_v40, %v8603_v20 }
 0x753   : > { %v8604_v22 = vmul.f32 %v17079_v28, %v8534_v36 }
 0x754   : > { %v8408_v31 = vadd.f32 1e-05, %v8344_v43  ;;  %8737 = vst [vmem:[%s16778_s11 + $0x170] sm:$0xff] %v8673_v18 }
 0x755   : > { %v8674_v48 = vadd.f32 %v17087_v40, %v8604_v22 }
 0x756   : > { %11883 = vrsqrt.f32 %v8408_v31 }
 0x757   : > { %8738 = vst [vmem:[%s16778_s11 + $0x178] sm:$0xff] %v8674_v48 }
 0x75c   : > { %v11882_v27 = vpop.eup %11881 }
 0x75d   : > { %v8535_v23 = vmul.f32 %v11882_v27, %v17847_v51 }
 0x75f   : > { %v8268_v0 = vpop.xlane.xlu1 %8267  ;;  %v8605_v10 = vmul.f32 %v17079_v28, %v8535_v23 }
 0x760   : > { %v8345_v53 = vmul.f32 0.0078125, %v8268_v0  ;;  %v8270_v4 = vpop.xlane.xlu0 %8269  ;;  %v11884_v39 = vpop.eup %11883 }
 0x761   : > { %v8346_v35 = vmul.f32 0.0078125, %v8270_v4  ;;  %v8675_v33 = vadd.f32 %v17087_v40, %v8605_v10  ;;  %v8536_v62 = vmul.f32 %v11884_v39, %v16890_v56 }
 0x762   : > { %v8409_v49 = vadd.f32 1e-05, %v8345_v53 }
 0x763   : > { %v8410_v17 = vadd.f32 1e-05, %v8346_v35  ;;  %8739 = vst [vmem:[%s16778_s11 + $0x180] sm:$0xff] %v8675_v33  ;;  %v8606_v3 = vmul.f32 %v17079_v28, %v8536_v62 }
 0x764   : > { %11885 = vrsqrt.f32 %v8409_v49 }
 0x765   : > { %11887 = vrsqrt.f32 %v8410_v17  ;;  %v8676_v19 = vadd.f32 %v17087_v40, %v8606_v3 }
 0x767   : > { %v8272_v38 = vpop.xlane.xlu1 %8271  ;;  %8740 = vst [vmem:[%s16778_s11 + $0x188] sm:$0xff] %v8676_v19 }
 0x768   : > { %v8347_v30 = vmul.f32 0.0078125, %v8272_v38  ;;  %v8274_v29 = vpop.xlane.xlu0 %8273 }
 0x769   : > { %v8348_v5 = vmul.f32 0.0078125, %v8274_v29 }
 0x76a   : > { %v8411_v25 = vadd.f32 1e-05, %v8347_v30 }
 0x76b   : > { %v8412_v15 = vadd.f32 1e-05, %v8348_v5 }
 0x76c   : > { %11889 = vrsqrt.f32 %v8411_v25 }
 0x76d   : > { %11891 = vrsqrt.f32 %v8412_v15 }
 0x76e   : > { %v11886_v56 = vpop.eup %11885 }
 0x76f   : > { %v11888_v11 = vpop.eup %11887  ;;  %v8537_v13 = vmul.f32 %v11886_v56, %v16903_v42  ;;  %v8276_v37 = vpop.xlane.xlu1 %8275 }
 0x770   : > { %v8538_v6 = vmul.f32 %v11888_v11, %v17848_v8  ;;  %v8349_v63 = vmul.f32 0.0078125, %v8276_v37  ;;  %v8278_v9 = vpop.xlane.xlu0 %8277 }
 0x771   : > { %v8607_v59 = vmul.f32 %v17079_v28, %v8537_v13  ;;  %v8350_v32 = vmul.f32 0.0078125, %v8278_v9 }
 0x772   : > { %v8608_v44 = vmul.f32 %v17079_v28, %v8538_v6  ;;  %v8413_v2 = vadd.f32 1e-05, %v8349_v63 }
 0x773   : > { %v8677_v34 = vadd.f32 %v17087_v40, %v8607_v59  ;;  %v8414_v61 = vadd.f32 1e-05, %v8350_v32 }
 0x774   : > { %v8678_v7 = vadd.f32 %v17087_v40, %v8608_v44  ;;  %11893 = vrsqrt.f32 %v8413_v2 }
 0x775   : > { %8741 = vst [vmem:[%s16778_s11 + $0x190] sm:$0xff] %v8677_v34  ;;  %11895 = vrsqrt.f32 %v8414_v61 }
 0x776   : > { %v11890_v42 = vpop.eup %11889  ;;  %8742 = vst [vmem:[%s16778_s11 + $0x198] sm:$0xff] %v8678_v7 }
 0x777   : > { %v11892_v57 = vpop.eup %11891  ;;  %v8539_v47 = vmul.f32 %v11890_v42, %v16919_v45  ;;  %v8280_v46 = vpop.xlane.xlu1 %8279 }
 0x778   : > { %v8540_v1 = vmul.f32 %v11892_v57, %v16922_v16  ;;  %v8351_v50 = vmul.f32 0.0078125, %v8280_v46 }
 0x779   : > { %v8282_v20 = vpop.xlane.xlu0 %8281  ;;  %v8609_v14 = vmul.f32 %v17079_v28, %v8539_v47 }
 0x77a   : > { %v8352_v36 = vmul.f32 0.0078125, %v8282_v20  ;;  %v8610_v43 = vmul.f32 %v17079_v28, %v8540_v1  ;;  %v8415_v18 = vadd.f32 1e-05, %v8351_v50 }
 0x77b   : > { %v8679_v22 = vadd.f32 %v17087_v40, %v8609_v14 }
 0x77c   : > { %v8416_v31 = vadd.f32 1e-05, %v8352_v36  ;;  %v8680_v48 = vadd.f32 %v17087_v40, %v8610_v43  ;;  %11897 = vrsqrt.f32 %v8415_v18 }
 0x77d   : > { %8743 = vst [vmem:[%s16778_s11 + $0x1a0] sm:$0xff] %v8679_v22 }
 0x77e   : > { %11899 = vrsqrt.f32 %v8416_v31  ;;  %v11894_v45 = vpop.eup %11893  ;;  %8744 = vst [vmem:[%s16778_s11 + $0x1a8] sm:$0xff] %v8680_v48 }
 0x77f   : > { %v11896_v16 = vpop.eup %11895  ;;  %v8541_v27 = vmul.f32 %v11894_v45, %v16930_v21 }
 0x780   : > { %v8284_v51 = vpop.xlane.xlu1 %8283  ;;  %v8542_v23 = vmul.f32 %v11896_v16, %v16934_v54 }
 0x781   : > { %v8353_v0 = vmul.f32 0.0078125, %v8284_v51  ;;  %v8611_v10 = vmul.f32 %v17079_v28, %v8541_v27 }
 0x782   : > { %v8612_v53 = vmul.f32 %v17079_v28, %v8542_v23 }
 0x783   : > { %v8417_v4 = vadd.f32 1e-05, %v8353_v0  ;;  %v8681_v39 = vadd.f32 %v17087_v40, %v8611_v10 }
 0x784   : > { %v8682_v35 = vadd.f32 %v17087_v40, %v8612_v53  ;;  %v8286_v33 = vpop.xlane.xlu0 %8285 }
 0x785   : > { %11901 = vrsqrt.f32 %v8417_v4  ;;  %8745 = vst [vmem:[%s16778_s11 + $0x1b0] sm:$0xff] %v8681_v39  ;;  %v8354_v62 = vmul.f32 0.0078125, %v8286_v33 }
 0x786   : > { %v11898_v49 = vpop.eup %11897  ;;  %8746 = vst [vmem:[%s16778_s11 + $0x1b8] sm:$0xff] %v8682_v35 }
 0x787   : > { %v8543_v54 = vmul.f32 %v11898_v49, %v16948_v12  ;;  %v8418_v17 = vadd.f32 1e-05, %v8354_v62 }
 0x788   : > { %v11900_v21 = vpop.eup %11899  ;;  %v8288_v3 = vpop.xlane.xlu1 %8287 }
 0x789   : > { %v8544_v19 = vmul.f32 %v11900_v21, %v16952_v24  ;;  %v8355_v38 = vmul.f32 0.0078125, %v8288_v3  ;;  %v8613_v30 = vmul.f32 %v17079_v28, %v8543_v54  ;;  %11903 = vrsqrt.f32 %v8418_v17 }
 0x78b   : > { %v8614_v29 = vmul.f32 %v17079_v28, %v8544_v19  ;;  %v8419_v5 = vadd.f32 1e-05, %v8355_v38  ;;  %v8683_v25 = vadd.f32 %v17087_v40, %v8613_v30 }
 0x78c   : > { %v8290_v15 = vpop.xlane.xlu0 %8289 }
 0x78d   : > { %v8684_v56 = vadd.f32 %v17087_v40, %v8614_v29  ;;  %11905 = vrsqrt.f32 %v8419_v5  ;;  %v8356_v11 = vmul.f32 0.0078125, %v8290_v15  ;;  %8747 = vst [vmem:[%s16778_s11 + $0x1c0] sm:$0xff] %v8683_v25 }
 0x78f   : > { %v11902_v12 = vpop.eup %11901  ;;  %8748 = vst [vmem:[%s16778_s11 + $0x1c8] sm:$0xff] %v8684_v56  ;;  %v8420_v13 = vadd.f32 1e-05, %v8356_v11  ;;  %v8292_v24 = vpop.xlane.xlu1 %8291 }
 0x790   : > { %v8545_v37 = vmul.f32 %v11902_v12, %v16966_v41  ;;  %v8357_v8 = vmul.f32 0.0078125, %v8292_v24  ;;  %v8294_v6 = vpop.xlane.xlu0 %8293 }
 0x791   : > { %11907 = vrsqrt.f32 %v8420_v13  ;;  %v8358_v63 = vmul.f32 0.0078125, %v8294_v6 }
 0x792   : > { %v8615_v9 = vmul.f32 %v17079_v28, %v8545_v37  ;;  %v8421_v59 = vadd.f32 1e-05, %v8357_v8 }
 0x793   : > { %v8422_v32 = vadd.f32 1e-05, %v8358_v63  ;;  %v11904_v44 = vpop.eup %11903 }
 0x794   : > { %v8685_v2 = vadd.f32 %v17087_v40, %v8615_v9  ;;  %11909 = vrsqrt.f32 %v8421_v59  ;;  %v8546_v34 = vmul.f32 %v11904_v44, %v16975_v26 }
 0x795   : > { %11911 = vrsqrt.f32 %v8422_v32 }
 0x796   : > { %8749 = vst [vmem:[%s16778_s11 + $0x1d0] sm:$0xff] %v8685_v2  ;;  %v8616_v41 = vmul.f32 %v17079_v28, %v8546_v34 }
 0x797   : > { %v11906_v61 = vpop.eup %11905 }
 0x798   : > { %v8547_v7 = vmul.f32 %v11906_v61, %v16984_v58  ;;  %v8686_v42 = vadd.f32 %v17087_v40, %v8616_v41 }
 0x79a   : > { %v8617_v57 = vmul.f32 %v17079_v28, %v8547_v7  ;;  %8750 = vst [vmem:[%s16778_s11 + $0x1d8] sm:$0xff] %v8686_v42 }
 0x79b   : > { %v11908_v47 = vpop.eup %11907 }
 0x79c   : > { %v8687_v46 = vadd.f32 %v17087_v40, %v8617_v57  ;;  %v8548_v26 = vmul.f32 %v11908_v47, %v16993_v55 }
 0x79e   : > { %v11910_v1 = vpop.eup %11909  ;;  %8751 = vst [vmem:[%s16778_s11 + $0x1e0] sm:$0xff] %v8687_v46  ;;  %v8618_v50 = vmul.f32 %v17079_v28, %v8548_v26 }
 0x79f   : > { %v11912_v20 = vpop.eup %11911  ;;  %v8549_v58 = vmul.f32 %v11910_v1, %v17001_v60 }
 0x7a0   : > { %v8688_v14 = vadd.f32 %v17087_v40, %v8618_v50  ;;  %v8550_v36 = vmul.f32 %v11912_v20, %v17005_v52 }
 0x7a1   : > { %v8619_v43 = vmul.f32 %v17079_v28, %v8549_v58 }
 0x7a2   : > { %8752 = vst [vmem:[%s16778_s11 + $0x1e8] sm:$0xff] %v8688_v14  ;;  %v8620_v55 = vmul.f32 %v17079_v28, %v8550_v36 }
 0x7a3   : > { %v8689_v18 = vadd.f32 %v17087_v40, %v8619_v43 }
 0x7a4   : > { %v8690_v60 = vadd.f32 %v17087_v40, %v8620_v55 }
 0x7a5   : > { %8753 = vst [vmem:[%s16778_s11 + $0x1f0] sm:$0xff] %v8689_v18 }
 0x7a6   : > { %8754 = vst [vmem:[%s16778_s11 + $0x1f8] sm:$0xff] %v8690_v60 }
 0x7a7   : > { %11928 = shalt.err (!%p11925_p3)
}
 0x7a8   : > { %s11929_s16 = scalar_lea.hbm %s17191_s26, 8192  ;;  %s11933_s12 = scalar_lea.hbm %s17247_s6, 16384 }
 0x7a9   : > { %p11930_p4 = scmp.ne.s32.totalorder %s17191_s26, %s11929_s16  ;;  %p11934_p9 = scmp.lt.u32.totalorder %s17191_s26, %s17247_s6 }
 0x7aa   : > { %p11935_p10 = scmp.lt.u32.totalorder %s11933_s12, %s11929_s16  ;;  %p11937_p12 = scmp.lt.u32.totalorder %s11929_s16, %s17191_s26 }
 0x7ab   : > { %p11931_p7 = pnand %p11930_p4, %p12057_p5 }
 0x7ac   : > { %p11936_p11 = por %p11935_p10, %p11934_p9 }
 0x7ad   : > { %p11932_p8 = pneg %p11931_p7 }
 0x7ae   : > { %p11938_p13 = por %p11937_p12, %p11936_p11 }
 0x7b0   : > { %p11939_p0 = pnand %p11938_p13, %p11932_p8 }
 0x7b2   : > { %11942 = shalt.err (!%p11939_p0)
}
 0x7b3   : > { %s11982_s15 = smov 128   ;;  %s11983_s18 = smov 8  }
 0x7b4   : > { %11356 = dma.vmem_to_hbm [thread:$0]  (%p12057_p5), %s17193_s17, 8192, %s17191_s26, %s17200_s25, %s11982_s15, %s11982_s15, %s11983_s18  }
 0x7b5 PF: > { %p11362_p1 = scmp.ge.s32.totalorder %s11977_s24, 2  ;;  %s8784_s9 = sand.u32 1, %s11965_s21  }
 0x7b6   : > { %s8785_s20 = scalar_lea.sflag [#allocation3], %s8784_s9 }
 0x7b7   : > { %p11359_p2 = pnand %p11362_p1, %p12061_p6 }
 0x7b9   : > { %11960 = dma.done.wait (!%p11359_p2), %s8785_s20, 8192  }
 0x7ba   : > { %11962 = vsyncadd (!%p11359_p2), %s8785_s20, 4294959104  ;;  %p16_p3 = scmp.ge.s32.totalorder %s12044_s27, 4   ;;  %s17849_s21 = smov %s11969_s22 }
 0x7bb   : > { %s17850_s22 = smov %s11973_s23  ;;  %s17851_s23 = smov %s12055_s30 }
 0x7bc   : > { %s17852_s24 = smov %s12044_s27  ;;  %18 = sbr.rel (!%p16_p3) target bundleno = 3 (0x3), region = 82 }
 0x7c3   :  { %8790 = vsyncpa [#allocation3], 1 }
 0x7c4   :  { %8792 = vsyncpa [#allocation3 + $0x1], 1 }

</bundles_post_ra>
